<compile_context>
chip_gen: v7x
topology: tpu7x:2x2x1
jax: 0.10.0
libtpu: 0.0.40
codegen_flags: <defaults>
</compile_context>

<pallas_src>
import functools

import numpy as np
import jax
import jax.numpy as jnp
from jax.experimental import pallas as pl
from jax.experimental.pallas import tpu as pltpu

VOCAB_SIZE = 264


def _round_up(x, m):
    return (x + m - 1) // m * m


# ----------------------------------------------------------------------------
# Fused image encoder: 3 x (conv3x3 valid + bias + ReLU + maxpool2x2) + 4x4 select
# ----------------------------------------------------------------------------
def _imgenc_kernel(x_ref, w_ref, b_ref, s_ref, o_ref, xcat_ref, *, W0):
    # x_ref : (1, 1, CP, n)  one frame, channels padded to CP, n = H0*W0 (lane axis)
    # w_ref : (1, 3, CP, 9*CP) per-layer flat conv weights (tap-major columns)
    # b_ref : (1, 3, CP, 1)    per-layer biases
    # s_ref : (n, 16)          constant selection of the 16 final 4x4 positions
    # o_ref : (1, 1, CP, 16)   compact per-frame features (torch (C,4,4) flatten order)
    n = x_ref.shape[-1]
    CP = x_ref.shape[-2]
    cur = x_ref[0, 0]                                          # (CP, n) f32
    for layer in range(3):
        stride = 1 << layer                                    # layer spacing on the 46x46 grid
        # Stack the 9 rolled taps into a (9*CP, n) scratch -> single K=9*CP contraction.
        for k in range(9):
            off = stride * ((k // 3) * W0 + (k % 3))
            rolled = cur if off == 0 else pltpu.roll(cur, shift=n - off, axis=1)
            xcat_ref[k * CP:(k + 1) * CP, :] = rolled
        y = jnp.dot(w_ref[0, layer], xcat_ref[...],
                    preferred_element_type=jnp.float32) + b_ref[0, layer]
        y = jnp.maximum(y, 0.0)                                # bias + ReLU (f32 epilogue)
        # 2x2 max-pool, result written at the window's top-left lane.
        y = jnp.maximum(y, pltpu.roll(y, shift=n - stride, axis=1))
        y = jnp.maximum(y, pltpu.roll(y, shift=n - stride * W0, axis=1))
        cur = y
    o_ref[0, 0] = jnp.dot(cur, s_ref[...], preferred_element_type=jnp.float32)


def _make_select(H0, W0):
    # Final valid 4x4 outputs live at stride 8 on the original lane grid.
    h, w = H0, W0
    for _ in range(3):
        h, w = (h - 2) // 2, (w - 2) // 2
    assert h == 4 and w == 4, (h, w)
    s = np.zeros((H0 * W0, 16), np.float32)
    for i in range(4):
        for j in range(4):
            s[(8 * i) * W0 + (8 * j), i * 4 + j] = 1.0
    return jnp.asarray(s)


def img_encode_all(params, traj_r, traj_l, traj_c):
    """Runs the three ImgEnc conv towers in one pallas_call; returns (T, B, 3*CP*16) f32."""
    B, T, Cin, H0, W0 = traj_r.shape
    # Roll-based conv/pool wraparound safety was verified for this exact geometry
    # (46 -> 44 -> 22 -> 20 -> 10 -> 8 -> 4, matching Linear(4*4*C, ...)).
    assert (H0, W0) == (46, 46), "fused conv kernel assumes 46x46 inputs"
    F = B * T
    n = H0 * W0
    CP = params["conv_w"].shape[2]
    assert Cin <= CP

    x = jnp.stack([traj_r, traj_l, traj_c], axis=0).reshape(3, F, Cin, n)
    x = jnp.pad(x, ((0, 0), (0, 0), (0, CP - Cin), (0, 0))).astype(jnp.float32)
    sel = _make_select(H0, W0)

    feats = pl.pallas_call(
        functools.partial(_imgenc_kernel, W0=W0),
        out_shape=jax.ShapeDtypeStruct((3, F, CP, 16), jnp.float32),
        grid_spec=pltpu.PrefetchScalarGridSpec(
            num_scalar_prefetch=0,
            grid=(3, F),
            in_specs=[
                pl.BlockSpec((1, 1, CP, n), lambda e, f: (e, f, 0, 0)),
                pl.BlockSpec((1, 3, CP, 9 * CP), lambda e, f: (e, 0, 0, 0)),
                pl.BlockSpec((1, 3, CP, 1), lambda e, f: (e, 0, 0, 0)),
                pl.BlockSpec((n, 16), lambda e, f: (0, 0)),
            ],
            out_specs=pl.BlockSpec((1, 1, CP, 16), lambda e, f: (e, f, 0, 0)),
            scratch_shapes=[pltpu.VMEM((9 * CP, n), jnp.float32)],
        ),
        compiler_params=pltpu.CompilerParams(
            dimension_semantics=("parallel", "parallel")),
    )(x, params["conv_w"], params["conv_b"], sel)

    feats = feats.reshape(3, B, T, CP * 16)                     # torch (C,4,4) flatten order
    feats = jnp.transpose(feats, (2, 1, 0, 3)).reshape(T, B, 3 * CP * 16)   # [r | l | c]
    return feats


# ----------------------------------------------------------------------------
# Fully fused multi-layer LSTM (single pallas_call per LSTM)
# ----------------------------------------------------------------------------
def _lstm_fused_kernel(x_ref, len_ref, *rest, num_layers):
    # rest = [wih_0, whh_0, b_0, ..., wih_{L-1}, whh_{L-1}, b_{L-1}, hfin_ref]
    w_refs = rest[:3 * num_layers]
    hfin_ref = rest[3 * num_layers]
    T, B = x_ref.shape[0], x_ref.shape[1]
    H = hfin_ref.shape[-1]
    lens = len_ref[...]                                         # (B, 1) int32

    xs = [x_ref[t] for t in range(T)]                           # layer inputs per timestep
    h = jnp.zeros((B, H), jnp.float32)
    for layer in range(num_layers):
        wih = w_refs[3 * layer][...]
        whh = w_refs[3 * layer + 1][...]
        b = w_refs[3 * layer + 2][...]
        h = jnp.zeros((B, H), jnp.float32)
        c = jnp.zeros((B, H), jnp.float32)
        outs = []
        for t in range(T):                                      # T is small & static -> unrolled
            g = (jnp.dot(xs[t], wih, preferred_element_type=jnp.float32)
                 + jnp.dot(h, whh, preferred_element_type=jnp.float32) + b)
            i_g = jax.nn.sigmoid(g[:, 0 * H:1 * H])
            f_g = jax.nn.sigmoid(g[:, 1 * H:2 * H])
            g_g = jnp.tanh(g[:, 2 * H:3 * H])
            o_g = jax.nn.sigmoid(g[:, 3 * H:4 * H])
            c_new = f_g * c + i_g * g_g
            h_new = o_g * jnp.tanh(c_new)
            # pack_padded_sequence semantics: state only advances while t < length,
            # so after the loop h holds h_{length[b]} (zero-length rows stay zero).
            active = lens > t
            h = jnp.where(active, h_new, h)
            c = jnp.where(active, c_new, c)
            outs.append(h)
        xs = outs
    hfin_ref[...] = h


def _full_spec(a):
    return pl.BlockSpec(a.shape, lambda *_, nd=a.ndim: (0,) * nd)


def lstm_encode(x_tbi, lengths, layers):
    """Equivalent of lstm_helper(...)[1]: last-layer hidden at each sequence's length."""
    T, B, _ = x_tbi.shape
    H = layers[0][1].shape[0]
    num_layers = len(layers)
    flat = []
    for (wih, whh, b) in layers:
        flat += [wih, whh, b.reshape(1, -1)]
    lens = lengths.astype(jnp.int32).reshape(B, 1)
    x_tbi = x_tbi.astype(jnp.float32)
    return pl.pallas_call(
        functools.partial(_lstm_fused_kernel, num_layers=num_layers),
        out_shape=jax.ShapeDtypeStruct((B, H), jnp.float32),
        grid_spec=pltpu.PrefetchScalarGridSpec(
            num_scalar_prefetch=0,
            grid=(1,),
            in_specs=[_full_spec(x_tbi), _full_spec(lens)] + [_full_spec(a) for a in flat],
            out_specs=pl.BlockSpec((B, H), lambda *_: (0, 0))),
        compiler_params=pltpu.CompilerParams(dimension_semantics=("arbitrary",)),
    )(x_tbi, lens, *flat)
    # TODO(synk): the batch-size-1 fast path of lstm_helper (ignores lengths) is not replicated.


# ----------------------------------------------------------------------------
# Fused classifier: relu([traj|lang] @ W1 + b1) @ W2 + b2
# ----------------------------------------------------------------------------
def _classifier_kernel(th_ref, lh_ref, w1a_ref, w1b_ref, b1_ref, w2_ref, b2_ref, o_ref):
    h = (jnp.dot(th_ref[...], w1a_ref[...], preferred_element_type=jnp.float32)
         + jnp.dot(lh_ref[...], w1b_ref[...], preferred_element_type=jnp.float32)
         + b1_ref[...])
    h = jnp.maximum(h, 0.0)
    o_ref[...] = jnp.dot(h, w2_ref[...], preferred_element_type=jnp.float32) + b2_ref[...]


def classifier(traj_h, lang_h, cls):
    B = traj_h.shape[0]
    ins = (traj_h, lang_h, cls["w1a"], cls["w1b"], cls["b1"], cls["w2"], cls["b2"])
    return pl.pallas_call(
        _classifier_kernel,
        out_shape=jax.ShapeDtypeStruct((B, 1), jnp.float32),
        grid_spec=pltpu.PrefetchScalarGridSpec(
            num_scalar_prefetch=0,
            grid=(1,),
            in_specs=[_full_spec(a) for a in ins],
            out_specs=pl.BlockSpec((B, 1), lambda *_: (0, 0))),
        compiler_params=pltpu.CompilerParams(dimension_semantics=("arbitrary",)),
    )(*ins)


# ----------------------------------------------------------------------------
# Parameter init (PyTorch-style bounds, stored in kernel-friendly / pre-folded layouts)
# ----------------------------------------------------------------------------
def _uniform(key, shape, bound):
    return jax.random.uniform(key, shape, jnp.float32, -bound, bound)


def init_conv(key, cout, cin, k=3):
    k1, k2 = jax.random.split(key)
    bound = 1.0 / np.sqrt(cin * k * k)
    return _uniform(k1, (cout, cin, k, k), bound), _uniform(k2, (cout,), bound)


def init_linear(key, out_f, in_f):
    k1, k2 = jax.random.split(key)
    bound = 1.0 / np.sqrt(in_f)
    return _uniform(k1, (out_f, in_f), bound), _uniform(k2, (out_f,), bound)


def init_lstm(key, in_f, hid, num_layers):
    layers = []
    for layer in range(num_layers):
        key, k1, k2, k3, k4 = jax.random.split(key, 5)
        d = in_f if layer == 0 else hid
        bound = 1.0 / np.sqrt(hid)
        wih = _uniform(k1, (4 * hid, d), bound)                 # PyTorch weight_ih_l{n}
        whh = _uniform(k2, (4 * hid, hid), bound)               # PyTorch weight_hh_l{n}
        bih = _uniform(k3, (4 * hid,), bound)
        bhh = _uniform(k4, (4 * hid,), bound)
        layers.append((wih.T, whh.T, bih + bhh))                # (In,4H), (H,4H), (4H,)
    return layers


def _flat_conv_weight(w, cp):
    # (Cout, Cin, 3, 3) -> (CP, 9*CP), column index = tap*CP + cin (padded entries zero).
    cout, cin = w.shape[0], w.shape[1]
    wt = jnp.transpose(w, (2, 3, 0, 1)).reshape(9, cout, cin)
    wt = jnp.pad(wt, ((0, 0), (0, cp - cout), (0, cp - cin)))
    return jnp.transpose(wt, (1, 0, 2)).reshape(cp, 9 * cp)


def init_imgenc_tower(key, n_channels, img_enc_size, cp):
    ks = jax.random.split(key, 5)
    cins = [3, n_channels, n_channels]
    conv_w, conv_b = [], []
    for li in range(3):
        w, b = init_conv(ks[li], n_channels, cins[li])
        conv_w.append(_flat_conv_weight(w, cp))
        conv_b.append(jnp.pad(b, (0, cp - n_channels)).reshape(cp, 1))
    w1, b1 = init_linear(ks[3], img_enc_size, 4 * 4 * n_channels)
    w2, b2 = init_linear(ks[4], img_enc_size, img_enc_size)
    # No nonlinearity between the two Linears -> fold into one (flat -> enc) matmul.
    w_img = w1.T @ w2.T                                         # (16*n_channels, enc)
    b_img = b1 @ w2.T + b2                                      # (enc,)
    w_img = jnp.pad(w_img, ((0, (cp - n_channels) * 16), (0, 0)))
    return jnp.stack(conv_w), jnp.stack(conv_b), w_img, b_img


def init_model(key, args):
    ks = jax.random.split(key, 8)
    n_ch = args["n_channels"]
    enc = args["img_enc_size"]
    lenc = args["lang_enc_size"]
    cp = _round_up(max(n_ch, 3), 8)

    conv_w, conv_b, w_img, b_img = [], [], [], []
    for tk in jax.random.split(ks[0], 3):                       # towers r, l, c
        cw, cb, wi, bi = init_imgenc_tower(tk, n_ch, enc, cp)
        conv_w.append(cw); conv_b.append(cb); w_img.append(wi); b_img.append(bi)
    conv_w = jnp.stack(conv_w)                                  # (3, 3, CP, 9*CP)
    conv_b = jnp.stack(conv_b)                                  # (3, 3, CP, 1)

    traj_lstm = init_lstm(ks[1], 3 * enc, enc, args["num_layers"])
    # Fold the three ImgEnc FC heads block-diagonally into the traj-LSTM layer-0 W_ih.
    wih0, whh0, b0 = traj_lstm[0]
    D = cp * 16
    bd = jnp.zeros((3 * D, 3 * enc), jnp.float32)
    bcat = jnp.zeros((3 * enc,), jnp.float32)
    for e in range(3):
        bd = bd.at[e * D:(e + 1) * D, e * enc:(e + 1) * enc].set(w_img[e])
        bcat = bcat.at[e * enc:(e + 1) * enc].set(b_img[e])
    traj_lstm[0] = (bd @ wih0, whh0, bcat @ wih0 + b0)

    descr_lstm = init_lstm(ks[2], lenc, lenc, args["num_layers"])
    embedding = jax.random.normal(ks[3], (VOCAB_SIZE, lenc), jnp.float32)

    w1, b1 = init_linear(ks[4], args["classifier_size"], enc + lenc)
    w2, b2 = init_linear(ks[5], 1, args["classifier_size"])
    cls = dict(w1a=w1.T[:enc], w1b=w1.T[enc:], b1=b1.reshape(1, -1),
               w2=w2.T, b2=b2.reshape(1, 1))

    return dict(conv_w=conv_w, conv_b=conv_b,
                traj_lstm=traj_lstm, descr_lstm=descr_lstm,
                embedding=embedding, cls=cls)


# ----------------------------------------------------------------------------
# Model forward
# ----------------------------------------------------------------------------
def model_forward(params, traj_r, traj_l, traj_c, lang, traj_len, lang_len):
    traj_x = img_encode_all(params, traj_r, traj_l, traj_c)      # (T, B, 3*CP*16)
    traj_h = lstm_encode(traj_x, traj_len, params["traj_lstm"])  # (B, img_enc_size)

    # TODO(synk): embedding lookup stays an XLA gather (jnp.take); no clean Pallas win here.
    lang_emb = jnp.take(params["embedding"], lang.astype(jnp.int32), axis=0)   # (B, L, E)
    lang_x = jnp.transpose(lang_emb, (1, 0, 2))                  # time-major
    lang_h = lstm_encode(lang_x, lang_len, params["descr_lstm"]) # (B, lang_enc_size)

    pred = classifier(traj_h, lang_h, params["cls"])             # (B, 1)
    return pred, lang_emb


# ----------------------------------------------------------------------------
if __name__ == "__main__":
    args = dict(n_channels=8, img_enc_size=32, lang_enc_size=32,
                classifier_size=64, num_layers=2)

    B, T, L = 2, 3, 6
    key = jax.random.PRNGKey(0)
    kp, k0, k1, k2, k3 = jax.random.split(key, 5)

    params = init_model(kp, args)

    # 46x46 inputs: 46 -> conv 44 -> pool 22 -> conv 20 -> pool 10 -> conv 8 -> pool 4,
    # matching Linear(4*4*n_channels, img_enc_size).
    traj_r = jax.random.normal(k0, (B, T, 3, 46, 46), jnp.float32)
    traj_l = jax.random.normal(k1, (B, T, 3, 46, 46), jnp.float32)
    traj_c = jax.random.normal(k2, (B, T, 3, 46, 46), jnp.float32)
    lang = jax.random.randint(k3, (B, L), 0, VOCAB_SIZE, dtype=jnp.int32)
    traj_len = jnp.array([3, 2], dtype=jnp.int32)
    lang_len = jnp.array([6, 4], dtype=jnp.int32)

    fwd = jax.jit(model_forward)
    pred, lang_emb = fwd(params, traj_r, traj_l, traj_c, lang, traj_len, lang_len)
    jax.block_until_ready((pred, lang_emb))

    assert pred.shape == (B, 1), pred.shape
    assert lang_emb.shape == (B, L, args["lang_enc_size"]), lang_emb.shape
    print("KERNEL_OK")
</pallas_src>

<mosaic_0001>
module attributes {stable_mosaic.version = 11 : i64} {
  func.func @_imgenc_kernel(%arg0: i32, %arg1: i32, %arg2: memref<1x1x8x2116xf32, #tpu.memory_space<vmem>>, %arg3: memref<1x3x8x72xf32, #tpu.memory_space<vmem>>, %arg4: memref<1x3x8x1xf32, #tpu.memory_space<vmem>>, %arg5: memref<2116x16xf32, #tpu.memory_space<vmem>>, %arg6: memref<1x1x8x16xf32, #tpu.memory_space<vmem>>, %arg7: memref<72x2116xf32, #tpu.memory_space<vmem>>) attributes {dimension_semantics = [#tpu.dimension_semantics<parallel>, #tpu.dimension_semantics<parallel>], iteration_bounds = array<i64: 3, 6>, scalar_prefetch = 0 : i64, scratch_operands = 1 : i64, tpu.core_type = #tpu.core_type<tc>, window_params = [{transform_indices = @transform_0, window_bounds = array<i64: 1, 1, 8, 2116>}, {transform_indices = @transform_1, window_bounds = array<i64: 1, 3, 8, 72>}, {transform_indices = @transform_2, window_bounds = array<i64: 1, 3, 8, 1>}, {pipeline_mode = #tpu.pipeline_mode<synchronous>, transform_indices = @transform_3, window_bounds = array<i64: 2116, 16>}, {transform_indices = @transform_4, window_bounds = array<i64: 1, 1, 8, 16>}]} {
    %c0 = arith.constant 0 : index
    %c0_0 = arith.constant 0 : index
    %c0_1 = arith.constant 0 : index
    %c0_2 = arith.constant 0 : index
    %0 = vector.load %arg2[%c0, %c0_0, %c0_1, %c0_2] : memref<1x1x8x2116xf32, #tpu.memory_space<vmem>>, vector<1x1x8x2116xf32>
    %1 = vector.shape_cast %0 : vector<1x1x8x2116xf32> to vector<8x2116xf32>
    %c0_3 = arith.constant 0 : index
    %c0_4 = arith.constant 0 : index
    %2 = vector.load %arg7[%c0_3, %c0_4] : memref<72x2116xf32, #tpu.memory_space<vmem>>, vector<8x2116xf32>
    tpu.vector_store %arg7[%c0_3, %c0_4], %1 {strides = array<i32>} : memref<72x2116xf32, #tpu.memory_space<vmem>>, vector<8x2116xf32>,
    %c2115_i32 = arith.constant 2115 : i32
    %3 = tpu.dynamic_rotate %1 by %c2115_i32 dim 1 : vector<8x2116xf32>, i32 -> vector<8x2116xf32>
    %c8 = arith.constant 8 : index
    %c0_5 = arith.constant 0 : index
    %4 = vector.load %arg7[%c8, %c0_5] : memref<72x2116xf32, #tpu.memory_space<vmem>>, vector<8x2116xf32>
    tpu.vector_store %arg7[%c8, %c0_5], %3 {strides = array<i32>} : memref<72x2116xf32, #tpu.memory_space<vmem>>, vector<8x2116xf32>,
    %c2114_i32 = arith.constant 2114 : i32
    %5 = tpu.dynamic_rotate %1 by %c2114_i32 dim 1 : vector<8x2116xf32>, i32 -> vector<8x2116xf32>
    %c16 = arith.constant 16 : index
    %c0_6 = arith.constant 0 : index
    %6 = vector.load %arg7[%c16, %c0_6] : memref<72x2116xf32, #tpu.memory_space<vmem>>, vector<8x2116xf32>
    tpu.vector_store %arg7[%c16, %c0_6], %5 {strides = array<i32>} : memref<72x2116xf32, #tpu.memory_space<vmem>>, vector<8x2116xf32>,
    %c2070_i32 = arith.constant 2070 : i32
    %7 = tpu.dynamic_rotate %1 by %c2070_i32 dim 1 : vector<8x2116xf32>, i32 -> vector<8x2116xf32>
    %c24 = arith.constant 24 : index
    %c0_7 = arith.constant 0 : index
    %8 = vector.load %arg7[%c24, %c0_7] : memref<72x2116xf32, #tpu.memory_space<vmem>>, vector<8x2116xf32>
    tpu.vector_store %arg7[%c24, %c0_7], %7 {strides = array<i32>} : memref<72x2116xf32, #tpu.memory_space<vmem>>, vector<8x2116xf32>,
    %c2069_i32 = arith.constant 2069 : i32
    %9 = tpu.dynamic_rotate %1 by %c2069_i32 dim 1 : vector<8x2116xf32>, i32 -> vector<8x2116xf32>
    %c32 = arith.constant 32 : index
    %c0_8 = arith.constant 0 : index
    %10 = vector.load %arg7[%c32, %c0_8] : memref<72x2116xf32, #tpu.memory_space<vmem>>, vector<8x2116xf32>
    tpu.vector_store %arg7[%c32, %c0_8], %9 {strides = array<i32>} : memref<72x2116xf32, #tpu.memory_space<vmem>>, vector<8x2116xf32>,
    %c2068_i32 = arith.constant 2068 : i32
    %11 = tpu.dynamic_rotate %1 by %c2068_i32 dim 1 : vector<8x2116xf32>, i32 -> vector<8x2116xf32>
    %c40 = arith.constant 40 : index
    %c0_9 = arith.constant 0 : index
    %12 = vector.load %arg7[%c40, %c0_9] : memref<72x2116xf32, #tpu.memory_space<vmem>>, vector<8x2116xf32>
    tpu.vector_store %arg7[%c40, %c0_9], %11 {strides = array<i32>} : memref<72x2116xf32, #tpu.memory_space<vmem>>, vector<8x2116xf32>,
    %c2024_i32 = arith.constant 2024 : i32
    %13 = tpu.dynamic_rotate %1 by %c2024_i32 dim 1 : vector<8x2116xf32>, i32 -> vector<8x2116xf32>
    %c48 = arith.constant 48 : index
    %c0_10 = arith.constant 0 : index
    %14 = vector.load %arg7[%c48, %c0_10] : memref<72x2116xf32, #tpu.memory_space<vmem>>, vector<8x2116xf32>
    tpu.vector_store %arg7[%c48, %c0_10], %13 {strides = array<i32>} : memref<72x2116xf32, #tpu.memory_space<vmem>>, vector<8x2116xf32>,
    %c2023_i32 = arith.constant 2023 : i32
    %15 = tpu.dynamic_rotate %1 by %c2023_i32 dim 1 : vector<8x2116xf32>, i32 -> vector<8x2116xf32>
    %c56 = arith.constant 56 : index
    %c0_11 = arith.constant 0 : index
    %16 = vector.load %arg7[%c56, %c0_11] : memref<72x2116xf32, #tpu.memory_space<vmem>>, vector<8x2116xf32>
    tpu.vector_store %arg7[%c56, %c0_11], %15 {strides = array<i32>} : memref<72x2116xf32, #tpu.memory_space<vmem>>, vector<8x2116xf32>,
    %c2022_i32 = arith.constant 2022 : i32
    %17 = tpu.dynamic_rotate %1 by %c2022_i32 dim 1 : vector<8x2116xf32>, i32 -> vector<8x2116xf32>
    %c64 = arith.constant 64 : index
    %c0_12 = arith.constant 0 : index
    %18 = vector.load %arg7[%c64, %c0_12] : memref<72x2116xf32, #tpu.memory_space<vmem>>, vector<8x2116xf32>
    tpu.vector_store %arg7[%c64, %c0_12], %17 {strides = array<i32>} : memref<72x2116xf32, #tpu.memory_space<vmem>>, vector<8x2116xf32>,
    %c0_13 = arith.constant 0 : index
    %c0_14 = arith.constant 0 : index
    %c0_15 = arith.constant 0 : index
    %c0_16 = arith.constant 0 : index
    %19 = vector.load %arg3[%c0_13, %c0_14, %c0_15, %c0_16] : memref<1x3x8x72xf32, #tpu.memory_space<vmem>>, vector<1x1x8x72xf32>
    %20 = vector.shape_cast %19 : vector<1x1x8x72xf32> to vector<8x72xf32>
    %c0_17 = arith.constant 0 : index
    %c0_18 = arith.constant 0 : index
    %21 = vector.load %arg7[%c0_17, %c0_18] : memref<72x2116xf32, #tpu.memory_space<vmem>>, vector<72x2116xf32>
    %cst = arith.constant dense<0.000000e+00> : vector<8x2116xf32>
    %22 = tpu.matmul %20, %21, %cst {dimension_numbers = #tpu.dot_dimension_numbers<[1], [0], [0], [1], [0, 0, 1, 1], [], []>} : vector<8x72xf32>, vector<72x2116xf32>, vector<8x2116xf32> -> vector<8x2116xf32>
    %c0_19 = arith.constant 0 : index
    %c0_20 = arith.constant 0 : index
    %c0_21 = arith.constant 0 : index
    %c0_22 = arith.constant 0 : index
    %23 = vector.load %arg4[%c0_19, %c0_20, %c0_21, %c0_22] : memref<1x3x8x1xf32, #tpu.memory_space<vmem>>, vector<1x1x8x1xf32>
    %24 = vector.shape_cast %23 : vector<1x1x8x1xf32> to vector<8x1xf32>
    %25 = vector.broadcast %24 : vector<8x1xf32> to vector<8x2116xf32>
    %26 = arith.addf %22, %25 : vector<8x2116xf32>
    %cst_23 = arith.constant 0.000000e+00 : f32
    %27 = vector.broadcast %cst_23 : f32 to vector<8x2116xf32>
    %28 = arith.maximumf %26, %27 : vector<8x2116xf32>
    %c2115_i32_24 = arith.constant 2115 : i32
    %29 = tpu.dynamic_rotate %28 by %c2115_i32_24 dim 1 : vector<8x2116xf32>, i32 -> vector<8x2116xf32>
    %30 = arith.maximumf %28, %29 : vector<8x2116xf32>
    %c2070_i32_25 = arith.constant 2070 : i32
    %31 = tpu.dynamic_rotate %30 by %c2070_i32_25 dim 1 : vector<8x2116xf32>, i32 -> vector<8x2116xf32>
    %32 = arith.maximumf %30, %31 : vector<8x2116xf32>
    %c0_26 = arith.constant 0 : index
    %c0_27 = arith.constant 0 : index
    %33 = vector.load %arg7[%c0_26, %c0_27] : memref<72x2116xf32, #tpu.memory_space<vmem>>, vector<8x2116xf32>
    tpu.vector_store %arg7[%c0_26, %c0_27], %32 {strides = array<i32>} : memref<72x2116xf32, #tpu.memory_space<vmem>>, vector<8x2116xf32>,
    %c2114_i32_28 = arith.constant 2114 : i32
    %34 = tpu.dynamic_rotate %32 by %c2114_i32_28 dim 1 : vector<8x2116xf32>, i32 -> vector<8x2116xf32>
    %c8_29 = arith.constant 8 : index
    %c0_30 = arith.constant 0 : index
    %35 = vector.load %arg7[%c8_29, %c0_30] : memref<72x2116xf32, #tpu.memory_space<vmem>>, vector<8x2116xf32>
    tpu.vector_store %arg7[%c8_29, %c0_30], %34 {strides = array<i32>} : memref<72x2116xf32, #tpu.memory_space<vmem>>, vector<8x2116xf32>,
    %c2112_i32 = arith.constant 2112 : i32
    %36 = tpu.dynamic_rotate %32 by %c2112_i32 dim 1 : vector<8x2116xf32>, i32 -> vector<8x2116xf32>
    %c16_31 = arith.constant 16 : index
    %c0_32 = arith.constant 0 : index
    %37 = vector.load %arg7[%c16_31, %c0_32] : memref<72x2116xf32, #tpu.memory_space<vmem>>, vector<8x2116xf32>
    tpu.vector_store %arg7[%c16_31, %c0_32], %36 {strides = array<i32>} : memref<72x2116xf32, #tpu.memory_space<vmem>>, vector<8x2116xf32>,
    %c2024_i32_33 = arith.constant 2024 : i32
    %38 = tpu.dynamic_rotate %32 by %c2024_i32_33 dim 1 : vector<8x2116xf32>, i32 -> vector<8x2116xf32>
    %c24_34 = arith.constant 24 : index
    %c0_35 = arith.constant 0 : index
    %39 = vector.load %arg7[%c24_34, %c0_35] : memref<72x2116xf32, #tpu.memory_space<vmem>>, vector<8x2116xf32>
    tpu.vector_store %arg7[%c24_34, %c0_35], %38 {strides = array<i32>} : memref<72x2116xf32, #tpu.memory_space<vmem>>, vector<8x2116xf32>,
    %c2022_i32_36 = arith.constant 2022 : i32
    %40 = tpu.dynamic_rotate %32 by %c2022_i32_36 dim 1 : vector<8x2116xf32>, i32 -> vector<8x2116xf32>
    %c32_37 = arith.constant 32 : index
    %c0_38 = arith.constant 0 : index
    %41 = vector.load %arg7[%c32_37, %c0_38] : memref<72x2116xf32, #tpu.memory_space<vmem>>, vector<8x2116xf32>
    tpu.vector_store %arg7[%c32_37, %c0_38], %40 {strides = array<i32>} : memref<72x2116xf32, #tpu.memory_space<vmem>>, vector<8x2116xf32>,
    %c2020_i32 = arith.constant 2020 : i32
    %42 = tpu.dynamic_rotate %32 by %c2020_i32 dim 1 : vector<8x2116xf32>, i32 -> vector<8x2116xf32>
    %c40_39 = arith.constant 40 : index
    %c0_40 = arith.constant 0 : index
    %43 = vector.load %arg7[%c40_39, %c0_40] : memref<72x2116xf32, #tpu.memory_space<vmem>>, vector<8x2116xf32>
    tpu.vector_store %arg7[%c40_39, %c0_40], %42 {strides = array<i32>} : memref<72x2116xf32, #tpu.memory_space<vmem>>, vector<8x2116xf32>,
    %c1932_i32 = arith.constant 1932 : i32
    %44 = tpu.dynamic_rotate %32 by %c1932_i32 dim 1 : vector<8x2116xf32>, i32 -> vector<8x2116xf32>
    %c48_41 = arith.constant 48 : index
    %c0_42 = arith.constant 0 : index
    %45 = vector.load %arg7[%c48_41, %c0_42] : memref<72x2116xf32, #tpu.memory_space<vmem>>, vector<8x2116xf32>
    tpu.vector_store %arg7[%c48_41, %c0_42], %44 {strides = array<i32>} : memref<72x2116xf32, #tpu.memory_space<vmem>>, vector<8x2116xf32>,
    %c1930_i32 = arith.constant 1930 : i32
    %46 = tpu.dynamic_rotate %32 by %c1930_i32 dim 1 : vector<8x2116xf32>, i32 -> vector<8x2116xf32>
    %c56_43 = arith.constant 56 : index
    %c0_44 = arith.constant 0 : index
    %47 = vector.load %arg7[%c56_43, %c0_44] : memref<72x2116xf32, #tpu.memory_space<vmem>>, vector<8x2116xf32>
    tpu.vector_store %arg7[%c56_43, %c0_44], %46 {strides = array<i32>} : memref<72x2116xf32, #tpu.memory_space<vmem>>, vector<8x2116xf32>,
    %c1928_i32 = arith.constant 1928 : i32
    %48 = tpu.dynamic_rotate %32 by %c1928_i32 dim 1 : vector<8x2116xf32>, i32 -> vector<8x2116xf32>
    %c64_45 = arith.constant 64 : index
    %c0_46 = arith.constant 0 : index
    %49 = vector.load %arg7[%c64_45, %c0_46] : memref<72x2116xf32, #tpu.memory_space<vmem>>, vector<8x2116xf32>
    tpu.vector_store %arg7[%c64_45, %c0_46], %48 {strides = array<i32>} : memref<72x2116xf32, #tpu.memory_space<vmem>>, vector<8x2116xf32>,
    %c0_47 = arith.constant 0 : index
    %c1 = arith.constant 1 : index
    %c0_48 = arith.constant 0 : index
    %c0_49 = arith.constant 0 : index
    %50 = vector.load %arg3[%c0_47, %c1, %c0_48, %c0_49] : memref<1x3x8x72xf32, #tpu.memory_space<vmem>>, vector<1x1x8x72xf32>
    %51 = vector.shape_cast %50 : vector<1x1x8x72xf32> to vector<8x72xf32>
    %c0_50 = arith.constant 0 : index
    %c0_51 = arith.constant 0 : index
    %52 = vector.load %arg7[%c0_50, %c0_51] : memref<72x2116xf32, #tpu.memory_space<vmem>>, vector<72x2116xf32>
    %cst_52 = arith.constant dense<0.000000e+00> : vector<8x2116xf32>
    %53 = tpu.matmul %51, %52, %cst_52 {dimension_numbers = #tpu.dot_dimension_numbers<[1], [0], [0], [1], [0, 0, 1, 1], [], []>} : vector<8x72xf32>, vector<72x2116xf32>, vector<8x2116xf32> -> vector<8x2116xf32>
    %c0_53 = arith.constant 0 : index
    %c1_54 = arith.constant 1 : index
    %c0_55 = arith.constant 0 : index
    %c0_56 = arith.constant 0 : index
    %54 = vector.load %arg4[%c0_53, %c1_54, %c0_55, %c0_56] : memref<1x3x8x1xf32, #tpu.memory_space<vmem>>, vector<1x1x8x1xf32>
    %55 = vector.shape_cast %54 : vector<1x1x8x1xf32> to vector<8x1xf32>
    %56 = vector.broadcast %55 : vector<8x1xf32> to vector<8x2116xf32>
    %57 = arith.addf %53, %56 : vector<8x2116xf32>
    %cst_57 = arith.constant 0.000000e+00 : f32
    %58 = vector.broadcast %cst_57 : f32 to vector<8x2116xf32>
    %59 = arith.maximumf %57, %58 : vector<8x2116xf32>
    %c2114_i32_58 = arith.constant 2114 : i32
    %60 = tpu.dynamic_rotate %59 by %c2114_i32_58 dim 1 : vector<8x2116xf32>, i32 -> vector<8x2116xf32>
    %61 = arith.maximumf %59, %60 : vector<8x2116xf32>
    %c2024_i32_59 = arith.constant 2024 : i32
    %62 = tpu.dynamic_rotate %61 by %c2024_i32_59 dim 1 : vector<8x2116xf32>, i32 -> vector<8x2116xf32>
    %63 = arith.maximumf %61, %62 : vector<8x2116xf32>
    %c0_60 = arith.constant 0 : index
    %c0_61 = arith.constant 0 : index
    %64 = vector.load %arg7[%c0_60, %c0_61] : memref<72x2116xf32, #tpu.memory_space<vmem>>, vector<8x2116xf32>
    tpu.vector_store %arg7[%c0_60, %c0_61], %63 {strides = array<i32>} : memref<72x2116xf32, #tpu.memory_space<vmem>>, vector<8x2116xf32>,
    %c2112_i32_62 = arith.constant 2112 : i32
    %65 = tpu.dynamic_rotate %63 by %c2112_i32_62 dim 1 : vector<8x2116xf32>, i32 -> vector<8x2116xf32>
    %c8_63 = arith.constant 8 : index
    %c0_64 = arith.constant 0 : index
    %66 = vector.load %arg7[%c8_63, %c0_64] : memref<72x2116xf32, #tpu.memory_space<vmem>>, vector<8x2116xf32>
    tpu.vector_store %arg7[%c8_63, %c0_64], %65 {strides = array<i32>} : memref<72x2116xf32, #tpu.memory_space<vmem>>, vector<8x2116xf32>,
    %c2108_i32 = arith.constant 2108 : i32
    %67 = tpu.dynamic_rotate %63 by %c2108_i32 dim 1 : vector<8x2116xf32>, i32 -> vector<8x2116xf32>
    %c16_65 = arith.constant 16 : index
    %c0_66 = arith.constant 0 : index
    %68 = vector.load %arg7[%c16_65, %c0_66] : memref<72x2116xf32, #tpu.memory_space<vmem>>, vector<8x2116xf32>
    tpu.vector_store %arg7[%c16_65, %c0_66], %67 {strides = array<i32>} : memref<72x2116xf32, #tpu.memory_space<vmem>>, vector<8x2116xf32>,
    %c1932_i32_67 = arith.constant 1932 : i32
    %69 = tpu.dynamic_rotate %63 by %c1932_i32_67 dim 1 : vector<8x2116xf32>, i32 -> vector<8x2116xf32>
    %c24_68 = arith.constant 24 : index
    %c0_69 = arith.constant 0 : index
    %70 = vector.load %arg7[%c24_68, %c0_69] : memref<72x2116xf32, #tpu.memory_space<vmem>>, vector<8x2116xf32>
    tpu.vector_store %arg7[%c24_68, %c0_69], %69 {strides = array<i32>} : memref<72x2116xf32, #tpu.memory_space<vmem>>, vector<8x2116xf32>,
    %c1928_i32_70 = arith.constant 1928 : i32
    %71 = tpu.dynamic_rotate %63 by %c1928_i32_70 dim 1 : vector<8x2116xf32>, i32 -> vector<8x2116xf32>
    %c32_71 = arith.constant 32 : index
    %c0_72 = arith.constant 0 : index
    %72 = vector.load %arg7[%c32_71, %c0_72] : memref<72x2116xf32, #tpu.memory_space<vmem>>, vector<8x2116xf32>
    tpu.vector_store %arg7[%c32_71, %c0_72], %71 {strides = array<i32>} : memref<72x2116xf32, #tpu.memory_space<vmem>>, vector<8x2116xf32>,
    %c1924_i32 = arith.constant 1924 : i32
    %73 = tpu.dynamic_rotate %63 by %c1924_i32 dim 1 : vector<8x2116xf32>, i32 -> vector<8x2116xf32>
    %c40_73 = arith.constant 40 : index
    %c0_74 = arith.constant 0 : index
    %74 = vector.load %arg7[%c40_73, %c0_74] : memref<72x2116xf32, #tpu.memory_space<vmem>>, vector<8x2116xf32>
    tpu.vector_store %arg7[%c40_73, %c0_74], %73 {strides = array<i32>} : memref<72x2116xf32, #tpu.memory_space<vmem>>, vector<8x2116xf32>,
    %c1748_i32 = arith.constant 1748 : i32
    %75 = tpu.dynamic_rotate %63 by %c1748_i32 dim 1 : vector<8x2116xf32>, i32 -> vector<8x2116xf32>
    %c48_75 = arith.constant 48 : index
    %c0_76 = arith.constant 0 : index
    %76 = vector.load %arg7[%c48_75, %c0_76] : memref<72x2116xf32, #tpu.memory_space<vmem>>, vector<8x2116xf32>
    tpu.vector_store %arg7[%c48_75, %c0_76], %75 {strides = array<i32>} : memref<72x2116xf32, #tpu.memory_space<vmem>>, vector<8x2116xf32>,
    %c1744_i32 = arith.constant 1744 : i32
    %77 = tpu.dynamic_rotate %63 by %c1744_i32 dim 1 : vector<8x2116xf32>, i32 -> vector<8x2116xf32>
    %c56_77 = arith.constant 56 : index
    %c0_78 = arith.constant 0 : index
    %78 = vector.load %arg7[%c56_77, %c0_78] : memref<72x2116xf32, #tpu.memory_space<vmem>>, vector<8x2116xf32>
    tpu.vector_store %arg7[%c56_77, %c0_78], %77 {strides = array<i32>} : memref<72x2116xf32, #tpu.memory_space<vmem>>, vector<8x2116xf32>,
    %c1740_i32 = arith.constant 1740 : i32
    %79 = tpu.dynamic_rotate %63 by %c1740_i32 dim 1 : vector<8x2116xf32>, i32 -> vector<8x2116xf32>
    %c64_79 = arith.constant 64 : index
    %c0_80 = arith.constant 0 : index
    %80 = vector.load %arg7[%c64_79, %c0_80] : memref<72x2116xf32, #tpu.memory_space<vmem>>, vector<8x2116xf32>
    tpu.vector_store %arg7[%c64_79, %c0_80], %79 {strides = array<i32>} : memref<72x2116xf32, #tpu.memory_space<vmem>>, vector<8x2116xf32>,
    %c0_81 = arith.constant 0 : index
    %c2 = arith.constant 2 : index
    %c0_82 = arith.constant 0 : index
    %c0_83 = arith.constant 0 : index
    %81 = vector.load %arg3[%c0_81, %c2, %c0_82, %c0_83] : memref<1x3x8x72xf32, #tpu.memory_space<vmem>>, vector<1x1x8x72xf32>
    %82 = vector.shape_cast %81 : vector<1x1x8x72xf32> to vector<8x72xf32>
    %c0_84 = arith.constant 0 : index
    %c0_85 = arith.constant 0 : index
    %83 = vector.load %arg7[%c0_84, %c0_85] : memref<72x2116xf32, #tpu.memory_space<vmem>>, vector<72x2116xf32>
    %cst_86 = arith.constant dense<0.000000e+00> : vector<8x2116xf32>
    %84 = tpu.matmul %82, %83, %cst_86 {dimension_numbers = #tpu.dot_dimension_numbers<[1], [0], [0], [1], [0, 0, 1, 1], [], []>} : vector<8x72xf32>, vector<72x2116xf32>, vector<8x2116xf32> -> vector<8x2116xf32>
    %c0_87 = arith.constant 0 : index
    %c2_88 = arith.constant 2 : index
    %c0_89 = arith.constant 0 : index
    %c0_90 = arith.constant 0 : index
    %85 = vector.load %arg4[%c0_87, %c2_88, %c0_89, %c0_90] : memref<1x3x8x1xf32, #tpu.memory_space<vmem>>, vector<1x1x8x1xf32>
    %86 = vector.shape_cast %85 : vector<1x1x8x1xf32> to vector<8x1xf32>
    %87 = vector.broadcast %86 : vector<8x1xf32> to vector<8x2116xf32>
    %88 = arith.addf %84, %87 : vector<8x2116xf32>
    %cst_91 = arith.constant 0.000000e+00 : f32
    %89 = vector.broadcast %cst_91 : f32 to vector<8x2116xf32>
    %90 = arith.maximumf %88, %89 : vector<8x2116xf32>
    %c2112_i32_92 = arith.constant 2112 : i32
    %91 = tpu.dynamic_rotate %90 by %c2112_i32_92 dim 1 : vector<8x2116xf32>, i32 -> vector<8x2116xf32>
    %92 = arith.maximumf %90, %91 : vector<8x2116xf32>
    %c1932_i32_93 = arith.constant 1932 : i32
    %93 = tpu.dynamic_rotate %92 by %c1932_i32_93 dim 1 : vector<8x2116xf32>, i32 -> vector<8x2116xf32>
    %94 = arith.maximumf %92, %93 : vector<8x2116xf32>
    %c0_94 = arith.constant 0 : index
    %c0_95 = arith.constant 0 : index
    %95 = vector.load %arg5[%c0_94, %c0_95] : memref<2116x16xf32, #tpu.memory_space<vmem>>, vector<2116x16xf32>
    %cst_96 = arith.constant dense<0.000000e+00> : vector<8x16xf32>
    %96 = tpu.matmul %94, %95, %cst_96 {dimension_numbers = #tpu.dot_dimension_numbers<[1], [0], [0], [1], [0, 0, 1, 1], [], []>} : vector<8x2116xf32>, vector<2116x16xf32>, vector<8x16xf32> -> vector<8x16xf32>
    %c0_97 = arith.constant 0 : index
    %c0_98 = arith.constant 0 : index
    %c0_99 = arith.constant 0 : index
    %c0_100 = arith.constant 0 : index
    %97 = vector.load %arg6[%c0_97, %c0_98, %c0_99, %c0_100] : memref<1x1x8x16xf32, #tpu.memory_space<vmem>>, vector<1x1x8x16xf32>
    %98 = vector.shape_cast %97 : vector<1x1x8x16xf32> to vector<8x16xf32>
    %99 = vector.shape_cast %96 : vector<8x16xf32> to vector<1x1x8x16xf32>
    tpu.vector_store %arg6[%c0_97, %c0_98, %c0_99, %c0_100], %99 {strides = array<i32>} : memref<1x1x8x16xf32, #tpu.memory_space<vmem>>, vector<1x1x8x16xf32>,
    return
  }
  func.func @transform_0(%arg0: i32, %arg1: i32) -> (i32, i32, i32, i32) {
    %c0_i32 = arith.constant 0 : i32
    %c0_i32_0 = arith.constant 0 : i32
    %c0_i32_1 = arith.constant 0 : i32
    return %arg0, %arg1, %c0_i32, %c0_i32_0 : i32, i32, i32, i32
  }
  func.func @transform_1(%arg0: i32, %arg1: i32) -> (i32, i32, i32, i32) {
    %c0_i32 = arith.constant 0 : i32
    %c0_i32_0 = arith.constant 0 : i32
    %c0_i32_1 = arith.constant 0 : i32
    %c0_i32_2 = arith.constant 0 : i32
    return %arg0, %c0_i32, %c0_i32_0, %c0_i32_1 : i32, i32, i32, i32
  }
  func.func @transform_2(%arg0: i32, %arg1: i32) -> (i32, i32, i32, i32) {
    %c0_i32 = arith.constant 0 : i32
    %c0_i32_0 = arith.constant 0 : i32
    %c0_i32_1 = arith.constant 0 : i32
    %c0_i32_2 = arith.constant 0 : i32
    return %arg0, %c0_i32, %c0_i32_0, %c0_i32_1 : i32, i32, i32, i32
  }
  func.func @transform_3(%arg0: i32, %arg1: i32) -> (i32, i32) {
    %c0_i32 = arith.constant 0 : i32
    %c0_i32_0 = arith.constant 0 : i32
    %c0_i32_1 = arith.constant 0 : i32
    return %c0_i32, %c0_i32_0 : i32, i32
  }
  func.func @transform_4(%arg0: i32, %arg1: i32) -> (i32, i32, i32, i32) {
    %c0_i32 = arith.constant 0 : i32
    %c0_i32_0 = arith.constant 0 : i32
    %c0_i32_1 = arith.constant 0 : i32
    return %arg0, %arg1, %c0_i32, %c0_i32_0 : i32, i32, i32, i32
  }
}

module attributes {stable_mosaic.version = 11 : i64} {
  func.func @_lstm_fused_kernel(%arg0: i32, %arg1: memref<3x2x384xf32, #tpu.memory_space<vmem>>, %arg2: memref<2x1xi32, #tpu.memory_space<vmem>>, %arg3: memref<384x128xf32, #tpu.memory_space<vmem>>, %arg4: memref<32x128xf32, #tpu.memory_space<vmem>>, %arg5: memref<1x128xf32, #tpu.memory_space<vmem>>, %arg6: memref<32x128xf32, #tpu.memory_space<vmem>>, %arg7: memref<32x128xf32, #tpu.memory_space<vmem>>, %arg8: memref<1x128xf32, #tpu.memory_space<vmem>>, %arg9: memref<2x32xf32, #tpu.memory_space<vmem>>) attributes {dimension_semantics = [#tpu.dimension_semantics<arbitrary>], iteration_bounds = array<i64: 1>, scalar_prefetch = 0 : i64, scratch_operands = 0 : i64, tpu.core_type = #tpu.core_type<tc>, window_params = [{pipeline_mode = #tpu.pipeline_mode<synchronous>, transform_indices = @transform_0, window_bounds = array<i64: 3, 2, 384>}, {pipeline_mode = #tpu.pipeline_mode<synchronous>, transform_indices = @transform_1, window_bounds = array<i64: 2, 1>}, {pipeline_mode = #tpu.pipeline_mode<synchronous>, transform_indices = @transform_2, window_bounds = array<i64: 384, 128>}, {pipeline_mode = #tpu.pipeline_mode<synchronous>, transform_indices = @transform_3, window_bounds = array<i64: 32, 128>}, {pipeline_mode = #tpu.pipeline_mode<synchronous>, transform_indices = @transform_4, window_bounds = array<i64: 1, 128>}, {pipeline_mode = #tpu.pipeline_mode<synchronous>, transform_indices = @transform_5, window_bounds = array<i64: 32, 128>}, {pipeline_mode = #tpu.pipeline_mode<synchronous>, transform_indices = @transform_6, window_bounds = array<i64: 32, 128>}, {pipeline_mode = #tpu.pipeline_mode<synchronous>, transform_indices = @transform_7, window_bounds = array<i64: 1, 128>}, {pipeline_mode = #tpu.pipeline_mode<synchronous>, transform_indices = @transform_8, window_bounds = array<i64: 2, 32>}]} {
    %c0 = arith.constant 0 : index
    %c0_0 = arith.constant 0 : index
    %0 = vector.load %arg2[%c0, %c0_0] : memref<2x1xi32, #tpu.memory_space<vmem>>, vector<2x1xi32>
    %c0_1 = arith.constant 0 : index
    %c0_2 = arith.constant 0 : index
    %c0_3 = arith.constant 0 : index
    %1 = vector.load %arg1[%c0_1, %c0_2, %c0_3] : memref<3x2x384xf32, #tpu.memory_space<vmem>>, vector<1x2x384xf32>
    %2 = vector.shape_cast %1 : vector<1x2x384xf32> to vector<2x384xf32>
    %c1 = arith.constant 1 : index
    %c0_4 = arith.constant 0 : index
    %c0_5 = arith.constant 0 : index
    %3 = vector.load %arg1[%c1, %c0_4, %c0_5] : memref<3x2x384xf32, #tpu.memory_space<vmem>>, vector<1x2x384xf32>
    %4 = vector.shape_cast %3 : vector<1x2x384xf32> to vector<2x384xf32>
    %c2 = arith.constant 2 : index
    %c0_6 = arith.constant 0 : index
    %c0_7 = arith.constant 0 : index
    %5 = vector.load %arg1[%c2, %c0_6, %c0_7] : memref<3x2x384xf32, #tpu.memory_space<vmem>>, vector<1x2x384xf32>
    %6 = vector.shape_cast %5 : vector<1x2x384xf32> to vector<2x384xf32>
    %c0_8 = arith.constant 0 : index
    %c0_9 = arith.constant 0 : index
    %7 = vector.load %arg3[%c0_8, %c0_9] : memref<384x128xf32, #tpu.memory_space<vmem>>, vector<384x128xf32>
    %c0_10 = arith.constant 0 : index
    %c0_11 = arith.constant 0 : index
    %8 = vector.load %arg4[%c0_10, %c0_11] : memref<32x128xf32, #tpu.memory_space<vmem>>, vector<32x128xf32>
    %c0_12 = arith.constant 0 : index
    %c0_13 = arith.constant 0 : index
    %9 = vector.load %arg5[%c0_12, %c0_13] : memref<1x128xf32, #tpu.memory_space<vmem>>, vector<1x128xf32>
    %cst = arith.constant 0.000000e+00 : f32
    %10 = vector.broadcast %cst : f32 to vector<2x32xf32>
    %cst_14 = arith.constant 0.000000e+00 : f32
    %11 = vector.broadcast %cst_14 : f32 to vector<2x32xf32>
    %cst_15 = arith.constant dense<0.000000e+00> : vector<2x128xf32>
    %12 = tpu.matmul %2, %7, %cst_15 {dimension_numbers = #tpu.dot_dimension_numbers<[1], [0], [0], [1], [0, 0, 1, 1], [], []>} : vector<2x384xf32>, vector<384x128xf32>, vector<2x128xf32> -> vector<2x128xf32>
    %cst_16 = arith.constant dense<0.000000e+00> : vector<2x128xf32>
    %13 = tpu.matmul %10, %8, %cst_16 {dimension_numbers = #tpu.dot_dimension_numbers<[1], [0], [0], [1], [0, 0, 1, 1], [], []>} : vector<2x32xf32>, vector<32x128xf32>, vector<2x128xf32> -> vector<2x128xf32>
    %14 = arith.addf %12, %13 : vector<2x128xf32>
    %15 = vector.broadcast %9 : vector<1x128xf32> to vector<2x128xf32>
    %16 = arith.addf %14, %15 : vector<2x128xf32>
    %17 = vector.extract_strided_slice %16 {offsets = [0, 0], sizes = [2, 32], strides = [1, 1]} : vector<2x128xf32> to vector<2x32xf32>
    %18 = arith.negf %17 : vector<2x32xf32>
    %19 = math.exp %18 : vector<2x32xf32>
    %cst_17 = arith.constant 1.000000e+00 : f32
    %20 = vector.broadcast %cst_17 : f32 to vector<2x32xf32>
    %21 = arith.addf %20, %19 : vector<2x32xf32>
    %22 = arith.divf %20, %21 : vector<2x32xf32>
    %23 = vector.extract_strided_slice %16 {offsets = [0, 32], sizes = [2, 32], strides = [1, 1]} : vector<2x128xf32> to vector<2x32xf32>
    %24 = arith.negf %23 : vector<2x32xf32>
    %25 = math.exp %24 : vector<2x32xf32>
    %cst_18 = arith.constant 1.000000e+00 : f32
    %26 = vector.broadcast %cst_18 : f32 to vector<2x32xf32>
    %27 = arith.addf %26, %25 : vector<2x32xf32>
    %28 = arith.divf %26, %27 : vector<2x32xf32>
    %29 = vector.extract_strided_slice %16 {offsets = [0, 64], sizes = [2, 32], strides = [1, 1]} : vector<2x128xf32> to vector<2x32xf32>
    %30 = math.tanh %29 : vector<2x32xf32>
    %31 = vector.extract_strided_slice %16 {offsets = [0, 96], sizes = [2, 32], strides = [1, 1]} : vector<2x128xf32> to vector<2x32xf32>
    %32 = arith.negf %31 : vector<2x32xf32>
    %33 = math.exp %32 : vector<2x32xf32>
    %cst_19 = arith.constant 1.000000e+00 : f32
    %34 = vector.broadcast %cst_19 : f32 to vector<2x32xf32>
    %35 = arith.addf %34, %33 : vector<2x32xf32>
    %36 = arith.divf %34, %35 : vector<2x32xf32>
    %37 = arith.mulf %28, %11 : vector<2x32xf32>
    %38 = arith.mulf %22, %30 : vector<2x32xf32>
    %39 = arith.addf %37, %38 : vector<2x32xf32>
    %40 = math.tanh %39 : vector<2x32xf32>
    %41 = arith.mulf %36, %40 : vector<2x32xf32>
    %c0_i32 = arith.constant 0 : i32
    %42 = vector.broadcast %c0_i32 : i32 to vector<2x1xi32>
    %43 = arith.cmpi sgt, %0, %42 : vector<2x1xi32>
    %44 = vector.shape_cast %43 : vector<2x1xi1> to vector<2x1xi1>
    %45 = vector.broadcast %44 : vector<2x1xi1> to vector<2x32xi1>
    %46 = arith.select %45, %41, %10 : vector<2x32xi1>, vector<2x32xf32>
    %47 = vector.shape_cast %43 : vector<2x1xi1> to vector<2x1xi1>
    %48 = vector.broadcast %47 : vector<2x1xi1> to vector<2x32xi1>
    %49 = arith.select %48, %39, %11 : vector<2x32xi1>, vector<2x32xf32>
    %cst_20 = arith.constant dense<0.000000e+00> : vector<2x128xf32>
    %50 = tpu.matmul %4, %7, %cst_20 {dimension_numbers = #tpu.dot_dimension_numbers<[1], [0], [0], [1], [0, 0, 1, 1], [], []>} : vector<2x384xf32>, vector<384x128xf32>, vector<2x128xf32> -> vector<2x128xf32>
    %cst_21 = arith.constant dense<0.000000e+00> : vector<2x128xf32>
    %51 = tpu.matmul %46, %8, %cst_21 {dimension_numbers = #tpu.dot_dimension_numbers<[1], [0], [0], [1], [0, 0, 1, 1], [], []>} : vector<2x32xf32>, vector<32x128xf32>, vector<2x128xf32> -> vector<2x128xf32>
    %52 = arith.addf %50, %51 : vector<2x128xf32>
    %53 = vector.broadcast %9 : vector<1x128xf32> to vector<2x128xf32>
    %54 = arith.addf %52, %53 : vector<2x128xf32>
    %55 = vector.extract_strided_slice %54 {offsets = [0, 0], sizes = [2, 32], strides = [1, 1]} : vector<2x128xf32> to vector<2x32xf32>
    %56 = arith.negf %55 : vector<2x32xf32>
    %57 = math.exp %56 : vector<2x32xf32>
    %cst_22 = arith.constant 1.000000e+00 : f32
    %58 = vector.broadcast %cst_22 : f32 to vector<2x32xf32>
    %59 = arith.addf %58, %57 : vector<2x32xf32>
    %60 = arith.divf %58, %59 : vector<2x32xf32>
    %61 = vector.extract_strided_slice %54 {offsets = [0, 32], sizes = [2, 32], strides = [1, 1]} : vector<2x128xf32> to vector<2x32xf32>
    %62 = arith.negf %61 : vector<2x32xf32>
    %63 = math.exp %62 : vector<2x32xf32>
    %cst_23 = arith.constant 1.000000e+00 : f32
    %64 = vector.broadcast %cst_23 : f32 to vector<2x32xf32>
    %65 = arith.addf %64, %63 : vector<2x32xf32>
    %66 = arith.divf %64, %65 : vector<2x32xf32>
    %67 = vector.extract_strided_slice %54 {offsets = [0, 64], sizes = [2, 32], strides = [1, 1]} : vector<2x128xf32> to vector<2x32xf32>
    %68 = math.tanh %67 : vector<2x32xf32>
    %69 = vector.extract_strided_slice %54 {offsets = [0, 96], sizes = [2, 32], strides = [1, 1]} : vector<2x128xf32> to vector<2x32xf32>
    %70 = arith.negf %69 : vector<2x32xf32>
    %71 = math.exp %70 : vector<2x32xf32>
    %cst_24 = arith.constant 1.000000e+00 : f32
    %72 = vector.broadcast %cst_24 : f32 to vector<2x32xf32>
    %73 = arith.addf %72, %71 : vector<2x32xf32>
    %74 = arith.divf %72, %73 : vector<2x32xf32>
    %75 = arith.mulf %66, %49 : vector<2x32xf32>
    %76 = arith.mulf %60, %68 : vector<2x32xf32>
    %77 = arith.addf %75, %76 : vector<2x32xf32>
    %78 = math.tanh %77 : vector<2x32xf32>
    %79 = arith.mulf %74, %78 : vector<2x32xf32>
    %c1_i32 = arith.constant 1 : i32
    %80 = vector.broadcast %c1_i32 : i32 to vector<2x1xi32>
    %81 = arith.cmpi sgt, %0, %80 : vector<2x1xi32>
    %82 = vector.shape_cast %81 : vector<2x1xi1> to vector<2x1xi1>
    %83 = vector.broadcast %82 : vector<2x1xi1> to vector<2x32xi1>
    %84 = arith.select %83, %79, %46 : vector<2x32xi1>, vector<2x32xf32>
    %85 = vector.shape_cast %81 : vector<2x1xi1> to vector<2x1xi1>
    %86 = vector.broadcast %85 : vector<2x1xi1> to vector<2x32xi1>
    %87 = arith.select %86, %77, %49 : vector<2x32xi1>, vector<2x32xf32>
    %cst_25 = arith.constant dense<0.000000e+00> : vector<2x128xf32>
    %88 = tpu.matmul %6, %7, %cst_25 {dimension_numbers = #tpu.dot_dimension_numbers<[1], [0], [0], [1], [0, 0, 1, 1], [], []>} : vector<2x384xf32>, vector<384x128xf32>, vector<2x128xf32> -> vector<2x128xf32>
    %cst_26 = arith.constant dense<0.000000e+00> : vector<2x128xf32>
    %89 = tpu.matmul %84, %8, %cst_26 {dimension_numbers = #tpu.dot_dimension_numbers<[1], [0], [0], [1], [0, 0, 1, 1], [], []>} : vector<2x32xf32>, vector<32x128xf32>, vector<2x128xf32> -> vector<2x128xf32>
    %90 = arith.addf %88, %89 : vector<2x128xf32>
    %91 = vector.broadcast %9 : vector<1x128xf32> to vector<2x128xf32>
    %92 = arith.addf %90, %91 : vector<2x128xf32>
    %93 = vector.extract_strided_slice %92 {offsets = [0, 0], sizes = [2, 32], strides = [1, 1]} : vector<2x128xf32> to vector<2x32xf32>
    %94 = arith.negf %93 : vector<2x32xf32>
    %95 = math.exp %94 : vector<2x32xf32>
    %cst_27 = arith.constant 1.000000e+00 : f32
    %96 = vector.broadcast %cst_27 : f32 to vector<2x32xf32>
    %97 = arith.addf %96, %95 : vector<2x32xf32>
    %98 = arith.divf %96, %97 : vector<2x32xf32>
    %99 = vector.extract_strided_slice %92 {offsets = [0, 32], sizes = [2, 32], strides = [1, 1]} : vector<2x128xf32> to vector<2x32xf32>
    %100 = arith.negf %99 : vector<2x32xf32>
    %101 = math.exp %100 : vector<2x32xf32>
    %cst_28 = arith.constant 1.000000e+00 : f32
    %102 = vector.broadcast %cst_28 : f32 to vector<2x32xf32>
    %103 = arith.addf %102, %101 : vector<2x32xf32>
    %104 = arith.divf %102, %103 : vector<2x32xf32>
    %105 = vector.extract_strided_slice %92 {offsets = [0, 64], sizes = [2, 32], strides = [1, 1]} : vector<2x128xf32> to vector<2x32xf32>
    %106 = math.tanh %105 : vector<2x32xf32>
    %107 = vector.extract_strided_slice %92 {offsets = [0, 96], sizes = [2, 32], strides = [1, 1]} : vector<2x128xf32> to vector<2x32xf32>
    %108 = arith.negf %107 : vector<2x32xf32>
    %109 = math.exp %108 : vector<2x32xf32>
    %cst_29 = arith.constant 1.000000e+00 : f32
    %110 = vector.broadcast %cst_29 : f32 to vector<2x32xf32>
    %111 = arith.addf %110, %109 : vector<2x32xf32>
    %112 = arith.divf %110, %111 : vector<2x32xf32>
    %113 = arith.mulf %104, %87 : vector<2x32xf32>
    %114 = arith.mulf %98, %106 : vector<2x32xf32>
    %115 = arith.addf %113, %114 : vector<2x32xf32>
    %116 = math.tanh %115 : vector<2x32xf32>
    %117 = arith.mulf %112, %116 : vector<2x32xf32>
    %c2_i32 = arith.constant 2 : i32
    %118 = vector.broadcast %c2_i32 : i32 to vector<2x1xi32>
    %119 = arith.cmpi sgt, %0, %118 : vector<2x1xi32>
    %120 = vector.shape_cast %119 : vector<2x1xi1> to vector<2x1xi1>
    %121 = vector.broadcast %120 : vector<2x1xi1> to vector<2x32xi1>
    %122 = arith.select %121, %117, %84 : vector<2x32xi1>, vector<2x32xf32>
    %c0_30 = arith.constant 0 : index
    %c0_31 = arith.constant 0 : index
    %123 = vector.load %arg6[%c0_30, %c0_31] : memref<32x128xf32, #tpu.memory_space<vmem>>, vector<32x128xf32>
    %c0_32 = arith.constant 0 : index
    %c0_33 = arith.constant 0 : index
    %124 = vector.load %arg7[%c0_32, %c0_33] : memref<32x128xf32, #tpu.memory_space<vmem>>, vector<32x128xf32>
    %c0_34 = arith.constant 0 : index
    %c0_35 = arith.constant 0 : index
    %125 = vector.load %arg8[%c0_34, %c0_35] : memref<1x128xf32, #tpu.memory_space<vmem>>, vector<1x128xf32>
    %cst_36 = arith.constant 0.000000e+00 : f32
    %126 = vector.broadcast %cst_36 : f32 to vector<2x32xf32>
    %cst_37 = arith.constant 0.000000e+00 : f32
    %127 = vector.broadcast %cst_37 : f32 to vector<2x32xf32>
    %cst_38 = arith.constant dense<0.000000e+00> : vector<2x128xf32>
    %128 = tpu.matmul %46, %123, %cst_38 {dimension_numbers = #tpu.dot_dimension_numbers<[1], [0], [0], [1], [0, 0, 1, 1], [], []>} : vector<2x32xf32>, vector<32x128xf32>, vector<2x128xf32> -> vector<2x128xf32>
    %cst_39 = arith.constant dense<0.000000e+00> : vector<2x128xf32>
    %129 = tpu.matmul %126, %124, %cst_39 {dimension_numbers = #tpu.dot_dimension_numbers<[1], [0], [0], [1], [0, 0, 1, 1], [], []>} : vector<2x32xf32>, vector<32x128xf32>, vector<2x128xf32> -> vector<2x128xf32>
    %130 = arith.addf %128, %129 : vector<2x128xf32>
    %131 = vector.broadcast %125 : vector<1x128xf32> to vector<2x128xf32>
    %132 = arith.addf %130, %131 : vector<2x128xf32>
    %133 = vector.extract_strided_slice %132 {offsets = [0, 0], sizes = [2, 32], strides = [1, 1]} : vector<2x128xf32> to vector<2x32xf32>
    %134 = arith.negf %133 : vector<2x32xf32>
    %135 = math.exp %134 : vector<2x32xf32>
    %cst_40 = arith.constant 1.000000e+00 : f32
    %136 = vector.broadcast %cst_40 : f32 to vector<2x32xf32>
    %137 = arith.addf %136, %135 : vector<2x32xf32>
    %138 = arith.divf %136, %137 : vector<2x32xf32>
    %139 = vector.extract_strided_slice %132 {offsets = [0, 32], sizes = [2, 32], strides = [1, 1]} : vector<2x128xf32> to vector<2x32xf32>
    %140 = arith.negf %139 : vector<2x32xf32>
    %141 = math.exp %140 : vector<2x32xf32>
    %cst_41 = arith.constant 1.000000e+00 : f32
    %142 = vector.broadcast %cst_41 : f32 to vector<2x32xf32>
    %143 = arith.addf %142, %141 : vector<2x32xf32>
    %144 = arith.divf %142, %143 : vector<2x32xf32>
    %145 = vector.extract_strided_slice %132 {offsets = [0, 64], sizes = [2, 32], strides = [1, 1]} : vector<2x128xf32> to vector<2x32xf32>
    %146 = math.tanh %145 : vector<2x32xf32>
    %147 = vector.extract_strided_slice %132 {offsets = [0, 96], sizes = [2, 32], strides = [1, 1]} : vector<2x128xf32> to vector<2x32xf32>
    %148 = arith.negf %147 : vector<2x32xf32>
    %149 = math.exp %148 : vector<2x32xf32>
    %cst_42 = arith.constant 1.000000e+00 : f32
    %150 = vector.broadcast %cst_42 : f32 to vector<2x32xf32>
    %151 = arith.addf %150, %149 : vector<2x32xf32>
    %152 = arith.divf %150, %151 : vector<2x32xf32>
    %153 = arith.mulf %144, %127 : vector<2x32xf32>
    %154 = arith.mulf %138, %146 : vector<2x32xf32>
    %155 = arith.addf %153, %154 : vector<2x32xf32>
    %156 = math.tanh %155 : vector<2x32xf32>
    %157 = arith.mulf %152, %156 : vector<2x32xf32>
    %c0_i32_43 = arith.constant 0 : i32
    %158 = vector.broadcast %c0_i32_43 : i32 to vector<2x1xi32>
    %159 = arith.cmpi sgt, %0, %158 : vector<2x1xi32>
    %160 = vector.shape_cast %159 : vector<2x1xi1> to vector<2x1xi1>
    %161 = vector.broadcast %160 : vector<2x1xi1> to vector<2x32xi1>
    %162 = arith.select %161, %157, %126 : vector<2x32xi1>, vector<2x32xf32>
    %163 = vector.shape_cast %159 : vector<2x1xi1> to vector<2x1xi1>
    %164 = vector.broadcast %163 : vector<2x1xi1> to vector<2x32xi1>
    %165 = arith.select %164, %155, %127 : vector<2x32xi1>, vector<2x32xf32>
    %cst_44 = arith.constant dense<0.000000e+00> : vector<2x128xf32>
    %166 = tpu.matmul %84, %123, %cst_44 {dimension_numbers = #tpu.dot_dimension_numbers<[1], [0], [0], [1], [0, 0, 1, 1], [], []>} : vector<2x32xf32>, vector<32x128xf32>, vector<2x128xf32> -> vector<2x128xf32>
    %cst_45 = arith.constant dense<0.000000e+00> : vector<2x128xf32>
    %167 = tpu.matmul %162, %124, %cst_45 {dimension_numbers = #tpu.dot_dimension_numbers<[1], [0], [0], [1], [0, 0, 1, 1], [], []>} : vector<2x32xf32>, vector<32x128xf32>, vector<2x128xf32> -> vector<2x128xf32>
    %168 = arith.addf %166, %167 : vector<2x128xf32>
    %169 = vector.broadcast %125 : vector<1x128xf32> to vector<2x128xf32>
    %170 = arith.addf %168, %169 : vector<2x128xf32>
    %171 = vector.extract_strided_slice %170 {offsets = [0, 0], sizes = [2, 32], strides = [1, 1]} : vector<2x128xf32> to vector<2x32xf32>
    %172 = arith.negf %171 : vector<2x32xf32>
    %173 = math.exp %172 : vector<2x32xf32>
    %cst_46 = arith.constant 1.000000e+00 : f32
    %174 = vector.broadcast %cst_46 : f32 to vector<2x32xf32>
    %175 = arith.addf %174, %173 : vector<2x32xf32>
    %176 = arith.divf %174, %175 : vector<2x32xf32>
    %177 = vector.extract_strided_slice %170 {offsets = [0, 32], sizes = [2, 32], strides = [1, 1]} : vector<2x128xf32> to vector<2x32xf32>
    %178 = arith.negf %177 : vector<2x32xf32>
    %179 = math.exp %178 : vector<2x32xf32>
    %cst_47 = arith.constant 1.000000e+00 : f32
    %180 = vector.broadcast %cst_47 : f32 to vector<2x32xf32>
    %181 = arith.addf %180, %179 : vector<2x32xf32>
    %182 = arith.divf %180, %181 : vector<2x32xf32>
    %183 = vector.extract_strided_slice %170 {offsets = [0, 64], sizes = [2, 32], strides = [1, 1]} : vector<2x128xf32> to vector<2x32xf32>
    %184 = math.tanh %183 : vector<2x32xf32>
    %185 = vector.extract_strided_slice %170 {offsets = [0, 96], sizes = [2, 32], strides = [1, 1]} : vector<2x128xf32> to vector<2x32xf32>
    %186 = arith.negf %185 : vector<2x32xf32>
    %187 = math.exp %186 : vector<2x32xf32>
    %cst_48 = arith.constant 1.000000e+00 : f32
    %188 = vector.broadcast %cst_48 : f32 to vector<2x32xf32>
    %189 = arith.addf %188, %187 : vector<2x32xf32>
    %190 = arith.divf %188, %189 : vector<2x32xf32>
    %191 = arith.mulf %182, %165 : vector<2x32xf32>
    %192 = arith.mulf %176, %184 : vector<2x32xf32>
    %193 = arith.addf %191, %192 : vector<2x32xf32>
    %194 = math.tanh %193 : vector<2x32xf32>
    %195 = arith.mulf %190, %194 : vector<2x32xf32>
    %c1_i32_49 = arith.constant 1 : i32
    %196 = vector.broadcast %c1_i32_49 : i32 to vector<2x1xi32>
    %197 = arith.cmpi sgt, %0, %196 : vector<2x1xi32>
    %198 = vector.shape_cast %197 : vector<2x1xi1> to vector<2x1xi1>
    %199 = vector.broadcast %198 : vector<2x1xi1> to vector<2x32xi1>
    %200 = arith.select %199, %195, %162 : vector<2x32xi1>, vector<2x32xf32>
    %201 = vector.shape_cast %197 : vector<2x1xi1> to vector<2x1xi1>
    %202 = vector.broadcast %201 : vector<2x1xi1> to vector<2x32xi1>
    %203 = arith.select %202, %193, %165 : vector<2x32xi1>, vector<2x32xf32>
    %cst_50 = arith.constant dense<0.000000e+00> : vector<2x128xf32>
    %204 = tpu.matmul %122, %123, %cst_50 {dimension_numbers = #tpu.dot_dimension_numbers<[1], [0], [0], [1], [0, 0, 1, 1], [], []>} : vector<2x32xf32>, vector<32x128xf32>, vector<2x128xf32> -> vector<2x128xf32>
    %cst_51 = arith.constant dense<0.000000e+00> : vector<2x128xf32>
    %205 = tpu.matmul %200, %124, %cst_51 {dimension_numbers = #tpu.dot_dimension_numbers<[1], [0], [0], [1], [0, 0, 1, 1], [], []>} : vector<2x32xf32>, vector<32x128xf32>, vector<2x128xf32> -> vector<2x128xf32>
    %206 = arith.addf %204, %205 : vector<2x128xf32>
    %207 = vector.broadcast %125 : vector<1x128xf32> to vector<2x128xf32>
    %208 = arith.addf %206, %207 : vector<2x128xf32>
    %209 = vector.extract_strided_slice %208 {offsets = [0, 0], sizes = [2, 32], strides = [1, 1]} : vector<2x128xf32> to vector<2x32xf32>
    %210 = arith.negf %209 : vector<2x32xf32>
    %211 = math.exp %210 : vector<2x32xf32>
    %cst_52 = arith.constant 1.000000e+00 : f32
    %212 = vector.broadcast %cst_52 : f32 to vector<2x32xf32>
    %213 = arith.addf %212, %211 : vector<2x32xf32>
    %214 = arith.divf %212, %213 : vector<2x32xf32>
    %215 = vector.extract_strided_slice %208 {offsets = [0, 32], sizes = [2, 32], strides = [1, 1]} : vector<2x128xf32> to vector<2x32xf32>
    %216 = arith.negf %215 : vector<2x32xf32>
    %217 = math.exp %216 : vector<2x32xf32>
    %cst_53 = arith.constant 1.000000e+00 : f32
    %218 = vector.broadcast %cst_53 : f32 to vector<2x32xf32>
    %219 = arith.addf %218, %217 : vector<2x32xf32>
    %220 = arith.divf %218, %219 : vector<2x32xf32>
    %221 = vector.extract_strided_slice %208 {offsets = [0, 64], sizes = [2, 32], strides = [1, 1]} : vector<2x128xf32> to vector<2x32xf32>
    %222 = math.tanh %221 : vector<2x32xf32>
    %223 = vector.extract_strided_slice %208 {offsets = [0, 96], sizes = [2, 32], strides = [1, 1]} : vector<2x128xf32> to vector<2x32xf32>
    %224 = arith.negf %223 : vector<2x32xf32>
    %225 = math.exp %224 : vector<2x32xf32>
    %cst_54 = arith.constant 1.000000e+00 : f32
    %226 = vector.broadcast %cst_54 : f32 to vector<2x32xf32>
    %227 = arith.addf %226, %225 : vector<2x32xf32>
    %228 = arith.divf %226, %227 : vector<2x32xf32>
    %229 = arith.mulf %220, %203 : vector<2x32xf32>
    %230 = arith.mulf %214, %222 : vector<2x32xf32>
    %231 = arith.addf %229, %230 : vector<2x32xf32>
    %232 = math.tanh %231 : vector<2x32xf32>
    %233 = arith.mulf %228, %232 : vector<2x32xf32>
    %c2_i32_55 = arith.constant 2 : i32
    %234 = vector.broadcast %c2_i32_55 : i32 to vector<2x1xi32>
    %235 = arith.cmpi sgt, %0, %234 : vector<2x1xi32>
    %236 = vector.shape_cast %235 : vector<2x1xi1> to vector<2x1xi1>
    %237 = vector.broadcast %236 : vector<2x1xi1> to vector<2x32xi1>
    %238 = arith.select %237, %233, %200 : vector<2x32xi1>, vector<2x32xf32>
    %c0_56 = arith.constant 0 : index
    %c0_57 = arith.constant 0 : index
    %239 = vector.load %arg9[%c0_56, %c0_57] : memref<2x32xf32, #tpu.memory_space<vmem>>, vector<2x32xf32>
    tpu.vector_store %arg9[%c0_56, %c0_57], %238 {strides = array<i32>} : memref<2x32xf32, #tpu.memory_space<vmem>>, vector<2x32xf32>,
    return
  }
  func.func @transform_0(%arg0: i32) -> (i32, i32, i32) {
    %c0_i32 = arith.constant 0 : i32
    %c0_i32_0 = arith.constant 0 : i32
    %c0_i32_1 = arith.constant 0 : i32
    %c0_i32_2 = arith.constant 0 : i32
    return %c0_i32, %c0_i32_0, %c0_i32_1 : i32, i32, i32
  }
  func.func @transform_1(%arg0: i32) -> (i32, i32) {
    %c0_i32 = arith.constant 0 : i32
    %c0_i32_0 = arith.constant 0 : i32
    %c0_i32_1 = arith.constant 0 : i32
    return %c0_i32, %c0_i32_0 : i32, i32
  }
  func.func @transform_2(%arg0: i32) -> (i32, i32) {
    %c0_i32 = arith.constant 0 : i32
    %c0_i32_0 = arith.constant 0 : i32
    %c0_i32_1 = arith.constant 0 : i32
    return %c0_i32, %c0_i32_0 : i32, i32
  }
  func.func @transform_3(%arg0: i32) -> (i32, i32) {
    %c0_i32 = arith.constant 0 : i32
    %c0_i32_0 = arith.constant 0 : i32
    %c0_i32_1 = arith.constant 0 : i32
    return %c0_i32, %c0_i32_0 : i32, i32
  }
  func.func @transform_4(%arg0: i32) -> (i32, i32) {
    %c0_i32 = arith.constant 0 : i32
    %c0_i32_0 = arith.constant 0 : i32
    %c0_i32_1 = arith.constant 0 : i32
    return %c0_i32, %c0_i32_0 : i32, i32
  }
  func.func @transform_5(%arg0: i32) -> (i32, i32) {
    %c0_i32 = arith.constant 0 : i32
    %c0_i32_0 = arith.constant 0 : i32
    %c0_i32_1 = arith.constant 0 : i32
    return %c0_i32, %c0_i32_0 : i32, i32
  }
  func.func @transform_6(%arg0: i32) -> (i32, i32) {
    %c0_i32 = arith.constant 0 : i32
    %c0_i32_0 = arith.constant 0 : i32
    %c0_i32_1 = arith.constant 0 : i32
    return %c0_i32, %c0_i32_0 : i32, i32
  }
  func.func @transform_7(%arg0: i32) -> (i32, i32) {
    %c0_i32 = arith.constant 0 : i32
    %c0_i32_0 = arith.constant 0 : i32
    %c0_i32_1 = arith.constant 0 : i32
    return %c0_i32, %c0_i32_0 : i32, i32
  }
  func.func @transform_8(%arg0: i32) -> (i32, i32) {
    %c0_i32 = arith.constant 0 : i32
    %c0_i32_0 = arith.constant 0 : i32
    %c0_i32_1 = arith.constant 0 : i32
    return %c0_i32, %c0_i32_0 : i32, i32
  }
}

module attributes {stable_mosaic.version = 11 : i64} {
  func.func @_classifier_kernel(%arg0: i32, %arg1: memref<2x32xf32, #tpu.memory_space<vmem>>, %arg2: memref<2x32xf32, #tpu.memory_space<vmem>>, %arg3: memref<32x64xf32, #tpu.memory_space<vmem>>, %arg4: memref<32x64xf32, #tpu.memory_space<vmem>>, %arg5: memref<1x64xf32, #tpu.memory_space<vmem>>, %arg6: memref<64x1xf32, #tpu.memory_space<vmem>>, %arg7: memref<1x1xf32, #tpu.memory_space<vmem>>, %arg8: memref<2x1xf32, #tpu.memory_space<vmem>>) attributes {dimension_semantics = [#tpu.dimension_semantics<arbitrary>], iteration_bounds = array<i64: 1>, scalar_prefetch = 0 : i64, scratch_operands = 0 : i64, tpu.core_type = #tpu.core_type<tc>, window_params = [{pipeline_mode = #tpu.pipeline_mode<synchronous>, transform_indices = @transform_0, window_bounds = array<i64: 2, 32>}, {pipeline_mode = #tpu.pipeline_mode<synchronous>, transform_indices = @transform_1, window_bounds = array<i64: 2, 32>}, {pipeline_mode = #tpu.pipeline_mode<synchronous>, transform_indices = @transform_2, window_bounds = array<i64: 32, 64>}, {pipeline_mode = #tpu.pipeline_mode<synchronous>, transform_indices = @transform_3, window_bounds = array<i64: 32, 64>}, {pipeline_mode = #tpu.pipeline_mode<synchronous>, transform_indices = @transform_4, window_bounds = array<i64: 1, 64>}, {pipeline_mode = #tpu.pipeline_mode<synchronous>, transform_indices = @transform_5, window_bounds = array<i64: 64, 1>}, {pipeline_mode = #tpu.pipeline_mode<synchronous>, transform_indices = @transform_6, window_bounds = array<i64: 1, 1>}, {pipeline_mode = #tpu.pipeline_mode<synchronous>, transform_indices = @transform_7, window_bounds = array<i64: 2, 1>}]} {
    %c0 = arith.constant 0 : index
    %c0_0 = arith.constant 0 : index
    %0 = vector.load %arg1[%c0, %c0_0] : memref<2x32xf32, #tpu.memory_space<vmem>>, vector<2x32xf32>
    %c0_1 = arith.constant 0 : index
    %c0_2 = arith.constant 0 : index
    %1 = vector.load %arg3[%c0_1, %c0_2] : memref<32x64xf32, #tpu.memory_space<vmem>>, vector<32x64xf32>
    %cst = arith.constant dense<0.000000e+00> : vector<2x64xf32>
    %2 = tpu.matmul %0, %1, %cst {dimension_numbers = #tpu.dot_dimension_numbers<[1], [0], [0], [1], [0, 0, 1, 1], [], []>} : vector<2x32xf32>, vector<32x64xf32>, vector<2x64xf32> -> vector<2x64xf32>
    %c0_3 = arith.constant 0 : index
    %c0_4 = arith.constant 0 : index
    %3 = vector.load %arg2[%c0_3, %c0_4] : memref<2x32xf32, #tpu.memory_space<vmem>>, vector<2x32xf32>
    %c0_5 = arith.constant 0 : index
    %c0_6 = arith.constant 0 : index
    %4 = vector.load %arg4[%c0_5, %c0_6] : memref<32x64xf32, #tpu.memory_space<vmem>>, vector<32x64xf32>
    %cst_7 = arith.constant dense<0.000000e+00> : vector<2x64xf32>
    %5 = tpu.matmul %3, %4, %cst_7 {dimension_numbers = #tpu.dot_dimension_numbers<[1], [0], [0], [1], [0, 0, 1, 1], [], []>} : vector<2x32xf32>, vector<32x64xf32>, vector<2x64xf32> -> vector<2x64xf32>
    %6 = arith.addf %2, %5 : vector<2x64xf32>
    %c0_8 = arith.constant 0 : index
    %c0_9 = arith.constant 0 : index
    %7 = vector.load %arg5[%c0_8, %c0_9] : memref<1x64xf32, #tpu.memory_space<vmem>>, vector<1x64xf32>
    %8 = vector.broadcast %7 : vector<1x64xf32> to vector<2x64xf32>
    %9 = arith.addf %6, %8 : vector<2x64xf32>
    %cst_10 = arith.constant 0.000000e+00 : f32
    %10 = vector.broadcast %cst_10 : f32 to vector<2x64xf32>
    %11 = arith.maximumf %9, %10 : vector<2x64xf32>
    %c0_11 = arith.constant 0 : index
    %c0_12 = arith.constant 0 : index
    %12 = vector.load %arg6[%c0_11, %c0_12] : memref<64x1xf32, #tpu.memory_space<vmem>>, vector<64x1xf32>
    %cst_13 = arith.constant dense<0.000000e+00> : vector<2x1xf32>
    %13 = tpu.matmul %11, %12, %cst_13 {dimension_numbers = #tpu.dot_dimension_numbers<[1], [0], [0], [1], [0, 0, 1, 1], [], []>} : vector<2x64xf32>, vector<64x1xf32>, vector<2x1xf32> -> vector<2x1xf32>
    %c0_14 = arith.constant 0 : index
    %c0_15 = arith.constant 0 : index
    %14 = vector.load %arg7[%c0_14, %c0_15] : memref<1x1xf32, #tpu.memory_space<vmem>>, vector<1x1xf32>
    %15 = vector.broadcast %14 : vector<1x1xf32> to vector<2x1xf32>
    %16 = arith.addf %13, %15 : vector<2x1xf32>
    %c0_16 = arith.constant 0 : index
    %c0_17 = arith.constant 0 : index
    %17 = vector.load %arg8[%c0_16, %c0_17] : memref<2x1xf32, #tpu.memory_space<vmem>>, vector<2x1xf32>
    tpu.vector_store %arg8[%c0_16, %c0_17], %16 {strides = array<i32>} : memref<2x1xf32, #tpu.memory_space<vmem>>, vector<2x1xf32>,
    return
  }
  func.func @transform_0(%arg0: i32) -> (i32, i32) {
    %c0_i32 = arith.constant 0 : i32
    %c0_i32_0 = arith.constant 0 : i32
    %c0_i32_1 = arith.constant 0 : i32
    return %c0_i32, %c0_i32_0 : i32, i32
  }
  func.func @transform_1(%arg0: i32) -> (i32, i32) {
    %c0_i32 = arith.constant 0 : i32
    %c0_i32_0 = arith.constant 0 : i32
    %c0_i32_1 = arith.constant 0 : i32
    return %c0_i32, %c0_i32_0 : i32, i32
  }
  func.func @transform_2(%arg0: i32) -> (i32, i32) {
    %c0_i32 = arith.constant 0 : i32
    %c0_i32_0 = arith.constant 0 : i32
    %c0_i32_1 = arith.constant 0 : i32
    return %c0_i32, %c0_i32_0 : i32, i32
  }
  func.func @transform_3(%arg0: i32) -> (i32, i32) {
    %c0_i32 = arith.constant 0 : i32
    %c0_i32_0 = arith.constant 0 : i32
    %c0_i32_1 = arith.constant 0 : i32
    return %c0_i32, %c0_i32_0 : i32, i32
  }
  func.func @transform_4(%arg0: i32) -> (i32, i32) {
    %c0_i32 = arith.constant 0 : i32
    %c0_i32_0 = arith.constant 0 : i32
    %c0_i32_1 = arith.constant 0 : i32
    return %c0_i32, %c0_i32_0 : i32, i32
  }
  func.func @transform_5(%arg0: i32) -> (i32, i32) {
    %c0_i32 = arith.constant 0 : i32
    %c0_i32_0 = arith.constant 0 : i32
    %c0_i32_1 = arith.constant 0 : i32
    return %c0_i32, %c0_i32_0 : i32, i32
  }
  func.func @transform_6(%arg0: i32) -> (i32, i32) {
    %c0_i32 = arith.constant 0 : i32
    %c0_i32_0 = arith.constant 0 : i32
    %c0_i32_1 = arith.constant 0 : i32
    return %c0_i32, %c0_i32_0 : i32, i32
  }
  func.func @transform_7(%arg0: i32) -> (i32, i32) {
    %c0_i32 = arith.constant 0 : i32
    %c0_i32_0 = arith.constant 0 : i32
    %c0_i32_1 = arith.constant 0 : i32
    return %c0_i32, %c0_i32_0 : i32, i32
  }
}

module attributes {stable_mosaic.version = 11 : i64} {
  func.func @_lstm_fused_kernel(%arg0: i32, %arg1: memref<6x2x32xf32, #tpu.memory_space<vmem>>, %arg2: memref<2x1xi32, #tpu.memory_space<vmem>>, %arg3: memref<32x128xf32, #tpu.memory_space<vmem>>, %arg4: memref<32x128xf32, #tpu.memory_space<vmem>>, %arg5: memref<1x128xf32, #tpu.memory_space<vmem>>, %arg6: memref<32x128xf32, #tpu.memory_space<vmem>>, %arg7: memref<32x128xf32, #tpu.memory_space<vmem>>, %arg8: memref<1x128xf32, #tpu.memory_space<vmem>>, %arg9: memref<2x32xf32, #tpu.memory_space<vmem>>) attributes {dimension_semantics = [#tpu.dimension_semantics<arbitrary>], iteration_bounds = array<i64: 1>, scalar_prefetch = 0 : i64, scratch_operands = 0 : i64, tpu.core_type = #tpu.core_type<tc>, window_params = [{pipeline_mode = #tpu.pipeline_mode<synchronous>, transform_indices = @transform_0, window_bounds = array<i64: 6, 2, 32>}, {pipeline_mode = #tpu.pipeline_mode<synchronous>, transform_indices = @transform_1, window_bounds = array<i64: 2, 1>}, {pipeline_mode = #tpu.pipeline_mode<synchronous>, transform_indices = @transform_2, window_bounds = array<i64: 32, 128>}, {pipeline_mode = #tpu.pipeline_mode<synchronous>, transform_indices = @transform_3, window_bounds = array<i64: 32, 128>}, {pipeline_mode = #tpu.pipeline_mode<synchronous>, transform_indices = @transform_4, window_bounds = array<i64: 1, 128>}, {pipeline_mode = #tpu.pipeline_mode<synchronous>, transform_indices = @transform_5, window_bounds = array<i64: 32, 128>}, {pipeline_mode = #tpu.pipeline_mode<synchronous>, transform_indices = @transform_6, window_bounds = array<i64: 32, 128>}, {pipeline_mode = #tpu.pipeline_mode<synchronous>, transform_indices = @transform_7, window_bounds = array<i64: 1, 128>}, {pipeline_mode = #tpu.pipeline_mode<synchronous>, transform_indices = @transform_8, window_bounds = array<i64: 2, 32>}]} {
    %c0 = arith.constant 0 : index
    %c0_0 = arith.constant 0 : index
    %0 = vector.load %arg2[%c0, %c0_0] : memref<2x1xi32, #tpu.memory_space<vmem>>, vector<2x1xi32>
    %c0_1 = arith.constant 0 : index
    %c0_2 = arith.constant 0 : index
    %c0_3 = arith.constant 0 : index
    %1 = vector.load %arg1[%c0_1, %c0_2, %c0_3] : memref<6x2x32xf32, #tpu.memory_space<vmem>>, vector<1x2x32xf32>
    %2 = vector.shape_cast %1 : vector<1x2x32xf32> to vector<2x32xf32>
    %c1 = arith.constant 1 : index
    %c0_4 = arith.constant 0 : index
    %c0_5 = arith.constant 0 : index
    %3 = vector.load %arg1[%c1, %c0_4, %c0_5] : memref<6x2x32xf32, #tpu.memory_space<vmem>>, vector<1x2x32xf32>
    %4 = vector.shape_cast %3 : vector<1x2x32xf32> to vector<2x32xf32>
    %c2 = arith.constant 2 : index
    %c0_6 = arith.constant 0 : index
    %c0_7 = arith.constant 0 : index
    %5 = vector.load %arg1[%c2, %c0_6, %c0_7] : memref<6x2x32xf32, #tpu.memory_space<vmem>>, vector<1x2x32xf32>
    %6 = vector.shape_cast %5 : vector<1x2x32xf32> to vector<2x32xf32>
    %c3 = arith.constant 3 : index
    %c0_8 = arith.constant 0 : index
    %c0_9 = arith.constant 0 : index
    %7 = vector.load %arg1[%c3, %c0_8, %c0_9] : memref<6x2x32xf32, #tpu.memory_space<vmem>>, vector<1x2x32xf32>
    %8 = vector.shape_cast %7 : vector<1x2x32xf32> to vector<2x32xf32>
    %c4 = arith.constant 4 : index
    %c0_10 = arith.constant 0 : index
    %c0_11 = arith.constant 0 : index
    %9 = vector.load %arg1[%c4, %c0_10, %c0_11] : memref<6x2x32xf32, #tpu.memory_space<vmem>>, vector<1x2x32xf32>
    %10 = vector.shape_cast %9 : vector<1x2x32xf32> to vector<2x32xf32>
    %c5 = arith.constant 5 : index
    %c0_12 = arith.constant 0 : index
    %c0_13 = arith.constant 0 : index
    %11 = vector.load %arg1[%c5, %c0_12, %c0_13] : memref<6x2x32xf32, #tpu.memory_space<vmem>>, vector<1x2x32xf32>
    %12 = vector.shape_cast %11 : vector<1x2x32xf32> to vector<2x32xf32>
    %c0_14 = arith.constant 0 : index
    %c0_15 = arith.constant 0 : index
    %13 = vector.load %arg3[%c0_14, %c0_15] : memref<32x128xf32, #tpu.memory_space<vmem>>, vector<32x128xf32>
    %c0_16 = arith.constant 0 : index
    %c0_17 = arith.constant 0 : index
    %14 = vector.load %arg4[%c0_16, %c0_17] : memref<32x128xf32, #tpu.memory_space<vmem>>, vector<32x128xf32>
    %c0_18 = arith.constant 0 : index
    %c0_19 = arith.constant 0 : index
    %15 = vector.load %arg5[%c0_18, %c0_19] : memref<1x128xf32, #tpu.memory_space<vmem>>, vector<1x128xf32>
    %cst = arith.constant 0.000000e+00 : f32
    %16 = vector.broadcast %cst : f32 to vector<2x32xf32>
    %cst_20 = arith.constant 0.000000e+00 : f32
    %17 = vector.broadcast %cst_20 : f32 to vector<2x32xf32>
    %cst_21 = arith.constant dense<0.000000e+00> : vector<2x128xf32>
    %18 = tpu.matmul %2, %13, %cst_21 {dimension_numbers = #tpu.dot_dimension_numbers<[1], [0], [0], [1], [0, 0, 1, 1], [], []>} : vector<2x32xf32>, vector<32x128xf32>, vector<2x128xf32> -> vector<2x128xf32>
    %cst_22 = arith.constant dense<0.000000e+00> : vector<2x128xf32>
    %19 = tpu.matmul %16, %14, %cst_22 {dimension_numbers = #tpu.dot_dimension_numbers<[1], [0], [0], [1], [0, 0, 1, 1], [], []>} : vector<2x32xf32>, vector<32x128xf32>, vector<2x128xf32> -> vector<2x128xf32>
    %20 = arith.addf %18, %19 : vector<2x128xf32>
    %21 = vector.broadcast %15 : vector<1x128xf32> to vector<2x128xf32>
    %22 = arith.addf %20, %21 : vector<2x128xf32>
    %23 = vector.extract_strided_slice %22 {offsets = [0, 0], sizes = [2, 32], strides = [1, 1]} : vector<2x128xf32> to vector<2x32xf32>
    %24 = arith.negf %23 : vector<2x32xf32>
    %25 = math.exp %24 : vector<2x32xf32>
    %cst_23 = arith.constant 1.000000e+00 : f32
    %26 = vector.broadcast %cst_23 : f32 to vector<2x32xf32>
    %27 = arith.addf %26, %25 : vector<2x32xf32>
    %28 = arith.divf %26, %27 : vector<2x32xf32>
    %29 = vector.extract_strided_slice %22 {offsets = [0, 32], sizes = [2, 32], strides = [1, 1]} : vector<2x128xf32> to vector<2x32xf32>
    %30 = arith.negf %29 : vector<2x32xf32>
    %31 = math.exp %30 : vector<2x32xf32>
    %cst_24 = arith.constant 1.000000e+00 : f32
    %32 = vector.broadcast %cst_24 : f32 to vector<2x32xf32>
    %33 = arith.addf %32, %31 : vector<2x32xf32>
    %34 = arith.divf %32, %33 : vector<2x32xf32>
    %35 = vector.extract_strided_slice %22 {offsets = [0, 64], sizes = [2, 32], strides = [1, 1]} : vector<2x128xf32> to vector<2x32xf32>
    %36 = math.tanh %35 : vector<2x32xf32>
    %37 = vector.extract_strided_slice %22 {offsets = [0, 96], sizes = [2, 32], strides = [1, 1]} : vector<2x128xf32> to vector<2x32xf32>
    %38 = arith.negf %37 : vector<2x32xf32>
    %39 = math.exp %38 : vector<2x32xf32>
    %cst_25 = arith.constant 1.000000e+00 : f32
    %40 = vector.broadcast %cst_25 : f32 to vector<2x32xf32>
    %41 = arith.addf %40, %39 : vector<2x32xf32>
    %42 = arith.divf %40, %41 : vector<2x32xf32>
    %43 = arith.mulf %34, %17 : vector<2x32xf32>
    %44 = arith.mulf %28, %36 : vector<2x32xf32>
    %45 = arith.addf %43, %44 : vector<2x32xf32>
    %46 = math.tanh %45 : vector<2x32xf32>
    %47 = arith.mulf %42, %46 : vector<2x32xf32>
    %c0_i32 = arith.constant 0 : i32
    %48 = vector.broadcast %c0_i32 : i32 to vector<2x1xi32>
    %49 = arith.cmpi sgt, %0, %48 : vector<2x1xi32>
    %50 = vector.shape_cast %49 : vector<2x1xi1> to vector<2x1xi1>
    %51 = vector.broadcast %50 : vector<2x1xi1> to vector<2x32xi1>
    %52 = arith.select %51, %47, %16 : vector<2x32xi1>, vector<2x32xf32>
    %53 = vector.shape_cast %49 : vector<2x1xi1> to vector<2x1xi1>
    %54 = vector.broadcast %53 : vector<2x1xi1> to vector<2x32xi1>
    %55 = arith.select %54, %45, %17 : vector<2x32xi1>, vector<2x32xf32>
    %cst_26 = arith.constant dense<0.000000e+00> : vector<2x128xf32>
    %56 = tpu.matmul %4, %13, %cst_26 {dimension_numbers = #tpu.dot_dimension_numbers<[1], [0], [0], [1], [0, 0, 1, 1], [], []>} : vector<2x32xf32>, vector<32x128xf32>, vector<2x128xf32> -> vector<2x128xf32>
    %cst_27 = arith.constant dense<0.000000e+00> : vector<2x128xf32>
    %57 = tpu.matmul %52, %14, %cst_27 {dimension_numbers = #tpu.dot_dimension_numbers<[1], [0], [0], [1], [0, 0, 1, 1], [], []>} : vector<2x32xf32>, vector<32x128xf32>, vector<2x128xf32> -> vector<2x128xf32>
    %58 = arith.addf %56, %57 : vector<2x128xf32>
    %59 = vector.broadcast %15 : vector<1x128xf32> to vector<2x128xf32>
    %60 = arith.addf %58, %59 : vector<2x128xf32>
    %61 = vector.extract_strided_slice %60 {offsets = [0, 0], sizes = [2, 32], strides = [1, 1]} : vector<2x128xf32> to vector<2x32xf32>
    %62 = arith.negf %61 : vector<2x32xf32>
    %63 = math.exp %62 : vector<2x32xf32>
    %cst_28 = arith.constant 1.000000e+00 : f32
    %64 = vector.broadcast %cst_28 : f32 to vector<2x32xf32>
    %65 = arith.addf %64, %63 : vector<2x32xf32>
    %66 = arith.divf %64, %65 : vector<2x32xf32>
    %67 = vector.extract_strided_slice %60 {offsets = [0, 32], sizes = [2, 32], strides = [1, 1]} : vector<2x128xf32> to vector<2x32xf32>
    %68 = arith.negf %67 : vector<2x32xf32>
    %69 = math.exp %68 : vector<2x32xf32>
    %cst_29 = arith.constant 1.000000e+00 : f32
    %70 = vector.broadcast %cst_29 : f32 to vector<2x32xf32>
    %71 = arith.addf %70, %69 : vector<2x32xf32>
    %72 = arith.divf %70, %71 : vector<2x32xf32>
    %73 = vector.extract_strided_slice %60 {offsets = [0, 64], sizes = [2, 32], strides = [1, 1]} : vector<2x128xf32> to vector<2x32xf32>
    %74 = math.tanh %73 : vector<2x32xf32>
    %75 = vector.extract_strided_slice %60 {offsets = [0, 96], sizes = [2, 32], strides = [1, 1]} : vector<2x128xf32> to vector<2x32xf32>
    %76 = arith.negf %75 : vector<2x32xf32>
    %77 = math.exp %76 : vector<2x32xf32>
    %cst_30 = arith.constant 1.000000e+00 : f32
    %78 = vector.broadcast %cst_30 : f32 to vector<2x32xf32>
    %79 = arith.addf %78, %77 : vector<2x32xf32>
    %80 = arith.divf %78, %79 : vector<2x32xf32>
    %81 = arith.mulf %72, %55 : vector<2x32xf32>
    %82 = arith.mulf %66, %74 : vector<2x32xf32>
    %83 = arith.addf %81, %82 : vector<2x32xf32>
    %84 = math.tanh %83 : vector<2x32xf32>
    %85 = arith.mulf %80, %84 : vector<2x32xf32>
    %c1_i32 = arith.constant 1 : i32
    %86 = vector.broadcast %c1_i32 : i32 to vector<2x1xi32>
    %87 = arith.cmpi sgt, %0, %86 : vector<2x1xi32>
    %88 = vector.shape_cast %87 : vector<2x1xi1> to vector<2x1xi1>
    %89 = vector.broadcast %88 : vector<2x1xi1> to vector<2x32xi1>
    %90 = arith.select %89, %85, %52 : vector<2x32xi1>, vector<2x32xf32>
    %91 = vector.shape_cast %87 : vector<2x1xi1> to vector<2x1xi1>
    %92 = vector.broadcast %91 : vector<2x1xi1> to vector<2x32xi1>
    %93 = arith.select %92, %83, %55 : vector<2x32xi1>, vector<2x32xf32>
    %cst_31 = arith.constant dense<0.000000e+00> : vector<2x128xf32>
    %94 = tpu.matmul %6, %13, %cst_31 {dimension_numbers = #tpu.dot_dimension_numbers<[1], [0], [0], [1], [0, 0, 1, 1], [], []>} : vector<2x32xf32>, vector<32x128xf32>, vector<2x128xf32> -> vector<2x128xf32>
    %cst_32 = arith.constant dense<0.000000e+00> : vector<2x128xf32>
    %95 = tpu.matmul %90, %14, %cst_32 {dimension_numbers = #tpu.dot_dimension_numbers<[1], [0], [0], [1], [0, 0, 1, 1], [], []>} : vector<2x32xf32>, vector<32x128xf32>, vector<2x128xf32> -> vector<2x128xf32>
    %96 = arith.addf %94, %95 : vector<2x128xf32>
    %97 = vector.broadcast %15 : vector<1x128xf32> to vector<2x128xf32>
    %98 = arith.addf %96, %97 : vector<2x128xf32>
    %99 = vector.extract_strided_slice %98 {offsets = [0, 0], sizes = [2, 32], strides = [1, 1]} : vector<2x128xf32> to vector<2x32xf32>
    %100 = arith.negf %99 : vector<2x32xf32>
    %101 = math.exp %100 : vector<2x32xf32>
    %cst_33 = arith.constant 1.000000e+00 : f32
    %102 = vector.broadcast %cst_33 : f32 to vector<2x32xf32>
    %103 = arith.addf %102, %101 : vector<2x32xf32>
    %104 = arith.divf %102, %103 : vector<2x32xf32>
    %105 = vector.extract_strided_slice %98 {offsets = [0, 32], sizes = [2, 32], strides = [1, 1]} : vector<2x128xf32> to vector<2x32xf32>
    %106 = arith.negf %105 : vector<2x32xf32>
    %107 = math.exp %106 : vector<2x32xf32>
    %cst_34 = arith.constant 1.000000e+00 : f32
    %108 = vector.broadcast %cst_34 : f32 to vector<2x32xf32>
    %109 = arith.addf %108, %107 : vector<2x32xf32>
    %110 = arith.divf %108, %109 : vector<2x32xf32>
    %111 = vector.extract_strided_slice %98 {offsets = [0, 64], sizes = [2, 32], strides = [1, 1]} : vector<2x128xf32> to vector<2x32xf32>
    %112 = math.tanh %111 : vector<2x32xf32>
    %113 = vector.extract_strided_slice %98 {offsets = [0, 96], sizes = [2, 32], strides = [1, 1]} : vector<2x128xf32> to vector<2x32xf32>
    %114 = arith.negf %113 : vector<2x32xf32>
    %115 = math.exp %114 : vector<2x32xf32>
    %cst_35 = arith.constant 1.000000e+00 : f32
    %116 = vector.broadcast %cst_35 : f32 to vector<2x32xf32>
    %117 = arith.addf %116, %115 : vector<2x32xf32>
    %118 = arith.divf %116, %117 : vector<2x32xf32>
    %119 = arith.mulf %110, %93 : vector<2x32xf32>
    %120 = arith.mulf %104, %112 : vector<2x32xf32>
    %121 = arith.addf %119, %120 : vector<2x32xf32>
    %122 = math.tanh %121 : vector<2x32xf32>
    %123 = arith.mulf %118, %122 : vector<2x32xf32>
    %c2_i32 = arith.constant 2 : i32
    %124 = vector.broadcast %c2_i32 : i32 to vector<2x1xi32>
    %125 = arith.cmpi sgt, %0, %124 : vector<2x1xi32>
    %126 = vector.shape_cast %125 : vector<2x1xi1> to vector<2x1xi1>
    %127 = vector.broadcast %126 : vector<2x1xi1> to vector<2x32xi1>
    %128 = arith.select %127, %123, %90 : vector<2x32xi1>, vector<2x32xf32>
    %129 = vector.shape_cast %125 : vector<2x1xi1> to vector<2x1xi1>
    %130 = vector.broadcast %129 : vector<2x1xi1> to vector<2x32xi1>
    %131 = arith.select %130, %121, %93 : vector<2x32xi1>, vector<2x32xf32>
    %cst_36 = arith.constant dense<0.000000e+00> : vector<2x128xf32>
    %132 = tpu.matmul %8, %13, %cst_36 {dimension_numbers = #tpu.dot_dimension_numbers<[1], [0], [0], [1], [0, 0, 1, 1], [], []>} : vector<2x32xf32>, vector<32x128xf32>, vector<2x128xf32> -> vector<2x128xf32>
    %cst_37 = arith.constant dense<0.000000e+00> : vector<2x128xf32>
    %133 = tpu.matmul %128, %14, %cst_37 {dimension_numbers = #tpu.dot_dimension_numbers<[1], [0], [0], [1], [0, 0, 1, 1], [], []>} : vector<2x32xf32>, vector<32x128xf32>, vector<2x128xf32> -> vector<2x128xf32>
    %134 = arith.addf %132, %133 : vector<2x128xf32>
    %135 = vector.broadcast %15 : vector<1x128xf32> to vector<2x128xf32>
    %136 = arith.addf %134, %135 : vector<2x128xf32>
    %137 = vector.extract_strided_slice %136 {offsets = [0, 0], sizes = [2, 32], strides = [1, 1]} : vector<2x128xf32> to vector<2x32xf32>
    %138 = arith.negf %137 : vector<2x32xf32>
    %139 = math.exp %138 : vector<2x32xf32>
    %cst_38 = arith.constant 1.000000e+00 : f32
    %140 = vector.broadcast %cst_38 : f32 to vector<2x32xf32>
    %141 = arith.addf %140, %139 : vector<2x32xf32>
    %142 = arith.divf %140, %141 : vector<2x32xf32>
    %143 = vector.extract_strided_slice %136 {offsets = [0, 32], sizes = [2, 32], strides = [1, 1]} : vector<2x128xf32> to vector<2x32xf32>
    %144 = arith.negf %143 : vector<2x32xf32>
    %145 = math.exp %144 : vector<2x32xf32>
    %cst_39 = arith.constant 1.000000e+00 : f32
    %146 = vector.broadcast %cst_39 : f32 to vector<2x32xf32>
    %147 = arith.addf %146, %145 : vector<2x32xf32>
    %148 = arith.divf %146, %147 : vector<2x32xf32>
    %149 = vector.extract_strided_slice %136 {offsets = [0, 64], sizes = [2, 32], strides = [1, 1]} : vector<2x128xf32> to vector<2x32xf32>
    %150 = math.tanh %149 : vector<2x32xf32>
    %151 = vector.extract_strided_slice %136 {offsets = [0, 96], sizes = [2, 32], strides = [1, 1]} : vector<2x128xf32> to vector<2x32xf32>
    %152 = arith.negf %151 : vector<2x32xf32>
    %153 = math.exp %152 : vector<2x32xf32>
    %cst_40 = arith.constant 1.000000e+00 : f32
    %154 = vector.broadcast %cst_40 : f32 to vector<2x32xf32>
    %155 = arith.addf %154, %153 : vector<2x32xf32>
    %156 = arith.divf %154, %155 : vector<2x32xf32>
    %157 = arith.mulf %148, %131 : vector<2x32xf32>
    %158 = arith.mulf %142, %150 : vector<2x32xf32>
    %159 = arith.addf %157, %158 : vector<2x32xf32>
    %160 = math.tanh %159 : vector<2x32xf32>
    %161 = arith.mulf %156, %160 : vector<2x32xf32>
    %c3_i32 = arith.constant 3 : i32
    %162 = vector.broadcast %c3_i32 : i32 to vector<2x1xi32>
    %163 = arith.cmpi sgt, %0, %162 : vector<2x1xi32>
    %164 = vector.shape_cast %163 : vector<2x1xi1> to vector<2x1xi1>
    %165 = vector.broadcast %164 : vector<2x1xi1> to vector<2x32xi1>
    %166 = arith.select %165, %161, %128 : vector<2x32xi1>, vector<2x32xf32>
    %167 = vector.shape_cast %163 : vector<2x1xi1> to vector<2x1xi1>
    %168 = vector.broadcast %167 : vector<2x1xi1> to vector<2x32xi1>
    %169 = arith.select %168, %159, %131 : vector<2x32xi1>, vector<2x32xf32>
    %cst_41 = arith.constant dense<0.000000e+00> : vector<2x128xf32>
    %170 = tpu.matmul %10, %13, %cst_41 {dimension_numbers = #tpu.dot_dimension_numbers<[1], [0], [0], [1], [0, 0, 1, 1], [], []>} : vector<2x32xf32>, vector<32x128xf32>, vector<2x128xf32> -> vector<2x128xf32>
    %cst_42 = arith.constant dense<0.000000e+00> : vector<2x128xf32>
    %171 = tpu.matmul %166, %14, %cst_42 {dimension_numbers = #tpu.dot_dimension_numbers<[1], [0], [0], [1], [0, 0, 1, 1], [], []>} : vector<2x32xf32>, vector<32x128xf32>, vector<2x128xf32> -> vector<2x128xf32>
    %172 = arith.addf %170, %171 : vector<2x128xf32>
    %173 = vector.broadcast %15 : vector<1x128xf32> to vector<2x128xf32>
    %174 = arith.addf %172, %173 : vector<2x128xf32>
    %175 = vector.extract_strided_slice %174 {offsets = [0, 0], sizes = [2, 32], strides = [1, 1]} : vector<2x128xf32> to vector<2x32xf32>
    %176 = arith.negf %175 : vector<2x32xf32>
    %177 = math.exp %176 : vector<2x32xf32>
    %cst_43 = arith.constant 1.000000e+00 : f32
    %178 = vector.broadcast %cst_43 : f32 to vector<2x32xf32>
    %179 = arith.addf %178, %177 : vector<2x32xf32>
    %180 = arith.divf %178, %179 : vector<2x32xf32>
    %181 = vector.extract_strided_slice %174 {offsets = [0, 32], sizes = [2, 32], strides = [1, 1]} : vector<2x128xf32> to vector<2x32xf32>
    %182 = arith.negf %181 : vector<2x32xf32>
    %183 = math.exp %182 : vector<2x32xf32>
    %cst_44 = arith.constant 1.000000e+00 : f32
    %184 = vector.broadcast %cst_44 : f32 to vector<2x32xf32>
    %185 = arith.addf %184, %183 : vector<2x32xf32>
    %186 = arith.divf %184, %185 : vector<2x32xf32>
    %187 = vector.extract_strided_slice %174 {offsets = [0, 64], sizes = [2, 32], strides = [1, 1]} : vector<2x128xf32> to vector<2x32xf32>
    %188 = math.tanh %187 : vector<2x32xf32>
    %189 = vector.extract_strided_slice %174 {offsets = [0, 96], sizes = [2, 32], strides = [1, 1]} : vector<2x128xf32> to vector<2x32xf32>
    %190 = arith.negf %189 : vector<2x32xf32>
    %191 = math.exp %190 : vector<2x32xf32>
    %cst_45 = arith.constant 1.000000e+00 : f32
    %192 = vector.broadcast %cst_45 : f32 to vector<2x32xf32>
    %193 = arith.addf %192, %191 : vector<2x32xf32>
    %194 = arith.divf %192, %193 : vector<2x32xf32>
    %195 = arith.mulf %186, %169 : vector<2x32xf32>
    %196 = arith.mulf %180, %188 : vector<2x32xf32>
    %197 = arith.addf %195, %196 : vector<2x32xf32>
    %198 = math.tanh %197 : vector<2x32xf32>
    %199 = arith.mulf %194, %198 : vector<2x32xf32>
    %c4_i32 = arith.constant 4 : i32
    %200 = vector.broadcast %c4_i32 : i32 to vector<2x1xi32>
    %201 = arith.cmpi sgt, %0, %200 : vector<2x1xi32>
    %202 = vector.shape_cast %201 : vector<2x1xi1> to vector<2x1xi1>
    %203 = vector.broadcast %202 : vector<2x1xi1> to vector<2x32xi1>
    %204 = arith.select %203, %199, %166 : vector<2x32xi1>, vector<2x32xf32>
    %205 = vector.shape_cast %201 : vector<2x1xi1> to vector<2x1xi1>
    %206 = vector.broadcast %205 : vector<2x1xi1> to vector<2x32xi1>
    %207 = arith.select %206, %197, %169 : vector<2x32xi1>, vector<2x32xf32>
    %cst_46 = arith.constant dense<0.000000e+00> : vector<2x128xf32>
    %208 = tpu.matmul %12, %13, %cst_46 {dimension_numbers = #tpu.dot_dimension_numbers<[1], [0], [0], [1], [0, 0, 1, 1], [], []>} : vector<2x32xf32>, vector<32x128xf32>, vector<2x128xf32> -> vector<2x128xf32>
    %cst_47 = arith.constant dense<0.000000e+00> : vector<2x128xf32>
    %209 = tpu.matmul %204, %14, %cst_47 {dimension_numbers = #tpu.dot_dimension_numbers<[1], [0], [0], [1], [0, 0, 1, 1], [], []>} : vector<2x32xf32>, vector<32x128xf32>, vector<2x128xf32> -> vector<2x128xf32>
    %210 = arith.addf %208, %209 : vector<2x128xf32>
    %211 = vector.broadcast %15 : vector<1x128xf32> to vector<2x128xf32>
    %212 = arith.addf %210, %211 : vector<2x128xf32>
    %213 = vector.extract_strided_slice %212 {offsets = [0, 0], sizes = [2, 32], strides = [1, 1]} : vector<2x128xf32> to vector<2x32xf32>
    %214 = arith.negf %213 : vector<2x32xf32>
    %215 = math.exp %214 : vector<2x32xf32>
    %cst_48 = arith.constant 1.000000e+00 : f32
    %216 = vector.broadcast %cst_48 : f32 to vector<2x32xf32>
    %217 = arith.addf %216, %215 : vector<2x32xf32>
    %218 = arith.divf %216, %217 : vector<2x32xf32>
    %219 = vector.extract_strided_slice %212 {offsets = [0, 32], sizes = [2, 32], strides = [1, 1]} : vector<2x128xf32> to vector<2x32xf32>
    %220 = arith.negf %219 : vector<2x32xf32>
    %221 = math.exp %220 : vector<2x32xf32>
    %cst_49 = arith.constant 1.000000e+00 : f32
    %222 = vector.broadcast %cst_49 : f32 to vector<2x32xf32>
    %223 = arith.addf %222, %221 : vector<2x32xf32>
    %224 = arith.divf %222, %223 : vector<2x32xf32>
    %225 = vector.extract_strided_slice %212 {offsets = [0, 64], sizes = [2, 32], strides = [1, 1]} : vector<2x128xf32> to vector<2x32xf32>
    %226 = math.tanh %225 : vector<2x32xf32>
    %227 = vector.extract_strided_slice %212 {offsets = [0, 96], sizes = [2, 32], strides = [1, 1]} : vector<2x128xf32> to vector<2x32xf32>
    %228 = arith.negf %227 : vector<2x32xf32>
    %229 = math.exp %228 : vector<2x32xf32>
    %cst_50 = arith.constant 1.000000e+00 : f32
    %230 = vector.broadcast %cst_50 : f32 to vector<2x32xf32>
    %231 = arith.addf %230, %229 : vector<2x32xf32>
    %232 = arith.divf %230, %231 : vector<2x32xf32>
    %233 = arith.mulf %224, %207 : vector<2x32xf32>
    %234 = arith.mulf %218, %226 : vector<2x32xf32>
    %235 = arith.addf %233, %234 : vector<2x32xf32>
    %236 = math.tanh %235 : vector<2x32xf32>
    %237 = arith.mulf %232, %236 : vector<2x32xf32>
    %c5_i32 = arith.constant 5 : i32
    %238 = vector.broadcast %c5_i32 : i32 to vector<2x1xi32>
    %239 = arith.cmpi sgt, %0, %238 : vector<2x1xi32>
    %240 = vector.shape_cast %239 : vector<2x1xi1> to vector<2x1xi1>
    %241 = vector.broadcast %240 : vector<2x1xi1> to vector<2x32xi1>
    %242 = arith.select %241, %237, %204 : vector<2x32xi1>, vector<2x32xf32>
    %c0_51 = arith.constant 0 : index
    %c0_52 = arith.constant 0 : index
    %243 = vector.load %arg6[%c0_51, %c0_52] : memref<32x128xf32, #tpu.memory_space<vmem>>, vector<32x128xf32>
    %c0_53 = arith.constant 0 : index
    %c0_54 = arith.constant 0 : index
    %244 = vector.load %arg7[%c0_53, %c0_54] : memref<32x128xf32, #tpu.memory_space<vmem>>, vector<32x128xf32>
    %c0_55 = arith.constant 0 : index
    %c0_56 = arith.constant 0 : index
    %245 = vector.load %arg8[%c0_55, %c0_56] : memref<1x128xf32, #tpu.memory_space<vmem>>, vector<1x128xf32>
    %cst_57 = arith.constant 0.000000e+00 : f32
    %246 = vector.broadcast %cst_57 : f32 to vector<2x32xf32>
    %cst_58 = arith.constant 0.000000e+00 : f32
    %247 = vector.broadcast %cst_58 : f32 to vector<2x32xf32>
    %cst_59 = arith.constant dense<0.000000e+00> : vector<2x128xf32>
    %248 = tpu.matmul %52, %243, %cst_59 {dimension_numbers = #tpu.dot_dimension_numbers<[1], [0], [0], [1], [0, 0, 1, 1], [], []>} : vector<2x32xf32>, vector<32x128xf32>, vector<2x128xf32> -> vector<2x128xf32>
    %cst_60 = arith.constant dense<0.000000e+00> : vector<2x128xf32>
    %249 = tpu.matmul %246, %244, %cst_60 {dimension_numbers = #tpu.dot_dimension_numbers<[1], [0], [0], [1], [0, 0, 1, 1], [], []>} : vector<2x32xf32>, vector<32x128xf32>, vector<2x128xf32> -> vector<2x128xf32>
    %250 = arith.addf %248, %249 : vector<2x128xf32>
    %251 = vector.broadcast %245 : vector<1x128xf32> to vector<2x128xf32>
    %252 = arith.addf %250, %251 : vector<2x128xf32>
    %253 = vector.extract_strided_slice %252 {offsets = [0, 0], sizes = [2, 32], strides = [1, 1]} : vector<2x128xf32> to vector<2x32xf32>
    %254 = arith.negf %253 : vector<2x32xf32>
    %255 = math.exp %254 : vector<2x32xf32>
    %cst_61 = arith.constant 1.000000e+00 : f32
    %256 = vector.broadcast %cst_61 : f32 to vector<2x32xf32>
    %257 = arith.addf %256, %255 : vector<2x32xf32>
    %258 = arith.divf %256, %257 : vector<2x32xf32>
    %259 = vector.extract_strided_slice %252 {offsets = [0, 32], sizes = [2, 32], strides = [1, 1]} : vector<2x128xf32> to vector<2x32xf32>
    %260 = arith.negf %259 : vector<2x32xf32>
    %261 = math.exp %260 : vector<2x32xf32>
    %cst_62 = arith.constant 1.000000e+00 : f32
    %262 = vector.broadcast %cst_62 : f32 to vector<2x32xf32>
    %263 = arith.addf %262, %261 : vector<2x32xf32>
    %264 = arith.divf %262, %263 : vector<2x32xf32>
    %265 = vector.extract_strided_slice %252 {offsets = [0, 64], sizes = [2, 32], strides = [1, 1]} : vector<2x128xf32> to vector<2x32xf32>
    %266 = math.tanh %265 : vector<2x32xf32>
    %267 = vector.extract_strided_slice %252 {offsets = [0, 96], sizes = [2, 32], strides = [1, 1]} : vector<2x128xf32> to vector<2x32xf32>
    %268 = arith.negf %267 : vector<2x32xf32>
    %269 = math.exp %268 : vector<2x32xf32>
    %cst_63 = arith.constant 1.000000e+00 : f32
    %270 = vector.broadcast %cst_63 : f32 to vector<2x32xf32>
    %271 = arith.addf %270, %269 : vector<2x32xf32>
    %272 = arith.divf %270, %271 : vector<2x32xf32>
    %273 = arith.mulf %264, %247 : vector<2x32xf32>
    %274 = arith.mulf %258, %266 : vector<2x32xf32>
    %275 = arith.addf %273, %274 : vector<2x32xf32>
    %276 = math.tanh %275 : vector<2x32xf32>
    %277 = arith.mulf %272, %276 : vector<2x32xf32>
    %c0_i32_64 = arith.constant 0 : i32
    %278 = vector.broadcast %c0_i32_64 : i32 to vector<2x1xi32>
    %279 = arith.cmpi sgt, %0, %278 : vector<2x1xi32>
    %280 = vector.shape_cast %279 : vector<2x1xi1> to vector<2x1xi1>
    %281 = vector.broadcast %280 : vector<2x1xi1> to vector<2x32xi1>
    %282 = arith.select %281, %277, %246 : vector<2x32xi1>, vector<2x32xf32>
    %283 = vector.shape_cast %279 : vector<2x1xi1> to vector<2x1xi1>
    %284 = vector.broadcast %283 : vector<2x1xi1> to vector<2x32xi1>
    %285 = arith.select %284, %275, %247 : vector<2x32xi1>, vector<2x32xf32>
    %cst_65 = arith.constant dense<0.000000e+00> : vector<2x128xf32>
    %286 = tpu.matmul %90, %243, %cst_65 {dimension_numbers = #tpu.dot_dimension_numbers<[1], [0], [0], [1], [0, 0, 1, 1], [], []>} : vector<2x32xf32>, vector<32x128xf32>, vector<2x128xf32> -> vector<2x128xf32>
    %cst_66 = arith.constant dense<0.000000e+00> : vector<2x128xf32>
    %287 = tpu.matmul %282, %244, %cst_66 {dimension_numbers = #tpu.dot_dimension_numbers<[1], [0], [0], [1], [0, 0, 1, 1], [], []>} : vector<2x32xf32>, vector<32x128xf32>, vector<2x128xf32> -> vector<2x128xf32>
    %288 = arith.addf %286, %287 : vector<2x128xf32>
    %289 = vector.broadcast %245 : vector<1x128xf32> to vector<2x128xf32>
    %290 = arith.addf %288, %289 : vector<2x128xf32>
    %291 = vector.extract_strided_slice %290 {offsets = [0, 0], sizes = [2, 32], strides = [1, 1]} : vector<2x128xf32> to vector<2x32xf32>
    %292 = arith.negf %291 : vector<2x32xf32>
    %293 = math.exp %292 : vector<2x32xf32>
    %cst_67 = arith.constant 1.000000e+00 : f32
    %294 = vector.broadcast %cst_67 : f32 to vector<2x32xf32>
    %295 = arith.addf %294, %293 : vector<2x32xf32>
    %296 = arith.divf %294, %295 : vector<2x32xf32>
    %297 = vector.extract_strided_slice %290 {offsets = [0, 32], sizes = [2, 32], strides = [1, 1]} : vector<2x128xf32> to vector<2x32xf32>
    %298 = arith.negf %297 : vector<2x32xf32>
    %299 = math.exp %298 : vector<2x32xf32>
    %cst_68 = arith.constant 1.000000e+00 : f32
    %300 = vector.broadcast %cst_68 : f32 to vector<2x32xf32>
    %301 = arith.addf %300, %299 : vector<2x32xf32>
    %302 = arith.divf %300, %301 : vector<2x32xf32>
    %303 = vector.extract_strided_slice %290 {offsets = [0, 64], sizes = [2, 32], strides = [1, 1]} : vector<2x128xf32> to vector<2x32xf32>
    %304 = math.tanh %303 : vector<2x32xf32>
    %305 = vector.extract_strided_slice %290 {offsets = [0, 96], sizes = [2, 32], strides = [1, 1]} : vector<2x128xf32> to vector<2x32xf32>
    %306 = arith.negf %305 : vector<2x32xf32>
    %307 = math.exp %306 : vector<2x32xf32>
    %cst_69 = arith.constant 1.000000e+00 : f32
    %308 = vector.broadcast %cst_69 : f32 to vector<2x32xf32>
    %309 = arith.addf %308, %307 : vector<2x32xf32>
    %310 = arith.divf %308, %309 : vector<2x32xf32>
    %311 = arith.mulf %302, %285 : vector<2x32xf32>
    %312 = arith.mulf %296, %304 : vector<2x32xf32>
    %313 = arith.addf %311, %312 : vector<2x32xf32>
    %314 = math.tanh %313 : vector<2x32xf32>
    %315 = arith.mulf %310, %314 : vector<2x32xf32>
    %c1_i32_70 = arith.constant 1 : i32
    %316 = vector.broadcast %c1_i32_70 : i32 to vector<2x1xi32>
    %317 = arith.cmpi sgt, %0, %316 : vector<2x1xi32>
    %318 = vector.shape_cast %317 : vector<2x1xi1> to vector<2x1xi1>
    %319 = vector.broadcast %318 : vector<2x1xi1> to vector<2x32xi1>
    %320 = arith.select %319, %315, %282 : vector<2x32xi1>, vector<2x32xf32>
    %321 = vector.shape_cast %317 : vector<2x1xi1> to vector<2x1xi1>
    %322 = vector.broadcast %321 : vector<2x1xi1> to vector<2x32xi1>
    %323 = arith.select %322, %313, %285 : vector<2x32xi1>, vector<2x32xf32>
    %cst_71 = arith.constant dense<0.000000e+00> : vector<2x128xf32>
    %324 = tpu.matmul %128, %243, %cst_71 {dimension_numbers = #tpu.dot_dimension_numbers<[1], [0], [0], [1], [0, 0, 1, 1], [], []>} : vector<2x32xf32>, vector<32x128xf32>, vector<2x128xf32> -> vector<2x128xf32>
    %cst_72 = arith.constant dense<0.000000e+00> : vector<2x128xf32>
    %325 = tpu.matmul %320, %244, %cst_72 {dimension_numbers = #tpu.dot_dimension_numbers<[1], [0], [0], [1], [0, 0, 1, 1], [], []>} : vector<2x32xf32>, vector<32x128xf32>, vector<2x128xf32> -> vector<2x128xf32>
    %326 = arith.addf %324, %325 : vector<2x128xf32>
    %327 = vector.broadcast %245 : vector<1x128xf32> to vector<2x128xf32>
    %328 = arith.addf %326, %327 : vector<2x128xf32>
    %329 = vector.extract_strided_slice %328 {offsets = [0, 0], sizes = [2, 32], strides = [1, 1]} : vector<2x128xf32> to vector<2x32xf32>
    %330 = arith.negf %329 : vector<2x32xf32>
    %331 = math.exp %330 : vector<2x32xf32>
    %cst_73 = arith.constant 1.000000e+00 : f32
    %332 = vector.broadcast %cst_73 : f32 to vector<2x32xf32>
    %333 = arith.addf %332, %331 : vector<2x32xf32>
    %334 = arith.divf %332, %333 : vector<2x32xf32>
    %335 = vector.extract_strided_slice %328 {offsets = [0, 32], sizes = [2, 32], strides = [1, 1]} : vector<2x128xf32> to vector<2x32xf32>
    %336 = arith.negf %335 : vector<2x32xf32>
    %337 = math.exp %336 : vector<2x32xf32>
    %cst_74 = arith.constant 1.000000e+00 : f32
    %338 = vector.broadcast %cst_74 : f32 to vector<2x32xf32>
    %339 = arith.addf %338, %337 : vector<2x32xf32>
    %340 = arith.divf %338, %339 : vector<2x32xf32>
    %341 = vector.extract_strided_slice %328 {offsets = [0, 64], sizes = [2, 32], strides = [1, 1]} : vector<2x128xf32> to vector<2x32xf32>
    %342 = math.tanh %341 : vector<2x32xf32>
    %343 = vector.extract_strided_slice %328 {offsets = [0, 96], sizes = [2, 32], strides = [1, 1]} : vector<2x128xf32> to vector<2x32xf32>
    %344 = arith.negf %343 : vector<2x32xf32>
    %345 = math.exp %344 : vector<2x32xf32>
    %cst_75 = arith.constant 1.000000e+00 : f32
    %346 = vector.broadcast %cst_75 : f32 to vector<2x32xf32>
    %347 = arith.addf %346, %345 : vector<2x32xf32>
    %348 = arith.divf %346, %347 : vector<2x32xf32>
    %349 = arith.mulf %340, %323 : vector<2x32xf32>
    %350 = arith.mulf %334, %342 : vector<2x32xf32>
    %351 = arith.addf %349, %350 : vector<2x32xf32>
    %352 = math.tanh %351 : vector<2x32xf32>
    %353 = arith.mulf %348, %352 : vector<2x32xf32>
    %c2_i32_76 = arith.constant 2 : i32
    %354 = vector.broadcast %c2_i32_76 : i32 to vector<2x1xi32>
    %355 = arith.cmpi sgt, %0, %354 : vector<2x1xi32>
    %356 = vector.shape_cast %355 : vector<2x1xi1> to vector<2x1xi1>
    %357 = vector.broadcast %356 : vector<2x1xi1> to vector<2x32xi1>
    %358 = arith.select %357, %353, %320 : vector<2x32xi1>, vector<2x32xf32>
    %359 = vector.shape_cast %355 : vector<2x1xi1> to vector<2x1xi1>
    %360 = vector.broadcast %359 : vector<2x1xi1> to vector<2x32xi1>
    %361 = arith.select %360, %351, %323 : vector<2x32xi1>, vector<2x32xf32>
    %cst_77 = arith.constant dense<0.000000e+00> : vector<2x128xf32>
    %362 = tpu.matmul %166, %243, %cst_77 {dimension_numbers = #tpu.dot_dimension_numbers<[1], [0], [0], [1], [0, 0, 1, 1], [], []>} : vector<2x32xf32>, vector<32x128xf32>, vector<2x128xf32> -> vector<2x128xf32>
    %cst_78 = arith.constant dense<0.000000e+00> : vector<2x128xf32>
    %363 = tpu.matmul %358, %244, %cst_78 {dimension_numbers = #tpu.dot_dimension_numbers<[1], [0], [0], [1], [0, 0, 1, 1], [], []>} : vector<2x32xf32>, vector<32x128xf32>, vector<2x128xf32> -> vector<2x128xf32>
    %364 = arith.addf %362, %363 : vector<2x128xf32>
    %365 = vector.broadcast %245 : vector<1x128xf32> to vector<2x128xf32>
    %366 = arith.addf %364, %365 : vector<2x128xf32>
    %367 = vector.extract_strided_slice %366 {offsets = [0, 0], sizes = [2, 32], strides = [1, 1]} : vector<2x128xf32> to vector<2x32xf32>
    %368 = arith.negf %367 : vector<2x32xf32>
    %369 = math.exp %368 : vector<2x32xf32>
    %cst_79 = arith.constant 1.000000e+00 : f32
    %370 = vector.broadcast %cst_79 : f32 to vector<2x32xf32>
    %371 = arith.addf %370, %369 : vector<2x32xf32>
    %372 = arith.divf %370, %371 : vector<2x32xf32>
    %373 = vector.extract_strided_slice %366 {offsets = [0, 32], sizes = [2, 32], strides = [1, 1]} : vector<2x128xf32> to vector<2x32xf32>
    %374 = arith.negf %373 : vector<2x32xf32>
    %375 = math.exp %374 : vector<2x32xf32>
    %cst_80 = arith.constant 1.000000e+00 : f32
    %376 = vector.broadcast %cst_80 : f32 to vector<2x32xf32>
    %377 = arith.addf %376, %375 : vector<2x32xf32>
    %378 = arith.divf %376, %377 : vector<2x32xf32>
    %379 = vector.extract_strided_slice %366 {offsets = [0, 64], sizes = [2, 32], strides = [1, 1]} : vector<2x128xf32> to vector<2x32xf32>
    %380 = math.tanh %379 : vector<2x32xf32>
    %381 = vector.extract_strided_slice %366 {offsets = [0, 96], sizes = [2, 32], strides = [1, 1]} : vector<2x128xf32> to vector<2x32xf32>
    %382 = arith.negf %381 : vector<2x32xf32>
    %383 = math.exp %382 : vector<2x32xf32>
    %cst_81 = arith.constant 1.000000e+00 : f32
    %384 = vector.broadcast %cst_81 : f32 to vector<2x32xf32>
    %385 = arith.addf %384, %383 : vector<2x32xf32>
    %386 = arith.divf %384, %385 : vector<2x32xf32>
    %387 = arith.mulf %378, %361 : vector<2x32xf32>
    %388 = arith.mulf %372, %380 : vector<2x32xf32>
    %389 = arith.addf %387, %388 : vector<2x32xf32>
    %390 = math.tanh %389 : vector<2x32xf32>
    %391 = arith.mulf %386, %390 : vector<2x32xf32>
    %c3_i32_82 = arith.constant 3 : i32
    %392 = vector.broadcast %c3_i32_82 : i32 to vector<2x1xi32>
    %393 = arith.cmpi sgt, %0, %392 : vector<2x1xi32>
    %394 = vector.shape_cast %393 : vector<2x1xi1> to vector<2x1xi1>
    %395 = vector.broadcast %394 : vector<2x1xi1> to vector<2x32xi1>
    %396 = arith.select %395, %391, %358 : vector<2x32xi1>, vector<2x32xf32>
    %397 = vector.shape_cast %393 : vector<2x1xi1> to vector<2x1xi1>
    %398 = vector.broadcast %397 : vector<2x1xi1> to vector<2x32xi1>
    %399 = arith.select %398, %389, %361 : vector<2x32xi1>, vector<2x32xf32>
    %cst_83 = arith.constant dense<0.000000e+00> : vector<2x128xf32>
    %400 = tpu.matmul %204, %243, %cst_83 {dimension_numbers = #tpu.dot_dimension_numbers<[1], [0], [0], [1], [0, 0, 1, 1], [], []>} : vector<2x32xf32>, vector<32x128xf32>, vector<2x128xf32> -> vector<2x128xf32>
    %cst_84 = arith.constant dense<0.000000e+00> : vector<2x128xf32>
    %401 = tpu.matmul %396, %244, %cst_84 {dimension_numbers = #tpu.dot_dimension_numbers<[1], [0], [0], [1], [0, 0, 1, 1], [], []>} : vector<2x32xf32>, vector<32x128xf32>, vector<2x128xf32> -> vector<2x128xf32>
    %402 = arith.addf %400, %401 : vector<2x128xf32>
    %403 = vector.broadcast %245 : vector<1x128xf32> to vector<2x128xf32>
    %404 = arith.addf %402, %403 : vector<2x128xf32>
    %405 = vector.extract_strided_slice %404 {offsets = [0, 0], sizes = [2, 32], strides = [1, 1]} : vector<2x128xf32> to vector<2x32xf32>
    %406 = arith.negf %405 : vector<2x32xf32>
    %407 = math.exp %406 : vector<2x32xf32>
    %cst_85 = arith.constant 1.000000e+00 : f32
    %408 = vector.broadcast %cst_85 : f32 to vector<2x32xf32>
    %409 = arith.addf %408, %407 : vector<2x32xf32>
    %410 = arith.divf %408, %409 : vector<2x32xf32>
    %411 = vector.extract_strided_slice %404 {offsets = [0, 32], sizes = [2, 32], strides = [1, 1]} : vector<2x128xf32> to vector<2x32xf32>
    %412 = arith.negf %411 : vector<2x32xf32>
    %413 = math.exp %412 : vector<2x32xf32>
    %cst_86 = arith.constant 1.000000e+00 : f32
    %414 = vector.broadcast %cst_86 : f32 to vector<2x32xf32>
    %415 = arith.addf %414, %413 : vector<2x32xf32>
    %416 = arith.divf %414, %415 : vector<2x32xf32>
    %417 = vector.extract_strided_slice %404 {offsets = [0, 64], sizes = [2, 32], strides = [1, 1]} : vector<2x128xf32> to vector<2x32xf32>
    %418 = math.tanh %417 : vector<2x32xf32>
    %419 = vector.extract_strided_slice %404 {offsets = [0, 96], sizes = [2, 32], strides = [1, 1]} : vector<2x128xf32> to vector<2x32xf32>
    %420 = arith.negf %419 : vector<2x32xf32>
    %421 = math.exp %420 : vector<2x32xf32>
    %cst_87 = arith.constant 1.000000e+00 : f32
    %422 = vector.broadcast %cst_87 : f32 to vector<2x32xf32>
    %423 = arith.addf %422, %421 : vector<2x32xf32>
    %424 = arith.divf %422, %423 : vector<2x32xf32>
    %425 = arith.mulf %416, %399 : vector<2x32xf32>
    %426 = arith.mulf %410, %418 : vector<2x32xf32>
    %427 = arith.addf %425, %426 : vector<2x32xf32>
    %428 = math.tanh %427 : vector<2x32xf32>
    %429 = arith.mulf %424, %428 : vector<2x32xf32>
    %c4_i32_88 = arith.constant 4 : i32
    %430 = vector.broadcast %c4_i32_88 : i32 to vector<2x1xi32>
    %431 = arith.cmpi sgt, %0, %430 : vector<2x1xi32>
    %432 = vector.shape_cast %431 : vector<2x1xi1> to vector<2x1xi1>
    %433 = vector.broadcast %432 : vector<2x1xi1> to vector<2x32xi1>
    %434 = arith.select %433, %429, %396 : vector<2x32xi1>, vector<2x32xf32>
    %435 = vector.shape_cast %431 : vector<2x1xi1> to vector<2x1xi1>
    %436 = vector.broadcast %435 : vector<2x1xi1> to vector<2x32xi1>
    %437 = arith.select %436, %427, %399 : vector<2x32xi1>, vector<2x32xf32>
    %cst_89 = arith.constant dense<0.000000e+00> : vector<2x128xf32>
    %438 = tpu.matmul %242, %243, %cst_89 {dimension_numbers = #tpu.dot_dimension_numbers<[1], [0], [0], [1], [0, 0, 1, 1], [], []>} : vector<2x32xf32>, vector<32x128xf32>, vector<2x128xf32> -> vector<2x128xf32>
    %cst_90 = arith.constant dense<0.000000e+00> : vector<2x128xf32>
    %439 = tpu.matmul %434, %244, %cst_90 {dimension_numbers = #tpu.dot_dimension_numbers<[1], [0], [0], [1], [0, 0, 1, 1], [], []>} : vector<2x32xf32>, vector<32x128xf32>, vector<2x128xf32> -> vector<2x128xf32>
    %440 = arith.addf %438, %439 : vector<2x128xf32>
    %441 = vector.broadcast %245 : vector<1x128xf32> to vector<2x128xf32>
    %442 = arith.addf %440, %441 : vector<2x128xf32>
    %443 = vector.extract_strided_slice %442 {offsets = [0, 0], sizes = [2, 32], strides = [1, 1]} : vector<2x128xf32> to vector<2x32xf32>
    %444 = arith.negf %443 : vector<2x32xf32>
    %445 = math.exp %444 : vector<2x32xf32>
    %cst_91 = arith.constant 1.000000e+00 : f32
    %446 = vector.broadcast %cst_91 : f32 to vector<2x32xf32>
    %447 = arith.addf %446, %445 : vector<2x32xf32>
    %448 = arith.divf %446, %447 : vector<2x32xf32>
    %449 = vector.extract_strided_slice %442 {offsets = [0, 32], sizes = [2, 32], strides = [1, 1]} : vector<2x128xf32> to vector<2x32xf32>
    %450 = arith.negf %449 : vector<2x32xf32>
    %451 = math.exp %450 : vector<2x32xf32>
    %cst_92 = arith.constant 1.000000e+00 : f32
    %452 = vector.broadcast %cst_92 : f32 to vector<2x32xf32>
    %453 = arith.addf %452, %451 : vector<2x32xf32>
    %454 = arith.divf %452, %453 : vector<2x32xf32>
    %455 = vector.extract_strided_slice %442 {offsets = [0, 64], sizes = [2, 32], strides = [1, 1]} : vector<2x128xf32> to vector<2x32xf32>
    %456 = math.tanh %455 : vector<2x32xf32>
    %457 = vector.extract_strided_slice %442 {offsets = [0, 96], sizes = [2, 32], strides = [1, 1]} : vector<2x128xf32> to vector<2x32xf32>
    %458 = arith.negf %457 : vector<2x32xf32>
    %459 = math.exp %458 : vector<2x32xf32>
    %cst_93 = arith.constant 1.000000e+00 : f32
    %460 = vector.broadcast %cst_93 : f32 to vector<2x32xf32>
    %461 = arith.addf %460, %459 : vector<2x32xf32>
    %462 = arith.divf %460, %461 : vector<2x32xf32>
    %463 = arith.mulf %454, %437 : vector<2x32xf32>
    %464 = arith.mulf %448, %456 : vector<2x32xf32>
    %465 = arith.addf %463, %464 : vector<2x32xf32>
    %466 = math.tanh %465 : vector<2x32xf32>
    %467 = arith.mulf %462, %466 : vector<2x32xf32>
    %c5_i32_94 = arith.constant 5 : i32
    %468 = vector.broadcast %c5_i32_94 : i32 to vector<2x1xi32>
    %469 = arith.cmpi sgt, %0, %468 : vector<2x1xi32>
    %470 = vector.shape_cast %469 : vector<2x1xi1> to vector<2x1xi1>
    %471 = vector.broadcast %470 : vector<2x1xi1> to vector<2x32xi1>
    %472 = arith.select %471, %467, %434 : vector<2x32xi1>, vector<2x32xf32>
    %c0_95 = arith.constant 0 : index
    %c0_96 = arith.constant 0 : index
    %473 = vector.load %arg9[%c0_95, %c0_96] : memref<2x32xf32, #tpu.memory_space<vmem>>, vector<2x32xf32>
    tpu.vector_store %arg9[%c0_95, %c0_96], %472 {strides = array<i32>} : memref<2x32xf32, #tpu.memory_space<vmem>>, vector<2x32xf32>,
    return
  }
  func.func @transform_0(%arg0: i32) -> (i32, i32, i32) {
    %c0_i32 = arith.constant 0 : i32
    %c0_i32_0 = arith.constant 0 : i32
    %c0_i32_1 = arith.constant 0 : i32
    %c0_i32_2 = arith.constant 0 : i32
    return %c0_i32, %c0_i32_0, %c0_i32_1 : i32, i32, i32
  }
  func.func @transform_1(%arg0: i32) -> (i32, i32) {
    %c0_i32 = arith.constant 0 : i32
    %c0_i32_0 = arith.constant 0 : i32
    %c0_i32_1 = arith.constant 0 : i32
    return %c0_i32, %c0_i32_0 : i32, i32
  }
  func.func @transform_2(%arg0: i32) -> (i32, i32) {
    %c0_i32 = arith.constant 0 : i32
    %c0_i32_0 = arith.constant 0 : i32
    %c0_i32_1 = arith.constant 0 : i32
    return %c0_i32, %c0_i32_0 : i32, i32
  }
  func.func @transform_3(%arg0: i32) -> (i32, i32) {
    %c0_i32 = arith.constant 0 : i32
    %c0_i32_0 = arith.constant 0 : i32
    %c0_i32_1 = arith.constant 0 : i32
    return %c0_i32, %c0_i32_0 : i32, i32
  }
  func.func @transform_4(%arg0: i32) -> (i32, i32) {
    %c0_i32 = arith.constant 0 : i32
    %c0_i32_0 = arith.constant 0 : i32
    %c0_i32_1 = arith.constant 0 : i32
    return %c0_i32, %c0_i32_0 : i32, i32
  }
  func.func @transform_5(%arg0: i32) -> (i32, i32) {
    %c0_i32 = arith.constant 0 : i32
    %c0_i32_0 = arith.constant 0 : i32
    %c0_i32_1 = arith.constant 0 : i32
    return %c0_i32, %c0_i32_0 : i32, i32
  }
  func.func @transform_6(%arg0: i32) -> (i32, i32) {
    %c0_i32 = arith.constant 0 : i32
    %c0_i32_0 = arith.constant 0 : i32
    %c0_i32_1 = arith.constant 0 : i32
    return %c0_i32, %c0_i32_0 : i32, i32
  }
  func.func @transform_7(%arg0: i32) -> (i32, i32) {
    %c0_i32 = arith.constant 0 : i32
    %c0_i32_0 = arith.constant 0 : i32
    %c0_i32_1 = arith.constant 0 : i32
    return %c0_i32, %c0_i32_0 : i32, i32
  }
  func.func @transform_8(%arg0: i32) -> (i32, i32) {
    %c0_i32 = arith.constant 0 : i32
    %c0_i32_0 = arith.constant 0 : i32
    %c0_i32_1 = arith.constant 0 : i32
    return %c0_i32, %c0_i32_0 : i32, i32
  }
}

</mosaic_0001>

<bundles_post_ra>
// kernel: model_forward.5
= control target key start
LH: loop header
LB: loop body
LE: loop exit
PB: predicated region body
PF: predicated region fallthrough
CT: control target
= control target key end

     0   :  { %v2140_v0 = vmov 0.0|0.0   ;;  %vm2141_vm0 = vmmov 0   ;;  %v2142_v4 = vmov 0.0   ;;  %v2143_v24 = vmov 1983009808   ;;  %s2708_s3 = inlined_call_operand.vmem [shape: f32[32,128], index: 3, kind: input, shape index: {}]   ;;  %s2709_s2 = inlined_call_operand.vmem [shape: f32[384,128], index: 2, kind: input, shape index: {}]   ;;  %s2710_s0 = inlined_call_operand.vmem [shape: f32[3,2,384], index: 0, kind: input, shape index: {}]   ;;  %s2711_s1 = inlined_call_operand.vmem [shape: s32[2,1], index: 1, kind: input, shape index: {}]   ;;  %s2712_s4 = inlined_call_operand.vmem [shape: f32[1,128], index: 4, kind: input, shape index: {}]   ;;  %s2713_s6 = inlined_call_operand.vmem [shape: f32[32,128], index: 6, kind: input, shape index: {}]   ;;  %s2714_s5 = inlined_call_operand.vmem [shape: f32[32,128], index: 5, kind: input, shape index: {}]   ;;  %s2715_s7 = inlined_call_operand.vmem [shape: f32[1,128], index: 7, kind: input, shape index: {}]   ;;  %s2716_s8 = inlined_call_operand.vmem [shape: f32[2,32], index: 8, kind: output, shape index: {}]  }
   0x1   :  { %1858 = vmatprep.subr.bf16.mxu0 %v2140_v0  ;;  %v83_v1 = vld [vmem:[%s2708_s3] sm:$0xff]  ;;  %v84_v2 = vld [vmem:[%s2708_s3 + $0x8] sm:$0xff]  ;;  %1662 = vmatprep.mubr.msk.f32.mxu0 %vm2141_vm0, %v2142_v4  ;;  %v85_v11 = vld [vmem:[%s2708_s3 + $0x10] sm:$0xff]  ;;  %v165_v25 = vunpack.c.l.s4 %v2143_v24  ;;  %v167_v26 = vlaneseq  ;;  %vm88_vm3 = vcmask 261120   ;;  %vm1430_vm8 = vcmask 254976  }
   0x2   :  { %v51_v3 = vld [vmem:[%s2709_s2 + $0x80] sm:$0xff]  ;;  %v2204_v5 = vpack.c.bf16 %v84_v2, %v83_v1  ;;  %v52_v6 = vld [vmem:[%s2709_s2 + $0x88] sm:$0xff]  ;;  %v86_v12 = vld [vmem:[%s2708_s3 + $0x18] sm:$0xff] }
   0x3   :  { %v35_v7 = vld [vmem:[%s2709_s2] sm:$0xff]  ;;  %v36_v8 = vld [vmem:[%s2709_s2 + $0x8] sm:$0xff]  ;;  %v2215_v9 = vpack.c.bf16 %v52_v6, %v51_v3  ;;  %v53_v13 = vld [vmem:[%s2709_s2 + $0x90] sm:$0xff]  ;;  %v2229_v14 = vpack.c.bf16 %v86_v12, %v85_v11  ;;  %v166_v36 = vunpack.c.0.s8 %v165_v25  ;;  %v168_v37 = vshrl.u32 %v167_v26, 7 }
   0x4   :  { %v2217_v10 = vpack.c.bf16 %v36_v8, %v35_v7  ;;  %1860 = vmatpush3.bf16.msra.mxu0 %v2204_v5  ;;  %v54_v15 = vld [vmem:[%s2709_s2 + $0x98] sm:$0xff]  ;;  %v37_v16 = vld [vmem:[%s2709_s2 + $0x10] sm:$0xff]  ;;  %v55_v19 = vld [vmem:[%s2709_s2 + $0xa0] sm:$0xff] }
   0x5   :  { %v38_v17 = vld [vmem:[%s2709_s2 + $0x18] sm:$0xff]  ;;  %1865 = vmatprep.subr.bf16.mxu1 %v2215_v9  ;;  %1861 = vmatprep.subr.bf16.mxu0 %v2140_v0  ;;  %v2242_v18 = vpack.c.bf16 %v54_v15, %v53_v13  ;;  %v56_v20 = vld [vmem:[%s2709_s2 + $0xa8] sm:$0xff]  ;;  %v67_v21 = vld [vmem:[%s2709_s2 + $0x100] sm:$0xff]  ;;  %v2318_v47 = vsub.s32 %v166_v36, %v168_v37 }
   0x6   :  { %1867 = vmatpush3.bf16.msra.mxu1 %v2217_v10  ;;  %v2254_v22 = vpack.c.bf16 %v38_v17, %v37_v16  ;;  %v68_v23 = vld [vmem:[%s2709_s2 + $0x108] sm:$0xff]  ;;  %v2260_v27 = vpack.c.bf16 %v56_v20, %v55_v19  ;;  %v39_v28 = vld [vmem:[%s2709_s2 + $0x20] sm:$0xff]  ;;  %v57_v31 = vld [vmem:[%s2709_s2 + $0xb0] sm:$0xff] }
   0x7   :  { %1869 = vmatprep.subr.bf16.mxu1 %v2242_v18  ;;  %v40_v29 = vld [vmem:[%s2709_s2 + $0x28] sm:$0xff]  ;;  %v2269_v30 = vpack.c.bf16 %v68_v23, %v67_v21  ;;  %v58_v32 = vld [vmem:[%s2709_s2 + $0xb8] sm:$0xff]  ;;  %v69_v33 = vld [vmem:[%s2709_s2 + $0x110] sm:$0xff] }
   0x8   :  { %1863 = vmatpush3.bf16.msra.mxu0 %v2229_v14  ;;  %v70_v34 = vld [vmem:[%s2709_s2 + $0x118] sm:$0xff]  ;;  %v2285_v35 = vpack.c.bf16 %v40_v29, %v39_v28  ;;  %v2289_v38 = vpack.c.bf16 %v58_v32, %v57_v31  ;;  %v41_v39 = vld [vmem:[%s2709_s2 + $0x30] sm:$0xff]  ;;  %v59_v42 = vld [vmem:[%s2709_s2 + $0xc0] sm:$0xff] }
   0x9   :  { %1896 = vmatprep.subr.bf16.mxu0 %v2140_v0  ;;  %v42_v40 = vld [vmem:[%s2709_s2 + $0x38] sm:$0xff]  ;;  %v2298_v41 = vpack.c.bf16 %v70_v34, %v69_v33  ;;  %v60_v43 = vld [vmem:[%s2709_s2 + $0xc8] sm:$0xff]  ;;  %v71_v44 = vld [vmem:[%s2709_s2 + $0x120] sm:$0xff] }
   0xa   :  { %1871 = vmatpush3.bf16.msra.mxu1 %v2254_v22  ;;  %v72_v45 = vld [vmem:[%s2709_s2 + $0x128] sm:$0xff]  ;;  %v2316_v46 = vpack.c.bf16 %v42_v40, %v41_v39  ;;  %v2321_v48 = vpack.c.bf16 %v60_v43, %v59_v42  ;;  %v43_v49 = vld [vmem:[%s2709_s2 + $0x40] sm:$0xff]  ;;  %v61_v52 = vld [vmem:[%s2709_s2 + $0xd0] sm:$0xff]  ;;  %v2144_v39 = vmov 0  }
   0xb   :  { %1663 = vmatmul.mubr.f32.vlgmr.msra.gmra.mrb[0].mxu0 %v2142_v4  ;;  %1873 = vmatprep.subr.bf16.mxu1 %v2260_v27  ;;  %v44_v50 = vld [vmem:[%s2709_s2 + $0x48] sm:$0xff]  ;;  %v2330_v51 = vpack.c.bf16 %v72_v45, %v71_v44  ;;  %v62_v53 = vld [vmem:[%s2709_s2 + $0xd8] sm:$0xff]  ;;  %v73_v54 = vld [vmem:[%s2709_s2 + $0x130] sm:$0xff] }
   0xc   :  { %1898 = vmatpush3.bf16.msra.mxu0 %v2269_v30  ;;  %1697 = vmatprep.mubr.msk.f32.mxu0 %vm2141_vm0, %v2142_v4  ;;  %v74_v55 = vld [vmem:[%s2709_s2 + $0x138] sm:$0xff]  ;;  %v30_v56 = vld [vmem:[%s2710_s0] sm:$0x3f]  ;;  %v2349_v57 = vpack.c.bf16 %v44_v50, %v43_v49  ;;  %v2353_v59 = vpack.c.bf16 %v62_v53, %v61_v52  ;;  %v45_v60 = vld [vmem:[%s2709_s2 + $0x50] sm:$0xff] }
   0xd   :  { %1899 = vmatprep.subr.bf16.mxu0 %v2140_v0  ;;  %v170_v58 = vrot.slane %v30_v56, %v2318_v47  ;;  %v46_v61 = vld [vmem:[%s2709_s2 + $0x58] sm:$0xff]  ;;  %v2362_v62 = vpack.c.bf16 %v74_v55, %v73_v54  ;;  %v63_v63 = vld [vmem:[%s2709_s2 + $0xe0] sm:$0xff]  ;;  %v64_v1 = vld [vmem:[%s2709_s2 + $0xe8] sm:$0xff]  ;;  %v163_v34 = vcombine.high %v30_v56, %v30_v56  ;;  %2087 = vset.pattern.permute.xlu1 %v2144_v39 }
   0xe   :  { %1875 = vmatpush3.bf16.msra.mxu1 %v2285_v35  ;;  %v75_v3 = vld [vmem:[%s2709_s2 + $0x140] sm:$0xff]  ;;  %v76_v6 = vld [vmem:[%s2709_s2 + $0x148] sm:$0xff]  ;;  %v2378_v7 = vpack.c.bf16 %v46_v61, %v45_v60  ;;  %v2381_v8 = vpack.c.bf16 %v64_v1, %v63_v63  ;;  %v65_v15 = vld [vmem:[%s2709_s2 + $0xf0] sm:$0xff]  ;;  %2088 = vset.pattern.permute.xlu0 %v2144_v39 }
   0xf   :  { %1877 = vmatprep.subr.bf16.mxu1 %v2289_v38  ;;  %v178_v2 = vcombine.high %v170_v58, %v170_v58  ;;  %v47_v11 = vld [vmem:[%s2709_s2 + $0x60] sm:$0xff]  ;;  %v48_v12 = vld [vmem:[%s2709_s2 + $0x68] sm:$0xff]  ;;  %v2390_v13 = vpack.c.bf16 %v76_v6, %v75_v3  ;;  %v66_v16 = vld [vmem:[%s2709_s2 + $0xf8] sm:$0xff]  ;;  %v177_v37 = vrot.slane %v163_v34, %v2318_v47 }
  0x10   :  { %1901 = vmatpush3.bf16.msra.mxu0 %v2298_v41  ;;  %v77_v17 = vld [vmem:[%s2709_s2 + $0x150] sm:$0xff]  ;;  %v78_v19 = vld [vmem:[%s2709_s2 + $0x158] sm:$0xff]  ;;  %v2406_v20 = vpack.c.bf16 %v48_v12, %v47_v11  ;;  %v2409_v21 = vpack.c.bf16 %v66_v16, %v65_v15  ;;  %v79_v26 = vld [vmem:[%s2709_s2 + $0x160] sm:$0xff] }
  0x11   :  { %1902 = vmatprep.subr.bf16.mxu0 %v2140_v0  ;;  %246 = vmatprep.mubr.f32.mxu1 %v178_v2  ;;  %v49_v23 = vld [vmem:[%s2709_s2 + $0x70] sm:$0xff]  ;;  %v50_v24 = vld [vmem:[%s2709_s2 + $0x78] sm:$0xff]  ;;  %v2418_v25 = vpack.c.bf16 %v78_v19, %v77_v17  ;;  %v80_v28 = vld [vmem:[%s2709_s2 + $0x168] sm:$0xff] }
  0x12   :  { %1879 = vmatpush3.bf16.msra.mxu1 %v2316_v46  ;;  %v2428_v29 = vpack.c.bf16 %v50_v24, %v49_v23  ;;  %v2432_v31 = vpack.c.bf16 %v80_v28, %v79_v26  ;;  %v81_v32 = vld [vmem:[%s2709_s2 + $0x170] sm:$0xff]  ;;  %v82_v33 = vld [vmem:[%s2709_s2 + $0x178] sm:$0xff]  ;;  %v2476_v40 = vld [vmem:[%s2711_s1] sm:$0x3]  ;;  %s2145_s1 = smov 64  }
  0x13   :  { %1881 = vmatprep.subr.bf16.mxu1 %v2321_v48  ;;  %v2444_v36 = vpack.c.bf16 %v82_v33, %v81_v32  ;;  %vm353_vm1 = vcmp.gt.s32.totalorder %v2476_v40, 0  ;;  %v2484_v53 = vld [vmem:[%s2712_s4] ss:$0 sm:$0xff]  ;;  %s2146_s4 = smov 32   ;;  %v1436_v16 = vld [vmem:[%s2710_s0 + $0x6] sm:$0x3f] }
  0x14   :  { %1904 = vmatpush3.bf16.msra.mxu0 %v2330_v51  ;;  %v354_v42 = vsel %vm353_vm1, 1, %v2144_v39  ;;  %v444_v17 = vrot.slane %v1436_v16, %v2318_v47  ;;  %vm621_vm4 = vcmp.gt.s32.totalorder %v2476_v40, 1  ;;  %vm889_vm6 = vcmp.gt.s32.totalorder %v2476_v40, 2 }
  0x15   :  { %1905 = vmatprep.subr.bf16.mxu0 %v2140_v0  ;;  %356 = vperm.xlu1 %2087, %v354_v42  }
  0x16   :  { %1883 = vmatpush3.bf16.msra.mxu1 %v2349_v57  ;;  %v452_v19 = vcombine.high %v444_v17, %v444_v17 }
  0x17   :  { %1885 = vmatprep.subr.bf16.mxu1 %v2353_v59 }
  0x18   :  { %1907 = vmatpush3.bf16.msra.mxu0 %v2362_v62 }
  0x19   :  { %1908 = vmatprep.subr.bf16.mxu0 %v2140_v0 }
  0x1a   :  { %1887 = vmatpush3.bf16.msra.mxu1 %v2378_v7 }
  0x1b   :  { %1889 = vmatprep.subr.bf16.mxu1 %v2381_v8 }
  0x1c   :  { %1910 = vmatpush3.bf16.msra.mxu0 %v2390_v13 }
  0x1d   :  { %1911 = vmatprep.subr.bf16.mxu0 %v2140_v0 }
  0x1e   :  { %1891 = vmatpush3.bf16.msra.mxu1 %v2406_v20 }
  0x1f   :  { %1893 = vmatprep.subr.bf16.mxu1 %v2409_v21 }
  0x20   :  { %1913 = vmatpush3.bf16.msra.mxu0 %v2418_v25 }
  0x21   :  { %1914 = vmatprep.subr.bf16.mxu0 %v2140_v0 }
  0x22   :  { %1895 = vmatpush3.bf16.msra.mxu1 %v2428_v29 }
  0x23   :  { %1920 = vmatprep.subr.bf16.mxu1 %v2140_v0 }
  0x24   :  { %1916 = vmatpush3.bf16.msra.mxu0 %v2432_v31 }
  0x25   :  { %247 = vmatmul.mubr.f32.vlgmr.msra.gmra.mrb[0].mxu1 %v170_v58  ;;  %1917 = vmatprep.subr.bf16.mxu0 %v2140_v0 }
  0x26   :  { %1922 = vmatpush3.bf16.msra.mxu1 %v2204_v5  ;;  %1708 = vmatprep.mubr.msk.f32.mxu1 %vm2141_vm0, %v2142_v4 }
  0x27   :  { %1923 = vmatprep.subr.bf16.mxu1 %v2140_v0 }
  0x28   :  { %1919 = vmatpush3.bf16.msra.mxu0 %v2444_v36 }
  0x29   :  { %1927 = vmatprep.subr.bf16.mxu0 %v2215_v9 }
  0x2a   :  { %1925 = vmatpush3.bf16.msra.mxu1 %v2229_v14 }
  0x2b   :  { %1698 = vmatmul.mubr.f32.vlgmr.msra.gmra.mrb[2].mxu0 %v177_v37  ;;  %1958 = vmatprep.subr.bf16.mxu1 %v2140_v0  ;;  %v437_v37 = vcombine.high %v1436_v16, %v1436_v16 }
  0x2c   :  { %1929 = vmatpush3.bf16.msra.mxu0 %v2217_v10  ;;  %520 = vmatprep.mubr.f32.mxu0 %v452_v19 }
  0x2d   :  { %1931 = vmatprep.subr.bf16.mxu0 %v2242_v18  ;;  %v451_v42 = vrot.slane %v437_v37, %v2318_v47 }
  0x30   :  { %1933 = vmatpush3.bf16.msra.mxu0 %v2254_v22 }
  0x31   :  { %1935 = vmatprep.subr.bf16.mxu0 %v2260_v27 }
  0x34   :  { %1937 = vmatpush3.bf16.msra.mxu0 %v2285_v35 }
  0x35   :  { %1939 = vmatprep.subr.bf16.mxu0 %v2289_v38 }
  0x38   :  { %1941 = vmatpush3.bf16.msra.mxu0 %v2316_v46 }
  0x39   :  { %1943 = vmatprep.subr.bf16.mxu0 %v2321_v48 }
  0x3c   :  { %1945 = vmatpush3.bf16.msra.mxu0 %v2349_v57 }
  0x3d   :  { %1947 = vmatprep.subr.bf16.mxu0 %v2353_v59 }
  0x40   :  { %1949 = vmatpush3.bf16.msra.mxu0 %v2378_v7 }
  0x41   :  { %1951 = vmatprep.subr.bf16.mxu0 %v2381_v8 }
  0x44   :  { %1953 = vmatpush3.bf16.msra.mxu0 %v2406_v20 }
  0x45   :  { %1955 = vmatprep.subr.bf16.mxu0 %v2409_v21 }
  0x48   :  { %1957 = vmatpush3.bf16.msra.mxu0 %v2428_v29 }
  0x49   :  { %1982 = vmatprep.subr.bf16.mxu0 %v2140_v0 }
  0x4b   :  { %521 = vmatmul.mubr.f32.vlgmr.msra.gmra.mrb[4].mxu0 %v444_v17 }
  0x4c   :  { %1984 = vmatpush3.bf16.msra.mxu0 %v2204_v5  ;;  %1754 = vmatprep.mubr.msk.f32.mxu0 %vm2141_vm0, %v2142_v4 }
  0x4d   :  { %1985 = vmatprep.subr.bf16.mxu0 %v2140_v0 }
  0x50   :  { %1987 = vmatpush3.bf16.msra.mxu0 %v2229_v14 }
  0x51   :  { %2020 = vmatprep.subr.bf16.mxu0 %v2140_v0 }
  0x94   :  { %v2503_v24 = vpop.permute.xlu1 %356 }
  0x95   :  { %vm358_vm2 = vcmp.eq.s32.totalorder %v2503_v24, 1 }
  0xde   :  { %v158_v43 = vpop.f32.mrb[0].mxu0 }
  0xdf   :  { %v1664_v44 = vpop.f32.mrb[1].mxu0 }
  0xf8   :  { %v1490_v45 = vpop.f32.mrb[0].mxu1 }
  0xf9   :  { %v1491_v49 = vpop.f32.mrb[1].mxu1 }
  0xfa   :  { %v1492_v50 = vadd.f32 %v1491_v49, %v1490_v45  ;;  %v1437_v49 = vld [vmem:[%s2710_s0 + $0xc] sm:$0x3f] }
  0xfc   :  { %v249_v52 = vadd.f32 %v1492_v50, %v158_v43  ;;  %v712_v50 = vrot.slane %v1437_v49, %v2318_v47 }
  0xfe   :  { %v318_v54 = vpop.f32.mrb[2].mxu0 }
  0xff   :  { %v319_v55 = vadd.f32 %v318_v54, %v249_v52  ;;  %v1699_v56 = vpop.f32.mrb[3].mxu0  ;;  %v720_v52 = vcombine.high %v712_v50, %v712_v50 }
 0x101   :  { %v328_v58 = vadd.f32 %v2484_v53, %v319_v55 }
 0x103   :  { %2092 = vtanh.f32 %v328_v58  ;;  %v1439_v61 = vmul.f32 -1.442695, %v328_v58 }
 0x105   :  { %2094 = vpow2.f32 %v1439_v61  ;;  %v900_v61 = vld [vmem:[%s2713_s6] sm:$0xff] }
 0x10d   :  { %v2093_v60 = vpop.eup %2092 }
 0x10e   :  { %338 = vrot.lane.b32.xlu0 %v2093_v60, %s2145_s1 }
 0x10f   :  { %v2095_v63 = vpop.eup %2094 }
 0x110   :  { %v332_v1 = vadd.f32 1.0, %v2095_v63  ;;  %v901_v63 = vld [vmem:[%s2713_s6 + $0x8] sm:$0xff] }
 0x112   :  { %2096 = vrcp.f32 %v332_v1  ;;  %v2588_v1 = vpack.c.bf16 %v901_v63, %v900_v61  ;;  %v890_v63 = vsel %vm889_vm6, 1, %v2144_v39 }
 0x11c   :  { %v2097_v2 = vpop.eup %2096 }
 0x11d   :  { %v336_v11 = vmul.f32 0.0, %v2097_v2 }
 0x11e   :  { %v1547_v32 = vpop.f32.mrb[4].mxu0 }
 0x11f   :  { %v1548_v33 = vpop.f32.mrb[5].mxu0 }
 0x120   :  { %v1549_v34 = vadd.f32 %v1548_v33, %v1547_v32  ;;  %v2658_v33 = vld [vmem:[%s2715_s7] ss:$0 sm:$0xff] }
 0x180   :  { %v339_v3 = vpop.permute.xlu0 %338 }
 0x181   :  { %v341_v6 = vmul.f32 %v2097_v2, %v339_v3  ;;  %v903_v3 = vld [vmem:[%s2713_s6 + $0x18] sm:$0xff] }
 0x183   :  { %343 = vrot.lane.b32.xlu0 %v341_v6, %s2146_s4 }
 0x1f5   :  { %v344_v12 = vpop.permute.xlu0 %343 }
 0x1f6   :  { %v2489_v15 = vadd.f32 %v344_v12, %v336_v11 }
 0x1f8   :  { %2098 = vtanh.f32 %v2489_v15 }
 0x202   :  { %v2099_v23 = vpop.eup %2098 }
 0x203   :  { %349 = vrot.lane.b32.xlu1 %v2099_v23, %s2145_s1 }
 0x275   :  { %v350_v26 = vpop.permute.xlu1 %349 }
 0x276   :  { %v352_v28 = vmul.f32 %v2097_v2, %v350_v26  ;;  %v902_v2 = vld [vmem:[%s2713_s6 + $0x10] sm:$0xff] }
 0x277   :  { %v2598_v6 = vpack.c.bf16 %v903_v3, %v902_v2 }
 0x278   :  { %v2508_v5 = vsel %vm358_vm2, %v352_v28, 0.0 }
 0x279   :  { %362 = vrot.lane.b32.xlu0 %v2508_v5, %s2146_s4 }
 0x2eb   :  { %v2512_v14 = vpop.permute.xlu0 %362 }
 0x2ec   :  { %1709 = vmatmul.mubr.msk.f32.vlgmr.msra.gmra.mrb[2].mxu1 %vm88_vm3, %v2512_v14 }
 0x2ed   :  { %1960 = vmatpush3.bf16.msra.mxu1 %v2269_v30  ;;  %1743 = vmatprep.mubr.msk.f32.mxu1 %vm2141_vm0, %v2142_v4 }
 0x2ee   :  { %1961 = vmatprep.subr.bf16.mxu1 %v2140_v0 }
 0x2f1   :  { %1963 = vmatpush3.bf16.msra.mxu1 %v2298_v41 }
 0x2f2   :  { %1964 = vmatprep.subr.bf16.mxu1 %v2140_v0 }
 0x2f5   :  { %1966 = vmatpush3.bf16.msra.mxu1 %v2330_v51 }
 0x2f6   :  { %1967 = vmatprep.subr.bf16.mxu1 %v2140_v0 }
 0x2f9   :  { %1969 = vmatpush3.bf16.msra.mxu1 %v2362_v62 }
 0x2fa   :  { %1970 = vmatprep.subr.bf16.mxu1 %v2140_v0 }
 0x2fd   :  { %1972 = vmatpush3.bf16.msra.mxu1 %v2390_v13 }
 0x2fe   :  { %1973 = vmatprep.subr.bf16.mxu1 %v2140_v0 }
 0x301   :  { %1975 = vmatpush3.bf16.msra.mxu1 %v2418_v25 }
 0x302   :  { %1976 = vmatprep.subr.bf16.mxu1 %v2140_v0 }
 0x305   :  { %1978 = vmatpush3.bf16.msra.mxu1 %v2432_v31 }
 0x306   :  { %1979 = vmatprep.subr.bf16.mxu1 %v2140_v0 }
 0x309   :  { %1981 = vmatpush3.bf16.msra.mxu1 %v2444_v36 }
 0x30a   :  { %1989 = vmatprep.subr.bf16.mxu1 %v2215_v9 }
 0x30c   :  { %1744 = vmatmul.mubr.f32.vlgmr.msra.gmra.mrb[4].mxu1 %v451_v42 }
 0x30d   :  { %1991 = vmatpush3.bf16.msra.mxu1 %v2217_v10  ;;  %788 = vmatprep.mubr.f32.mxu1 %v720_v52 }
 0x30e   :  { %1993 = vmatprep.subr.bf16.mxu1 %v2242_v18 }
 0x311   :  { %1995 = vmatpush3.bf16.msra.mxu1 %v2254_v22 }
 0x312   :  { %1997 = vmatprep.subr.bf16.mxu1 %v2260_v27 }
 0x315   :  { %1999 = vmatpush3.bf16.msra.mxu1 %v2285_v35 }
 0x316   :  { %2001 = vmatprep.subr.bf16.mxu1 %v2289_v38 }
 0x319   :  { %2003 = vmatpush3.bf16.msra.mxu1 %v2316_v46 }
 0x31a   :  { %2005 = vmatprep.subr.bf16.mxu1 %v2321_v48  ;;  %v622_v48 = vsel %vm621_vm4, 1, %v2144_v39 }
 0x31d   :  { %2007 = vmatpush3.bf16.msra.mxu1 %v2349_v57 }
 0x31e   :  { %2009 = vmatprep.subr.bf16.mxu1 %v2353_v59 }
 0x321   :  { %2011 = vmatpush3.bf16.msra.mxu1 %v2378_v7 }
 0x322   :  { %2013 = vmatprep.subr.bf16.mxu1 %v2381_v8 }
 0x325   :  { %2015 = vmatpush3.bf16.msra.mxu1 %v2406_v20 }
 0x326   :  { %2017 = vmatprep.subr.bf16.mxu1 %v2409_v21 }
 0x329   :  { %2019 = vmatpush3.bf16.msra.mxu1 %v2428_v29  ;;  %v2559_v29 = vsel %vm358_vm2, %v2489_v15, 0.0 }
 0x32a   :  { %2044 = vmatprep.subr.bf16.mxu1 %v2140_v0 }
 0x32c   :  { %789 = vmatmul.mubr.f32.vlgmr.msra.gmra.mrb[6].mxu1 %v712_v50 }
 0x32d   :  { %1800 = vmatprep.mubr.msk.f32.mxu1 %vm2141_vm0, %v2142_v4  ;;  %2046 = vmatpush3.bf16.msra.mxu1 %v2588_v1 }
 0x32e   :  { %2047 = vmatprep.subr.bf16.mxu1 %v2140_v0 }
 0x331   :  { %2049 = vmatpush3.bf16.msra.mxu1 %v2598_v6 }
 0x332   :  { %2056 = vmatprep.subr.bf16.mxu1 %v2140_v0 }
 0x334   :  { %1801 = vmatmul.mubr.f32.vlgmr.msra.gmra.mrb[8].mxu1 %v2142_v4 }
 0x335   :  { %2058 = vmatpush3.bf16.msra.mxu1 %v2588_v1  ;;  %1822 = vmatprep.mubr.msk.f32.mxu1 %vm2141_vm0, %v2142_v4 }
 0x336   :  { %2059 = vmatprep.subr.bf16.mxu1 %v2140_v0 }
 0x339   :  { %2061 = vmatpush3.bf16.msra.mxu1 %v2598_v6 }
 0x33a   :  { %2068 = vmatprep.subr.bf16.mxu1 %v2140_v0 }
 0x3bf   :  { %v432_v9 = vpop.f32.mrb[2].mxu1 }
 0x3c0   :  { %v523_v10 = vadd.f32 %v1549_v34, %v432_v9  ;;  %v1710_v18 = vpop.f32.mrb[3].mxu1 }
 0x3df   :  { %v592_v22 = vpop.f32.mrb[4].mxu1 }
 0x3e0   :  { %v593_v27 = vadd.f32 %v592_v22, %v523_v10  ;;  %v1745_v35 = vpop.f32.mrb[5].mxu1 }
 0x3e2   :  { %v596_v38 = vadd.f32 %v2484_v53, %v593_v27 }
 0x3e4   :  { %2100 = vtanh.f32 %v596_v38  ;;  %v1441_v57 = vmul.f32 -1.442695, %v596_v38 }
 0x3e6   :  { %2102 = vpow2.f32 %v1441_v57 }
 0x3ee   :  { %v2101_v46 = vpop.eup %2100 }
 0x3ef   :  { %606 = vrot.lane.b32.xlu1 %v2101_v46, %s2145_s1 }
 0x3f0   :  { %v2103_v59 = vpop.eup %2102 }
 0x3f1   :  { %v600_v7 = vadd.f32 1.0, %v2103_v59 }
 0x3f3   :  { %624 = vperm.xlu1 %2087, %v622_v48   ;;  %2104 = vrcp.f32 %v600_v7 }
 0x3fd   :  { %v2105_v8 = vpop.eup %2104 }
 0x3fe   :  { %v604_v43 = vmul.f32 %v2105_v8, %v2559_v29 }
 0x3ff   :  { %v1604_v11 = vpop.f32.mrb[6].mxu1 }
 0x400   :  { %v1605_v12 = vpop.f32.mrb[7].mxu1 }
 0x401   :  { %v1606_v15 = vadd.f32 %v1605_v12, %v1604_v11 }
 0x461   :  { %v607_v20 = vpop.permute.xlu1 %606 }
 0x462   :  { %v609_v21 = vmul.f32 %v2105_v8, %v607_v20 }
 0x464   :  { %611 = vrot.lane.b32.xlu0 %v609_v21, %s2146_s4 }
 0x472   :  { %v2572_v55 = vpop.permute.xlu1 %624 }
 0x473   :  { %vm626_vm5 = vcmp.eq.s32.totalorder %v2572_v55, 1 }
 0x4d6   :  { %v612_v44 = vpop.permute.xlu0 %611 }
 0x4d7   :  { %v2562_v45 = vadd.f32 %v612_v44, %v604_v43 }
 0x4d9   :  { %2106 = vtanh.f32 %v2562_v45  ;;  %v628_v40 = vsel %vm626_vm5, %v2562_v45, %v2559_v29 }
 0x4e3   :  { %v2107_v54 = vpop.eup %2106 }
 0x4e4   :  { %617 = vrot.lane.b32.xlu0 %v2107_v54, %s2145_s1 }
 0x556   :  { %v618_v56 = vpop.permute.xlu0 %617 }
 0x557   :  { %v620_v58 = vmul.f32 %v2105_v8, %v618_v56 }
 0x559   :  { %v2578_v60 = vsel %vm626_vm5, %v620_v58, %v2508_v5 }
 0x55a   :  { %630 = vrot.lane.b32.xlu1 %v2578_v60, %s2146_s4 }
 0x5cc   :  { %v631_v16 = vpop.permute.xlu1 %630 }
 0x5cd   :  { %1755 = vmatmul.mubr.msk.f32.vlgmr.msra.gmra.mrb[6].mxu0 %vm88_vm3, %v631_v16 }
 0x5ce   :  { %2022 = vmatpush3.bf16.msra.mxu0 %v2269_v30  ;;  %1789 = vmatprep.mubr.msk.f32.mxu0 %vm2141_vm0, %v2142_v4  ;;  %v705_v30 = vcombine.high %v1437_v49, %v1437_v49 }
 0x5cf   :  { %2023 = vmatprep.subr.bf16.mxu0 %v2140_v0 }
 0x5d2   :  { %2025 = vmatpush3.bf16.msra.mxu0 %v2298_v41  ;;  %v896_v41 = vld [vmem:[%s2714_s5] sm:$0xff] }
 0x5d3   :  { %2026 = vmatprep.subr.bf16.mxu0 %v2140_v0 }
 0x5d6   :  { %2028 = vmatpush3.bf16.msra.mxu0 %v2330_v51  ;;  %v897_v51 = vld [vmem:[%s2714_s5 + $0x8] sm:$0xff] }
 0x5d7   :  { %2029 = vmatprep.subr.bf16.mxu0 %v2140_v0 }
 0x5da   :  { %2031 = vmatpush3.bf16.msra.mxu0 %v2362_v62  ;;  %v719_v62 = vrot.slane %v705_v30, %v2318_v47  ;;  %v971_v47 = vpop.f32.mrb[8].mxu1 }
 0x5db   :  { %2032 = vmatprep.subr.bf16.mxu0 %v2140_v0 }
 0x5de   :  { %2034 = vmatpush3.bf16.msra.mxu0 %v2390_v13  ;;  %v2051_v13 = vpack.c.bf16 %v897_v51, %v896_v41 }
 0x5df   :  { %2035 = vmatprep.subr.bf16.mxu0 %v2140_v0 }
 0x5e2   :  { %2037 = vmatpush3.bf16.msra.mxu0 %v2418_v25  ;;  %v898_v25 = vld [vmem:[%s2714_s5 + $0x10] sm:$0xff] }
 0x5e3   :  { %2038 = vmatprep.subr.bf16.mxu0 %v2140_v0 }
 0x5e6   :  { %2040 = vmatpush3.bf16.msra.mxu0 %v2432_v31  ;;  %v899_v31 = vld [vmem:[%s2714_s5 + $0x18] sm:$0xff] }
 0x5e7   :  { %2041 = vmatprep.subr.bf16.mxu0 %v2140_v0  ;;  %v2054_v17 = vpack.c.bf16 %v899_v31, %v898_v25 }
 0x5ea   :  { %2043 = vmatpush3.bf16.msra.mxu0 %v2444_v36  ;;  %v1802_v36 = vpop.f32.mrb[9].mxu1 }
 0x5eb   :  { %2050 = vmatprep.subr.bf16.mxu0 %v2140_v0 }
 0x5ed   :  { %1790 = vmatmul.mubr.f32.vlgmr.msra.gmra.mrb[8].mxu0 %v719_v62 }
 0x5ee   :  { %2052 = vmatpush3.bf16.msra.mxu0 %v2051_v13  ;;  %1811 = vmatprep.mubr.msk.f32.mxu0 %vm2141_vm0, %v2142_v4 }
 0x5ef   :  { %2053 = vmatprep.subr.bf16.mxu0 %v2140_v0 }
 0x5f2   :  { %2055 = vmatpush3.bf16.msra.mxu0 %v2054_v17 }
 0x5f3   :  { %2062 = vmatprep.subr.bf16.mxu0 %v2140_v0 }
 0x5f5   :  { %1812 = vmatmul.mubr.msk.f32.vlgmr.msra.gmra.mrb[10].mxu0 %vm88_vm3, %v2512_v14 }
 0x5f6   :  { %2064 = vmatpush3.bf16.msra.mxu0 %v2051_v13  ;;  %1833 = vmatprep.mubr.msk.f32.mxu0 %vm2141_vm0, %v2142_v4 }
 0x5f7   :  { %2065 = vmatprep.subr.bf16.mxu0 %v2140_v0 }
 0x5fa   :  { %2067 = vmatpush3.bf16.msra.mxu0 %v2054_v17 }
 0x5fb   :  { %2074 = vmatprep.subr.bf16.mxu0 %v2140_v0 }
 0x5fd   :  { %1834 = vmatmul.mubr.msk.f32.vlgmr.msra.gmra.mrb[12].mxu0 %vm88_vm3, %v631_v16 }
 0x5fe   :  { %2076 = vmatpush3.bf16.msra.mxu0 %v2051_v13  ;;  %1855 = vmatprep.mubr.msk.f32.mxu0 %vm2141_vm0, %v2142_v4 }
 0x5ff   :  { %2077 = vmatprep.subr.bf16.mxu0 %v2140_v0 }
 0x602   :  { %2079 = vmatpush3.bf16.msra.mxu0 %v2054_v17 }
 0x6a0   :  { %v700_v19 = vpop.f32.mrb[6].mxu0 }
 0x6a1   :  { %v791_v23 = vadd.f32 %v1606_v15, %v700_v19  ;;  %v1756_v26 = vpop.f32.mrb[7].mxu0 }
 0x6c0   :  { %v860_v28 = vpop.f32.mrb[8].mxu0 }
 0x6c1   :  { %v861_v5 = vadd.f32 %v860_v28, %v791_v23  ;;  %v1791_v32 = vpop.f32.mrb[9].mxu0 }
 0x6c3   :  { %v864_v8 = vadd.f32 %v2484_v53, %v861_v5 }
 0x6c5   :  { %v1443_v43 = vmul.f32 -1.442695, %v864_v8 }
 0x6c8   :  { %v1041_v34 = vpop.f32.mrb[10].mxu0 }
 0x6c9   :  { %v1042_v14 = vadd.f32 %v1041_v34, %v971_v47  ;;  %v1813_v37 = vpop.f32.mrb[11].mxu0 }
 0x6cb   :  { %v1051_v42 = vadd.f32 %v2658_v33, %v1042_v14 }
 0x6cd   :  { %2108 = vtanh.f32 %v1051_v42  ;;  %v1446_v22 = vmul.f32 -1.442695, %v1051_v42 }
 0x6cf   :  { %2110 = vpow2.f32 %v1446_v22 }
 0x6d0   :  { %v1219_v9 = vpop.f32.mrb[12].mxu0 }
 0x6d1   :  { %v1835_v10 = vpop.f32.mrb[13].mxu0 }
 0x6d7   :  { %v2109_v18 = vpop.eup %2108 }
 0x6d8   :  { %1061 = vrot.lane.b32.xlu0 %v2109_v18, %s2145_s1 }
 0x6d9   :  { %v2111_v27 = vpop.eup %2110 }
 0x6da   :  { %v1055_v35 = vadd.f32 1.0, %v2111_v27 }
 0x6dc   :  { %2112 = vrcp.f32 %v1055_v35 }
 0x6e6   :  { %v2113_v38 = vpop.eup %2112 }
 0x6e7   :  { %v1059_v57 = vmul.f32 0.0, %v2113_v38 }
 0x74a   :  { %v1062_v46 = vpop.permute.xlu0 %1061 }
 0x74b   :  { %v1064_v48 = vmul.f32 %v2113_v38, %v1062_v46 }
 0x74d   :  { %1066 = vrot.lane.b32.xlu1 %v1064_v48, %s2146_s4 }
 0x7bf   :  { %v1067_v59 = vpop.permute.xlu1 %1066 }
 0x7c0   :  { %v1069_v7 = vadd.f32 %v1067_v59, %v1059_v57 }
 0x7c2   :  { %2114 = vtanh.f32 %v1069_v7  ;;  %v1077_v13 = vsel %vm358_vm2, %v1069_v7, 0.0 }
 0x7c3   :  { %2116 = vtanh.f32 %v864_v8 }
 0x7c4   :  { %2118 = vpow2.f32 %v1443_v43 }
 0x7cc   :  { %v2115_v20 = vpop.eup %2114 }
 0x7cd   :  { %1072 = vrot.lane.b32.xlu0 %v2115_v20, %s2145_s1  ;;  %v2117_v21 = vpop.eup %2116 }
 0x7ce   :  { %v2119_v44 = vpop.eup %2118 }
 0x7cf   :  { %v868_v49 = vadd.f32 1.0, %v2119_v44 }
 0x7d1   :  { %874 = vrot.lane.b32.xlu0 %v2117_v21, %s2145_s1  ;;  %2120 = vrcp.f32 %v868_v49 }
 0x7db   :  { %v2121_v56 = vpop.eup %2120 }
 0x83f   :  { %v1073_v50 = vpop.permute.xlu0 %1072 }
 0x840   :  { %v1075_v52 = vmul.f32 %v2113_v38, %v1073_v50 }
 0x842   :  { %v1076_v54 = vsel %vm358_vm2, %v1075_v52, 0.0 }
 0x843   :  { %1079 = vrot.lane.b32.xlu1 %v1076_v54, %s2146_s4  ;;  %v875_v53 = vpop.permute.xlu0 %874 }
 0x844   :  { %v877_v58 = vmul.f32 %v2121_v56, %v875_v53 }
 0x846   :  { %879 = vrot.lane.b32.xlu0 %v877_v58, %s2146_s4 }
 0x84a   :  { %892 = vperm.xlu0 %2088, %v890_v63  }
 0x8b5   :  { %v1080_v61 = vpop.permute.xlu1 %1079 }
 0x8b6   :  { %1823 = vmatmul.mubr.msk.f32.vlgmr.msra.gmra.mrb[10].mxu1 %vm88_vm3, %v1080_v61 }
 0x8b7   :  { %2070 = vmatpush3.bf16.msra.mxu1 %v2588_v1  ;;  %1844 = vmatprep.mubr.msk.f32.mxu1 %vm2141_vm0, %v2142_v4 }
 0x8b8   :  { %2071 = vmatprep.subr.bf16.mxu1 %v2140_v0  ;;  %v880_v39 = vpop.permute.xlu0 %879 }
 0x8bb   :  { %2073 = vmatpush3.bf16.msra.mxu1 %v2598_v6  ;;  %v872_v6 = vmul.f32 %v2121_v56, %v628_v40 }
 0x8bd   :  { %v882_v16 = vadd.f32 %v880_v39, %v872_v6 }
 0x8c9   :  { %v893_v45 = vpop.permute.xlu0 %892 }
 0x8ca   :  { %vm894_vm7 = vcmp.eq.s32.totalorder %v893_v45, 1 }
 0x989   :  { %v1149_v2 = vpop.f32.mrb[10].mxu1 }
 0x98a   :  { %v1220_v3 = vadd.f32 %v1219_v9, %v1149_v2  ;;  %v1824_v11 = vpop.f32.mrb[11].mxu1 }
 0x98c   :  { %v1223_v12 = vadd.f32 %v2658_v33, %v1220_v3 }
 0x98e   :  { %2122 = vtanh.f32 %v1223_v12  ;;  %v1449_v1 = vmul.f32 -1.442695, %v1223_v12 }
 0x990   :  { %2124 = vpow2.f32 %v1449_v1 }
 0x998   :  { %v2123_v15 = vpop.eup %2122 }
 0x999   :  { %1233 = vrot.lane.b32.xlu1 %v2123_v15, %s2145_s1 }
 0x99a   :  { %v2125_v4 = vpop.eup %2124 }
 0x99b   :  { %v1227_v0 = vadd.f32 1.0, %v2125_v4 }
 0x99d   :  { %2126 = vrcp.f32 %v1227_v0 }
 0x99e   :  { %2128 = vtanh.f32 %v882_v16 }
 0x9a7   :  { %v2127_v30 = vpop.eup %2126 }
 0x9a8   :  { %v2129_v62 = vpop.eup %2128  ;;  %v1231_v25 = vmul.f32 %v2127_v30, %v1077_v13 }
 0xa0b   :  { %v1234_v41 = vpop.permute.xlu1 %1233 }
 0xa0c   :  { %v1236_v51 = vmul.f32 %v2127_v30, %v1234_v41 }
 0xa0e   :  { %1238 = vrot.lane.b32.xlu1 %v1236_v51, %s2146_s4 }
 0xa12   :  { %885 = vrot.lane.b32.xlu1 %v2129_v62, %s2145_s1 }
 0xa80   :  { %v1239_v31 = vpop.permute.xlu1 %1238 }
 0xa81   :  { %v1241_v17 = vadd.f32 %v1239_v31, %v1231_v25 }
 0xa83   :  { %2130 = vtanh.f32 %v1241_v17  ;;  %v1249_v46 = vsel %vm626_vm5, %v1241_v17, %v1077_v13 }
 0xa84   :  { %v886_v29 = vpop.permute.xlu1 %885 }
 0xa85   :  { %v888_v36 = vmul.f32 %v2121_v56, %v886_v29 }
 0xa87   :  { %v895_v19 = vsel %vm894_vm7, %v888_v36, %v2578_v60 }
 0xa8d   :  { %v2131_v47 = vpop.eup %2130 }
 0xa8e   :  { %1244 = vrot.lane.b32.xlu1 %v2131_v47, %s2145_s1 }
 0xa92   :  { %1326 = vrot.lane.b32.xlu1 %v895_v19, %s2146_s4 }
 0xb00   :  { %v1245_v23 = vpop.permute.xlu1 %1244 }
 0xb01   :  { %v1247_v26 = vmul.f32 %v2127_v30, %v1245_v23 }
 0xb03   :  { %v1248_v24 = vsel %vm626_vm5, %v1247_v26, %v1076_v54 }
 0xb04   :  { %1251 = vrot.lane.b32.xlu0 %v1248_v24, %s2146_s4  ;;  %v1327_v28 = vpop.permute.xlu1 %1326 }
 0xb05   :  { %1856 = vmatmul.mubr.msk.f32.vlgmr.msra.gmra.mrb[14].mxu0 %vm88_vm3, %v1327_v28 }
 0xb76   :  { %v1252_v5 = vpop.permute.xlu0 %1251 }
 0xb77   :  { %1845 = vmatmul.mubr.msk.f32.vlgmr.msra.gmra.mrb[12].mxu1 %vm88_vm3, %v1252_v5 }
 0xbd8   :  { %v1396_v32 = vpop.f32.mrb[14].mxu0 }
 0xbd9   :  { %v1857_v34 = vpop.f32.mrb[15].mxu0 }
 0xc4a   :  { %v1321_v14 = vpop.f32.mrb[12].mxu1 }
 0xc4b   :  { %v1397_v37 = vadd.f32 %v1396_v32, %v1321_v14  ;;  %v1846_v60 = vpop.f32.mrb[13].mxu1 }
 0xc4d   :  { %v1400_v42 = vadd.f32 %v2658_v33, %v1397_v37 }
 0xc4f   :  { %2132 = vtanh.f32 %v1400_v42  ;;  %v1452_v10 = vmul.f32 -1.442695, %v1400_v42 }
 0xc51   :  { %2134 = vpow2.f32 %v1452_v10 }
 0xc59   :  { %v2133_v9 = vpop.eup %2132 }
 0xc5a   :  { %1410 = vrot.lane.b32.xlu0 %v2133_v9, %s2145_s1 }
 0xc5b   :  { %v2135_v18 = vpop.eup %2134 }
 0xc5c   :  { %v1404_v22 = vadd.f32 1.0, %v2135_v18 }
 0xc5e   :  { %2136 = vrcp.f32 %v1404_v22 }
 0xc68   :  { %v2137_v27 = vpop.eup %2136 }
 0xc69   :  { %v1408_v48 = vmul.f32 %v2137_v27, %v1249_v46 }
 0xccc   :  { %v1411_v35 = vpop.permute.xlu0 %1410 }
 0xccd   :  { %v1413_v38 = vmul.f32 %v2137_v27, %v1411_v35 }
 0xccf   :  { %1415 = vrot.lane.b32.xlu1 %v1413_v38, %s2146_s4 }
 0xd41   :  { %v1416_v57 = vpop.permute.xlu1 %1415 }
 0xd42   :  { %v1418_v33 = vadd.f32 %v1416_v57, %v1408_v48 }
 0xd44   :  { %2138 = vtanh.f32 %v1418_v33 }
 0xd4e   :  { %v2139_v59 = vpop.eup %2138 }
 0xd4f   :  { %1421 = vrot.lane.b32.xlu0 %v2139_v59, %s2145_s1 }
 0xdc1   :  { %v1422_v7 = vpop.permute.xlu0 %1421 }
 0xdc2   :  { %v1424_v8 = vmul.f32 %v2137_v27, %v1422_v7 }
 0xdc4   :  { %v1425_v20 = vsel %vm894_vm7, %v1424_v8, %v1248_v24 }
 0xdc5   :  { %1427 = vrot.lane.b32.xlu1 %v1425_v20, %s2146_s4 }
 0xe37   :  { %v1428_v21 = vpop.permute.xlu1 %1427 }
 0xe38   :  { %1431 = vst.msk [vmem:[%s2716_s8] sm:$0x3] %vm1430_vm8, %v1428_v21 }

// kernel: model_forward.7
= control target key start
LH: loop header
LB: loop body
LE: loop exit
PB: predicated region body
PF: predicated region fallthrough
CT: control target
= control target key end

     0   :  { %v381_v0 = vmov 0.0|0.0   ;;  %vm382_vm0 = vmmov 0   ;;  %v383_v4 = vmov 0.0   ;;  %vm38_vm1 = vcmask 261120   ;;  %s490_s3 = inlined_call_operand.vmem [shape: f32[32,64], index: 3, kind: input, shape index: {}]   ;;  %s491_s2 = inlined_call_operand.vmem [shape: f32[32,64], index: 2, kind: input, shape index: {}]   ;;  %s492_s1 = inlined_call_operand.vmem [shape: f32[2,32], index: 1, kind: input, shape index: {}]   ;;  %s493_s0 = inlined_call_operand.vmem [shape: f32[2,32], index: 0, kind: input, shape index: {}]   ;;  %s494_s5 = inlined_call_operand.vmem [shape: f32[64,1], index: 5, kind: input, shape index: {}]   ;;  %s495_s6 = inlined_call_operand.<no memory space> [shape: f32[1,1], index: 6, kind: input, shape index: {}]   ;;  %s496_s4 = inlined_call_operand.vmem [shape: f32[1,64], index: 4, kind: input, shape index: {}]   ;;  %s497_s7 = inlined_call_operand.vmem [shape: f32[2,1], index: 7, kind: output, shape index: {}]  }
   0x1   :  { %354 = vmatprep.subr.bf16.mxu1 %v381_v0  ;;  %v34_v1 = vld [vmem:[%s490_s3] sm:$0xff]  ;;  %v35_v2 = vld [vmem:[%s490_s3 + $0x8] sm:$0xff]  ;;  %v36_v3 = vld [vmem:[%s490_s3 + $0x10] sm:$0xff]  ;;  %321 = vmatprep.mubr.msk.f32.mxu1 %vm382_vm0, %v383_v4  ;;  %v12_v28 = vstv %s495_s6  ;;  %vm209_vm2 = vcmask 523264   ;;  %vm283_vm3 = vcmask 1024  }
   0x2   :  { %v355_v5 = vpack.c.bf16 %v35_v2, %v34_v1  ;;  %v37_v6 = vld [vmem:[%s490_s3 + $0x18] sm:$0xff]  ;;  %366 = vmatprep.subr.bf16.mxu0 %v381_v0  ;;  %351 = vmatprep.mubr.msk.f32.mxu0 %vm382_vm0, %v383_v4  ;;  %v29_v8 = vld [vmem:[%s491_s2] sm:$0xff]  ;;  %v30_v9 = vld [vmem:[%s491_s2 + $0x8] sm:$0xff]  ;;  %13 = vst [vmem:[#allocation2] sm:$0x1] %v12_v28 }
   0x3   :  { %v358_v7 = vpack.c.bf16 %v37_v6, %v36_v3  ;;  %v33_v10 = vld [vmem:[%s492_s1] sm:$0x3]  ;;  %v361_v11 = vpack.c.bf16 %v30_v9, %v29_v8  ;;  %v31_v12 = vld [vmem:[%s491_s2 + $0x10] sm:$0xff]  ;;  %v32_v13 = vld [vmem:[%s491_s2 + $0x18] sm:$0xff] }
   0x4   :  { %356 = vmatpush3.bf16.msra.mxu1 %v355_v5  ;;  %v364_v14 = vpack.c.bf16 %v32_v13, %v31_v12  ;;  %v28_v15 = vld [vmem:[%s493_s0] sm:$0x3]  ;;  %v195_v17 = vld [vmem:[%s494_s5 + $0x8] sm:$0xff]  ;;  %v196_v19 = vld [vmem:[%s494_s5 + $0x10] sm:$0xff] }
   0x5   :  { %357 = vmatprep.subr.bf16.mxu1 %v381_v0  ;;  %v194_v16 = vld [vmem:[%s494_s5] sm:$0xff]  ;;  %v197_v20 = vld [vmem:[%s494_s5 + $0x18] sm:$0xff]  ;;  %v199_v23 = vld [vmem:[%s494_s5 + $0x28] sm:$0xff] }
   0x6   :  { %v367_v18 = vpack.c.bf16 %v195_v17, %v194_v16  ;;  %v370_v21 = vpack.c.bf16 %v197_v20, %v196_v19  ;;  %v198_v22 = vld [vmem:[%s494_s5 + $0x20] sm:$0xff]  ;;  %v200_v25 = vld [vmem:[%s494_s5 + $0x30] sm:$0xff]  ;;  %v201_v26 = vld [vmem:[%s494_s5 + $0x38] sm:$0xff] }
   0x7   :  { %v373_v24 = vpack.c.bf16 %v199_v23, %v198_v22  ;;  %v376_v27 = vpack.c.bf16 %v201_v26, %v200_v25  ;;  %v291_v32 = vld [vmem:[%s496_s4] ss:$0 sm:$0xff] }
   0x8   :  { %359 = vmatpush3.bf16.msra.mxu1 %v358_v7  ;;  %368 = vmatpush3.bf16.msra.mxu0 %v367_v18 }
   0x9   :  { %360 = vmatprep.subr.bf16.mxu1 %v381_v0  ;;  %369 = vmatprep.subr.bf16.mxu0 %v381_v0  ;;  %v292_v37 = vld [vmem:[#allocation2] ss:$0 sm:$0xff] }
   0xb   :  { %322 = vmatmul.mubr.msk.f32.vlgmr.msra.gmra.mrb[0].mxu1 %vm38_vm1, %v33_v10 }
   0xc   :  { %362 = vmatpush3.bf16.msra.mxu1 %v361_v11  ;;  %332 = vmatprep.mubr.msk.f32.mxu1 %vm382_vm0, %v383_v4 }
   0xd   :  { %363 = vmatprep.subr.bf16.mxu1 %v381_v0  ;;  %371 = vmatpush3.bf16.msra.mxu0 %v370_v21 }
   0xe   :  { %372 = vmatprep.subr.bf16.mxu0 %v381_v0 }
  0x10   :  { %365 = vmatpush3.bf16.msra.mxu1 %v364_v14 }
  0x11   :  { %374 = vmatpush3.bf16.msra.mxu0 %v373_v24 }
  0x12   :  { %375 = vmatprep.subr.bf16.mxu0 %v381_v0 }
  0x13   :  { %333 = vmatmul.mubr.msk.f32.vlgmr.msra.gmra.mrb[2].mxu1 %vm38_vm1, %v28_v15 }
  0x15   :  { %377 = vmatpush3.bf16.msra.mxu0 %v376_v27 }
  0xde   :  { %v108_v29 = vpop.f32.mrb[0].mxu1 }
  0xdf   :  { %v323_v30 = vpop.f32.mrb[1].mxu1 }
  0xe6   :  { %v181_v31 = vpop.f32.mrb[2].mxu1 }
  0xe7   :  { %v182_v33 = vadd.f32 %v181_v31, %v108_v29  ;;  %v334_v34 = vpop.f32.mrb[3].mxu1 }
  0xe9   :  { %v192_v35 = vadd.f32 %v291_v32, %v182_v33 }
  0xeb   :  { %v193_v36 = vmax.f32 %v192_v35, 0.0 }
  0xed   :  { %352 = vmatmul.mubr.msk.f32.vlgmr.msra.gmra.mrb[0].mxu0 %vm209_vm2, %v193_v36 }
 0x1c0   :  { %v279_v38 = vpop.f32.mrb[0].mxu0 }
 0x1c1   :  { %v280_v39 = vadd.f32 %v292_v37, %v279_v38  ;;  %v353_v40 = vpop.f32.mrb[1].mxu0 }
 0x1c3   :  { %284 = vst.msk [vmem:[%s497_s7] sm:$0x3] %vm283_vm3, %v280_v39 }

// kernel: model_forward.6
= control target key start
LH: loop header
LB: loop body
LE: loop exit
PB: predicated region body
PF: predicated region fallthrough
CT: control target
= control target key end

     0   :  { %v2869_v0 = vmov 0.0|0.0   ;;  %vm2870_vm0 = vmmov 0   ;;  %v2871_v8 = vmov 0.0   ;;  %vm50_vm1 = vcmask 261120   ;;  %s3365_s3 = inlined_call_operand.vmem [shape: f32[32,128], index: 3, kind: input, shape index: {}]   ;;  %s3366_s2 = inlined_call_operand.vmem [shape: f32[32,128], index: 2, kind: input, shape index: {}]   ;;  %s3367_s0 = inlined_call_operand.vmem [shape: f32[6,2,32], index: 0, kind: input, shape index: {}]   ;;  %s3368_s1 = inlined_call_operand.vmem [shape: s32[2,1], index: 1, kind: input, shape index: {}]   ;;  %s3369_s4 = inlined_call_operand.vmem [shape: f32[1,128], index: 4, kind: input, shape index: {}]   ;;  %s3370_s5 = inlined_call_operand.vmem [shape: f32[32,128], index: 5, kind: input, shape index: {}]   ;;  %s3371_s6 = inlined_call_operand.vmem [shape: f32[32,128], index: 6, kind: input, shape index: {}]   ;;  %s3372_s7 = inlined_call_operand.vmem [shape: f32[1,128], index: 7, kind: input, shape index: {}]   ;;  %s3373_s8 = inlined_call_operand.vmem [shape: f32[2,32], index: 8, kind: output, shape index: {}]  }
   0x1   :  { %2621 = vmatprep.subr.bf16.mxu0 %v2869_v0  ;;  %2627 = vmatprep.subr.bf16.mxu1 %v2869_v0  ;;  %v45_v1 = vld [vmem:[%s3365_s3] sm:$0xff]  ;;  %v46_v2 = vld [vmem:[%s3365_s3 + $0x8] sm:$0xff]  ;;  %v47_v6 = vld [vmem:[%s3365_s3 + $0x10] sm:$0xff]  ;;  %v2872_v15 = vmov 0   ;;  %vm2190_vm14 = vcmask 254976  }
   0x2   :  { %v41_v3 = vld [vmem:[%s3366_s2] sm:$0xff]  ;;  %v2931_v4 = vpack.c.bf16 %v46_v2, %v45_v1  ;;  %v42_v5 = vld [vmem:[%s3366_s2 + $0x8] sm:$0xff]  ;;  %v48_v7 = vld [vmem:[%s3365_s3 + $0x18] sm:$0xff]  ;;  %2365 = vmatprep.mubr.msk.f32.mxu0 %vm2870_vm0, %v2871_v8  ;;  %2376 = vmatprep.mubr.msk.f32.mxu1 %vm2870_vm0, %v2871_v8 }
   0x3   :  { %v2946_v9 = vpack.c.bf16 %v42_v5, %v41_v3  ;;  %v43_v10 = vld [vmem:[%s3366_s2 + $0x10] sm:$0xff]  ;;  %v44_v11 = vld [vmem:[%s3366_s2 + $0x18] sm:$0xff]  ;;  %v2955_v12 = vpack.c.bf16 %v48_v7, %v47_v6  ;;  %v30_v14 = vld [vmem:[%s3367_s0] sm:$0x3]  ;;  %2771 = vset.pattern.permute.xlu1 %v2872_v15  ;;  %2772 = vset.pattern.permute.xlu0 %v2872_v15 }
   0x4   :  { %2623 = vmatpush3.bf16.msra.mxu0 %v2931_v4  ;;  %v2959_v13 = vpack.c.bf16 %v44_v11, %v43_v10  ;;  %v2987_v16 = vld [vmem:[%s3368_s1] sm:$0x3]  ;;  %s2873_s1 = smov 64   ;;  %v2196_v35 = vld [vmem:[%s3367_s0 + $0x2] sm:$0x3]  ;;  %v1141_v41 = vld [vmem:[%s3370_s5 + $0x8] sm:$0xff] }
   0x5   :  { %2629 = vmatpush3.bf16.msra.mxu1 %v2946_v9  ;;  %2624 = vmatprep.subr.bf16.mxu0 %v2869_v0  ;;  %vm228_vm2 = vcmp.gt.s32.totalorder %v2987_v16, 0  ;;  %v2995_v19 = vld [vmem:[%s3369_s4] ss:$0 sm:$0xff]  ;;  %s2874_s4 = smov 32   ;;  %v2197_v36 = vld [vmem:[%s3367_s0 + $0x4] sm:$0x3] }
   0x6   :  { %2630 = vmatprep.subr.bf16.mxu1 %v2869_v0  ;;  %v229_v17 = vsel %vm228_vm2, 1, %v2872_v15  ;;  %v2198_v38 = vld [vmem:[%s3367_s0 + $0x6] sm:$0x3]  ;;  %v2199_v39 = vld [vmem:[%s3367_s0 + $0x8] sm:$0x3]  ;;  %v1142_v44 = vld [vmem:[%s3370_s5 + $0x10] sm:$0xff] }
   0x7   :  { %231 = vperm.xlu1 %2771, %v229_v17   ;;  %v1140_v40 = vld [vmem:[%s3370_s5] sm:$0xff]  ;;  %v2200_v42 = vld [vmem:[%s3367_s0 + $0xa] sm:$0x3]  ;;  %v1143_v45 = vld [vmem:[%s3370_s5 + $0x18] sm:$0xff]  ;;  %vm409_vm4 = vcmp.gt.s32.totalorder %v2987_v16, 1  ;;  %vm590_vm6 = vcmp.gt.s32.totalorder %v2987_v16, 2 }
   0x8   :  { %2626 = vmatpush3.bf16.msra.mxu0 %v2955_v12  ;;  %v3052_v43 = vpack.c.bf16 %v1141_v41, %v1140_v40  ;;  %v3063_v46 = vpack.c.bf16 %v1143_v45, %v1142_v44  ;;  %v410_v7 = vsel %vm409_vm4, 1, %v2872_v15  ;;  %vm771_vm8 = vcmp.gt.s32.totalorder %v2987_v16, 3 }
   0x9   :  { %2632 = vmatpush3.bf16.msra.mxu1 %v2959_v13  ;;  %2633 = vmatprep.subr.bf16.mxu0 %v2869_v0  ;;  %vm952_vm10 = vcmp.gt.s32.totalorder %v2987_v16, 4  ;;  %vm1133_vm12 = vcmp.gt.s32.totalorder %v2987_v16, 5 }
   0xa   :  { %2639 = vmatprep.subr.bf16.mxu1 %v2869_v0 }
   0xb   :  { %2366 = vmatmul.mubr.f32.vlgmr.msra.gmra.mrb[0].mxu0 %v2871_v8 }
   0xc   :  { %2377 = vmatmul.mubr.msk.f32.vlgmr.msra.gmra.mrb[0].mxu1 %vm50_vm1, %v30_v14  ;;  %2635 = vmatpush3.bf16.msra.mxu0 %v2931_v4 }
   0xd   :  { %2641 = vmatpush3.bf16.msra.mxu1 %v2946_v9  ;;  %2398 = vmatprep.mubr.msk.f32.mxu1 %vm2870_vm0, %v2871_v8 }
   0xe   :  { %2642 = vmatprep.subr.bf16.mxu1 %v2869_v0  ;;  %2636 = vmatprep.subr.bf16.mxu0 %v2869_v0 }
   0xf   :  { %2387 = vmatprep.mubr.msk.f32.mxu0 %vm2870_vm0, %v2871_v8 }
  0x10   :  { %2638 = vmatpush3.bf16.msra.mxu0 %v2955_v12 }
  0x11   :  { %2644 = vmatpush3.bf16.msra.mxu1 %v2959_v13  ;;  %2645 = vmatprep.subr.bf16.mxu0 %v2869_v0 }
  0x12   :  { %2651 = vmatprep.subr.bf16.mxu1 %v2869_v0 }
  0x14   :  { %2399 = vmatmul.mubr.msk.f32.vlgmr.msra.gmra.mrb[2].mxu1 %vm50_vm1, %v2196_v35 }
  0x15   :  { %2653 = vmatpush3.bf16.msra.mxu1 %v2946_v9  ;;  %2420 = vmatprep.mubr.msk.f32.mxu1 %vm2870_vm0, %v2871_v8 }
  0x16   :  { %2654 = vmatprep.subr.bf16.mxu1 %v2869_v0 }
  0x19   :  { %2656 = vmatpush3.bf16.msra.mxu1 %v2959_v13 }
  0x1a   :  { %2663 = vmatprep.subr.bf16.mxu1 %v2869_v0 }
  0x1c   :  { %2421 = vmatmul.mubr.msk.f32.vlgmr.msra.gmra.mrb[4].mxu1 %vm50_vm1, %v2197_v36  ;;  %v591_v36 = vsel %vm590_vm6, 1, %v2872_v15 }
  0x1d   :  { %2665 = vmatpush3.bf16.msra.mxu1 %v2946_v9  ;;  %2442 = vmatprep.mubr.msk.f32.mxu1 %vm2870_vm0, %v2871_v8 }
  0x1e   :  { %2666 = vmatprep.subr.bf16.mxu1 %v2869_v0 }
  0x21   :  { %2668 = vmatpush3.bf16.msra.mxu1 %v2959_v13 }
  0x22   :  { %2675 = vmatprep.subr.bf16.mxu1 %v2869_v0 }
  0x24   :  { %2443 = vmatmul.mubr.msk.f32.vlgmr.msra.gmra.mrb[6].mxu1 %vm50_vm1, %v2198_v38 }
  0x25   :  { %2677 = vmatpush3.bf16.msra.mxu1 %v2946_v9  ;;  %2464 = vmatprep.mubr.msk.f32.mxu1 %vm2870_vm0, %v2871_v8 }
  0x26   :  { %2678 = vmatprep.subr.bf16.mxu1 %v2869_v0 }
  0x29   :  { %2680 = vmatpush3.bf16.msra.mxu1 %v2959_v13 }
  0x2a   :  { %2687 = vmatprep.subr.bf16.mxu1 %v2869_v0 }
  0x2c   :  { %2465 = vmatmul.mubr.msk.f32.vlgmr.msra.gmra.mrb[8].mxu1 %vm50_vm1, %v2199_v39 }
  0x2d   :  { %2689 = vmatpush3.bf16.msra.mxu1 %v2946_v9  ;;  %2486 = vmatprep.mubr.msk.f32.mxu1 %vm2870_vm0, %v2871_v8 }
  0x2e   :  { %2690 = vmatprep.subr.bf16.mxu1 %v2869_v0 }
  0x31   :  { %2692 = vmatpush3.bf16.msra.mxu1 %v2959_v13 }
  0x32   :  { %2699 = vmatprep.subr.bf16.mxu1 %v2869_v0 }
  0x34   :  { %2487 = vmatmul.mubr.msk.f32.vlgmr.msra.gmra.mrb[10].mxu1 %vm50_vm1, %v2200_v42 }
  0x35   :  { %2701 = vmatpush3.bf16.msra.mxu1 %v3052_v43  ;;  %2508 = vmatprep.mubr.msk.f32.mxu1 %vm2870_vm0, %v2871_v8 }
  0x36   :  { %2702 = vmatprep.subr.bf16.mxu1 %v2869_v0 }
  0x39   :  { %2704 = vmatpush3.bf16.msra.mxu1 %v3063_v46 }
  0x3a   :  { %2711 = vmatprep.subr.bf16.mxu1 %v2869_v0 }
  0x86   :  { %v3070_v47 = vpop.permute.xlu1 %231 }
  0x87   :  { %vm233_vm3 = vcmp.eq.s32.totalorder %v3070_v47, 1 }
  0xde   :  { %v120_v18 = vpop.f32.mrb[0].mxu0 }
  0xdf   :  { %v193_v20 = vpop.f32.mrb[0].mxu1  ;;  %v2367_v21 = vpop.f32.mrb[1].mxu0 }
  0xe0   :  { %v194_v22 = vadd.f32 %v193_v20, %v120_v18  ;;  %v2378_v23 = vpop.f32.mrb[1].mxu1 }
  0xe2   :  { %v203_v24 = vadd.f32 %v2995_v19, %v194_v22 }
  0xe4   :  { %2773 = vtanh.f32 %v203_v24  ;;  %v2203_v26 = vmul.f32 -1.442695, %v203_v24 }
  0xe6   :  { %2775 = vpow2.f32 %v2203_v26 }
  0xe7   :  { %v380_v51 = vpop.f32.mrb[2].mxu1 }
  0xe8   :  { %v2400_v52 = vpop.f32.mrb[3].mxu1 }
  0xee   :  { %v2774_v25 = vpop.eup %2773 }
  0xef   :  { %213 = vrot.lane.b32.xlu0 %v2774_v25, %s2873_s1  ;;  %v3076_v53 = vpop.f32.mrb[4].mxu1 }
  0xf0   :  { %v2776_v27 = vpop.eup %2775  ;;  %v2422_v54 = vpop.f32.mrb[5].mxu1 }
  0xf1   :  { %v207_v28 = vadd.f32 1.0, %v2776_v27 }
  0xf3   :  { %2777 = vrcp.f32 %v207_v28 }
  0xf7   :  { %v3078_v55 = vpop.f32.mrb[6].mxu1 }
  0xf8   :  { %v2444_v56 = vpop.f32.mrb[7].mxu1 }
  0xfd   :  { %v2778_v29 = vpop.eup %2777 }
  0xfe   :  { %v211_v32 = vmul.f32 0.0, %v2778_v29 }
  0xff   :  { %v3080_v57 = vpop.f32.mrb[8].mxu1 }
 0x100   :  { %v2466_v58 = vpop.f32.mrb[9].mxu1 }
 0x107   :  { %v3084_v60 = vpop.f32.mrb[10].mxu1 }
 0x108   :  { %v2488_v61 = vpop.f32.mrb[11].mxu1 }
 0x161   :  { %v214_v30 = vpop.permute.xlu0 %213 }
 0x162   :  { %v216_v31 = vmul.f32 %v2778_v29, %v214_v30 }
 0x164   :  { %218 = vrot.lane.b32.xlu0 %v216_v31, %s2874_s4 }
 0x1d6   :  { %v219_v33 = vpop.permute.xlu0 %218 }
 0x1d7   :  { %v3000_v34 = vadd.f32 %v219_v33, %v211_v32 }
 0x1d9   :  { %2779 = vtanh.f32 %v3000_v34  ;;  %v235_v18 = vsel %vm233_vm3, %v3000_v34, 0.0 }
 0x1e3   :  { %v2780_v37 = vpop.eup %2779 }
 0x1e4   :  { %224 = vrot.lane.b32.xlu1 %v2780_v37, %s2873_s1 }
 0x256   :  { %v225_v48 = vpop.permute.xlu1 %224 }
 0x257   :  { %v227_v49 = vmul.f32 %v2778_v29, %v225_v48 }
 0x259   :  { %v234_v50 = vsel %vm233_vm3, %v227_v49, 0.0 }
 0x25a   :  { %237 = vrot.lane.b32.xlu0 %v234_v50, %s2874_s4 }
 0x2cc   :  { %v238_v59 = vpop.permute.xlu0 %237 }
 0x2cd   :  { %2388 = vmatmul.mubr.msk.f32.vlgmr.msra.gmra.mrb[2].mxu0 %vm50_vm1, %v238_v59  ;;  %2509 = vmatmul.mubr.msk.f32.vlgmr.msra.gmra.mrb[12].mxu1 %vm50_vm1, %v238_v59 }
 0x2ce   :  { %2647 = vmatpush3.bf16.msra.mxu0 %v2931_v4  ;;  %2713 = vmatpush3.bf16.msra.mxu1 %v3052_v43 }
 0x2cf   :  { %2648 = vmatprep.subr.bf16.mxu0 %v2869_v0  ;;  %2714 = vmatprep.subr.bf16.mxu1 %v2869_v0 }
 0x2d0   :  { %2409 = vmatprep.mubr.msk.f32.mxu0 %vm2870_vm0, %v2871_v8  ;;  %2530 = vmatprep.mubr.msk.f32.mxu1 %vm2870_vm0, %v2871_v8 }
 0x2d2   :  { %2650 = vmatpush3.bf16.msra.mxu0 %v2955_v12  ;;  %2716 = vmatpush3.bf16.msra.mxu1 %v3063_v46 }
 0x2d3   :  { %2657 = vmatprep.subr.bf16.mxu0 %v2869_v0  ;;  %2723 = vmatprep.subr.bf16.mxu1 %v2869_v0 }
 0x3a0   :  { %v307_v62 = vpop.f32.mrb[2].mxu0  ;;  %v3098_v63 = vpop.f32.mrb[12].mxu1 }
 0x3a1   :  { %v381_v1 = vadd.f32 %v380_v51, %v307_v62  ;;  %v2389_v2 = vpop.f32.mrb[3].mxu0  ;;  %v2510_v3 = vpop.f32.mrb[13].mxu1 }
 0x3a3   :  { %v384_v5 = vadd.f32 %v2995_v19, %v381_v1 }
 0x3a5   :  { %2781 = vtanh.f32 %v384_v5  ;;  %v2206_v9 = vmul.f32 -1.442695, %v384_v5  ;;  %v772_v5 = vsel %vm771_vm8, 1, %v2872_v15 }
 0x3a7   :  { %2783 = vpow2.f32 %v2206_v9 }
 0x3af   :  { %v2782_v6 = vpop.eup %2781 }
 0x3b0   :  { %394 = vrot.lane.b32.xlu1 %v2782_v6, %s2873_s1 }
 0x3b1   :  { %v2784_v10 = vpop.eup %2783 }
 0x3b2   :  { %v388_v11 = vadd.f32 1.0, %v2784_v10 }
 0x3b4   :  { %412 = vperm.xlu1 %2771, %v410_v7   ;;  %2785 = vrcp.f32 %v388_v11 }
 0x3be   :  { %v2786_v13 = vpop.eup %2785 }
 0x3bf   :  { %v392_v20 = vmul.f32 %v2786_v13, %v235_v18 }
 0x422   :  { %v395_v14 = vpop.permute.xlu1 %394 }
 0x423   :  { %v397_v17 = vmul.f32 %v2786_v13, %v395_v14 }
 0x425   :  { %399 = vrot.lane.b32.xlu0 %v397_v17, %s2874_s4 }
 0x433   :  { %v3109_v24 = vpop.permute.xlu1 %412 }
 0x434   :  { %vm414_vm5 = vcmp.eq.s32.totalorder %v3109_v24, 1 }
 0x497   :  { %v400_v21 = vpop.permute.xlu0 %399 }
 0x498   :  { %v402_v22 = vadd.f32 %v400_v21, %v392_v20 }
 0x49a   :  { %2787 = vtanh.f32 %v402_v22  ;;  %v416_v44 = vsel %vm414_vm5, %v402_v22, %v235_v18 }
 0x4a4   :  { %v2788_v23 = vpop.eup %2787 }
 0x4a5   :  { %405 = vrot.lane.b32.xlu0 %v2788_v23, %s2873_s1 }
 0x517   :  { %v406_v25 = vpop.permute.xlu0 %405 }
 0x518   :  { %v408_v26 = vmul.f32 %v2786_v13, %v406_v25 }
 0x51a   :  { %v415_v27 = vsel %vm414_vm5, %v408_v26, %v234_v50 }
 0x51b   :  { %418 = vrot.lane.b32.xlu1 %v415_v27, %s2874_s4 }
 0x58d   :  { %v419_v28 = vpop.permute.xlu1 %418 }
 0x58e   :  { %2410 = vmatmul.mubr.msk.f32.vlgmr.msra.gmra.mrb[4].mxu0 %vm50_vm1, %v419_v28  ;;  %2531 = vmatmul.mubr.msk.f32.vlgmr.msra.gmra.mrb[14].mxu1 %vm50_vm1, %v419_v28 }
 0x58f   :  { %2659 = vmatpush3.bf16.msra.mxu0 %v2931_v4  ;;  %2725 = vmatpush3.bf16.msra.mxu1 %v3052_v43 }
 0x590   :  { %2660 = vmatprep.subr.bf16.mxu0 %v2869_v0  ;;  %2726 = vmatprep.subr.bf16.mxu1 %v2869_v0 }
 0x591   :  { %2431 = vmatprep.mubr.msk.f32.mxu0 %vm2870_vm0, %v2871_v8  ;;  %2552 = vmatprep.mubr.msk.f32.mxu1 %vm2870_vm0, %v2871_v8 }
 0x593   :  { %2662 = vmatpush3.bf16.msra.mxu0 %v2955_v12  ;;  %2728 = vmatpush3.bf16.msra.mxu1 %v3063_v46 }
 0x594   :  { %2669 = vmatprep.subr.bf16.mxu0 %v2869_v0  ;;  %2735 = vmatprep.subr.bf16.mxu1 %v2869_v0 }
 0x661   :  { %v488_v29 = vpop.f32.mrb[4].mxu0  ;;  %v3129_v30 = vpop.f32.mrb[14].mxu1 }
 0x662   :  { %v562_v31 = vadd.f32 %v3076_v53, %v488_v29  ;;  %v2411_v32 = vpop.f32.mrb[5].mxu0  ;;  %v2532_v33 = vpop.f32.mrb[15].mxu1 }
 0x664   :  { %v565_v34 = vadd.f32 %v2995_v19, %v562_v31 }
 0x666   :  { %2789 = vtanh.f32 %v565_v34  ;;  %v2209_v37 = vmul.f32 -1.442695, %v565_v34 }
 0x668   :  { %2791 = vpow2.f32 %v2209_v37 }
 0x670   :  { %v2790_v35 = vpop.eup %2789 }
 0x671   :  { %575 = vrot.lane.b32.xlu0 %v2790_v35, %s2873_s1 }
 0x672   :  { %v2792_v38 = vpop.eup %2791 }
 0x673   :  { %v569_v39 = vadd.f32 1.0, %v2792_v38 }
 0x675   :  { %593 = vperm.xlu0 %2772, %v591_v36   ;;  %2793 = vrcp.f32 %v569_v39 }
 0x67f   :  { %v2794_v40 = vpop.eup %2793 }
 0x680   :  { %v573_v45 = vmul.f32 %v2794_v40, %v416_v44 }
 0x6e3   :  { %v576_v41 = vpop.permute.xlu0 %575 }
 0x6e4   :  { %v578_v42 = vmul.f32 %v2794_v40, %v576_v41 }
 0x6e6   :  { %580 = vrot.lane.b32.xlu1 %v578_v42, %s2874_s4 }
 0x6f4   :  { %v3140_v51 = vpop.permute.xlu0 %593 }
 0x6f5   :  { %vm595_vm7 = vcmp.eq.s32.totalorder %v3140_v51, 1 }
 0x758   :  { %v581_v48 = vpop.permute.xlu1 %580 }
 0x759   :  { %v583_v49 = vadd.f32 %v581_v48, %v573_v45 }
 0x75b   :  { %2795 = vtanh.f32 %v583_v49  ;;  %v597_v13 = vsel %vm595_vm7, %v583_v49, %v416_v44 }
 0x765   :  { %v2796_v50 = vpop.eup %2795 }
 0x766   :  { %586 = vrot.lane.b32.xlu1 %v2796_v50, %s2873_s1 }
 0x7d8   :  { %v587_v52 = vpop.permute.xlu1 %586 }
 0x7d9   :  { %v589_v53 = vmul.f32 %v2794_v40, %v587_v52  ;;  %v1144_v52 = vld [vmem:[%s3371_s6] sm:$0xff] }
 0x7db   :  { %v596_v54 = vsel %vm595_vm7, %v589_v53, %v415_v27  ;;  %v1145_v53 = vld [vmem:[%s3371_s6 + $0x8] sm:$0xff] }
 0x7dc   :  { %599 = vrot.lane.b32.xlu1 %v596_v54, %s2874_s4 }
 0x84e   :  { %v600_v56 = vpop.permute.xlu1 %599 }
 0x84f   :  { %2432 = vmatmul.mubr.msk.f32.vlgmr.msra.gmra.mrb[6].mxu0 %vm50_vm1, %v600_v56  ;;  %2553 = vmatmul.mubr.msk.f32.vlgmr.msra.gmra.mrb[16].mxu1 %vm50_vm1, %v600_v56  ;;  %v1146_v56 = vld [vmem:[%s3371_s6 + $0x10] sm:$0xff] }
 0x850   :  { %2671 = vmatpush3.bf16.msra.mxu0 %v2931_v4  ;;  %2737 = vmatpush3.bf16.msra.mxu1 %v3052_v43 }
 0x851   :  { %2672 = vmatprep.subr.bf16.mxu0 %v2869_v0  ;;  %2738 = vmatprep.subr.bf16.mxu1 %v2869_v0 }
 0x852   :  { %2453 = vmatprep.mubr.msk.f32.mxu0 %vm2870_vm0, %v2871_v8  ;;  %2574 = vmatprep.mubr.msk.f32.mxu1 %vm2870_vm0, %v2871_v8 }
 0x854   :  { %2674 = vmatpush3.bf16.msra.mxu0 %v2955_v12  ;;  %2740 = vmatpush3.bf16.msra.mxu1 %v3063_v46 }
 0x855   :  { %2681 = vmatprep.subr.bf16.mxu0 %v2869_v0  ;;  %2747 = vmatprep.subr.bf16.mxu1 %v2869_v0 }
 0x922   :  { %v669_v58 = vpop.f32.mrb[6].mxu0  ;;  %v3160_v59 = vpop.f32.mrb[16].mxu1 }
 0x923   :  { %v743_v61 = vadd.f32 %v3078_v55, %v669_v58  ;;  %v2433_v62 = vpop.f32.mrb[7].mxu0  ;;  %v2554_v1 = vpop.f32.mrb[17].mxu1  ;;  %v1147_v58 = vld [vmem:[%s3371_s6 + $0x18] sm:$0xff] }
 0x924   :  { %v3234_v62 = vpack.c.bf16 %v1147_v58, %v1146_v56 }
 0x925   :  { %v746_v2 = vadd.f32 %v2995_v19, %v743_v61 }
 0x927   :  { %2797 = vtanh.f32 %v746_v2  ;;  %v2212_v6 = vmul.f32 -1.442695, %v746_v2 }
 0x929   :  { %2799 = vpow2.f32 %v2212_v6 }
 0x931   :  { %v2798_v3 = vpop.eup %2797 }
 0x932   :  { %756 = vrot.lane.b32.xlu0 %v2798_v3, %s2873_s1 }
 0x933   :  { %v2800_v7 = vpop.eup %2799 }
 0x934   :  { %v750_v9 = vadd.f32 1.0, %v2800_v7 }
 0x936   :  { %774 = vperm.xlu0 %2772, %v772_v5   ;;  %2801 = vrcp.f32 %v750_v9  ;;  %v3261_v5 = vld [vmem:[%s3372_s7] ss:$0 sm:$0xff] }
 0x940   :  { %v2802_v10 = vpop.eup %2801 }
 0x941   :  { %v754_v14 = vmul.f32 %v2802_v10, %v597_v13 }
 0x9a4   :  { %v757_v55 = vpop.permute.xlu0 %756 }
 0x9a5   :  { %v759_v11 = vmul.f32 %v2802_v10, %v757_v55 }
 0x9a7   :  { %761 = vrot.lane.b32.xlu1 %v759_v11, %s2874_s4 }
 0x9b5   :  { %v3171_v21 = vpop.permute.xlu0 %774 }
 0x9b6   :  { %vm776_vm9 = vcmp.eq.s32.totalorder %v3171_v21, 1 }
 0xa19   :  { %v762_v17 = vpop.permute.xlu1 %761 }
 0xa1a   :  { %v764_v18 = vadd.f32 %v762_v17, %v754_v14 }
 0xa1c   :  { %2803 = vtanh.f32 %v764_v18  ;;  %v3201_v39 = vsel %vm776_vm9, %v764_v18, %v597_v13 }
 0xa26   :  { %v2804_v20 = vpop.eup %2803 }
 0xa27   :  { %767 = vrot.lane.b32.xlu1 %v2804_v20, %s2873_s1 }
 0xa99   :  { %v768_v22 = vpop.permute.xlu1 %767 }
 0xa9a   :  { %v770_v23 = vmul.f32 %v2802_v10, %v768_v22 }
 0xa9c   :  { %v777_v25 = vsel %vm776_vm9, %v770_v23, %v596_v54  ;;  %v3223_v54 = vpack.c.bf16 %v1145_v53, %v1144_v52 }
 0xa9d   :  { %780 = vrot.lane.b32.xlu0 %v777_v25, %s2874_s4 }
 0xb0f   :  { %v781_v26 = vpop.permute.xlu0 %780 }
 0xb10   :  { %2454 = vmatmul.mubr.msk.f32.vlgmr.msra.gmra.mrb[8].mxu0 %vm50_vm1, %v781_v26  ;;  %2575 = vmatmul.mubr.msk.f32.vlgmr.msra.gmra.mrb[18].mxu1 %vm50_vm1, %v781_v26 }
 0xb11   :  { %2683 = vmatpush3.bf16.msra.mxu0 %v2931_v4  ;;  %2749 = vmatpush3.bf16.msra.mxu1 %v3052_v43 }
 0xb12   :  { %2684 = vmatprep.subr.bf16.mxu0 %v2869_v0  ;;  %2750 = vmatprep.subr.bf16.mxu1 %v2869_v0 }
 0xb13   :  { %2475 = vmatprep.mubr.msk.f32.mxu0 %vm2870_vm0, %v2871_v8  ;;  %2596 = vmatprep.mubr.msk.f32.mxu1 %vm2870_vm0, %v2871_v8 }
 0xb15   :  { %2686 = vmatpush3.bf16.msra.mxu0 %v2955_v12  ;;  %2752 = vmatpush3.bf16.msra.mxu1 %v3063_v46  ;;  %v953_v12 = vsel %vm952_vm10, 1, %v2872_v15 }
 0xb16   :  { %2693 = vmatprep.subr.bf16.mxu0 %v2869_v0  ;;  %2759 = vmatprep.subr.bf16.mxu1 %v2869_v0 }
 0xbe3   :  { %v850_v4 = vpop.f32.mrb[8].mxu0  ;;  %v3191_v27 = vpop.f32.mrb[18].mxu1 }
 0xbe4   :  { %v924_v28 = vadd.f32 %v3080_v57, %v850_v4  ;;  %v2455_v29 = vpop.f32.mrb[9].mxu0  ;;  %v2576_v31 = vpop.f32.mrb[19].mxu1 }
 0xbe6   :  { %v927_v32 = vadd.f32 %v2995_v19, %v924_v28 }
 0xbe8   :  { %2805 = vtanh.f32 %v927_v32  ;;  %v2215_v34 = vmul.f32 -1.442695, %v927_v32 }
 0xbea   :  { %2807 = vpow2.f32 %v2215_v34 }
 0xbf2   :  { %v2806_v33 = vpop.eup %2805 }
 0xbf3   :  { %937 = vrot.lane.b32.xlu1 %v2806_v33, %s2873_s1 }
 0xbf4   :  { %v2808_v35 = vpop.eup %2807 }
 0xbf5   :  { %v931_v36 = vadd.f32 1.0, %v2808_v35 }
 0xbf7   :  { %955 = vperm.xlu1 %2771, %v953_v12   ;;  %2809 = vrcp.f32 %v931_v36 }
 0xc01   :  { %v2810_v37 = vpop.eup %2809 }
 0xc02   :  { %v935_v40 = vmul.f32 %v2810_v37, %v3201_v39 }
 0xc65   :  { %v938_v57 = vpop.permute.xlu1 %937 }
 0xc66   :  { %v940_v38 = vmul.f32 %v2810_v37, %v938_v57 }
 0xc68   :  { %942 = vrot.lane.b32.xlu0 %v940_v38, %s2874_s4 }
 0xc76   :  { %v3208_v45 = vpop.permute.xlu1 %955 }
 0xc77   :  { %vm957_vm11 = vcmp.eq.s32.totalorder %v3208_v45, 1 }
 0xcda   :  { %v943_v41 = vpop.permute.xlu0 %942 }
 0xcdb   :  { %v3204_v42 = vadd.f32 %v943_v41, %v935_v40 }
 0xcdd   :  { %2811 = vtanh.f32 %v3204_v42 }
 0xce7   :  { %v2812_v44 = vpop.eup %2811 }
 0xce8   :  { %948 = vrot.lane.b32.xlu0 %v2812_v44, %s2873_s1 }
 0xd5a   :  { %v949_v48 = vpop.permute.xlu0 %948 }
 0xd5b   :  { %v951_v49 = vmul.f32 %v2810_v37, %v949_v48 }
 0xd5d   :  { %v3213_v50 = vsel %vm957_vm11, %v951_v49, %v777_v25 }
 0xd5e   :  { %961 = vrot.lane.b32.xlu1 %v3213_v50, %s2874_s4 }
 0xdd0   :  { %v962_v61 = vpop.permute.xlu1 %961 }
 0xdd1   :  { %2476 = vmatmul.mubr.msk.f32.vlgmr.msra.gmra.mrb[10].mxu0 %vm50_vm1, %v962_v61  ;;  %2597 = vmatmul.mubr.msk.f32.vlgmr.msra.gmra.mrb[20].mxu1 %vm50_vm1, %v962_v61 }
 0xdd2   :  { %2695 = vmatpush3.bf16.msra.mxu0 %v3223_v54  ;;  %2497 = vmatprep.mubr.msk.f32.mxu0 %vm2870_vm0, %v2871_v8 }
 0xdd3   :  { %2696 = vmatprep.subr.bf16.mxu0 %v2869_v0  ;;  %2761 = vmatpush3.bf16.msra.mxu1 %v3052_v43 }
 0xdd4   :  { %2762 = vmatprep.subr.bf16.mxu1 %v2869_v0  ;;  %2618 = vmatprep.mubr.msk.f32.mxu1 %vm2870_vm0, %v2871_v8 }
 0xdd6   :  { %2698 = vmatpush3.bf16.msra.mxu0 %v3234_v62 }
 0xdd7   :  { %2705 = vmatprep.subr.bf16.mxu0 %v2869_v0  ;;  %2764 = vmatpush3.bf16.msra.mxu1 %v3063_v46 }
 0xdd9   :  { %2498 = vmatmul.mubr.f32.vlgmr.msra.gmra.mrb[12].mxu0 %v2871_v8 }
 0xdda   :  { %2707 = vmatpush3.bf16.msra.mxu0 %v3223_v54  ;;  %2519 = vmatprep.mubr.msk.f32.mxu0 %vm2870_vm0, %v2871_v8 }
 0xddb   :  { %2708 = vmatprep.subr.bf16.mxu0 %v2869_v0 }
 0xdde   :  { %2710 = vmatpush3.bf16.msra.mxu0 %v3234_v62 }
 0xddf   :  { %2717 = vmatprep.subr.bf16.mxu0 %v2869_v0 }
 0xea4   :  { %v1031_v43 = vpop.f32.mrb[10].mxu0  ;;  %v3253_v1 = vpop.f32.mrb[20].mxu1 }
 0xea5   :  { %v3256_v2 = vadd.f32 %v3084_v60, %v1031_v43  ;;  %v2477_v46 = vpop.f32.mrb[11].mxu0  ;;  %v2598_v3 = vpop.f32.mrb[21].mxu1 }
 0xeac   :  { %v1215_v6 = vpop.f32.mrb[12].mxu0 }
 0xead   :  { %v1286_v7 = vadd.f32 %v3098_v63, %v1215_v6  ;;  %v2499_v9 = vpop.f32.mrb[13].mxu0 }
 0xeaf   :  { %v1295_v10 = vadd.f32 %v3261_v5, %v1286_v7 }
 0xeb1   :  { %2813 = vtanh.f32 %v1295_v10  ;;  %v2221_v11 = vmul.f32 -1.442695, %v1295_v10 }
 0xeb3   :  { %2815 = vpow2.f32 %v2221_v11 }
 0xebb   :  { %v2814_v55 = vpop.eup %2813 }
 0xebc   :  { %1305 = vrot.lane.b32.xlu0 %v2814_v55, %s2873_s1 }
 0xebd   :  { %v2816_v60 = vpop.eup %2815 }
 0xebe   :  { %v1299_v13 = vadd.f32 1.0, %v2816_v60 }
 0xec0   :  { %2817 = vrcp.f32 %v1299_v13 }
 0xeca   :  { %v2818_v14 = vpop.eup %2817 }
 0xecb   :  { %v1303_v20 = vmul.f32 0.0, %v2818_v14 }
 0xf2e   :  { %v1306_v17 = vpop.permute.xlu0 %1305 }
 0xf2f   :  { %v1308_v18 = vmul.f32 %v2818_v14, %v1306_v17 }
 0xf31   :  { %1310 = vrot.lane.b32.xlu1 %v1308_v18, %s2874_s4 }
 0xfa3   :  { %v1311_v22 = vpop.permute.xlu1 %1310 }
 0xfa4   :  { %v1313_v63 = vadd.f32 %v1311_v22, %v1303_v20 }
 0xfa6   :  { %2819 = vtanh.f32 %v1313_v63 }
 0xfb0   :  { %v2820_v23 = vpop.eup %2819 }
 0xfb1   :  { %1316 = vrot.lane.b32.xlu0 %v2820_v23, %s2873_s1 }
0x1023   :  { %v1317_v25 = vpop.permute.xlu0 %1316 }
0x1024   :  { %v1319_v26 = vmul.f32 %v2818_v14, %v1317_v25 }
0x1026   :  { %v1320_v4 = vsel %vm233_vm3, %v1319_v26, 0.0 }
0x1027   :  { %1323 = vrot.lane.b32.xlu1 %v1320_v4, %s2874_s4 }
0x1099   :  { %v1324_v28 = vpop.permute.xlu1 %1323 }
0x109a   :  { %2520 = vmatmul.mubr.msk.f32.vlgmr.msra.gmra.mrb[14].mxu0 %vm50_vm1, %v1324_v28 }
0x109b   :  { %2719 = vmatpush3.bf16.msra.mxu0 %v3223_v54  ;;  %2541 = vmatprep.mubr.msk.f32.mxu0 %vm2870_vm0, %v2871_v8 }
0x109c   :  { %2720 = vmatprep.subr.bf16.mxu0 %v2869_v0 }
0x109f   :  { %2722 = vmatpush3.bf16.msra.mxu0 %v3234_v62 }
0x10a0   :  { %2729 = vmatprep.subr.bf16.mxu0 %v2869_v0 }
0x116d   :  { %v1393_v29 = vpop.f32.mrb[14].mxu0 }
0x116e   :  { %v1464_v31 = vadd.f32 %v3129_v30, %v1393_v29  ;;  %v2521_v32 = vpop.f32.mrb[15].mxu0  ;;  %v1321_v30 = vsel %vm233_vm3, %v1313_v63, 0.0 }
0x1170   :  { %v1467_v33 = vadd.f32 %v3261_v5, %v1464_v31 }
0x1172   :  { %2821 = vtanh.f32 %v1467_v33  ;;  %v2224_v34 = vmul.f32 -1.442695, %v1467_v33 }
0x1174   :  { %2823 = vpow2.f32 %v2224_v34 }
0x117c   :  { %v2822_v12 = vpop.eup %2821 }
0x117d   :  { %1477 = vrot.lane.b32.xlu0 %v2822_v12, %s2873_s1 }
0x117e   :  { %v2824_v35 = vpop.eup %2823 }
0x117f   :  { %v1471_v36 = vadd.f32 1.0, %v2824_v35 }
0x1181   :  { %2825 = vrcp.f32 %v1471_v36  ;;  %v1108_v36 = vadd.f32 %v2995_v19, %v3256_v2 }
0x118b   :  { %v2826_v37 = vpop.eup %2825 }
0x118c   :  { %v1475_v40 = vmul.f32 %v2826_v37, %v1321_v30 }
0x11ef   :  { %v1478_v57 = vpop.permute.xlu0 %1477 }
0x11f0   :  { %v1480_v38 = vmul.f32 %v2826_v37, %v1478_v57 }
0x11f2   :  { %1482 = vrot.lane.b32.xlu1 %v1480_v38, %s2874_s4  ;;  %v2218_v38 = vmul.f32 -1.442695, %v1108_v36 }
0x1264   :  { %v1483_v41 = vpop.permute.xlu1 %1482 }
0x1265   :  { %v1485_v44 = vadd.f32 %v1483_v41, %v1475_v40 }
0x1267   :  { %2827 = vtanh.f32 %v1485_v44 }
0x1271   :  { %v2828_v48 = vpop.eup %2827 }
0x1272   :  { %1488 = vrot.lane.b32.xlu0 %v2828_v48, %s2873_s1 }
0x12e4   :  { %v1489_v49 = vpop.permute.xlu0 %1488 }
0x12e5   :  { %v1491_v52 = vmul.f32 %v2826_v37, %v1489_v49  ;;  %v1134_v49 = vsel %vm1133_vm12, 1, %v2872_v15 }
0x12e7   :  { %v1492_v53 = vsel %vm414_vm5, %v1491_v52, %v1320_v4 }
0x12e8   :  { %1495 = vrot.lane.b32.xlu1 %v1492_v53, %s2874_s4 }
0x135a   :  { %v1496_v56 = vpop.permute.xlu1 %1495 }
0x135b   :  { %2542 = vmatmul.mubr.msk.f32.vlgmr.msra.gmra.mrb[16].mxu0 %vm50_vm1, %v1496_v56 }
0x135c   :  { %2731 = vmatpush3.bf16.msra.mxu0 %v3223_v54  ;;  %2563 = vmatprep.mubr.msk.f32.mxu0 %vm2870_vm0, %v2871_v8 }
0x135d   :  { %2732 = vmatprep.subr.bf16.mxu0 %v2869_v0 }
0x1360   :  { %2734 = vmatpush3.bf16.msra.mxu0 %v3234_v62 }
0x1361   :  { %2741 = vmatprep.subr.bf16.mxu0 %v2869_v0 }
0x142e   :  { %v1565_v47 = vpop.f32.mrb[16].mxu0 }
0x142f   :  { %v1636_v58 = vadd.f32 %v3160_v59, %v1565_v47  ;;  %v2543_v61 = vpop.f32.mrb[17].mxu0  ;;  %v1493_v59 = vsel %vm414_vm5, %v1485_v44, %v1321_v30 }
0x1431   :  { %v1639_v43 = vadd.f32 %v3261_v5, %v1636_v58 }
0x1433   :  { %2829 = vtanh.f32 %v1639_v43  ;;  %v2227_v3 = vmul.f32 -1.442695, %v1639_v43 }
0x1435   :  { %2831 = vpow2.f32 %v2227_v3 }
0x143d   :  { %v2830_v46 = vpop.eup %2829 }
0x143e   :  { %1649 = vrot.lane.b32.xlu0 %v2830_v46, %s2873_s1 }
0x143f   :  { %v2832_v6 = vpop.eup %2831 }
0x1440   :  { %v1643_v7 = vadd.f32 1.0, %v2832_v6 }
0x1442   :  { %2833 = vrcp.f32 %v1643_v7 }
0x144c   :  { %v2834_v9 = vpop.eup %2833 }
0x144d   :  { %v1647_v11 = vmul.f32 %v2834_v9, %v1493_v59 }
0x14b0   :  { %v1650_v10 = vpop.permute.xlu0 %1649 }
0x14b1   :  { %v1652_v55 = vmul.f32 %v2834_v9, %v1650_v10 }
0x14b3   :  { %1654 = vrot.lane.b32.xlu1 %v1652_v55, %s2874_s4 }
0x1525   :  { %v1655_v60 = vpop.permute.xlu1 %1654 }
0x1526   :  { %v1657_v13 = vadd.f32 %v1655_v60, %v1647_v11 }
0x1528   :  { %2835 = vtanh.f32 %v1657_v13 }
0x1532   :  { %v2836_v14 = vpop.eup %2835 }
0x1533   :  { %1660 = vrot.lane.b32.xlu0 %v2836_v14, %s2873_s1 }
0x15a5   :  { %v1661_v17 = vpop.permute.xlu0 %1660 }
0x15a6   :  { %v1663_v18 = vmul.f32 %v2834_v9, %v1661_v17 }
0x15a8   :  { %v1664_v20 = vsel %vm595_vm7, %v1663_v18, %v1492_v53 }
0x15a9   :  { %1667 = vrot.lane.b32.xlu1 %v1664_v20, %s2874_s4 }
0x161b   :  { %v1668_v22 = vpop.permute.xlu1 %1667 }
0x161c   :  { %2564 = vmatmul.mubr.msk.f32.vlgmr.msra.gmra.mrb[18].mxu0 %vm50_vm1, %v1668_v22 }
0x161d   :  { %2743 = vmatpush3.bf16.msra.mxu0 %v3223_v54  ;;  %2585 = vmatprep.mubr.msk.f32.mxu0 %vm2870_vm0, %v2871_v8 }
0x161e   :  { %2744 = vmatprep.subr.bf16.mxu0 %v2869_v0 }
0x1621   :  { %2746 = vmatpush3.bf16.msra.mxu0 %v3234_v62 }
0x1622   :  { %2753 = vmatprep.subr.bf16.mxu0 %v2869_v0 }
0x16ef   :  { %v1737_v24 = vpop.f32.mrb[18].mxu0 }
0x16f0   :  { %v1808_v63 = vadd.f32 %v3191_v27, %v1737_v24  ;;  %v2565_v23 = vpop.f32.mrb[19].mxu0  ;;  %v1665_v27 = vsel %vm595_vm7, %v1657_v13, %v1493_v59 }
0x16f2   :  { %v1811_v25 = vadd.f32 %v3261_v5, %v1808_v63 }
0x16f4   :  { %2837 = vtanh.f32 %v1811_v25  ;;  %v2230_v4 = vmul.f32 -1.442695, %v1811_v25 }
0x16f6   :  { %2839 = vpow2.f32 %v2230_v4 }
0x16fe   :  { %v2838_v26 = vpop.eup %2837 }
0x16ff   :  { %1821 = vrot.lane.b32.xlu0 %v2838_v26, %s2873_s1 }
0x1700   :  { %v2840_v28 = vpop.eup %2839 }
0x1701   :  { %v1815_v29 = vadd.f32 1.0, %v2840_v28 }
0x1703   :  { %2841 = vrcp.f32 %v1815_v29 }
0x170d   :  { %v2842_v31 = vpop.eup %2841 }
0x170e   :  { %v1819_v12 = vmul.f32 %v2842_v31, %v1665_v27 }
0x1771   :  { %v1822_v32 = vpop.permute.xlu0 %1821 }
0x1772   :  { %v1824_v33 = vmul.f32 %v2842_v31, %v1822_v32 }
0x1774   :  { %1826 = vrot.lane.b32.xlu1 %v1824_v33, %s2874_s4 }
0x17e6   :  { %v1827_v34 = vpop.permute.xlu1 %1826 }
0x17e7   :  { %v1829_v35 = vadd.f32 %v1827_v34, %v1819_v12 }
0x17e9   :  { %2843 = vtanh.f32 %v1829_v35  ;;  %v1837_v7 = vsel %vm776_vm9, %v1829_v35, %v1665_v27 }
0x17ea   :  { %2845 = vtanh.f32 %v1108_v36 }
0x17eb   :  { %2847 = vpow2.f32 %v2218_v38 }
0x17f3   :  { %v2844_v37 = vpop.eup %2843 }
0x17f4   :  { %1832 = vrot.lane.b32.xlu0 %v2844_v37, %s2873_s1  ;;  %v2846_v57 = vpop.eup %2845 }
0x17f5   :  { %v2848_v30 = vpop.eup %2847 }
0x17f6   :  { %v1112_v40 = vadd.f32 1.0, %v2848_v30 }
0x17f8   :  { %1118 = vrot.lane.b32.xlu0 %v2846_v57, %s2873_s1  ;;  %2849 = vrcp.f32 %v1112_v40 }
0x1802   :  { %v2850_v48 = vpop.eup %2849 }
0x1866   :  { %v1833_v51 = vpop.permute.xlu0 %1832 }
0x1867   :  { %v1835_v41 = vmul.f32 %v2842_v31, %v1833_v51 }
0x1869   :  { %v1836_v44 = vsel %vm776_vm9, %v1835_v41, %v1664_v20 }
0x186a   :  { %1839 = vrot.lane.b32.xlu1 %v1836_v44, %s2874_s4  ;;  %v1119_v19 = vpop.permute.xlu0 %1118 }
0x186b   :  { %v1121_v2 = vmul.f32 %v2850_v48, %v1119_v19 }
0x186d   :  { %1123 = vrot.lane.b32.xlu0 %v1121_v2, %s2874_s4 }
0x1871   :  { %1136 = vperm.xlu0 %2772, %v1134_v49  }
0x18dc   :  { %v1840_v52 = vpop.permute.xlu1 %1839 }
0x18dd   :  { %2586 = vmatmul.mubr.msk.f32.vlgmr.msra.gmra.mrb[20].mxu0 %vm50_vm1, %v1840_v52 }
0x18de   :  { %2755 = vmatpush3.bf16.msra.mxu0 %v3223_v54  ;;  %2607 = vmatprep.mubr.msk.f32.mxu0 %vm2870_vm0, %v2871_v8 }
0x18df   :  { %2756 = vmatprep.subr.bf16.mxu0 %v2869_v0  ;;  %v959_v0 = vsel %vm957_vm11, %v3204_v42, %v3201_v39  ;;  %v1124_v8 = vpop.permute.xlu0 %1123 }
0x18e2   :  { %2758 = vmatpush3.bf16.msra.mxu0 %v3234_v62  ;;  %v1116_v62 = vmul.f32 %v2850_v48, %v959_v0 }
0x18f0   :  { %v1137_v59 = vpop.permute.xlu0 %1136 }
0x18f1   :  { %vm1138_vm13 = vcmp.eq.s32.totalorder %v1137_v59, 1 }
0x19b0   :  { %v1909_v53 = vpop.f32.mrb[20].mxu0 }
0x19b1   :  { %v1980_v16 = vadd.f32 %v3253_v1, %v1909_v53  ;;  %v2587_v56 = vpop.f32.mrb[21].mxu0  ;;  %v1126_v1 = vadd.f32 %v1124_v8, %v1116_v62 }
0x19b3   :  { %v1983_v47 = vadd.f32 %v3261_v5, %v1980_v16 }
0x19b5   :  { %2851 = vtanh.f32 %v1983_v47  ;;  %v2233_v58 = vmul.f32 -1.442695, %v1983_v47 }
0x19b7   :  { %2853 = vpow2.f32 %v2233_v58 }
0x19bf   :  { %v2852_v15 = vpop.eup %2851 }
0x19c0   :  { %1993 = vrot.lane.b32.xlu1 %v2852_v15, %s2873_s1 }
0x19c1   :  { %v2854_v54 = vpop.eup %2853 }
0x19c2   :  { %v1987_v61 = vadd.f32 1.0, %v2854_v54 }
0x19c4   :  { %2855 = vrcp.f32 %v1987_v61 }
0x19c5   :  { %2857 = vtanh.f32 %v1126_v1 }
0x19ce   :  { %v2856_v43 = vpop.eup %2855 }
0x19cf   :  { %v2858_v6 = vpop.eup %2857  ;;  %v1991_v9 = vmul.f32 %v2856_v43, %v1837_v7 }
0x1a32   :  { %v1994_v46 = vpop.permute.xlu1 %1993 }
0x1a33   :  { %v1996_v3 = vmul.f32 %v2856_v43, %v1994_v46 }
0x1a35   :  { %1998 = vrot.lane.b32.xlu1 %v1996_v3, %s2874_s4 }
0x1a39   :  { %1129 = vrot.lane.b32.xlu1 %v2858_v6, %s2873_s1 }
0x1aa7   :  { %v1999_v10 = vpop.permute.xlu1 %1998 }
0x1aa8   :  { %v2001_v55 = vadd.f32 %v1999_v10, %v1991_v9 }
0x1aaa   :  { %2859 = vtanh.f32 %v2001_v55  ;;  %v2009_v33 = vsel %vm957_vm11, %v2001_v55, %v1837_v7 }
0x1aab   :  { %v1130_v39 = vpop.permute.xlu1 %1129 }
0x1aac   :  { %v1132_v11 = vmul.f32 %v2850_v48, %v1130_v39 }
0x1aae   :  { %v1139_v60 = vsel %vm1138_vm13, %v1132_v11, %v3213_v50 }
0x1ab4   :  { %v2860_v42 = vpop.eup %2859 }
0x1ab5   :  { %2004 = vrot.lane.b32.xlu0 %v2860_v42, %s2873_s1 }
0x1ab9   :  { %2086 = vrot.lane.b32.xlu0 %v1139_v60, %s2874_s4 }
0x1b27   :  { %v2005_v13 = vpop.permute.xlu0 %2004 }
0x1b28   :  { %v2007_v14 = vmul.f32 %v2856_v43, %v2005_v13 }
0x1b2a   :  { %v2008_v21 = vsel %vm957_vm11, %v2007_v14, %v1836_v44 }
0x1b2b   :  { %2011 = vrot.lane.b32.xlu1 %v2008_v21, %s2874_s4  ;;  %v2087_v17 = vpop.permute.xlu0 %2086 }
0x1b2c   :  { %2619 = vmatmul.mubr.msk.f32.vlgmr.msra.gmra.mrb[22].mxu1 %vm50_vm1, %v2087_v17 }
0x1b9d   :  { %v2012_v18 = vpop.permute.xlu1 %2011 }
0x1b9e   :  { %2608 = vmatmul.mubr.msk.f32.vlgmr.msra.gmra.mrb[22].mxu0 %vm50_vm1, %v2012_v18 }
0x1bff   :  { %v2156_v20 = vpop.f32.mrb[22].mxu1 }
0x1c00   :  { %v2620_v22 = vpop.f32.mrb[23].mxu1 }
0x1c71   :  { %v2081_v24 = vpop.f32.mrb[22].mxu0 }
0x1c72   :  { %v2157_v63 = vadd.f32 %v2156_v20, %v2081_v24  ;;  %v2609_v50 = vpop.f32.mrb[23].mxu0 }
0x1c74   :  { %v2160_v23 = vadd.f32 %v3261_v5, %v2157_v63 }
0x1c76   :  { %2861 = vtanh.f32 %v2160_v23  ;;  %v2236_v26 = vmul.f32 -1.442695, %v2160_v23 }
0x1c78   :  { %2863 = vpow2.f32 %v2236_v26 }
0x1c80   :  { %v2862_v25 = vpop.eup %2861 }
0x1c81   :  { %2170 = vrot.lane.b32.xlu1 %v2862_v25, %s2873_s1 }
0x1c82   :  { %v2864_v4 = vpop.eup %2863 }
0x1c83   :  { %v2164_v28 = vadd.f32 1.0, %v2864_v4 }
0x1c85   :  { %2865 = vrcp.f32 %v2164_v28 }
0x1c8f   :  { %v2866_v29 = vpop.eup %2865 }
0x1c90   :  { %v2168_v27 = vmul.f32 %v2866_v29, %v2009_v33 }
0x1cf3   :  { %v2171_v31 = vpop.permute.xlu1 %2170 }
0x1cf4   :  { %v2173_v32 = vmul.f32 %v2866_v29, %v2171_v31 }
0x1cf6   :  { %2175 = vrot.lane.b32.xlu0 %v2173_v32, %s2874_s4 }
0x1d68   :  { %v2176_v12 = vpop.permute.xlu0 %2175 }
0x1d69   :  { %v2178_v5 = vadd.f32 %v2176_v12, %v2168_v27 }
0x1d6b   :  { %2867 = vtanh.f32 %v2178_v5 }
0x1d75   :  { %v2868_v34 = vpop.eup %2867 }
0x1d76   :  { %2181 = vrot.lane.b32.xlu1 %v2868_v34, %s2873_s1 }
0x1de8   :  { %v2182_v35 = vpop.permute.xlu1 %2181 }
0x1de9   :  { %v2184_v36 = vmul.f32 %v2866_v29, %v2182_v35 }
0x1deb   :  { %v2185_v37 = vsel %vm1138_vm13, %v2184_v36, %v2008_v21 }
0x1dec   :  { %2187 = vrot.lane.b32.xlu0 %v2185_v37, %s2874_s4 }
0x1e5e   :  { %v2188_v57 = vpop.permute.xlu0 %2187 }
0x1e5f   :  { %2191 = vst.msk [vmem:[%s3373_s8] sm:$0x3] %vm2190_vm14, %v2188_v57 }

// kernel: model_forward.4
= control target key start
LH: loop header
LB: loop body
LE: loop exit
PB: predicated region body
PF: predicated region fallthrough
CT: control target
= control target key end

     0   :  { %s7950_s15 = smov 0   ;;  %s7952_s16 = smov 0   ;;  %s11656_s0 = inlined_call_operand.vmem [shape: f32[3,6,8,2116], index: 0, kind: input, shape index: {}]   ;;  %s11657_s1 = inlined_call_operand.vmem [shape: f32[3,3,8,72], index: 1, kind: input, shape index: {}]   ;;  %s11658_s2 = inlined_call_operand.vmem [shape: f32[3,3,8,1], index: 2, kind: input, shape index: {}]   ;;  %s11659_s3 = inlined_call_operand.vmem [shape: f32[2116,16], index: 3, kind: input, shape index: {}]   ;;  %s11660_s4 = inlined_call_operand.vmem [shape: f32[3,6,8,16], index: 4, kind: output, shape index: {}]  }
   0x1   :  { %s7954_s17 = smov 0   ;;  %s7956_s18 = smov 0  }
   0x2   :  { %s7958_s19 = smov 0  }
   0x3 LB: > { %s23_s20 = sadd.s32 1, %s7893_s17  ;;  %s26_s21 = sadd.s32 1, %s7897_s18  ;;  %s7901_s19 = sphi %s7958_s19, %s14_s19   ;;  %s7897_s18 = sphi %s7956_s18, %s11664_s18   ;;  %s7893_s17 = sphi %s7954_s17, %s11663_s17   ;;  %s7889_s16 = sphi %s7952_s16, %s11662_s16   ;;  %s7885_s15 = sphi %s7950_s15, %s11661_s15  }
   0x4   : > { %p24_p0 = scmp.ge.s32.totalorder %s23_s20, 6  ;;  %p6597_p1 = scmp.ge.s32.totalorder %s7901_s19, 1 }
   0x5   : > { %p202_p2 = scmp.lt.s32.totalorder %s7901_s19, 19 }
   0x6   : > { %s11666_s20 = smov (%p24_p0, %s23_s20), 0  ;;  %s11668_s21 = smov (!%p24_p0, %s26_s21), %s7897_s18 }
   0x7   : > { %p203_p3 = pnand %p6597_p1, %p202_p2  ;;  %p28_p4 = scmp.ge.s32.totalorder %s11668_s21, 3 }
   0x8   : > { %p245_p5 = scmp.lt.s32.totalorder (!%p203_p3), %s7889_s16, 2  ;;  %p247_p6 = scmp.lt.s32.totalorder (!%p203_p3), %s7885_s15, 5  ;;  %vm305_vm0 = vcmask (!%p203_p3), 556032   ;;  %v7911_v9 = vmov (!%p203_p3), 0.0   ;;  %vm362_vm1 = vcmask (!%p203_p3), 1039360   ;;  %vm447_vm2 = vcmask (!%p203_p3), 1031168  }
   0x9   : > { %s11670_s21 = smov (%p28_p4, %s11668_s21), 0  ;;  %206 = sbr.rel (%p203_p3) target bundleno = 2669 (0xa6d), region = 36 }
   0xa   : > { %s7903_s29 = smov (!%p203_p3), 127   ;;  %s7904_s30 = smov (!%p203_p3), 126   ;;  %1249 = vmatprep.mubr.f32.mxu0 (!%p203_p3), %v7911_v9  ;;  %1320 = vmatprep.mubr.f32.mxu1 (!%p203_p3), %v7911_v9  ;;  %vm532_vm3 = vcmask (!%p203_p3), 670720   ;;  %vm617_vm4 = vcmask (!%p203_p3), 662528   ;;  %vm702_vm5 = vcmask (!%p203_p3), 654336   ;;  %vm793_vm6 = vcmask (!%p203_p3), 293888  }
   0xb   : > { %s7905_s5 = smov (!%p203_p3), 82   ;;  %s7906_s6 = smov (!%p203_p3), 68   ;;  %vm881_vm7 = vcmask (!%p203_p3), 285696   ;;  %v7913_v54 = vmov (!%p203_p3), 0   ;;  %vm969_vm8 = vcmask (!%p203_p3), 277504   ;;  %vm1181_vm9 = vcmask (!%p203_p3), 588800  }
   0xc   : > { %s7907_s7 = smov (!%p203_p3), 81   ;;  %s7908_s8 = smov (!%p203_p3), 80   ;;  %7795 = vset.pattern.permute.xlu1 (!%p203_p3), %v7913_v54  ;;  %7796 = vset.pattern.permute.xlu0 (!%p203_p3), %v7913_v54  ;;  %vm307_vm10 = vcmask (!%p203_p3), 1048096   ;;  %vm7915_vm11 = vmmov (!%p203_p3), 0   ;;  %vm2203_vm12 = vcmask (!%p203_p3), 1014784   ;;  %vm2468_vm13 = vcmask (!%p203_p3), 261120  }
   0xd   : > { %s7909_s9 = smov (!%p203_p3), 36   ;;  %s7910_s10 = smov (!%p203_p3), 35   ;;  %vm2638_vm14 = vcmask (!%p203_p3), 572416   ;;  %vm3963_vm15 = vcmask (!%p203_p3), 982016  }
   0xe   : > { %s7912_s11 = smov (!%p203_p3), 34   ;;  %s7916_s26 = smov (!%p203_p3), 124  }
   0xf   : > { %s7917_s27 = smov (!%p203_p3), 32  }
  0x10   : > { %s11672_s16 = smov (!%p245_p5, %s7889_s16), 2  ;;  %s11674_s15 = smov (!%p247_p6, %s7885_s15), 5 }
  0x11   : > { %s7730_s22 = smul.u32 102, %s11672_s16 }
  0x12   : > { %s7729_s23 = smul.u32 17, %s11674_s15 }
  0x13   : > { %s7731_s12 = smul.u32 24, %s11672_s16 }
  0x14   : > { %s251_s24 = sadd.s32 %s7730_s22, %s7729_s23 }
  0x15   : > { %s6598_s25 = sshll.u32 %s251_s24, 3  ;;  %s8286_s22 = scalar_lea.vmem %s11657_s1, %s7731_s12 }
  0x16   : > { %s7989_s28 = scalar_lea.vmem %s11656_s0, %s6598_s25  ;;  %s8531_s25 = scalar_lea.vmem %s11658_s2, %s7731_s12 }
  0x17   : > { %v7992_v0 = vld [vmem:[%s7989_s28 + $0x8] sm:$0xff]  ;;  %v7995_v1 = vld [vmem:[%s7989_s28] sm:$0xff]  ;;  %v8002_v2 = vld [vmem:[%s7989_s28 + $0x10] sm:$0xff] }
  0x18   : > { %330 = vrot.lane.b32.xlu0 %v7992_v0, %s7903_s29  ;;  %328 = vrot.lane.b32.xlu1 %v7995_v1, %s7903_s29  ;;  %v8005_v3 = vld [vmem:[%s7989_s28 + $0x50] sm:$0xff]  ;;  %v8009_v4 = vld [vmem:[%s7989_s28 + $0x80] sm:$0xff] }
  0x19   : > { %299 = vst [vmem:[#allocation2 + $0x50] sm:$0xff] %v8005_v3  ;;  %306 = vst.msk [vmem:[#allocation2 + $0x80] sm:$0xff] %vm305_vm0, %v8009_v4  ;;  %v8042_v5 = vld [vmem:[%s7989_s28 + $0x18] sm:$0xff]  ;;  %v8045_v6 = vld [vmem:[%s7989_s28 + $0x20] sm:$0xff] }
  0x1a   : > { %v8072_v7 = vld [vmem:[%s7989_s28 + $0x28] sm:$0xff]  ;;  %v8075_v8 = vld [vmem:[%s7989_s28 + $0x30] sm:$0xff]  ;;  %v8124_v11 = vld [vmem:[%s7989_s28 + $0x38] sm:$0xff] }
  0x1b   : > { %v8088_v10 = vld [vmem:[%s7989_s28 + $0x70] sm:$0xff]  ;;  %v8131_v12 = vld [vmem:[%s7989_s28 + $0x40] sm:$0xff]  ;;  %v8161_v20 = vld [vmem:[%s7989_s28 + $0x48] sm:$0xff] }
  0x1c   : > { %332 = vrot.lane.b32.xlu0 %v8002_v2, %s7903_s29  ;;  %415 = vrot.lane.b32.xlu1 %v7992_v0, %s7904_s30  ;;  %303 = vst [vmem:[#allocation2 + $0x70] sm:$0xff] %v8088_v10 }
  0x20   : > { %417 = vrot.lane.b32.xlu0 %v8002_v2, %s7904_s30  ;;  %500 = vrot.lane.b32.xlu1 %v7992_v0, %s7905_s5 }
  0x24   : > { %502 = vrot.lane.b32.xlu0 %v8002_v2, %s7905_s5  ;;  %413 = vrot.lane.b32.xlu1 %v7995_v1, %s7904_s30 }
  0x28   : > { %498 = vrot.lane.b32.xlu0 %v7995_v1, %s7905_s5  ;;  %308 = vrot.lane.b32.xlu1 %v7995_v1, %s7906_s6 }
  0x2c   : > { %585 = vrot.lane.b32.xlu0 %v7992_v0, %s7907_s7  ;;  %587 = vrot.lane.b32.xlu1 %v8002_v2, %s7907_s7 }
  0x30   : > { %670 = vrot.lane.b32.xlu0 %v7992_v0, %s7908_s8  ;;  %672 = vrot.lane.b32.xlu1 %v8002_v2, %s7908_s8 }
  0x34   : > { %583 = vrot.lane.b32.xlu0 %v7995_v1, %s7907_s7  ;;  %668 = vrot.lane.b32.xlu1 %v7995_v1, %s7908_s8 }
  0x38   : > { %334 = vrot.lane.b32.xlu0 %v8042_v5, %s7903_s29  ;;  %336 = vrot.lane.b32.xlu1 %v8045_v6, %s7903_s29 }
  0x3c   : > { %759 = vrot.lane.b32.xlu0 %v7992_v0, %s7909_s9  ;;  %761 = vrot.lane.b32.xlu1 %v8002_v2, %s7909_s9 }
  0x40   : > { %847 = vrot.lane.b32.xlu0 %v7992_v0, %s7910_s10  ;;  %849 = vrot.lane.b32.xlu1 %v8002_v2, %s7910_s10 }
  0x44   : > { %757 = vrot.lane.b32.xlu0 %v7995_v1, %s7909_s9  ;;  %845 = vrot.lane.b32.xlu1 %v7995_v1, %s7910_s10 }
  0x48   : > { %419 = vrot.lane.b32.xlu0 %v8042_v5, %s7904_s30  ;;  %421 = vrot.lane.b32.xlu1 %v8045_v6, %s7904_s30 }
  0x4c   : > { %504 = vrot.lane.b32.xlu0 %v8042_v5, %s7905_s5  ;;  %506 = vrot.lane.b32.xlu1 %v8045_v6, %s7905_s5 }
  0x50   : > { %338 = vrot.lane.b32.xlu0 %v8072_v7, %s7903_s29  ;;  %340 = vrot.lane.b32.xlu1 %v8075_v8, %s7903_s29 }
  0x54   : > { %935 = vrot.lane.b32.xlu0 %v7992_v0, %s7912_s11  ;;  %937 = vrot.lane.b32.xlu1 %v8002_v2, %s7912_s11 }
  0x58   : > { %933 = vrot.lane.b32.xlu0 %v7995_v1, %s7912_s11  ;;  %589 = vrot.lane.b32.xlu1 %v8042_v5, %s7907_s7 }
  0x5c   : > { %591 = vrot.lane.b32.xlu0 %v8045_v6, %s7907_s7  ;;  %674 = vrot.lane.b32.xlu1 %v8042_v5, %s7908_s8 }
  0x60   : > { %676 = vrot.lane.b32.xlu0 %v8045_v6, %s7908_s8  ;;  %423 = vrot.lane.b32.xlu1 %v8072_v7, %s7904_s30 }
  0x64   : > { %425 = vrot.lane.b32.xlu0 %v8075_v8, %s7904_s30  ;;  %508 = vrot.lane.b32.xlu1 %v8072_v7, %s7905_s5 }
  0x68   : > { %510 = vrot.lane.b32.xlu0 %v8075_v8, %s7905_s5  ;;  %763 = vrot.lane.b32.xlu1 %v8042_v5, %s7909_s9 }
  0x6c   : > { %765 = vrot.lane.b32.xlu0 %v8045_v6, %s7909_s9  ;;  %851 = vrot.lane.b32.xlu1 %v8042_v5, %s7910_s10 }
  0x70   : > { %853 = vrot.lane.b32.xlu0 %v8045_v6, %s7910_s10  ;;  %593 = vrot.lane.b32.xlu1 %v8072_v7, %s7907_s7 }
  0x74   : > { %595 = vrot.lane.b32.xlu0 %v8075_v8, %s7907_s7  ;;  %678 = vrot.lane.b32.xlu1 %v8072_v7, %s7908_s8 }
  0x78   : > { %680 = vrot.lane.b32.xlu0 %v8075_v8, %s7908_s8  ;;  %342 = vrot.lane.b32.xlu1 %v8124_v11, %s7903_s29 }
  0x7c   : > { %344 = vrot.lane.b32.xlu0 %v8131_v12, %s7903_s29  ;;  %767 = vrot.lane.b32.xlu1 %v8072_v7, %s7909_s9 }
  0x80   : > { %769 = vrot.lane.b32.xlu0 %v8075_v8, %s7909_s9  ;;  %855 = vrot.lane.b32.xlu1 %v8072_v7, %s7910_s10 }
  0x84   : > { %857 = vrot.lane.b32.xlu0 %v8075_v8, %s7910_s10  ;;  %939 = vrot.lane.b32.xlu1 %v8042_v5, %s7912_s11 }
  0x88   : > { %941 = vrot.lane.b32.xlu0 %v8045_v6, %s7912_s11  ;;  %753 = vrot.lane.b32.xlu1 %v7992_v0, %s7906_s6 }
  0x8a   : > { %v331_v13 = vpop.permute.xlu0 %330  ;;  %v329_v14 = vpop.permute.xlu1 %328 }
  0x8b   : > { %v363_v15 = vsel %vm362_vm1, %v329_v14, %v331_v13 }
  0x8c   : > { %427 = vrot.lane.b32.xlu0 %v8124_v11, %s7904_s30  ;;  %429 = vrot.lane.b32.xlu1 %v8131_v12, %s7904_s30  ;;  %v7043_v21 = vpack.c.bf16 %v363_v15, %v7995_v1  ;;  %v8244_v1 = vld [vmem:[%s7989_s28 + $0x58] sm:$0xff] }
  0x8e   : > { %v333_v16 = vpop.permute.xlu0 %332  ;;  %v416_v17 = vpop.permute.xlu1 %415 }
  0x8f   : > { %v364_v18 = vsel %vm362_vm1, %v331_v13, %v333_v16 }
  0x90   : > { %512 = vrot.lane.b32.xlu0 %v8124_v11, %s7905_s5  ;;  %514 = vrot.lane.b32.xlu1 %v8131_v12, %s7905_s5  ;;  %v7041_v19 = vpack.c.bf16 %v364_v18, %v7992_v0 }
  0x92   : > { %v8164_v22 = vpop.permute.xlu0 %417  ;;  %v501_v23 = vpop.permute.xlu1 %500  ;;  %7042 = vmatprep.subr.bf16.mxu0 %v7041_v19 }
  0x93   : > { %7044 = vmatpush1.bf16.msra.mxu0 %v7043_v21  ;;  %v449_v26 = vsel %vm447_vm2, %v416_v17, %v8164_v22 }
  0x94   : > { %346 = vrot.lane.b32.xlu0 %v8161_v20, %s7903_s29  ;;  %348 = vrot.lane.b32.xlu1 %v8005_v3, %s7903_s29 }
  0x96   : > { %v8170_v24 = vpop.permute.xlu0 %502  ;;  %v414_v25 = vpop.permute.xlu1 %413 }
  0x97   : > { %v534_v27 = vsel %vm532_vm3, %v501_v23, %v8170_v24  ;;  %v448_v31 = vsel %vm447_vm2, %v414_v25, %v416_v17 }
  0x98   : > { %943 = vrot.lane.b32.xlu0 %v8072_v7, %s7912_s11  ;;  %945 = vrot.lane.b32.xlu1 %v8075_v8, %s7912_s11  ;;  %v7045_v28 = vpack.c.bf16 %v534_v27, %v449_v26 }
  0x9a   : > { %v499_v29 = vpop.permute.xlu0 %498  ;;  %v8180_v30 = vpop.permute.xlu1 %308  ;;  %7046 = vmatprep.subr.bf16.mxu0 %v7045_v28 }
  0x9b   : > { %v533_v32 = vsel %vm532_vm3, %v499_v29, %v501_v23 }
  0x9c   : > { %597 = vrot.lane.b32.xlu0 %v8124_v11, %s7907_s7  ;;  %599 = vrot.lane.b32.xlu1 %v8131_v12, %s7907_s7  ;;  %v7047_v33 = vpack.c.bf16 %v533_v32, %v448_v31 }
  0x9e   : > { %v586_v34 = vpop.permute.xlu0 %585  ;;  %v8188_v35 = vpop.permute.xlu1 %587  ;;  %7048 = vmatpush1.bf16.msra.mxu0 %v7047_v33 }
  0x9f   : > { %v619_v38 = vsel %vm617_vm4, %v586_v34, %v8188_v35 }
  0xa0   : > { %682 = vrot.lane.b32.xlu0 %v8124_v11, %s7908_s8  ;;  %684 = vrot.lane.b32.xlu1 %v8131_v12, %s7908_s8 }
  0xa2   : > { %v671_v36 = vpop.permute.xlu0 %670  ;;  %v8194_v37 = vpop.permute.xlu1 %672 }
  0xa3   : > { %v704_v39 = vsel %vm702_vm5, %v671_v36, %v8194_v37 }
  0xa4   : > { %431 = vrot.lane.b32.xlu0 %v8161_v20, %s7904_s30  ;;  %433 = vrot.lane.b32.xlu1 %v8005_v3, %s7904_s30  ;;  %v7049_v40 = vpack.c.bf16 %v704_v39, %v619_v38 }
  0xa6   : > { %v584_v41 = vpop.permute.xlu0 %583  ;;  %v669_v42 = vpop.permute.xlu1 %668  ;;  %7050 = vmatprep.subr.bf16.mxu0 %v7049_v40 }
  0xa7   : > { %v618_v43 = vsel %vm617_vm4, %v584_v41, %v586_v34  ;;  %v703_v44 = vsel %vm702_vm5, %v669_v42, %v671_v36  ;;  %v8294_v34 = vld [vmem:[%s8286_s22] sm:$0xff] }
  0xa8   : > { %516 = vrot.lane.b32.xlu0 %v8161_v20, %s7905_s5  ;;  %518 = vrot.lane.b32.xlu1 %v8005_v3, %s7905_s5  ;;  %v7051_v45 = vpack.c.bf16 %v703_v44, %v618_v43 }
  0xaa   : > { %v335_v46 = vpop.permute.xlu0 %334  ;;  %v8210_v47 = vpop.permute.xlu1 %336  ;;  %7052 = vmatpush1.bf16.msra.mxu0 %v7051_v45 }
  0xab   : > { %v365_v48 = vsel %vm362_vm1, %v333_v16, %v335_v46  ;;  %v366_v49 = vsel %vm362_vm1, %v335_v46, %v8210_v47 }
  0xac   : > { %771 = vrot.lane.b32.xlu0 %v8124_v11, %s7909_s9  ;;  %773 = vrot.lane.b32.xlu1 %v8131_v12, %s7909_s9  ;;  %v7057_v50 = vpack.c.bf16 %v366_v49, %v8042_v5  ;;  %v7059_v51 = vpack.c.bf16 %v365_v48, %v8002_v2  ;;  %v8247_v2 = vld [vmem:[%s7989_s28 + $0x60] sm:$0xff] }
  0xae   : > { %v760_v52 = vpop.permute.xlu0 %759  ;;  %v8221_v53 = vpop.permute.xlu1 %761  ;;  %7058 = vmatprep.subr.bf16.mxu1 %v7057_v50 }
  0xaf   : > { %7060 = vmatpush1.bf16.msra.mxu1 %v7059_v51  ;;  %v795_v57 = vsel %vm793_vm6, %v760_v52, %v8221_v53 }
  0xb0   : > { %859 = vrot.lane.b32.xlu0 %v8124_v11, %s7910_s10  ;;  %861 = vrot.lane.b32.xlu1 %v8131_v12, %s7910_s10 }
  0xb2   : > { %v848_v55 = vpop.permute.xlu0 %847  ;;  %v8227_v56 = vpop.permute.xlu1 %849 }
  0xb3   : > { %v883_v58 = vsel %vm881_vm7, %v848_v55, %v8227_v56 }
  0xb4   : > { %601 = vrot.lane.b32.xlu0 %v8161_v20, %s7907_s7  ;;  %603 = vrot.lane.b32.xlu1 %v8005_v3, %s7907_s7  ;;  %v7053_v59 = vpack.c.bf16 %v883_v58, %v795_v57 }
  0xb6   : > { %v758_v60 = vpop.permute.xlu0 %757  ;;  %v846_v61 = vpop.permute.xlu1 %845  ;;  %7054 = vmatprep.subr.bf16.mxu0 %v7053_v59 }
  0xb7   : > { %v794_v62 = vsel %vm793_vm6, %v758_v60, %v760_v52  ;;  %v882_v63 = vsel %vm881_vm7, %v846_v61, %v848_v55 }
  0xb8   : > { %686 = vrot.lane.b32.xlu0 %v8161_v20, %s7908_s8  ;;  %688 = vrot.lane.b32.xlu1 %v8005_v3, %s7908_s8  ;;  %v7055_v0 = vpack.c.bf16 %v882_v63, %v794_v62 }
  0xba   : > { %v420_v5 = vpop.permute.xlu0 %419  ;;  %v8249_v13 = vpop.permute.xlu1 %421  ;;  %7056 = vmatpush1.bf16.msra.mxu0 %v7055_v0 }
  0xbb   : > { %v450_v16 = vsel %vm447_vm2, %v8164_v22, %v420_v5  ;;  %v451_v17 = vsel %vm447_vm2, %v420_v5, %v8249_v13 }
  0xbc   : > { %350 = vrot.lane.b32.xlu0 %v8244_v1, %s7903_s29  ;;  %352 = vrot.lane.b32.xlu1 %v8247_v2, %s7903_s29 }
  0xbe   : > { %v505_v14 = vpop.permute.xlu0 %504  ;;  %v507_v15 = vpop.permute.xlu1 %506 }
  0xbf   : > { %v535_v18 = vsel %vm532_vm3, %v8170_v24, %v505_v14  ;;  %v536_v19 = vsel %vm532_vm3, %v505_v14, %v507_v15 }
  0xc0   : > { %775 = vrot.lane.b32.xlu0 %v8161_v20, %s7909_s9  ;;  %777 = vrot.lane.b32.xlu1 %v8005_v3, %s7909_s9  ;;  %v7061_v21 = vpack.c.bf16 %v536_v19, %v451_v17  ;;  %v7063_v23 = vpack.c.bf16 %v535_v18, %v450_v16 }
  0xc2   : > { %v339_v25 = vpop.permute.xlu0 %338  ;;  %v8266_v26 = vpop.permute.xlu1 %340  ;;  %7062 = vmatprep.subr.bf16.mxu1 %v7061_v21 }
  0xc3   : > { %7064 = vmatpush1.bf16.msra.mxu1 %v7063_v23  ;;  %v368_v28 = vsel %vm362_vm1, %v339_v25, %v8266_v26  ;;  %v367_v29 = vsel %vm362_vm1, %v8210_v47, %v339_v25 }
  0xc4   : > { %863 = vrot.lane.b32.xlu0 %v8161_v20, %s7910_s10  ;;  %865 = vrot.lane.b32.xlu1 %v8005_v3, %s7910_s10  ;;  %v7073_v36 = vpack.c.bf16 %v368_v28, %v8072_v7  ;;  %v7075_v38 = vpack.c.bf16 %v367_v29, %v8045_v6  ;;  %v8312_v7 = vld [vmem:[%s7989_s28 + $0x68] sm:$0xff] }
  0xc6   : > { %v936_v22 = vpop.permute.xlu0 %935  ;;  %v8273_v24 = vpop.permute.xlu1 %937 }
  0xc7   : > { %v971_v27 = vsel %vm969_vm8, %v936_v22, %v8273_v24 }
  0xc8   : > { %947 = vrot.lane.b32.xlu0 %v8124_v11, %s7912_s11  ;;  %949 = vrot.lane.b32.xlu1 %v8131_v12, %s7912_s11 }
  0xc9   : > { %1201 = vmatprep.subr.mxu0 %v971_v27 }
  0xca   : > { %v934_v31 = vpop.permute.xlu0 %933  ;;  %v590_v32 = vpop.permute.xlu1 %589 }
  0xcb   : > { %v970_v33 = vsel %vm969_vm8, %v934_v31, %v936_v22  ;;  %v620_v45 = vsel %vm617_vm4, %v8188_v35, %v590_v32 }
  0xcc   : > { %435 = vrot.lane.b32.xlu0 %v8244_v1, %s7904_s30  ;;  %437 = vrot.lane.b32.xlu1 %v8247_v2, %s7904_s30 }
  0xcd   : > { %1202 = vmatpush1.msra.mxu0 %v970_v33 }
  0xce   : > { %v8302_v39 = vpop.permute.xlu0 %591  ;;  %v675_v40 = vpop.permute.xlu1 %674  ;;  %7074 = vmatprep.subr.bf16.mxu0 %v7073_v36  ;;  %6602 = vmatmul.mubr.msk.f32.vlgmr.msra.gmra.mrb[0].mxu0 %vm1181_vm9, %v8294_v34 }
  0xcf   : > { %7076 = vmatpush1.bf16.msra.mxu0 %v7075_v38  ;;  %1391 = vmatprep.mubr.f32.mxu0 %v7911_v9  ;;  %v705_v6 = vsel %vm702_vm5, %v8194_v37, %v675_v40  ;;  %v621_v43 = vsel %vm617_vm4, %v590_v32, %v8302_v39 }
  0xd0   : > { %520 = vrot.lane.b32.xlu0 %v8244_v1, %s7905_s5  ;;  %522 = vrot.lane.b32.xlu1 %v8247_v2, %s7905_s5  ;;  %v7067_v47 = vpack.c.bf16 %v705_v6, %v620_v45 }
  0xd2   : > { %v677_v41 = vpop.permute.xlu0 %676  ;;  %v424_v42 = vpop.permute.xlu1 %423 }
  0xd3   : > { %v706_v44 = vsel %vm702_vm5, %v675_v40, %v677_v41  ;;  %v452_v54 = vsel %vm447_vm2, %v8249_v13, %v424_v42  ;;  %v8402_v40 = vld [vmem:[%s7989_s28 + $0x78] sm:$0xff]  ;;  %s7918_s28 = smov 72  }
  0xd4   : > { %354 = vrot.lane.b32.xlu0 %v8312_v7, %s7903_s29  ;;  %356 = vrot.lane.b32.xlu1 %v8088_v10, %s7903_s29  ;;  %v7065_v46 = vpack.c.bf16 %v706_v44, %v621_v43  ;;  %v8411_v44 = vsel %vm307_vm10, %v8180_v30, %v8009_v4 }
  0xd6   : > { %v8325_v48 = vpop.permute.xlu0 %425  ;;  %v509_v37 = vpop.permute.xlu1 %508  ;;  %7066 = vmatprep.subr.bf16.mxu1 %v7065_v46 }
  0xd7   : > { %7068 = vmatpush1.bf16.msra.mxu1 %v7067_v47  ;;  %v537_v35 = vsel %vm532_vm3, %v507_v15, %v509_v37  ;;  %v453_v51 = vsel %vm447_vm2, %v424_v42, %v8325_v48 }
  0xd8   : > { %951 = vrot.lane.b32.xlu0 %v8161_v20, %s7912_s11  ;;  %953 = vrot.lane.b32.xlu1 %v8005_v3, %s7912_s11  ;;  %v7079_v55 = vpack.c.bf16 %v537_v35, %v452_v54 }
  0xda   : > { %v8332_v49 = vpop.permute.xlu0 %510  ;;  %v764_v50 = vpop.permute.xlu1 %763 }
  0xdb   : > { %v538_v52 = vsel %vm532_vm3, %v509_v37, %v8332_v49  ;;  %v796_v0 = vsel %vm793_vm6, %v8221_v53, %v764_v50 }
  0xdc   : > { %605 = vrot.lane.b32.xlu0 %v8244_v1, %s7907_s7  ;;  %607 = vrot.lane.b32.xlu1 %v8247_v2, %s7907_s7  ;;  %v7077_v3 = vpack.c.bf16 %v538_v52, %v453_v51 }
  0xde   : > { %v766_v57 = vpop.permute.xlu0 %765  ;;  %v852_v58 = vpop.permute.xlu1 %851  ;;  %7078 = vmatprep.subr.bf16.mxu0 %v7077_v3 }
  0xdf   : > { %7080 = vmatpush1.bf16.msra.mxu0 %v7079_v55  ;;  %v884_v59 = vsel %vm881_vm7, %v8227_v56, %v852_v58  ;;  %v797_v62 = vsel %vm793_vm6, %v764_v50, %v766_v57 }
  0xe0   : > { %690 = vrot.lane.b32.xlu0 %v8244_v1, %s7908_s8  ;;  %692 = vrot.lane.b32.xlu1 %v8247_v2, %s7908_s8  ;;  %v7071_v13 = vpack.c.bf16 %v884_v59, %v796_v0 }
  0xe2   : > { %v854_v60 = vpop.permute.xlu0 %853  ;;  %v594_v61 = vpop.permute.xlu1 %593 }
  0xe3   : > { %v885_v63 = vsel %vm881_vm7, %v852_v58, %v854_v60  ;;  %v622_v19 = vsel %vm617_vm4, %v8302_v39, %v594_v61 }
  0xe4   : > { %439 = vrot.lane.b32.xlu0 %v8312_v7, %s7904_s30  ;;  %441 = vrot.lane.b32.xlu1 %v8088_v10, %s7904_s30  ;;  %v7069_v5 = vpack.c.bf16 %v885_v63, %v797_v62 }
  0xe6   : > { %v8358_v14 = vpop.permute.xlu0 %595  ;;  %v679_v56 = vpop.permute.xlu1 %678  ;;  %7070 = vmatprep.subr.bf16.mxu1 %v7069_v5 }
  0xe7   : > { %7072 = vmatpush1.bf16.msra.mxu1 %v7071_v13  ;;  %v707_v53 = vsel %vm702_vm5, %v677_v41, %v679_v56  ;;  %v623_v17 = vsel %vm617_vm4, %v594_v61, %v8358_v14 }
  0xe8   : > { %524 = vrot.lane.b32.xlu0 %v8312_v7, %s7905_s5  ;;  %526 = vrot.lane.b32.xlu1 %v8088_v10, %s7905_s5  ;;  %v7083_v23 = vpack.c.bf16 %v707_v53, %v622_v19 }
  0xea   : > { %v8365_v15 = vpop.permute.xlu0 %680  ;;  %v343_v16 = vpop.permute.xlu1 %342 }
  0xeb   : > { %v708_v18 = vsel %vm702_vm5, %v679_v56, %v8365_v15  ;;  %v369_v46 = vsel %vm362_vm1, %v8266_v26, %v343_v16 }
  0xec   : > { %779 = vrot.lane.b32.xlu0 %v8244_v1, %s7909_s9  ;;  %781 = vrot.lane.b32.xlu1 %v8247_v2, %s7909_s9  ;;  %v7081_v21 = vpack.c.bf16 %v708_v18, %v623_v17  ;;  %v7091_v26 = vpack.c.bf16 %v369_v46, %v8075_v8 }
  0xee   : > { %v8377_v25 = vpop.permute.xlu0 %344  ;;  %v768_v22 = vpop.permute.xlu1 %767  ;;  %7082 = vmatprep.subr.bf16.mxu0 %v7081_v21 }
  0xef   : > { %7084 = vmatpush1.bf16.msra.mxu0 %v7083_v23  ;;  %v798_v38 = vsel %vm793_vm6, %v766_v57, %v768_v22  ;;  %v370_v41 = vsel %vm362_vm1, %v343_v16, %v8377_v25 }
  0xf0   : > { %867 = vrot.lane.b32.xlu0 %v8244_v1, %s7910_s10  ;;  %869 = vrot.lane.b32.xlu1 %v8247_v2, %s7910_s10  ;;  %v7089_v37 = vpack.c.bf16 %v370_v41, %v8124_v11 }
  0xf2   : > { %v8383_v27 = vpop.permute.xlu0 %769  ;;  %v856_v28 = vpop.permute.xlu1 %855 }
  0xf3   : > { %v886_v29 = vsel %vm881_vm7, %v854_v60, %v856_v28  ;;  %v799_v33 = vsel %vm793_vm6, %v768_v22, %v8383_v27 }
  0xf4   : > { %609 = vrot.lane.b32.xlu0 %v8312_v7, %s7907_s7  ;;  %611 = vrot.lane.b32.xlu1 %v8088_v10, %s7907_s7  ;;  %v7087_v6 = vpack.c.bf16 %v886_v29, %v798_v38 }
  0xf6   : > { %v8390_v31 = vpop.permute.xlu0 %857  ;;  %v940_v32 = vpop.permute.xlu1 %939 }
  0xf7   : > { %v887_v36 = vsel %vm881_vm7, %v856_v28, %v8390_v31  ;;  %v972_v47 = vsel %vm969_vm8, %v8273_v24, %v940_v32 }
  0xf8   : > { %694 = vrot.lane.b32.xlu0 %v8312_v7, %s7908_s8  ;;  %696 = vrot.lane.b32.xlu1 %v8088_v10, %s7908_s8  ;;  %v7085_v39 = vpack.c.bf16 %v887_v36, %v799_v33 }
  0xfa   : > { %v942_v42 = vpop.permute.xlu0 %941  ;;  %v8406_v43 = vpop.permute.xlu1 %753  ;;  %7086 = vmatprep.subr.bf16.mxu0 %v7085_v39 }
  0xfb   : > { %v973_v45 = vsel %vm969_vm8, %v940_v32, %v942_v42  ;;  %7088 = vmatpush1.bf16.msra.mxu0 %v7087_v6 }
  0xfc   : > { %358 = vrot.lane.b32.xlu0 %v8402_v40, %s7903_s29  ;;  %360 = vrot.lane.b32.xlu1 %v8411_v44, %s7903_s29 }
  0xfd   : > { %1272 = vmatprep.subr.mxu1 %v973_v45 }
  0xfe   : > { %v428_v4 = vpop.permute.xlu0 %427  ;;  %v8423_v35 = vpop.permute.xlu1 %429  ;;  %1273 = vmatpush1.msra.mxu1 %v972_v47 }
  0xff   : > { %6603 = vmatmul.mubr.msk.f32.vlgmr.msra.gmra.mrb[0].mxu1 %vm1181_vm9, %v8294_v34  ;;  %7090 = vmatprep.subr.bf16.mxu1 %v7089_v37  ;;  %v454_v50 = vsel %vm447_vm2, %v8325_v48, %v428_v4  ;;  %v455_v51 = vsel %vm447_vm2, %v428_v4, %v8423_v35 }
 0x100   : > { %783 = vrot.lane.b32.xlu0 %v8312_v7, %s7909_s9  ;;  %785 = vrot.lane.b32.xlu1 %v8088_v10, %s7909_s9 }
 0x101   : > { %7092 = vmatpush1.bf16.msra.mxu1 %v7091_v26  ;;  %1462 = vmatprep.mubr.f32.mxu1 %v7911_v9 }
 0x102   : > { %v513_v11 = vpop.permute.xlu0 %512  ;;  %v515_v24 = vpop.permute.xlu1 %514 }
 0x103   : > { %v539_v8 = vsel %vm532_vm3, %v8332_v49, %v513_v11  ;;  %v540_v52 = vsel %vm532_vm3, %v513_v11, %v515_v24 }
 0x104   : > { %871 = vrot.lane.b32.xlu0 %v8312_v7, %s7910_s10  ;;  %873 = vrot.lane.b32.xlu1 %v8088_v10, %s7910_s10  ;;  %v7093_v54 = vpack.c.bf16 %v540_v52, %v455_v51  ;;  %v7095_v3 = vpack.c.bf16 %v539_v8, %v454_v50 }
 0x106   : > { %v347_v55 = vpop.permute.xlu0 %346  ;;  %v8444_v57 = vpop.permute.xlu1 %348  ;;  %7094 = vmatprep.subr.bf16.mxu1 %v7093_v54 }
 0x107   : > { %7096 = vmatpush1.bf16.msra.mxu1 %v7095_v3  ;;  %v372_v48 = vsel %vm362_vm1, %v347_v55, %v8444_v57  ;;  %v371_v61 = vsel %vm362_vm1, %v8377_v25, %v347_v55 }
 0x108   : > { %955 = vrot.lane.b32.xlu0 %v8244_v1, %s7912_s11  ;;  %957 = vrot.lane.b32.xlu1 %v8247_v2, %s7912_s11  ;;  %v7105_v62 = vpack.c.bf16 %v372_v48, %v8161_v20  ;;  %v7107_v5 = vpack.c.bf16 %v371_v61, %v8131_v12 }
 0x10a   : > { %v944_v49 = vpop.permute.xlu0 %943  ;;  %v8452_v58 = vpop.permute.xlu1 %945 }
 0x10b   : > { %v974_v59 = vsel %vm969_vm8, %v942_v42, %v944_v49  ;;  %v975_v60 = vsel %vm969_vm8, %v944_v49, %v8452_v58 }
 0x10c   : > { %443 = vrot.lane.b32.xlu0 %v8402_v40, %s7904_s30  ;;  %445 = vrot.lane.b32.xlu1 %v8411_v44, %s7904_s30 }
 0x10d   : > { %1343 = vmatprep.subr.mxu0 %v975_v60 }
 0x10e   : > { %v598_v63 = vpop.permute.xlu0 %597  ;;  %v600_v0 = vpop.permute.xlu1 %599  ;;  %1344 = vmatpush1.msra.mxu0 %v974_v59 }
 0x10f   : > { %6604 = vmatmul.mubr.msk.f32.vlgmr.msra.gmra.mrb[2].mxu0 %vm1181_vm9, %v8294_v34  ;;  %7106 = vmatprep.subr.bf16.mxu0 %v7105_v62  ;;  %v624_v56 = vsel %vm617_vm4, %v8358_v14, %v598_v63  ;;  %v625_v53 = vsel %vm617_vm4, %v598_v63, %v600_v0 }
 0x110   : > { %528 = vrot.lane.b32.xlu0 %v8402_v40, %s7905_s5  ;;  %530 = vrot.lane.b32.xlu1 %v8411_v44, %s7905_s5 }
 0x111   : > { %7108 = vmatpush1.bf16.msra.mxu0 %v7107_v5  ;;  %1533 = vmatprep.mubr.f32.mxu0 %v7911_v9 }
 0x112   : > { %v683_v13 = vpop.permute.xlu0 %682  ;;  %v685_v20 = vpop.permute.xlu1 %684 }
 0x113   : > { %v709_v16 = vsel %vm702_vm5, %v8365_v15, %v683_v13  ;;  %v710_v12 = vsel %vm702_vm5, %v683_v13, %v685_v20  ;;  %v1032_v13 = vld [vmem:[#allocation2 + $0x50] sm:$0xff] }
 0x114   : > { %959 = vrot.lane.b32.xlu0 %v8312_v7, %s7912_s11  ;;  %961 = vrot.lane.b32.xlu1 %v8088_v10, %s7912_s11  ;;  %v7097_v17 = vpack.c.bf16 %v710_v12, %v625_v53  ;;  %v7099_v18 = vpack.c.bf16 %v709_v16, %v624_v56 }
 0x116   : > { %v432_v19 = vpop.permute.xlu0 %431  ;;  %v8482_v21 = vpop.permute.xlu1 %433  ;;  %7098 = vmatprep.subr.bf16.mxu1 %v7097_v17 }
 0x117   : > { %7100 = vmatpush1.bf16.msra.mxu1 %v7099_v18  ;;  %v456_v23 = vsel %vm447_vm2, %v8423_v35, %v432_v19  ;;  %v457_v10 = vsel %vm447_vm2, %v432_v19, %v8482_v21 }
 0x118   : > { %613 = vrot.lane.b32.xlu0 %v8402_v40, %s7907_s7  ;;  %615 = vrot.lane.b32.xlu1 %v8411_v44, %s7907_s7  ;;  %s7922_s7 = smov 12  }
 0x11a   : > { %v517_v14 = vpop.permute.xlu0 %516  ;;  %v8488_v15 = vpop.permute.xlu1 %518 }
 0x11b   : > { %v541_v25 = vsel %vm532_vm3, %v515_v24, %v517_v14  ;;  %v542_v22 = vsel %vm532_vm3, %v517_v14, %v8488_v15  ;;  %v1175_v24 = vld [vmem:[%s8531_s25] sm:$0xff] }
 0x11c   : > { %698 = vrot.lane.b32.xlu0 %v8402_v40, %s7908_s8  ;;  %700 = vrot.lane.b32.xlu1 %v8411_v44, %s7908_s8  ;;  %v7109_v28 = vpack.c.bf16 %v542_v22, %v457_v10  ;;  %v7111_v29 = vpack.c.bf16 %v541_v25, %v456_v23  ;;  %s7923_s8 = smov 16  }
 0x11e   : > { %v772_v32 = vpop.permute.xlu0 %771  ;;  %v774_v33 = vpop.permute.xlu1 %773  ;;  %7110 = vmatprep.subr.bf16.mxu0 %v7109_v28 }
 0x11f   : > { %7112 = vmatpush1.bf16.msra.mxu0 %v7111_v29  ;;  %v800_v39 = vsel %vm793_vm6, %v8383_v27, %v772_v32  ;;  %v801_v6 = vsel %vm793_vm6, %v772_v32, %v774_v33  ;;  %v755_v27 = vsel %vm307_vm10, %v8406_v43, %v8180_v30 }
 0x120   : > { %787 = vrot.lane.b32.xlu0 %v8402_v40, %s7909_s9  ;;  %789 = vrot.lane.b32.xlu1 %v8411_v44, %s7909_s9 }
 0x122   : > { %v860_v36 = vpop.permute.xlu0 %859  ;;  %v862_v38 = vpop.permute.xlu1 %861 }
 0x123   : > { %v888_v41 = vsel %vm881_vm7, %v8390_v31, %v860_v36  ;;  %v889_v42 = vsel %vm881_vm7, %v860_v36, %v862_v38 }
 0x124   : > { %875 = vrot.lane.b32.xlu0 %v8402_v40, %s7910_s10  ;;  %877 = vrot.lane.b32.xlu1 %v8411_v44, %s7910_s10  ;;  %v7101_v45 = vpack.c.bf16 %v889_v42, %v801_v6  ;;  %v7103_v46 = vpack.c.bf16 %v888_v41, %v800_v39 }
 0x126   : > { %v602_v47 = vpop.permute.xlu0 %601  ;;  %v8515_v37 = vpop.permute.xlu1 %603  ;;  %7102 = vmatprep.subr.bf16.mxu1 %v7101_v45 }
 0x127   : > { %7104 = vmatpush1.bf16.msra.mxu1 %v7103_v46  ;;  %v626_v35 = vsel %vm617_vm4, %v600_v0, %v602_v47  ;;  %v627_v26 = vsel %vm617_vm4, %v602_v47, %v8515_v37 }
 0x128   : > { %963 = vrot.lane.b32.xlu0 %v8402_v40, %s7912_s11  ;;  %965 = vrot.lane.b32.xlu1 %v8411_v44, %s7912_s11 }
 0x12a   : > { %v687_v31 = vpop.permute.xlu0 %686  ;;  %v8524_v4 = vpop.permute.xlu1 %688 }
 0x12b   : > { %v711_v44 = vsel %vm702_vm5, %v685_v20, %v687_v31  ;;  %v712_v30 = vsel %vm702_vm5, %v687_v31, %v8524_v4 }
 0x12c   : > { %879 = vrot.lane.b32.xlu1 %v755_v27, %s7910_s10  ;;  %791 = vrot.lane.b32.xlu0 %v755_v27, %s7909_s9  ;;  %v7113_v43 = vpack.c.bf16 %v712_v30, %v627_v26  ;;  %v7115_v11 = vpack.c.bf16 %v711_v44, %v626_v35 }
 0x12e   : > { %v351_v50 = vpop.permute.xlu0 %350  ;;  %v353_v51 = vpop.permute.xlu1 %352  ;;  %7114 = vmatprep.subr.bf16.mxu0 %v7113_v43 }
 0x12f   : > { %7116 = vmatpush1.bf16.msra.mxu0 %v7115_v11  ;;  %v374_v62 = vsel %vm362_vm1, %v351_v50, %v353_v51  ;;  %v373_v63 = vsel %vm362_vm1, %v8444_v57, %v351_v50 }
 0x130   : > { %1178 = vperm.xlu1 %7795, %v1175_v24   ;;  %967 = vrot.lane.b32.xlu0 %v755_v27, %s7912_s11  ;;  %v7121_v53 = vpack.c.bf16 %v374_v62, %v8244_v1  ;;  %v7123_v16 = vpack.c.bf16 %v373_v63, %v1032_v13 }
 0x132   : > { %v776_v8 = vpop.permute.xlu0 %775  ;;  %v8543_v52 = vpop.permute.xlu1 %777 }
 0x133   : > { %v802_v55 = vsel %vm793_vm6, %v774_v33, %v776_v8  ;;  %v803_v48 = vsel %vm793_vm6, %v776_v8, %v8543_v52 }
 0x136   : > { %v864_v54 = vpop.permute.xlu0 %863  ;;  %v8545_v3 = vpop.permute.xlu1 %865 }
 0x137   : > { %v890_v49 = vsel %vm881_vm7, %v862_v38, %v864_v54  ;;  %v891_v59 = vsel %vm881_vm7, %v864_v54, %v8545_v3 }
 0x138   : > { %v7117_v60 = vpack.c.bf16 %v891_v59, %v803_v48  ;;  %v7119_v61 = vpack.c.bf16 %v890_v49, %v802_v55 }
 0x13a   : > { %v948_v0 = vpop.permute.xlu0 %947  ;;  %v950_v5 = vpop.permute.xlu1 %949  ;;  %7118 = vmatprep.subr.bf16.mxu0 %v7117_v60 }
 0x13b   : > { %v976_v20 = vsel %vm969_vm8, %v8452_v58, %v948_v0  ;;  %v977_v56 = vsel %vm969_vm8, %v948_v0, %v950_v5  ;;  %7120 = vmatpush1.bf16.msra.mxu0 %v7119_v61 }
 0x13c   : > { %1414 = vmatprep.subr.mxu1 %v977_v56 }
 0x13d   : > { %1415 = vmatpush1.msra.mxu1 %v976_v20 }
 0x13e   : > { %v436_v12 = vpop.permute.xlu0 %435  ;;  %v438_v17 = vpop.permute.xlu1 %437  ;;  %6605 = vmatmul.mubr.msk.f32.vlgmr.msra.gmra.mrb[2].mxu1 %vm1181_vm9, %v8294_v34  ;;  %7122 = vmatprep.subr.bf16.mxu1 %v7121_v53 }
 0x13f   : > { %7124 = vmatpush1.bf16.msra.mxu1 %v7123_v16  ;;  %1604 = vmatprep.mubr.f32.mxu1 %v7911_v9  ;;  %v458_v58 = vsel %vm447_vm2, %v8482_v21, %v436_v12  ;;  %v459_v19 = vsel %vm447_vm2, %v436_v12, %v438_v17 }
 0x142   : > { %v521_v57 = vpop.permute.xlu0 %520  ;;  %v523_v18 = vpop.permute.xlu1 %522 }
 0x143   : > { %v543_v1 = vsel %vm532_vm3, %v8488_v15, %v521_v57  ;;  %v544_v14 = vsel %vm532_vm3, %v521_v57, %v523_v18 }
 0x144   : > { %v7125_v23 = vpack.c.bf16 %v544_v14, %v459_v19  ;;  %v7127_v10 = vpack.c.bf16 %v543_v1, %v458_v58 }
 0x146   : > { %v355_v25 = vpop.permute.xlu0 %354  ;;  %v8569_v22 = vpop.permute.xlu1 %356  ;;  %7126 = vmatprep.subr.bf16.mxu1 %v7125_v23 }
 0x147   : > { %7128 = vmatpush1.bf16.msra.mxu1 %v7127_v10  ;;  %v376_v28 = vsel %vm362_vm1, %v355_v25, %v8569_v22  ;;  %v375_v29 = vsel %vm362_vm1, %v353_v51, %v355_v25 }
 0x148   : > { %v7137_v36 = vpack.c.bf16 %v376_v28, %v8312_v7  ;;  %v7139_v38 = vpack.c.bf16 %v375_v29, %v8247_v2 }
 0x14a   : > { %v952_v21 = vpop.permute.xlu0 %951  ;;  %v8574_v32 = vpop.permute.xlu1 %953 }
 0x14b   : > { %v978_v33 = vsel %vm969_vm8, %v950_v5, %v952_v21  ;;  %v979_v15 = vsel %vm969_vm8, %v952_v21, %v8574_v32 }
 0x14c   : > { %1485 = vmatprep.subr.mxu0 %v979_v15  ;;  %v1036_v15 = vld [vmem:[#allocation2 + $0x70] sm:$0xff] }
 0x14d   : > { %1486 = vmatpush1.msra.mxu0 %v978_v33 }
 0x14e   : > { %v606_v39 = vpop.permute.xlu0 %605  ;;  %v608_v6 = vpop.permute.xlu1 %607  ;;  %6606 = vmatmul.mubr.msk.f32.vlgmr.msra.gmra.mrb[4].mxu0 %vm1181_vm9, %v8294_v34  ;;  %7138 = vmatprep.subr.bf16.mxu0 %v7137_v36 }
 0x14f   : > { %7140 = vmatpush1.bf16.msra.mxu0 %v7139_v38  ;;  %1675 = vmatprep.mubr.f32.mxu0 %v7911_v9  ;;  %v628_v45 = vsel %vm617_vm4, %v8515_v37, %v606_v39  ;;  %v629_v46 = vsel %vm617_vm4, %v606_v39, %v608_v6 }
 0x152   : > { %v691_v41 = vpop.permute.xlu0 %690  ;;  %v693_v42 = vpop.permute.xlu1 %692 }
 0x153   : > { %v713_v7 = vsel %vm702_vm5, %v8524_v4, %v691_v41  ;;  %v714_v2 = vsel %vm702_vm5, %v691_v41, %v693_v42 }
 0x154   : > { %v7129_v47 = vpack.c.bf16 %v714_v2, %v629_v46  ;;  %v7131_v27 = vpack.c.bf16 %v713_v7, %v628_v45 }
 0x156   : > { %v440_v31 = vpop.permute.xlu0 %439  ;;  %v8590_v35 = vpop.permute.xlu1 %441  ;;  %7130 = vmatprep.subr.bf16.mxu1 %v7129_v47 }
 0x157   : > { %7132 = vmatpush1.bf16.msra.mxu1 %v7131_v27  ;;  %v460_v30 = vsel %vm447_vm2, %v438_v17, %v440_v31  ;;  %v461_v37 = vsel %vm447_vm2, %v440_v31, %v8590_v35 }
 0x15a   : > { %v525_v26 = vpop.permute.xlu0 %524  ;;  %v8592_v44 = vpop.permute.xlu1 %526 }
 0x15b   : > { %v545_v43 = vsel %vm532_vm3, %v523_v18, %v525_v26  ;;  %v546_v4 = vsel %vm532_vm3, %v525_v26, %v8592_v44  ;;  %v1038_v26 = vld [vmem:[#allocation2 + $0x80] sm:$0xff] }
 0x15c   : > { %v7141_v11 = vpack.c.bf16 %v546_v4, %v461_v37  ;;  %v7143_v24 = vpack.c.bf16 %v545_v43, %v460_v30 }
 0x15e   : > { %v780_v50 = vpop.permute.xlu0 %779  ;;  %v782_v51 = vpop.permute.xlu1 %781  ;;  %7142 = vmatprep.subr.bf16.mxu0 %v7141_v11  ;;  %v7914_v11 = vmov 0.0|0.0  }
 0x15f   : > { %7144 = vmatpush1.bf16.msra.mxu0 %v7143_v24  ;;  %v804_v55 = vsel %vm793_vm6, %v8543_v52, %v780_v50  ;;  %v805_v48 = vsel %vm793_vm6, %v780_v50, %v782_v51 }
 0x162   : > { %v868_v8 = vpop.permute.xlu0 %867  ;;  %v870_v54 = vpop.permute.xlu1 %869 }
 0x163   : > { %v892_v49 = vsel %vm881_vm7, %v8545_v3, %v868_v8  ;;  %v893_v59 = vsel %vm881_vm7, %v868_v8, %v870_v54 }
 0x164   : > { %v7133_v60 = vpack.c.bf16 %v893_v59, %v805_v48  ;;  %v7135_v61 = vpack.c.bf16 %v892_v49, %v804_v55 }
 0x166   : > { %v610_v62 = vpop.permute.xlu0 %609  ;;  %v8606_v63 = vpop.permute.xlu1 %611  ;;  %7134 = vmatprep.subr.bf16.mxu1 %v7133_v60 }
 0x167   : > { %7136 = vmatpush1.bf16.msra.mxu1 %v7135_v61  ;;  %v630_v13 = vsel %vm617_vm4, %v608_v6, %v610_v62  ;;  %v631_v52 = vsel %vm617_vm4, %v610_v62, %v8606_v63 }
 0x16a   : > { %v695_v0 = vpop.permute.xlu0 %694  ;;  %v8608_v5 = vpop.permute.xlu1 %696 }
 0x16b   : > { %v715_v20 = vsel %vm702_vm5, %v693_v42, %v695_v0  ;;  %v716_v3 = vsel %vm702_vm5, %v695_v0, %v8608_v5 }
 0x16c   : > { %v7145_v56 = vpack.c.bf16 %v716_v3, %v631_v52  ;;  %v7147_v53 = vpack.c.bf16 %v715_v20, %v630_v13 }
 0x16e   : > { %v359_v16 = vpop.permute.xlu0 %358  ;;  %v361_v12 = vpop.permute.xlu1 %360  ;;  %7146 = vmatprep.subr.bf16.mxu0 %v7145_v56 }
 0x16f   : > { %412 = vst.msk [vmem:[#allocation2 + $0x108] sm:$0xff] %vm305_vm0, %v361_v12  ;;  %7148 = vmatpush1.bf16.msra.mxu0 %v7147_v53  ;;  %v378_v28 = vsel %vm362_vm1, %v359_v16, %v361_v12  ;;  %v377_v29 = vsel %vm362_vm1, %v8569_v22, %v359_v16 }
 0x170   : > { %v7153_v39 = vpack.c.bf16 %v378_v28, %v8402_v40  ;;  %v7155_v6 = vpack.c.bf16 %v377_v29, %v1036_v15 }
 0x172   : > { %v784_v17 = vpop.permute.xlu0 %783  ;;  %v8617_v57 = vpop.permute.xlu1 %785 }
 0x173   : > { %v806_v19 = vsel %vm793_vm6, %v782_v51, %v784_v17  ;;  %v807_v1 = vsel %vm793_vm6, %v784_v17, %v8617_v57 }
 0x176   : > { %v872_v18 = vpop.permute.xlu0 %871  ;;  %v8619_v58 = vpop.permute.xlu1 %873  ;;  %v1055_v30 = vld [vmem:[#allocation2 + $0x108] sm:$0xff] }
 0x177   : > { %v894_v14 = vsel %vm881_vm7, %v870_v54, %v872_v18  ;;  %v895_v23 = vsel %vm881_vm7, %v872_v18, %v8619_v58  ;;  %v7170_v43 = vpack.c.bf16 %v1055_v30, %v1038_v26 }
 0x178   : > { %v7149_v10 = vpack.c.bf16 %v895_v23, %v807_v1  ;;  %v7151_v25 = vpack.c.bf16 %v894_v14, %v806_v19 }
 0x17a   : > { %v956_v21 = vpop.permute.xlu0 %955  ;;  %v958_v33 = vpop.permute.xlu1 %957  ;;  %7150 = vmatprep.subr.bf16.mxu0 %v7149_v10 }
 0x17b   : > { %v980_v36 = vsel %vm969_vm8, %v8574_v32, %v956_v21  ;;  %v981_v38 = vsel %vm969_vm8, %v956_v21, %v958_v33  ;;  %7152 = vmatpush1.bf16.msra.mxu0 %v7151_v25 }
 0x17c   : > { %1556 = vmatprep.subr.mxu1 %v981_v38 }
 0x17d   : > { %1557 = vmatpush1.msra.mxu1 %v980_v36 }
 0x17e   : > { %v444_v41 = vpop.permute.xlu0 %443  ;;  %v446_v42 = vpop.permute.xlu1 %445  ;;  %6607 = vmatmul.mubr.msk.f32.vlgmr.msra.gmra.mrb[4].mxu1 %vm1181_vm9, %v8294_v34  ;;  %7154 = vmatprep.subr.bf16.mxu1 %v7153_v39 }
 0x17f   : > { %497 = vst.msk [vmem:[#allocation2 + $0x190] sm:$0xff] %vm305_vm0, %v446_v42  ;;  %7156 = vmatpush1.bf16.msra.mxu1 %v7155_v6  ;;  %1746 = vmatprep.mubr.f32.mxu1 %v7911_v9  ;;  %v462_v45 = vsel %vm447_vm2, %v8590_v35, %v444_v41  ;;  %v463_v40 = vsel %vm447_vm2, %v444_v41, %v446_v42 }
 0x182   : > { %v529_v22 = vpop.permute.xlu0 %528  ;;  %v531_v32 = vpop.permute.xlu1 %530 }
 0x183   : > { %v547_v46 = vsel %vm532_vm3, %v8592_v44, %v529_v22  ;;  %v548_v7 = vsel %vm532_vm3, %v529_v22, %v531_v32  ;;  %582 = vst.msk [vmem:[#allocation2 + $0x218] sm:$0xff] %vm305_vm0, %v531_v32 }
 0x184   : > { %v7157_v2 = vpack.c.bf16 %v548_v7, %v463_v40  ;;  %v7159_v47 = vpack.c.bf16 %v547_v46, %v462_v45 }
 0x186   : > { %v960_v27 = vpop.permute.xlu0 %959  ;;  %v962_v31 = vpop.permute.xlu1 %961  ;;  %7158 = vmatprep.subr.bf16.mxu1 %v7157_v2  ;;  %v1072_v50 = vld [vmem:[#allocation2 + $0x190] sm:$0xff] }
 0x187   : > { %v982_v37 = vsel %vm969_vm8, %v958_v33, %v960_v27  ;;  %v983_v35 = vsel %vm969_vm8, %v960_v27, %v962_v31  ;;  %7160 = vmatpush1.bf16.msra.mxu1 %v7159_v47 }
 0x188   : > { %1627 = vmatprep.subr.mxu0 %v983_v35 }
 0x189   : > { %1628 = vmatpush1.msra.mxu0 %v982_v37 }
 0x18a   : > { %v614_v44 = vpop.permute.xlu0 %613  ;;  %v616_v4 = vpop.permute.xlu1 %615  ;;  %6608 = vmatmul.mubr.msk.f32.vlgmr.msra.gmra.mrb[6].mxu0 %vm1181_vm9, %v8294_v34  ;;  %7169 = vmatprep.subr.bf16.mxu0 %v7914_v11  ;;  %v1089_v24 = vld [vmem:[#allocation2 + $0x218] sm:$0xff] }
 0x18b   : > { %667 = vst.msk [vmem:[#allocation2 + $0x2a0] sm:$0xff] %vm305_vm0, %v616_v4  ;;  %7171 = vmatpush3.bf16.msra.mxu0 %v7170_v43  ;;  %6975 = vmatprep.mubr.msk.f32.mxu0 %vm7915_vm11, %v7911_v9  ;;  %v7173_v51 = vpack.c.bf16 %v1089_v24, %v1072_v50  ;;  %v632_v55 = vsel %vm617_vm4, %v8606_v63, %v614_v44 }
 0x18c   : > { %7172 = vmatprep.subr.bf16.mxu0 %v7914_v11  ;;  %v633_v48 = vsel %vm617_vm4, %v614_v44, %v616_v4  ;;  %vm4494_vm4 = vcmask 64512  }
 0x18e   : > { %v699_v8 = vpop.permute.xlu0 %698  ;;  %v701_v54 = vpop.permute.xlu1 %700 }
 0x18f   : > { %v717_v49 = vsel %vm702_vm5, %v8608_v5, %v699_v8  ;;  %v718_v59 = vsel %vm702_vm5, %v699_v8, %v701_v54  ;;  %752 = vst.msk [vmem:[#allocation2 + $0x328] sm:$0xff] %vm305_vm0, %v701_v54  ;;  %7174 = vmatpush3.bf16.msra.mxu0 %v7173_v51  ;;  %vm5845_vm5 = vcmask 1043456  }
 0x190   : > { %v7161_v60 = vpack.c.bf16 %v718_v59, %v633_v48  ;;  %7175 = vmatprep.subr.bf16.mxu0 %v7914_v11  ;;  %v7163_v61 = vpack.c.bf16 %v717_v49, %v632_v55 }
 0x192   : > { %v788_v62 = vpop.permute.xlu0 %787  ;;  %v790_v0 = vpop.permute.xlu1 %789  ;;  %7162 = vmatprep.subr.bf16.mxu1 %v7161_v60  ;;  %v1106_v20 = vld [vmem:[#allocation2 + $0x2a0] sm:$0xff] }
 0x193   : > { %7164 = vmatpush1.bf16.msra.mxu1 %v7163_v61  ;;  %v808_v63 = vsel %vm793_vm6, %v8617_v57, %v788_v62  ;;  %v809_v3 = vsel %vm793_vm6, %v788_v62, %v790_v0 }
 0x196   : > { %v876_v13 = vpop.permute.xlu0 %875  ;;  %v878_v52 = vpop.permute.xlu1 %877  ;;  %v1123_v5 = vld [vmem:[#allocation2 + $0x328] sm:$0xff] }
 0x197   : > { %v896_v56 = vsel %vm881_vm7, %v8619_v58, %v876_v13  ;;  %v897_v53 = vsel %vm881_vm7, %v876_v13, %v878_v52  ;;  %v7176_v16 = vpack.c.bf16 %v1123_v5, %v1106_v20 }
 0x198   : > { %v7165_v12 = vpack.c.bf16 %v897_v53, %v809_v3  ;;  %v7167_v17 = vpack.c.bf16 %v896_v56, %v808_v63 }
 0x199   : > { %7177 = vmatpush3.bf16.msra.mxu0 %v7176_v16 }
 0x19a   : > { %v964_v18 = vpop.permute.xlu0 %963  ;;  %v966_v19 = vpop.permute.xlu1 %965  ;;  %7166 = vmatprep.subr.bf16.mxu1 %v7165_v12  ;;  %7178 = vmatprep.subr.bf16.mxu0 %v7914_v11 }
 0x19b   : > { %v985_v57 = vsel %vm969_vm8, %v964_v18, %v966_v19  ;;  %7168 = vmatpush1.bf16.msra.mxu1 %v7167_v17  ;;  %v984_v1 = vsel %vm969_vm8, %v962_v31, %v964_v18 }
 0x19c   : > { %1698 = vmatprep.subr.mxu1 %v985_v57 }
 0x19e   : > { %v792_v14 = vpop.permute.xlu0 %791  ;;  %v880_v23 = vpop.permute.xlu1 %879 }
 0x19f   : > { %v810_v58 = vsel %vm793_vm6, %v790_v0, %v792_v14  ;;  %v898_v10 = vsel %vm881_vm7, %v878_v52, %v880_v23  ;;  %1699 = vmatpush1.msra.mxu1 %v984_v1 }
 0x1a0   : > { %844 = vst.msk [vmem:[#allocation2 + $0x3b0] sm:$0xff] %vm305_vm0, %v810_v58  ;;  %932 = vst.msk [vmem:[#allocation2 + $0x438] sm:$0xff] %vm305_vm0, %v898_v10  ;;  %6609 = vmatmul.mubr.msk.f32.vlgmr.msra.gmra.mrb[6].mxu1 %vm1181_vm9, %v8294_v34 }
 0x1a1   : > { %v1251_v25 = vpop.f32.mrb[0].mxu0  ;;  %3002 = vmatprep.mubr.f32.mxu1 %v7911_v9 }
 0x1a2   : > { %v968_v28 = vpop.permute.xlu0 %967  ;;  %v1253_v29 = vpop.f32.mrb[1].mxu0 }
 0x1a3   : > { %v986_v21 = vsel %vm969_vm8, %v966_v19, %v968_v28 }
 0x1a4   : > { %1020 = vst.msk [vmem:[#allocation2 + $0x4c0] sm:$0xff] %vm305_vm0, %v986_v21 }
 0x1a7   : > { %v1140_v33 = vld [vmem:[#allocation2 + $0x3b0] sm:$0xff]  ;;  %v1157_v15 = vld [vmem:[#allocation2 + $0x438] sm:$0xff] }
 0x1a8   : > { %v7179_v36 = vpack.c.bf16 %v1157_v15, %v1140_v33 }
 0x1aa   : > { %7180 = vmatpush3.bf16.msra.mxu0 %v7179_v36 }
 0x1ab   : > { %6973 = vmatprep.subr.mxu0 %v7911_v9  ;;  %v1174_v38 = vld [vmem:[#allocation2 + $0x4c0] sm:$0xff] }
 0x1ae   : > { %6974 = vmatpush3.msra.mxu0 %v1174_v38 }
 0x1af   : > { %v8681_v39 = vpop.permute.xlu1 %1178  ;;  %6976 = vmatmul.mubr.msk.f32.vlgmr.msra.gmra.mrb[8].mxu0 %vm1181_vm9, %v8294_v34 }
 0x1b0   : > { %v1252_v6 = vadd.f32 %v1251_v25, %v8681_v39  ;;  %v8687_v41 = vadd.f32 %v1253_v29, %v8681_v39  ;;  %3073 = vmatprep.mubr.f32.mxu0 %v7911_v9 }
 0x1b2   : > { %v8690_v42 = vmax.f32 %v1252_v6, 0.0  ;;  %v1824_v22 = vmax.f32 %v8687_v41, 0.0 }
 0x1b4   : > { %1860 = vrot.lane.b32.xlu0 %v8690_v42, %s7903_s29 }
 0x1b8   : > { %1862 = vrot.lane.b32.xlu0 %v1824_v22, %s7903_s29 }
 0x1d2   : > { %v1322_v32 = vpop.f32.mrb[0].mxu1 }
 0x1d3   : > { %v8699_v34 = vadd.f32 %v1322_v32, %v8681_v39  ;;  %v1324_v45 = vpop.f32.mrb[1].mxu1 }
 0x1d4   : > { %v8702_v40 = vadd.f32 %v1324_v45, %v8681_v39 }
 0x1d5   : > { %v1825_v46 = vmax.f32 %v8699_v34, 0.0 }
 0x1d6   : > { %v1826_v7 = vmax.f32 %v8702_v40, 0.0 }
 0x1d7   : > { %1864 = vrot.lane.b32.xlu1 %v1825_v46, %s7903_s29 }
 0x1d8   : > { %1866 = vrot.lane.b32.xlu0 %v1826_v7, %s7903_s29 }
 0x1db   : > { %1840 = vrot.lane.b32.xlu1 %v8690_v42, %s7906_s6 }
 0x1e2   : > { %v1393_v2 = vpop.f32.mrb[2].mxu0 }
 0x1e3   : > { %v8715_v47 = vadd.f32 %v1393_v2, %v8681_v39  ;;  %v1395_v27 = vpop.f32.mrb[3].mxu0 }
 0x1e4   : > { %v8718_v31 = vadd.f32 %v1395_v27, %v8681_v39 }
 0x1e5   : > { %v1827_v26 = vmax.f32 %v8715_v47, 0.0 }
 0x1e6   : > { %v1828_v30 = vmax.f32 %v8718_v31, 0.0 }
 0x1e7   : > { %1868 = vrot.lane.b32.xlu1 %v1827_v26, %s7903_s29 }
 0x1e8   : > { %1870 = vrot.lane.b32.xlu0 %v1828_v30, %s7903_s29 }
 0x211   : > { %v1464_v37 = vpop.f32.mrb[2].mxu1 }
 0x212   : > { %v8729_v35 = vadd.f32 %v1464_v37, %v8681_v39  ;;  %v1466_v43 = vpop.f32.mrb[3].mxu1 }
 0x213   : > { %v8732_v44 = vadd.f32 %v1466_v43, %v8681_v39 }
 0x214   : > { %v1829_v4 = vmax.f32 %v8729_v35, 0.0 }
 0x215   : > { %v1830_v24 = vmax.f32 %v8732_v44, 0.0 }
 0x216   : > { %1872 = vrot.lane.b32.xlu1 %v1829_v4, %s7903_s29 }
 0x217   : > { %1874 = vrot.lane.b32.xlu0 %v1830_v24, %s7903_s29 }
 0x221   : > { %v1535_v50 = vpop.f32.mrb[4].mxu0 }
 0x222   : > { %v8743_v51 = vadd.f32 %v1535_v50, %v8681_v39  ;;  %v1537_v8 = vpop.f32.mrb[5].mxu0 }
 0x223   : > { %v8746_v54 = vadd.f32 %v1537_v8, %v8681_v39 }
 0x224   : > { %v1831_v55 = vmax.f32 %v8743_v51, 0.0 }
 0x225   : > { %v1832_v48 = vmax.f32 %v8746_v54, 0.0 }
 0x226   : > { %1876 = vrot.lane.b32.xlu1 %v1831_v55, %s7903_s29  ;;  %v1861_v56 = vpop.permute.xlu0 %1860 }
 0x227   : > { %1878 = vrot.lane.b32.xlu0 %v1832_v48, %s7903_s29 }
 0x22a   : > { %v1863_v57 = vpop.permute.xlu0 %1862 }
 0x22b   : > { %v1894_v10 = vsel %vm362_vm1, %v1861_v56, %v1863_v57 }
 0x22c   : > { %v8807_v29 = vmax.f32 %v8690_v42, %v1894_v10 }
 0x249   : > { %v1865_v53 = vpop.permute.xlu1 %1864 }
 0x24a   : > { %v1895_v23 = vsel %vm362_vm1, %v1863_v57, %v1865_v53  ;;  %v1867_v25 = vpop.permute.xlu0 %1866 }
 0x24b   : > { %v8801_v58 = vmax.f32 %v1824_v22, %v1895_v23  ;;  %v1896_v42 = vsel %vm362_vm1, %v1865_v53, %v1867_v25 }
 0x24d   : > { %v1841_v1 = vpop.permute.xlu1 %1840 }
 0x251   : > { %v1606_v49 = vpop.f32.mrb[4].mxu1 }
 0x252   : > { %v8757_v59 = vadd.f32 %v1606_v49, %v8681_v39  ;;  %v1608_v60 = vpop.f32.mrb[5].mxu1 }
 0x253   : > { %v8760_v61 = vadd.f32 %v1608_v60, %v8681_v39 }
 0x254   : > { %v1833_v62 = vmax.f32 %v8757_v59, 0.0 }
 0x255   : > { %v1834_v0 = vmax.f32 %v8760_v61, 0.0 }
 0x256   : > { %1880 = vrot.lane.b32.xlu1 %v1833_v62, %s7903_s29 }
 0x257   : > { %1882 = vrot.lane.b32.xlu0 %v1834_v0, %s7903_s29 }
 0x259   : > { %v1869_v28 = vpop.permute.xlu1 %1868 }
 0x25a   : > { %v1897_v21 = vsel %vm362_vm1, %v1867_v25, %v1869_v28  ;;  %v1871_v33 = vpop.permute.xlu0 %1870 }
 0x25b   : > { %v8814_v36 = vmax.f32 %v1826_v7, %v1897_v21  ;;  %v1898_v41 = vsel %vm362_vm1, %v1869_v28, %v1871_v33 }
 0x25c   : > { %v8823_v32 = vmax.f32 %v1827_v26, %v1898_v41 }
 0x25d   : > { %v1677_v63 = vpop.f32.mrb[6].mxu0 }
 0x25e   : > { %v8771_v13 = vadd.f32 %v1677_v63, %v8681_v39  ;;  %v1679_v52 = vpop.f32.mrb[7].mxu0 }
 0x25f   : > { %v8774_v20 = vadd.f32 %v1679_v52, %v8681_v39 }
 0x260   : > { %v1835_v5 = vmax.f32 %v8771_v13, 0.0 }
 0x261   : > { %v1836_v3 = vmax.f32 %v8774_v20, 0.0 }
 0x262   : > { %1884 = vrot.lane.b32.xlu1 %v1835_v5, %s7903_s29 }
 0x263   : > { %1886 = vrot.lane.b32.xlu0 %v1836_v3, %s7903_s29 }
 0x273   : > { %v1748_v16 = vpop.f32.mrb[6].mxu1 }
 0x274   : > { %v8785_v12 = vadd.f32 %v1748_v16, %v8681_v39  ;;  %v1750_v17 = vpop.f32.mrb[7].mxu1 }
 0x275   : > { %v8788_v18 = vadd.f32 %v1750_v17, %v8681_v39 }
 0x276   : > { %v1837_v19 = vmax.f32 %v8785_v12, 0.0 }
 0x277   : > { %v1838_v14 = vmax.f32 %v8788_v18, 0.0 }
 0x278   : > { %1888 = vrot.lane.b32.xlu1 %v1837_v19, %s7903_s29 }
 0x279   : > { %1890 = vrot.lane.b32.xlu0 %v1838_v14, %s7903_s29 }
 0x27d   : > { %1966 = vrot.lane.b32.xlu0 %v8801_v58, %s7905_s5 }
 0x281   : > { %1944 = vrot.lane.b32.xlu0 %v8807_v29, %s7906_s6 }
 0x282   : > { %v1819_v15 = vpop.f32.mrb[8].mxu0 }
 0x283   : > { %v1820_v38 = vadd.f32 %v1819_v15, %v8681_v39  ;;  %v6977_v6 = vpop.f32.mrb[9].mxu0  ;;  %v8831_v39 = vmax.f32 %v1825_v46, %v1896_v42 }
 0x285   : > { %v1839_v22 = vmax.f32 %v1820_v38, 0.0  ;;  %1970 = vrot.lane.b32.xlu0 %v8814_v36, %s7905_s5 }
 0x287   : > { %v1842_v45 = vsel %vm307_vm10, %v1841_v1, %v1839_v22 }
 0x288   : > { %1892 = vrot.lane.b32.xlu1 %v1842_v45, %s7903_s29  ;;  %v1873_v40 = vpop.permute.xlu1 %1872  ;;  %s7919_s29 = smov 70  }
 0x289   : > { %1972 = vrot.lane.b32.xlu0 %v8823_v32, %s7905_s5  ;;  %v1899_v7 = vsel %vm362_vm1, %v1871_v33, %v1873_v40  ;;  %v1875_v2 = vpop.permute.xlu0 %1874 }
 0x28a   : > { %v8840_v47 = vmax.f32 %v1828_v30, %v1899_v7  ;;  %v1900_v27 = vsel %vm362_vm1, %v1873_v40, %v1875_v2 }
 0x28b   : > { %v8847_v34 = vmax.f32 %v1829_v4, %v1900_v27 }
 0x28c   : > { %1968 = vrot.lane.b32.xlu1 %v8831_v39, %s7905_s5 }
 0x290   : > { %1964 = vrot.lane.b32.xlu1 %v8807_v29, %s7905_s5 }
 0x294   : > { %1974 = vrot.lane.b32.xlu1 %v8840_v47, %s7905_s5 }
 0x298   : > { %1976 = vrot.lane.b32.xlu1 %v8847_v34, %s7905_s5  ;;  %v1877_v46 = vpop.permute.xlu1 %1876 }
 0x299   : > { %v1901_v26 = vsel %vm362_vm1, %v1875_v2, %v1877_v46  ;;  %v1879_v37 = vpop.permute.xlu0 %1878 }
 0x29a   : > { %v8854_v31 = vmax.f32 %v1830_v24, %v1901_v26  ;;  %v1902_v30 = vsel %vm362_vm1, %v1877_v46, %v1879_v37 }
 0x29b   : > { %v8859_v43 = vmax.f32 %v1831_v55, %v1902_v30 }
 0x29c   : > { %1978 = vrot.lane.b32.xlu0 %v8854_v31, %s7905_s5 }
 0x29d   : > { %1980 = vrot.lane.b32.xlu1 %v8859_v43, %s7905_s5 }
 0x2c8   : > { %v1881_v35 = vpop.permute.xlu1 %1880 }
 0x2c9   : > { %v1903_v4 = vsel %vm362_vm1, %v1879_v37, %v1881_v35  ;;  %v1883_v50 = vpop.permute.xlu0 %1882 }
 0x2ca   : > { %v8868_v44 = vmax.f32 %v1832_v48, %v1903_v4  ;;  %v1904_v24 = vsel %vm362_vm1, %v1881_v35, %v1883_v50 }
 0x2cb   : > { %v8873_v51 = vmax.f32 %v1833_v62, %v1904_v24 }
 0x2cc   : > { %1982 = vrot.lane.b32.xlu0 %v8868_v44, %s7905_s5 }
 0x2cd   : > { %1984 = vrot.lane.b32.xlu1 %v8873_v51, %s7905_s5 }
 0x2d4   : > { %v1885_v8 = vpop.permute.xlu1 %1884 }
 0x2d5   : > { %v1905_v55 = vsel %vm362_vm1, %v1883_v50, %v1885_v8  ;;  %v1887_v49 = vpop.permute.xlu0 %1886 }
 0x2d6   : > { %v8882_v54 = vmax.f32 %v1834_v0, %v1905_v55  ;;  %v1906_v48 = vsel %vm362_vm1, %v1885_v8, %v1887_v49 }
 0x2d7   : > { %v8887_v59 = vmax.f32 %v1835_v5, %v1906_v48 }
 0x2d8   : > { %1986 = vrot.lane.b32.xlu0 %v8882_v54, %s7905_s5 }
 0x2d9   : > { %1988 = vrot.lane.b32.xlu1 %v8887_v59, %s7905_s5 }
 0x2ea   : > { %v1889_v60 = vpop.permute.xlu1 %1888 }
 0x2eb   : > { %v1907_v62 = vsel %vm362_vm1, %v1887_v49, %v1889_v60  ;;  %v1891_v63 = vpop.permute.xlu0 %1890 }
 0x2ec   : > { %v8896_v61 = vmax.f32 %v1836_v3, %v1907_v62  ;;  %v1908_v0 = vsel %vm362_vm1, %v1889_v60, %v1891_v63 }
 0x2ed   : > { %v8901_v13 = vmax.f32 %v1837_v19, %v1908_v0 }
 0x2ee   : > { %1990 = vrot.lane.b32.xlu0 %v8896_v61, %s7905_s5 }
 0x2ef   : > { %1992 = vrot.lane.b32.xlu1 %v8901_v13, %s7905_s5  ;;  %v1967_v52 = vpop.permute.xlu0 %1966 }
 0x2f3   : > { %v1945_v12 = vpop.permute.xlu0 %1944 }
 0x2fa   : > { %v1893_v5 = vpop.permute.xlu1 %1892 }
 0x2fb   : > { %v1909_v56 = vsel %vm362_vm1, %v1891_v63, %v1893_v5  ;;  %v8912_v3 = vmax.f32 %v1839_v22, %v1893_v5  ;;  %vm4226_vm1 = vcmask 523264  }
 0x2fc   : > { %v8910_v20 = vmax.f32 %v1838_v14, %v1909_v56  ;;  %v1971_v14 = vpop.permute.xlu0 %1970 }
 0x2fd   : > { %v1946_v19 = vsel %vm307_vm10, %v1945_v12, %v8912_v3 }
 0x2fe   : > { %v1969_v53 = vpop.permute.xlu1 %1968  ;;  %1994 = vrot.lane.b32.xlu0 %v8910_v20, %s7905_s5 }
 0x2ff   : > { %v1999_v16 = vsel %vm532_vm3, %v1967_v52, %v1969_v53  ;;  %v2000_v23 = vsel %vm532_vm3, %v1969_v53, %v1971_v14 }
 0x300   : > { %v8918_v17 = vmax.f32 %v8801_v58, %v1999_v16  ;;  %v8955_v58 = vmax.f32 %v8831_v39, %v2000_v23  ;;  %v1973_v25 = vpop.permute.xlu0 %1972 }
 0x301   : > { %v2001_v21 = vsel %vm532_vm3, %v1971_v14, %v1973_v25 }
 0x302   : > { %v1965_v57 = vpop.permute.xlu1 %1964  ;;  %2087 = vrot.lane.b32.xlu1 %v8918_v17, %s7904_s30  ;;  %1996 = vrot.lane.b32.xlu0 %v1946_v19, %s7905_s5  ;;  %v8979_v33 = vmax.f32 %v8814_v36, %v2001_v21  ;;  %s7921_s5 = smov 64  }
 0x303   : > { %v1998_v18 = vsel %vm532_vm3, %v1965_v57, %v1967_v52 }
 0x304   : > { %v8927_v1 = vmax.f32 %v8807_v29, %v1998_v18 }
 0x306   : > { %2085 = vrot.lane.b32.xlu1 %v8927_v1, %s7904_s30  ;;  %2171 = vrot.lane.b32.xlu0 %v8918_v17, %s7916_s26  ;;  %v1975_v10 = vpop.permute.xlu1 %1974 }
 0x307   : > { %v2002_v28 = vsel %vm532_vm3, %v1973_v25, %v1975_v10 }
 0x308   : > { %v8971_v29 = vmax.f32 %v8823_v32, %v2002_v28 }
 0x30a   : > { %2258 = vrot.lane.b32.xlu1 %v8927_v1, %s7909_s9  ;;  %2260 = vrot.lane.b32.xlu0 %v8918_v17, %s7909_s9  ;;  %v1977_v15 = vpop.permute.xlu1 %1976 }
 0x30b   : > { %v2003_v42 = vsel %vm532_vm3, %v1975_v10, %v1977_v15 }
 0x30c   : > { %v9015_v32 = vmax.f32 %v8840_v47, %v2003_v42 }
 0x30e   : > { %2432 = vrot.lane.b32.xlu1 %v8927_v1, %s7917_s27  ;;  %2169 = vrot.lane.b32.xlu0 %v8927_v1, %s7916_s26  ;;  %v1979_v36 = vpop.permute.xlu0 %1978 }
 0x30f   : > { %v1981_v38 = vpop.permute.xlu1 %1980  ;;  %v2004_v46 = vsel %vm532_vm3, %v1977_v15, %v1979_v36 }
 0x310   : > { %v9048_v26 = vmax.f32 %v8847_v34, %v2004_v46  ;;  %v2005_v50 = vsel %vm532_vm3, %v1979_v36, %v1981_v38 }
 0x311   : > { %v9090_v24 = vmax.f32 %v8854_v31, %v2005_v50 }
 0x312   : > { %2520 = vrot.lane.b32.xlu1 %v8918_v17, %s7918_s28  ;;  %2347 = vrot.lane.b32.xlu0 %v8918_v17, %s7912_s11 }
 0x316   : > { %2689 = vrot.lane.b32.xlu1 %v8918_v17, %s7906_s6  ;;  %2434 = vrot.lane.b32.xlu0 %v8918_v17, %s7917_s27 }
 0x31a   : > { %2254 = vrot.lane.b32.xlu1 %v8918_v17, %s7906_s6  ;;  %2345 = vrot.lane.b32.xlu0 %v8927_v1, %s7912_s11 }
 0x31e   : > { %2604 = vrot.lane.b32.xlu0 %v8918_v17, %s7919_s29  ;;  %2173 = vrot.lane.b32.xlu1 %v8955_v58, %s7916_s26 }
 0x322   : > { %2065 = vrot.lane.b32.xlu0 %v8927_v1, %s7906_s6  ;;  %2262 = vrot.lane.b32.xlu1 %v8955_v58, %s7909_s9 }
 0x326   : > { %2349 = vrot.lane.b32.xlu1 %v8955_v58, %s7912_s11  ;;  %2089 = vrot.lane.b32.xlu0 %v8955_v58, %s7904_s30 }
 0x32a   : > { %2436 = vrot.lane.b32.xlu1 %v8955_v58, %s7917_s27  ;;  %2093 = vrot.lane.b32.xlu0 %v8971_v29, %s7904_s30 }
 0x32e   : > { %2522 = vrot.lane.b32.xlu1 %v8955_v58, %s7918_s28  ;;  %2524 = vrot.lane.b32.xlu0 %v8979_v33, %s7918_s28 }
 0x332   : > { %2606 = vrot.lane.b32.xlu1 %v8955_v58, %s7919_s29  ;;  %2608 = vrot.lane.b32.xlu0 %v8979_v33, %s7919_s29 }
 0x336   : > { %2691 = vrot.lane.b32.xlu1 %v8955_v58, %s7906_s6  ;;  %2177 = vrot.lane.b32.xlu0 %v8971_v29, %s7916_s26 }
 0x33a   : > { %2266 = vrot.lane.b32.xlu0 %v8971_v29, %s7909_s9  ;;  %2091 = vrot.lane.b32.xlu1 %v8979_v33, %s7904_s30 }
 0x33e   : > { %2693 = vrot.lane.b32.xlu0 %v8979_v33, %s7906_s6  ;;  %2175 = vrot.lane.b32.xlu1 %v8979_v33, %s7916_s26  ;;  %v9001_v6 = vpop.permute.xlu0 %1982 }
 0x33f   : > { %v2006_v41 = vsel %vm532_vm3, %v1981_v38, %v9001_v6  ;;  %v9021_v45 = vpop.permute.xlu1 %1984 }
 0x340   : > { %v9006_v22 = vmax.f32 %v8859_v43, %v2006_v41  ;;  %v2007_v0 = vsel %vm532_vm3, %v9001_v6, %v9021_v45 }
 0x342   : > { %2351 = vrot.lane.b32.xlu0 %v8979_v33, %s7912_s11  ;;  %2264 = vrot.lane.b32.xlu1 %v8979_v33, %s7909_s9  ;;  %2056 = vst [vmem:[#allocation2 + $0x40] sm:$0xff] %v9006_v22 }
 0x346   : > { %2438 = vrot.lane.b32.xlu0 %v8979_v33, %s7917_s27  ;;  %2095 = vrot.lane.b32.xlu1 %v9015_v32, %s7904_s30 }
 0x34a   : > { %2528 = vrot.lane.b32.xlu0 %v9015_v32, %s7918_s28  ;;  %2353 = vrot.lane.b32.xlu1 %v8971_v29, %s7912_s11  ;;  %v1987_v39 = vpop.permute.xlu0 %1986 }
 0x34b   : > { %v2008_v40 = vsel %vm532_vm3, %v9021_v45, %v1987_v39  ;;  %v1989_v7 = vpop.permute.xlu1 %1988 }
 0x34c   : > { %v9030_v2 = vmax.f32 %v8873_v51, %v2008_v40  ;;  %v2009_v47 = vsel %vm532_vm3, %v1987_v39, %v1989_v7 }
 0x34d   : > { %v9034_v27 = vmax.f32 %v8882_v54, %v2009_v47 }
 0x34e   : > { %2612 = vrot.lane.b32.xlu0 %v9015_v32, %s7919_s29  ;;  %2440 = vrot.lane.b32.xlu1 %v8971_v29, %s7917_s27  ;;  %2058 = vst [vmem:[#allocation2 + $0x50] sm:$0xff] %v9030_v2 }
 0x34f   : > { %2059 = vst [vmem:[#allocation2 + $0x58] sm:$0xff] %v9034_v27 }
 0x352   : > { %2697 = vrot.lane.b32.xlu0 %v9015_v32, %s7906_s6  ;;  %2179 = vrot.lane.b32.xlu1 %v9015_v32, %s7916_s26 }
 0x356   : > { %2268 = vrot.lane.b32.xlu1 %v9015_v32, %s7909_s9  ;;  %2097 = vrot.lane.b32.xlu0 %v9048_v26, %s7904_s30 }
 0x35a   : > { %2526 = vrot.lane.b32.xlu1 %v8971_v29, %s7918_s28  ;;  %2181 = vrot.lane.b32.xlu0 %v9048_v26, %s7916_s26 }
 0x35e   : > { %2610 = vrot.lane.b32.xlu1 %v8971_v29, %s7919_s29  ;;  %2270 = vrot.lane.b32.xlu0 %v9048_v26, %s7909_s9 }
 0x360   : > { %v1991_v34 = vpop.permute.xlu0 %1990 }
 0x361   : > { %v2010_v37 = vsel %vm532_vm3, %v1989_v7, %v1991_v34  ;;  %v1993_v30 = vpop.permute.xlu1 %1992 }
 0x362   : > { %2355 = vrot.lane.b32.xlu1 %v9015_v32, %s7912_s11  ;;  %2357 = vrot.lane.b32.xlu0 %v9048_v26, %s7912_s11  ;;  %v9068_v43 = vmax.f32 %v8887_v59, %v2010_v37  ;;  %v2011_v35 = vsel %vm532_vm3, %v1991_v34, %v1993_v30 }
 0x363   : > { %v9072_v4 = vmax.f32 %v8896_v61, %v2011_v35 }
 0x364   : > { %2060 = vst [vmem:[#allocation2 + $0x60] sm:$0xff] %v9068_v43 }
 0x365   : > { %2061 = vst [vmem:[#allocation2 + $0x68] sm:$0xff] %v9072_v4 }
 0x366   : > { %2442 = vrot.lane.b32.xlu1 %v9015_v32, %s7917_s27  ;;  %2444 = vrot.lane.b32.xlu0 %v9048_v26, %s7917_s27 }
 0x36a   : > { %2695 = vrot.lane.b32.xlu1 %v8971_v29, %s7906_s6  ;;  %2699 = vrot.lane.b32.xlu0 %v9048_v26, %s7906_s6 }
 0x36e   : > { %2530 = vrot.lane.b32.xlu1 %v9048_v26, %s7918_s28  ;;  %2101 = vrot.lane.b32.xlu0 %v9006_v22, %s7904_s30 }
 0x370   : > { %v1995_v51 = vpop.permute.xlu0 %1994 }
 0x371   : > { %v2012_v8 = vsel %vm532_vm3, %v1993_v30, %v1995_v51 }
 0x372   : > { %v9094_v55 = vmax.f32 %v8901_v13, %v2012_v8  ;;  %2614 = vrot.lane.b32.xlu1 %v9048_v26, %s7919_s29  ;;  %2532 = vrot.lane.b32.xlu0 %v9090_v24, %s7918_s28  ;;  %v9127_v13 = vmax.f32 %v8868_v44, %v2007_v0 }
 0x374   : > { %2062 = vst [vmem:[#allocation2 + $0x70] sm:$0xff] %v9094_v55  ;;  %v2088_v49 = vpop.permute.xlu1 %2087  ;;  %v1997_v54 = vpop.permute.xlu0 %1996 }
 0x375   : > { %v2013_v48 = vsel %vm532_vm3, %v1995_v51, %v1997_v54  ;;  %v9103_v31 = vmax.f32 %v8912_v3, %v1997_v54  ;;  %vm4406_vm3 = vcmask 97280  }
 0x376   : > { %v9106_v59 = vmax.f32 %v8910_v20, %v2013_v48  ;;  %2099 = vrot.lane.b32.xlu1 %v9090_v24, %s7904_s30  ;;  %2616 = vrot.lane.b32.xlu0 %v9090_v24, %s7919_s29 }
 0x377   : > { %2064 = vst.msk [vmem:[#allocation2 + $0x80] sm:$0xff] %vm305_vm0, %v9103_v31 }
 0x378   : > { %2063 = vst [vmem:[#allocation2 + $0x78] sm:$0xff] %v9106_v59  ;;  %v2086_v60 = vpop.permute.xlu1 %2085  ;;  %v2172_v62 = vpop.permute.xlu0 %2171 }
 0x379   : > { %v2119_v14 = vsel %vm447_vm2, %v2086_v60, %v2088_v49 }
 0x37a   : > { %2185 = vrot.lane.b32.xlu1 %v9006_v22, %s7916_s26  ;;  %2183 = vrot.lane.b32.xlu0 %v9090_v24, %s7916_s26  ;;  %v7183_v15 = vpack.c.bf16 %v2119_v14, %v8927_v1 }
 0x37c   : > { %v2259_v63 = vpop.permute.xlu1 %2258  ;;  %v2261_v61 = vpop.permute.xlu0 %2260 }
 0x37d   : > { %v2294_v45 = vsel %vm793_vm6, %v2259_v63, %v2261_v61 }
 0x37e   : > { %2274 = vrot.lane.b32.xlu1 %v9006_v22, %s7909_s9  ;;  %2272 = vrot.lane.b32.xlu0 %v9090_v24, %s7909_s9 }
 0x380   : > { %v2433_v52 = vpop.permute.xlu1 %2432  ;;  %v2170_v5 = vpop.permute.xlu0 %2169 }
 0x381   : > { %v2204_v36 = vsel %vm2203_vm12, %v2170_v5, %v2172_v62 }
 0x382   : > { %2701 = vrot.lane.b32.xlu1 %v9090_v24, %s7906_s6  ;;  %2103 = vrot.lane.b32.xlu0 %v9127_v13, %s7904_s30  ;;  %v7187_v1 = vpack.c.bf16 %v2294_v45, %v2204_v36 }
 0x384   : > { %v2521_v56 = vpop.permute.xlu1 %2520  ;;  %v2348_v20 = vpop.permute.xlu0 %2347 }
 0x386   : > { %2361 = vrot.lane.b32.xlu1 %v9006_v22, %s7912_s11  ;;  %2359 = vrot.lane.b32.xlu0 %v9090_v24, %s7912_s11 }
 0x388   : > { %v9137_v3 = vpop.permute.xlu1 %2689  ;;  %v2435_v44 = vpop.permute.xlu0 %2434 }
 0x389   : > { %v2469_v34 = vsel %vm2468_vm13, %v2433_v52, %v2435_v44 }
 0x38a   : > { %2448 = vrot.lane.b32.xlu1 %v9006_v22, %s7917_s27  ;;  %2446 = vrot.lane.b32.xlu0 %v9090_v24, %s7917_s27 }
 0x38c   : > { %v9143_v53 = vpop.permute.xlu1 %2254  ;;  %v2346_v16 = vpop.permute.xlu0 %2345 }
 0x38d   : > { %v2381_v39 = vsel %vm969_vm8, %v2346_v16, %v2348_v20  ;;  %v9237_v16 = vld [vmem:[%s8286_s22 + $0x8] sm:$0xff] }
 0x38e   : > { %2536 = vrot.lane.b32.xlu1 %v9127_v13, %s7918_s28  ;;  %2187 = vrot.lane.b32.xlu0 %v9127_v13, %s7916_s26  ;;  %v7191_v37 = vpack.c.bf16 %v2469_v34, %v2381_v39 }
 0x390   : > { %v9149_v12 = vpop.permute.xlu1 %2173  ;;  %v2605_v19 = vpop.permute.xlu0 %2604 }
 0x391   : > { %v2205_v38 = vsel %vm2203_vm12, %v2172_v62, %v9149_v12 }
 0x392   : > { %2620 = vrot.lane.b32.xlu1 %v9127_v13, %s7919_s29  ;;  %2276 = vrot.lane.b32.xlu0 %v9127_v13, %s7909_s9 }
 0x394   : > { %v9155_v57 = vpop.permute.xlu1 %2262  ;;  %v9157_v18 = vpop.permute.xlu0 %2065 }
 0x395   : > { %v2295_v28 = vsel %vm793_vm6, %v2261_v61, %v9155_v57 }
 0x396   : > { %2705 = vrot.lane.b32.xlu1 %v9127_v13, %s7906_s6  ;;  %2534 = vrot.lane.b32.xlu0 %v9006_v22, %s7918_s28  ;;  %v7185_v42 = vpack.c.bf16 %v2295_v28, %v2205_v38 }
 0x398   : > { %v9164_v23 = vpop.permute.xlu1 %2349  ;;  %v2090_v10 = vpop.permute.xlu0 %2089 }
 0x399   : > { %v2120_v25 = vsel %vm447_vm2, %v2088_v49, %v2090_v10  ;;  %v2382_v40 = vsel %vm969_vm8, %v2348_v20, %v9164_v23 }
 0x39a   : > { %2618 = vrot.lane.b32.xlu0 %v9006_v22, %s7919_s29  ;;  %2105 = vrot.lane.b32.xlu1 %v9030_v2, %s7904_s30  ;;  %v7181_v21 = vpack.c.bf16 %v2120_v25, %v8918_v17 }
 0x39c   : > { %v9178_v6 = vpop.permute.xlu1 %2436  ;;  %v9180_v41 = vpop.permute.xlu0 %2093  ;;  %7182 = vmatprep.subr.bf16.mxu1 %v7181_v21 }
 0x39d   : > { %7184 = vmatpush1.bf16.msra.mxu1 %v7183_v15  ;;  %v2470_v17 = vsel %vm2468_vm13, %v2435_v44, %v9178_v6 }
 0x39e   : > { %2363 = vrot.lane.b32.xlu0 %v9127_v13, %s7912_s11  ;;  %2189 = vrot.lane.b32.xlu1 %v9030_v2, %s7916_s26  ;;  %v7189_v46 = vpack.c.bf16 %v2470_v17, %v2382_v40 }
 0x39f   : > { %7186 = vmatprep.subr.bf16.mxu1 %v7185_v42 }
 0x3a0   : > { %v2523_v7 = vpop.permute.xlu1 %2522  ;;  %v9192_v47 = vpop.permute.xlu0 %2524 }
 0x3a1   : > { %7188 = vmatpush1.bf16.msra.mxu1 %v7187_v1  ;;  %v2554_v50 = vsel %vm1181_vm9, %v2521_v56, %v2523_v7  ;;  %v2555_v51 = vsel %vm1181_vm9, %v2523_v7, %v9192_v47 }
 0x3a2   : > { %2450 = vrot.lane.b32.xlu0 %v9127_v13, %s7917_s27  ;;  %2278 = vrot.lane.b32.xlu1 %v9030_v2, %s7909_s9 }
 0x3a3   : > { %7190 = vmatprep.subr.bf16.mxu1 %v7189_v46 }
 0x3a4   : > { %v2607_v30 = vpop.permute.xlu1 %2606  ;;  %v9199_v35 = vpop.permute.xlu0 %2608 }
 0x3a5   : > { %v2639_v8 = vsel %vm2638_vm14, %v2605_v19, %v2607_v30  ;;  %v2640_v49 = vsel %vm2638_vm14, %v2607_v30, %v9199_v35  ;;  %7192 = vmatpush1.bf16.msra.mxu1 %v7191_v37 }
 0x3a6   : > { %2703 = vrot.lane.b32.xlu0 %v9006_v22, %s7906_s6  ;;  %2365 = vrot.lane.b32.xlu1 %v9030_v2, %s7912_s11  ;;  %v7193_v54 = vpack.c.bf16 %v2640_v49, %v2555_v51  ;;  %v7195_v48 = vpack.c.bf16 %v2639_v8, %v2554_v50 }
 0x3a8   : > { %v2692_v60 = vpop.permute.xlu1 %2691  ;;  %v9211_v62 = vpop.permute.xlu0 %2177  ;;  %7194 = vmatprep.subr.bf16.mxu1 %v7193_v54 }
 0x3a9   : > { %7196 = vmatpush1.bf16.msra.mxu1 %v7195_v48 }
 0x3aa   : > { %2538 = vrot.lane.b32.xlu0 %v9030_v2, %s7918_s28  ;;  %2452 = vrot.lane.b32.xlu1 %v9030_v2, %s7917_s27 }
 0x3ac   : > { %v2092_v63 = vpop.permute.xlu1 %2091  ;;  %v9217_v61 = vpop.permute.xlu0 %2266 }
 0x3ad   : > { %v2121_v22 = vsel %vm447_vm2, %v2090_v10, %v2092_v63  ;;  %v2122_v0 = vsel %vm447_vm2, %v2092_v63, %v9180_v41 }
 0x3ae   : > { %2622 = vrot.lane.b32.xlu0 %v9030_v2, %s7919_s29  ;;  %2540 = vrot.lane.b32.xlu1 %v9034_v27, %s7918_s28  ;;  %v7197_v52 = vpack.c.bf16 %v2122_v0, %v8979_v33  ;;  %v7199_v5 = vpack.c.bf16 %v2121_v22, %v8955_v58  ;;  %v2723_v33 = vsel %vm305_vm0, %v9137_v3, %v2692_v60 }
 0x3b0   : > { %v2176_v56 = vpop.permute.xlu1 %2175  ;;  %v9228_v20 = vpop.permute.xlu0 %2693  ;;  %7198 = vmatprep.subr.bf16.mxu0 %v7197_v52 }
 0x3b1   : > { %v2724_v44 = vsel %vm305_vm0, %v2692_v60, %v9228_v20  ;;  %7200 = vmatpush1.bf16.msra.mxu0 %v7199_v5  ;;  %v2206_v14 = vsel %vm2203_vm12, %v9149_v12, %v2176_v56  ;;  %v2207_v10 = vsel %vm2203_vm12, %v2176_v56, %v9211_v62 }
 0x3b2   : > { %2707 = vrot.lane.b32.xlu0 %v9030_v2, %s7906_s6  ;;  %2624 = vrot.lane.b32.xlu1 %v9034_v27, %s7919_s29 }
 0x3b3   : > { %2954 = vmatprep.subr.mxu1 %v2724_v44 }
 0x3b4   : > { %v2265_v58 = vpop.permute.xlu1 %2264  ;;  %v2352_v19 = vpop.permute.xlu0 %2351  ;;  %2955 = vmatpush1.msra.mxu1 %v2723_v33 }
 0x3b5   : > { %v2296_v2 = vsel %vm793_vm6, %v9155_v57, %v2265_v58  ;;  %v2297_v25 = vsel %vm793_vm6, %v2265_v58, %v9217_v61  ;;  %6613 = vmatmul.mubr.msk.f32.vlgmr.msra.gmra.mrb[8].mxu1 %vm1181_vm9, %v9237_v16  ;;  %v2383_v1 = vsel %vm969_vm8, %v9164_v23, %v2352_v19 }
 0x3b6   : > { %2107 = vrot.lane.b32.xlu0 %v9034_v27, %s7904_s30  ;;  %2709 = vrot.lane.b32.xlu1 %v9034_v27, %s7906_s6  ;;  %v7201_v3 = vpack.c.bf16 %v2297_v25, %v2207_v10  ;;  %v7203_v12 = vpack.c.bf16 %v2296_v2, %v2206_v14 }
 0x3b7   : > { %3144 = vmatprep.mubr.f32.mxu1 %v7911_v9 }
 0x3b8   : > { %v2096_v28 = vpop.permute.xlu1 %2095  ;;  %v2439_v21 = vpop.permute.xlu0 %2438  ;;  %7202 = vmatprep.subr.bf16.mxu0 %v7201_v3 }
 0x3b9   : > { %7204 = vmatpush1.bf16.msra.mxu0 %v7203_v12  ;;  %v2471_v36 = vsel %vm2468_vm13, %v9178_v6, %v2439_v21  ;;  %v2123_v23 = vsel %vm447_vm2, %v9180_v41, %v2096_v28 }
 0x3ba   : > { %2191 = vrot.lane.b32.xlu0 %v9034_v27, %s7916_s26  ;;  %2109 = vrot.lane.b32.xlu1 %v9068_v43, %s7904_s30  ;;  %v7207_v40 = vpack.c.bf16 %v2471_v36, %v2383_v1  ;;  %v7215_v50 = vpack.c.bf16 %v2123_v23, %v8971_v29 }
 0x3bc   : > { %v2354_v57 = vpop.permute.xlu1 %2353  ;;  %v9260_v15 = vpop.permute.xlu0 %2528 }
 0x3bd   : > { %v2384_v45 = vsel %vm969_vm8, %v2352_v19, %v2354_v57 }
 0x3be   : > { %2193 = vrot.lane.b32.xlu1 %v9068_v43, %s7916_s26  ;;  %2280 = vrot.lane.b32.xlu0 %v9034_v27, %s7909_s9 }
 0x3c0   : > { %v2441_v38 = vpop.permute.xlu1 %2440  ;;  %v9268_v42 = vpop.permute.xlu0 %2612 }
 0x3c1   : > { %v2472_v17 = vsel %vm2468_vm13, %v2439_v21, %v2441_v38 }
 0x3c2   : > { %2282 = vrot.lane.b32.xlu1 %v9068_v43, %s7909_s9  ;;  %2367 = vrot.lane.b32.xlu0 %v9034_v27, %s7912_s11  ;;  %v7205_v39 = vpack.c.bf16 %v2472_v17, %v2384_v45 }
 0x3c4   : > { %v2180_v7 = vpop.permute.xlu1 %2179  ;;  %v9278_v6 = vpop.permute.xlu0 %2697  ;;  %7206 = vmatprep.subr.bf16.mxu0 %v7205_v39 }
 0x3c5   : > { %7208 = vmatpush1.bf16.msra.mxu0 %v7207_v40  ;;  %v2208_v41 = vsel %vm2203_vm12, %v9211_v62, %v2180_v7 }
 0x3c6   : > { %2369 = vrot.lane.b32.xlu1 %v9068_v43, %s7912_s11  ;;  %2454 = vrot.lane.b32.xlu0 %v9034_v27, %s7917_s27 }
 0x3c8   : > { %v2269_v46 = vpop.permute.xlu1 %2268  ;;  %v9286_v34 = vpop.permute.xlu0 %2097 }
 0x3c9   : > { %v2124_v37 = vsel %vm447_vm2, %v2096_v28, %v9286_v34  ;;  %v2298_v8 = vsel %vm793_vm6, %v9217_v61, %v2269_v46 }
 0x3ca   : > { %2456 = vrot.lane.b32.xlu1 %v9068_v43, %s7917_s27  ;;  %2542 = vrot.lane.b32.xlu0 %v9068_v43, %s7918_s28  ;;  %v7213_v30 = vpack.c.bf16 %v2124_v37, %v9015_v32  ;;  %v7219_v0 = vpack.c.bf16 %v2298_v8, %v2208_v41 }
 0x3cc   : > { %v2527_v27 = vpop.permute.xlu1 %2526  ;;  %v9296_v51 = vpop.permute.xlu0 %2181  ;;  %7214 = vmatprep.subr.bf16.mxu1 %v7213_v30 }
 0x3cd   : > { %7216 = vmatpush1.bf16.msra.mxu1 %v7215_v50  ;;  %v2556_v29 = vsel %vm1181_vm9, %v9192_v47, %v2527_v27  ;;  %v2557_v32 = vsel %vm1181_vm9, %v2527_v27, %v9260_v15  ;;  %v2209_v48 = vsel %vm2203_vm12, %v2180_v7, %v9296_v51 }
 0x3ce   : > { %2544 = vrot.lane.b32.xlu1 %v9072_v4, %s7918_s28  ;;  %2626 = vrot.lane.b32.xlu0 %v9068_v43, %s7919_s29 }
 0x3d0   : > { %v2611_v49 = vpop.permute.xlu1 %2610  ;;  %v9310_v54 = vpop.permute.xlu0 %2270 }
 0x3d1   : > { %v2641_v60 = vsel %vm2638_vm14, %v9199_v35, %v2611_v49  ;;  %v2642_v62 = vsel %vm2638_vm14, %v2611_v49, %v9268_v42  ;;  %v2299_v63 = vsel %vm793_vm6, %v2269_v46, %v9310_v54 }
 0x3d2   : > { %2628 = vrot.lane.b32.xlu1 %v9072_v4, %s7919_s29  ;;  %2711 = vrot.lane.b32.xlu0 %v9068_v43, %s7906_s6  ;;  %v7209_v47 = vpack.c.bf16 %v2642_v62, %v2557_v32  ;;  %v7217_v61 = vpack.c.bf16 %v2299_v63, %v2209_v48  ;;  %v7211_v22 = vpack.c.bf16 %v2641_v60, %v2556_v29 }
 0x3d4   : > { %v2356_v52 = vpop.permute.xlu1 %2355  ;;  %v9324_v5 = vpop.permute.xlu0 %2357  ;;  %7210 = vmatprep.subr.bf16.mxu0 %v7209_v47  ;;  %7218 = vmatprep.subr.bf16.mxu1 %v7217_v61 }
 0x3d5   : > { %7212 = vmatpush1.bf16.msra.mxu0 %v7211_v22  ;;  %7220 = vmatpush1.bf16.msra.mxu1 %v7219_v0  ;;  %v2385_v43 = vsel %vm969_vm8, %v2354_v57, %v2356_v52  ;;  %v2386_v44 = vsel %vm969_vm8, %v2356_v52, %v9324_v5 }
 0x3d6   : > { %2113 = vrot.lane.b32.xlu1 %v9094_v55, %s7904_s30  ;;  %2111 = vrot.lane.b32.xlu0 %v9072_v4, %s7904_s30 }
 0x3d8   : > { %v2443_v35 = vpop.permute.xlu1 %2442  ;;  %v9330_v56 = vpop.permute.xlu0 %2444 }
 0x3d9   : > { %v2473_v33 = vsel %vm2468_vm13, %v2441_v38, %v2443_v35  ;;  %v2474_v58 = vsel %vm2468_vm13, %v2443_v35, %v9330_v56 }
 0x3da   : > { %2197 = vrot.lane.b32.xlu1 %v9094_v55, %s7916_s26  ;;  %2195 = vrot.lane.b32.xlu0 %v9072_v4, %s7916_s26  ;;  %v7221_v19 = vpack.c.bf16 %v2474_v58, %v2386_v44  ;;  %v7223_v14 = vpack.c.bf16 %v2473_v33, %v2385_v43  ;;  %v2256_v43 = vsel %vm307_vm10, %v9143_v53, %v9157_v18 }
 0x3dc   : > { %v2696_v10 = vpop.permute.xlu1 %2695  ;;  %v2700_v2 = vpop.permute.xlu0 %2699  ;;  %7222 = vmatprep.subr.bf16.mxu1 %v7221_v19 }
 0x3dd   : > { %v2725_v25 = vsel %vm305_vm0, %v9228_v20, %v2696_v10  ;;  %v2726_v3 = vsel %vm305_vm0, %v2696_v10, %v9278_v6  ;;  %7224 = vmatpush1.bf16.msra.mxu1 %v7223_v14  ;;  %v2727_v32 = vsel %vm305_vm0, %v9278_v6, %v2700_v2 }
 0x3de   : > { %2286 = vrot.lane.b32.xlu1 %v9094_v55, %s7909_s9  ;;  %2284 = vrot.lane.b32.xlu0 %v9072_v4, %s7909_s9 }
 0x3df   : > { %3025 = vmatprep.subr.mxu0 %v2726_v3  ;;  %v2783_v3 = vld [vmem:[#allocation2 + $0x40] sm:$0xff] }
 0x3e0   : > { %v2531_v12 = vpop.permute.xlu1 %2530  ;;  %v9350_v28 = vpop.permute.xlu0 %2101  ;;  %3026 = vmatpush1.msra.mxu0 %v2725_v25 }
 0x3e1   : > { %6614 = vmatmul.mubr.msk.f32.vlgmr.msra.gmra.mrb[10].mxu0 %vm1181_vm9, %v9237_v16  ;;  %v2558_v57 = vsel %vm1181_vm9, %v9260_v15, %v2531_v12 }
 0x3e2   : > { %2713 = vrot.lane.b32.xlu1 %v9072_v4, %s7906_s6  ;;  %2371 = vrot.lane.b32.xlu0 %v9072_v4, %s7912_s11 }
 0x3e3   : > { %3215 = vmatprep.mubr.f32.mxu0 %v7911_v9 }
 0x3e4   : > { %v2615_v20 = vpop.permute.xlu1 %2614  ;;  %v9359_v21 = vpop.permute.xlu0 %2532 }
 0x3e5   : > { %v2643_v36 = vsel %vm2638_vm14, %v9268_v42, %v2615_v20  ;;  %v2559_v17 = vsel %vm1181_vm9, %v2531_v12, %v9359_v21 }
 0x3e6   : > { %2373 = vrot.lane.b32.xlu1 %v9094_v55, %s7912_s11  ;;  %2458 = vrot.lane.b32.xlu0 %v9072_v4, %s7917_s27  ;;  %v7227_v7 = vpack.c.bf16 %v2643_v36, %v2558_v57 }
 0x3e8   : > { %v2100_v38 = vpop.permute.xlu1 %2099  ;;  %v9369_v45 = vpop.permute.xlu0 %2616 }
 0x3e9   : > { %v2125_v1 = vsel %vm447_vm2, %v9286_v34, %v2100_v38  ;;  %v2126_v39 = vsel %vm447_vm2, %v2100_v38, %v9350_v28  ;;  %v2644_v4 = vsel %vm2638_vm14, %v2615_v20, %v9369_v45 }
 0x3ea   : > { %2460 = vrot.lane.b32.xlu1 %v9094_v55, %s7917_s27  ;;  %2546 = vrot.lane.b32.xlu0 %v9094_v55, %s7918_s28  ;;  %v7225_v15 = vpack.c.bf16 %v2644_v4, %v2559_v17  ;;  %v7229_v42 = vpack.c.bf16 %v2126_v39, %v9090_v24  ;;  %v7231_v40 = vpack.c.bf16 %v2125_v1, %v9048_v26 }
 0x3ec   : > { %v9385_v23 = vpop.permute.xlu1 %2185  ;;  %v2184_v46 = vpop.permute.xlu0 %2183  ;;  %7226 = vmatprep.subr.bf16.mxu1 %v7225_v15  ;;  %7230 = vmatprep.subr.bf16.mxu0 %v7229_v42 }
 0x3ed   : > { %7228 = vmatpush1.bf16.msra.mxu1 %v7227_v7  ;;  %7232 = vmatpush1.bf16.msra.mxu0 %v7231_v40  ;;  %v2210_v26 = vsel %vm2203_vm12, %v9296_v51, %v2184_v46  ;;  %v2211_v24 = vsel %vm2203_vm12, %v2184_v46, %v9385_v23  ;;  %v6612_v40 = vld [vmem:[%s8531_s25 + $0x8] sm:$0xff] }
 0x3ee   : > { %2548 = vrot.lane.b32.xlu1 %v9106_v59, %s7918_s28  ;;  %2630 = vrot.lane.b32.xlu0 %v9094_v55, %s7919_s29 }
 0x3f0   : > { %v9391_v34 = vpop.permute.xlu1 %2274  ;;  %v2273_v37 = vpop.permute.xlu0 %2272 }
 0x3f1   : > { %v2300_v30 = vsel %vm793_vm6, %v9310_v54, %v2273_v37  ;;  %v2301_v50 = vsel %vm793_vm6, %v2273_v37, %v9391_v34  ;;  %v2067_v54 = vsel %vm307_vm10, %v9157_v18, %v9103_v31 }
 0x3f2   : > { %2632 = vrot.lane.b32.xlu1 %v9106_v59, %s7919_s29  ;;  %2715 = vrot.lane.b32.xlu0 %v9094_v55, %s7906_s6  ;;  %v7233_v27 = vpack.c.bf16 %v2301_v50, %v2211_v24  ;;  %v7235_v41 = vpack.c.bf16 %v2300_v30, %v2210_v26 }
 0x3f4   : > { %v9405_v8 = vpop.permute.xlu1 %2701  ;;  %v2104_v51 = vpop.permute.xlu0 %2103  ;;  %7234 = vmatprep.subr.bf16.mxu0 %v7233_v27 }
 0x3f5   : > { %v2728_v29 = vsel %vm305_vm0, %v2700_v2, %v9405_v8  ;;  %7236 = vmatpush1.bf16.msra.mxu0 %v7235_v41  ;;  %v2127_v44 = vsel %vm447_vm2, %v9350_v28, %v2104_v51 }
 0x3f6   : > { %2717 = vrot.lane.b32.xlu1 %v9106_v59, %s7906_s6  ;;  %2115 = vrot.lane.b32.xlu0 %v9106_v59, %s7904_s30  ;;  %v7247_v12 = vpack.c.bf16 %v2127_v44, %v2783_v3 }
 0x3f7   : > { %3096 = vmatprep.subr.mxu1 %v2728_v29 }
 0x3f8   : > { %v9415_v55 = vpop.permute.xlu1 %2361  ;;  %v2360_v49 = vpop.permute.xlu0 %2359  ;;  %3097 = vmatpush1.msra.mxu1 %v2727_v32 }
 0x3f9   : > { %6615 = vmatmul.mubr.msk.f32.vlgmr.msra.gmra.mrb[10].mxu1 %vm1181_vm9, %v9237_v16  ;;  %v2387_v60 = vsel %vm969_vm8, %v9324_v5, %v2360_v49  ;;  %v2388_v62 = vsel %vm969_vm8, %v2360_v49, %v9415_v55 }
 0x3fa   : > { %2117 = vrot.lane.b32.xlu1 %v2067_v54, %s7904_s30  ;;  %2199 = vrot.lane.b32.xlu0 %v9106_v59, %s7916_s26 }
 0x3fb   : > { %3286 = vmatprep.mubr.f32.mxu1 %v7911_v9 }
 0x3fc   : > { %v9426_v6 = vpop.permute.xlu1 %2448  ;;  %v2447_v48 = vpop.permute.xlu0 %2446 }
 0x3fd   : > { %v2475_v31 = vsel %vm2468_vm13, %v9330_v56, %v2447_v48  ;;  %v2476_v63 = vsel %vm2468_vm13, %v2447_v48, %v9426_v6 }
 0x3fe   : > { %2201 = vrot.lane.b32.xlu1 %v2067_v54, %s7916_s26  ;;  %2288 = vrot.lane.b32.xlu0 %v9106_v59, %s7909_s9  ;;  %v7237_v47 = vpack.c.bf16 %v2476_v63, %v2388_v62  ;;  %v7239_v61 = vpack.c.bf16 %v2475_v31, %v2387_v60 }
 0x400   : > { %v9439_v22 = vpop.permute.xlu1 %2536  ;;  %v2188_v0 = vpop.permute.xlu0 %2187  ;;  %7238 = vmatprep.subr.bf16.mxu0 %v7237_v47 }
 0x401   : > { %7240 = vmatpush1.bf16.msra.mxu0 %v7239_v61 }
 0x402   : > { %2290 = vrot.lane.b32.xlu1 %v2067_v54, %s7909_s9  ;;  %2375 = vrot.lane.b32.xlu0 %v9106_v59, %s7912_s11 }
 0x404   : > { %v9444_v52 = vpop.permute.xlu1 %2620  ;;  %v2277_v5 = vpop.permute.xlu0 %2276 }
 0x406   : > { %2377 = vrot.lane.b32.xlu1 %v2067_v54, %s7912_s11  ;;  %2462 = vrot.lane.b32.xlu0 %v9106_v59, %s7917_s27 }
 0x408   : > { %v9449_v35 = vpop.permute.xlu1 %2705  ;;  %v2535_v56 = vpop.permute.xlu0 %2534 }
 0x409   : > { %v2560_v33 = vsel %vm1181_vm9, %v9359_v21, %v2535_v56  ;;  %v2561_v19 = vsel %vm1181_vm9, %v2535_v56, %v9439_v22  ;;  %v2302_v21 = vsel %vm793_vm6, %v9391_v34, %v2277_v5 }
 0x40a   : > { %2464 = vrot.lane.b32.xlu1 %v2067_v54, %s7917_s27  ;;  %2550 = vrot.lane.b32.xlu0 %v2067_v54, %s7918_s28 }
 0x40c   : > { %v9460_v58 = vpop.permute.xlu1 %2105  ;;  %v2619_v59 = vpop.permute.xlu0 %2618 }
 0x40d   : > { %v2128_v14 = vsel %vm447_vm2, %v2104_v51, %v9460_v58  ;;  %v2645_v10 = vsel %vm2638_vm14, %v9369_v45, %v2619_v59  ;;  %v2646_v53 = vsel %vm2638_vm14, %v2619_v59, %v9444_v52  ;;  %v2212_v45 = vsel %vm2203_vm12, %v9385_v23, %v2188_v0 }
 0x40e   : > { %2552 = vrot.lane.b32.xlu1 %v2256_v43, %s7918_s28  ;;  %2634 = vrot.lane.b32.xlu0 %v2067_v54, %s7919_s29  ;;  %v7241_v18 = vpack.c.bf16 %v2646_v53, %v2561_v19  ;;  %v7245_v2 = vpack.c.bf16 %v2128_v14, %v9127_v13  ;;  %v7243_v25 = vpack.c.bf16 %v2645_v10, %v2560_v33 }
 0x40f   : > { %v7251_v1 = vpack.c.bf16 %v2302_v21, %v2212_v45 }
 0x410   : > { %v9473_v28 = vpop.permute.xlu1 %2189  ;;  %v2364_v20 = vpop.permute.xlu0 %2363  ;;  %7242 = vmatprep.subr.bf16.mxu0 %v7241_v18  ;;  %7246 = vmatprep.subr.bf16.mxu1 %v7245_v2 }
 0x411   : > { %7244 = vmatpush1.bf16.msra.mxu0 %v7243_v25  ;;  %7248 = vmatpush1.bf16.msra.mxu1 %v7247_v12  ;;  %v2213_v36 = vsel %vm2203_vm12, %v2188_v0, %v9473_v28  ;;  %v2389_v26 = vsel %vm969_vm8, %v9415_v55, %v2364_v20 }
 0x412   : > { %2636 = vrot.lane.b32.xlu1 %v2256_v43, %s7919_s29  ;;  %2292 = vrot.lane.b32.xlu0 %v2256_v43, %s7909_s9 }
 0x414   : > { %v9479_v57 = vpop.permute.xlu1 %2278  ;;  %v2451_v13 = vpop.permute.xlu0 %2450 }
 0x415   : > { %v2303_v38 = vsel %vm793_vm6, %v2277_v5, %v9479_v57  ;;  %v2477_v7 = vsel %vm2468_vm13, %v9426_v6, %v2451_v13 }
 0x416   : > { %2719 = vrot.lane.b32.xlu1 %v2067_v54, %s7906_s6  ;;  %2721 = vrot.lane.b32.xlu0 %v2256_v43, %s7906_s6  ;;  %v7249_v17 = vpack.c.bf16 %v2303_v38, %v2213_v36  ;;  %v7255_v30 = vpack.c.bf16 %v2477_v7, %v2389_v26 }
 0x418   : > { %v9489_v39 = vpop.permute.xlu1 %2365  ;;  %v2704_v4 = vpop.permute.xlu0 %2703  ;;  %7250 = vmatprep.subr.bf16.mxu1 %v7249_v17 }
 0x419   : > { %v2729_v15 = vsel %vm305_vm0, %v9405_v8, %v2704_v4  ;;  %v2730_v42 = vsel %vm305_vm0, %v2704_v4, %v9449_v35  ;;  %7252 = vmatpush1.bf16.msra.mxu1 %v7251_v1  ;;  %v2390_v34 = vsel %vm969_vm8, %v2364_v20, %v9489_v39 }
 0x41a   : > { %2379 = vrot.lane.b32.xlu1 %v2256_v43, %s7912_s11  ;;  %2466 = vrot.lane.b32.xlu0 %v2256_v43, %s7917_s27 }
 0x41b   : > { %3167 = vmatprep.subr.mxu0 %v2730_v42 }
 0x41c   : > { %v2453_v23 = vpop.permute.xlu1 %2452  ;;  %v2539_v46 = vpop.permute.xlu0 %2538  ;;  %3168 = vmatpush1.msra.mxu0 %v2729_v15 }
 0x41d   : > { %v2478_v37 = vsel %vm2468_vm13, %v2451_v13, %v2453_v23  ;;  %6616 = vmatmul.mubr.msk.f32.vlgmr.msra.gmra.mrb[12].mxu0 %vm1181_vm9, %v9237_v16  ;;  %v2562_v55 = vsel %vm1181_vm9, %v9439_v22, %v2539_v46  ;;  %v2786_v22 = vld [vmem:[#allocation2 + $0x58] sm:$0xff] }
 0x41e   : > { %2932 = vperm.xlu1 %7795, %v6612_v40   ;;  %v7253_v24 = vpack.c.bf16 %v2478_v37, %v2390_v34  ;;  %3357 = vmatprep.mubr.f32.mxu0 %v7911_v9  ;;  %v2788_v34 = vld [vmem:[#allocation2 + $0x68] sm:$0xff]  ;;  %v2787_v37 = vld [vmem:[#allocation2 + $0x60] sm:$0xff] }
 0x420   : > { %v9508_v50 = vpop.permute.xlu1 %2540  ;;  %v2623_v27 = vpop.permute.xlu0 %2622  ;;  %7254 = vmatprep.subr.bf16.mxu1 %v7253_v24 }
 0x421   : > { %7256 = vmatpush1.bf16.msra.mxu1 %v7255_v30  ;;  %v2647_v41 = vsel %vm2638_vm14, %v9444_v52, %v2623_v27  ;;  %v2563_v29 = vsel %vm1181_vm9, %v2539_v46, %v9508_v50  ;;  %v2785_v52 = vld [vmem:[#allocation2 + $0x50] sm:$0xff] }
 0x422   : > { %v7259_v54 = vpack.c.bf16 %v2647_v41, %v2562_v55 }
 0x424   : > { %v2625_v8 = vpop.permute.xlu1 %2624  ;;  %v2708_v51 = vpop.permute.xlu0 %2707 }
 0x425   : > { %v2648_v32 = vsel %vm2638_vm14, %v2623_v27, %v2625_v8  ;;  %v2731_v62 = vsel %vm305_vm0, %v9449_v35, %v2708_v51 }
 0x426   : > { %v7257_v49 = vpack.c.bf16 %v2648_v32, %v2563_v29 }
 0x428   : > { %v9517_v6 = vpop.permute.xlu1 %2709  ;;  %v2108_v48 = vpop.permute.xlu0 %2107  ;;  %7258 = vmatprep.subr.bf16.mxu1 %v7257_v49 }
 0x429   : > { %v2732_v60 = vsel %vm305_vm0, %v2708_v51, %v9517_v6  ;;  %7260 = vmatpush1.bf16.msra.mxu1 %v7259_v54  ;;  %v2129_v31 = vsel %vm447_vm2, %v9460_v58, %v2108_v48 }
 0x42a   : > { %3238 = vmatprep.subr.mxu1 %v2732_v60  ;;  %v7263_v5 = vpack.c.bf16 %v2129_v31, %v2785_v52 }
 0x42c   : > { %v2110_v63 = vpop.permute.xlu1 %2109  ;;  %v2192_v47 = vpop.permute.xlu0 %2191 }
 0x42d   : > { %v2130_v61 = vsel %vm447_vm2, %v2108_v48, %v2110_v63  ;;  %3239 = vmatpush1.msra.mxu1 %v2731_v62  ;;  %v2214_v19 = vsel %vm2203_vm12, %v9473_v28, %v2192_v47 }
 0x42e   : > { %6617 = vmatmul.mubr.msk.f32.vlgmr.msra.gmra.mrb[12].mxu1 %vm1181_vm9, %v9237_v16  ;;  %v7261_v0 = vpack.c.bf16 %v2130_v61, %v2786_v22 }
 0x42f   : > { %3428 = vmatprep.mubr.f32.mxu1 %v7911_v9 }
 0x430   : > { %v2194_v56 = vpop.permute.xlu1 %2193  ;;  %v2281_v43 = vpop.permute.xlu0 %2280  ;;  %7262 = vmatprep.subr.bf16.mxu0 %v7261_v0 }
 0x431   : > { %7264 = vmatpush1.bf16.msra.mxu0 %v7263_v5  ;;  %v2304_v35 = vsel %vm793_vm6, %v9479_v57, %v2281_v43  ;;  %v2215_v58 = vsel %vm2203_vm12, %v2192_v47, %v2194_v56 }
 0x432   : > { %v7267_v10 = vpack.c.bf16 %v2304_v35, %v2214_v19 }
 0x434   : > { %v2283_v44 = vpop.permute.xlu1 %2282  ;;  %v2368_v33 = vpop.permute.xlu0 %2367 }
 0x435   : > { %v2305_v59 = vsel %vm793_vm6, %v2281_v43, %v2283_v44  ;;  %v2391_v21 = vsel %vm969_vm8, %v9489_v39, %v2368_v33 }
 0x436   : > { %v7265_v14 = vpack.c.bf16 %v2305_v59, %v2215_v58 }
 0x438   : > { %v9535_v53 = vpop.permute.xlu1 %2369  ;;  %v2455_v18 = vpop.permute.xlu0 %2454  ;;  %7266 = vmatprep.subr.bf16.mxu0 %v7265_v14 }
 0x439   : > { %7268 = vmatpush1.bf16.msra.mxu0 %v7267_v10  ;;  %v2479_v2 = vsel %vm2468_vm13, %v2453_v23, %v2455_v18  ;;  %v2392_v12 = vsel %vm969_vm8, %v2368_v33, %v9535_v53 }
 0x43a   : > { %v7271_v57 = vpack.c.bf16 %v2479_v2, %v2391_v21 }
 0x43c   : > { %v2457_v25 = vpop.permute.xlu1 %2456  ;;  %v2543_v3 = vpop.permute.xlu0 %2542 }
 0x43d   : > { %v2480_v20 = vsel %vm2468_vm13, %v2455_v18, %v2457_v25  ;;  %v2564_v15 = vsel %vm1181_vm9, %v9508_v50, %v2543_v3 }
 0x43e   : > { %v7269_v28 = vpack.c.bf16 %v2480_v20, %v2392_v12 }
 0x440   : > { %v9543_v13 = vpop.permute.xlu1 %2544  ;;  %v2627_v36 = vpop.permute.xlu0 %2626  ;;  %7270 = vmatprep.subr.bf16.mxu0 %v7269_v28 }
 0x441   : > { %7272 = vmatpush1.bf16.msra.mxu0 %v7271_v57  ;;  %v2649_v38 = vsel %vm2638_vm14, %v2625_v8, %v2627_v36  ;;  %v2565_v1 = vsel %vm1181_vm9, %v2543_v3, %v9543_v13  ;;  %v2790_v57 = vld [vmem:[#allocation2 + $0x78] sm:$0xff] }
 0x442   : > { %v7275_v42 = vpack.c.bf16 %v2649_v38, %v2564_v15 }
 0x444   : > { %v2629_v45 = vpop.permute.xlu1 %2628  ;;  %v2712_v17 = vpop.permute.xlu0 %2711 }
 0x445   : > { %v2650_v4 = vsel %vm2638_vm14, %v2627_v36, %v2629_v45  ;;  %v2733_v62 = vsel %vm305_vm0, %v9517_v6, %v2712_v17  ;;  %v2789_v36 = vld [vmem:[#allocation2 + $0x70] sm:$0xff] }
 0x446   : > { %v7273_v39 = vpack.c.bf16 %v2650_v4, %v2565_v1 }
 0x448   : > { %v2114_v40 = vpop.permute.xlu1 %2113  ;;  %v2112_v7 = vpop.permute.xlu0 %2111  ;;  %7274 = vmatprep.subr.bf16.mxu0 %v7273_v39  ;;  %v2791_v39 = vld [vmem:[#allocation2 + $0x80] sm:$0xff] }
 0x449   : > { %v2131_v23 = vsel %vm447_vm2, %v2110_v63, %v2112_v7  ;;  %v2132_v46 = vsel %vm447_vm2, %v2112_v7, %v2114_v40  ;;  %7276 = vmatpush1.bf16.msra.mxu0 %v7275_v42 }
 0x44a   : > { %v7277_v26 = vpack.c.bf16 %v2132_v46, %v2788_v34  ;;  %v7279_v24 = vpack.c.bf16 %v2131_v23, %v2787_v37 }
 0x44c   : > { %v9553_v30 = vpop.permute.xlu1 %2197  ;;  %v2196_v27 = vpop.permute.xlu0 %2195  ;;  %7278 = vmatprep.subr.bf16.mxu1 %v7277_v26 }
 0x44d   : > { %7280 = vmatpush1.bf16.msra.mxu1 %v7279_v24  ;;  %v2216_v8 = vsel %vm2203_vm12, %v2194_v56, %v2196_v27  ;;  %v2217_v51 = vsel %vm2203_vm12, %v2196_v27, %v9553_v30 }
 0x450   : > { %v9555_v50 = vpop.permute.xlu1 %2286  ;;  %v2285_v41 = vpop.permute.xlu0 %2284 }
 0x451   : > { %v2306_v29 = vsel %vm793_vm6, %v2283_v44, %v2285_v41  ;;  %v2307_v32 = vsel %vm793_vm6, %v2285_v41, %v9555_v50 }
 0x452   : > { %v7281_v55 = vpack.c.bf16 %v2307_v32, %v2217_v51  ;;  %v7283_v49 = vpack.c.bf16 %v2306_v29, %v2216_v8 }
 0x454   : > { %v2714_v54 = vpop.permute.xlu1 %2713  ;;  %v2372_v48 = vpop.permute.xlu0 %2371  ;;  %7282 = vmatprep.subr.bf16.mxu1 %v7281_v55 }
 0x455   : > { %v2734_v60 = vsel %vm305_vm0, %v2712_v17, %v2714_v54  ;;  %7284 = vmatpush1.bf16.msra.mxu1 %v7283_v49  ;;  %v2393_v6 = vsel %vm969_vm8, %v9535_v53, %v2372_v48 }
 0x456   : > { %3309 = vmatprep.subr.mxu0 %v2734_v60 }
 0x457   : > { %3310 = vmatpush1.msra.mxu0 %v2733_v62 }
 0x458   : > { %v9566_v31 = vpop.permute.xlu1 %2373  ;;  %v2459_v63 = vpop.permute.xlu0 %2458  ;;  %6618 = vmatmul.mubr.msk.f32.vlgmr.msra.gmra.mrb[14].mxu0 %vm1181_vm9, %v9237_v16 }
 0x459   : > { %3499 = vmatprep.mubr.f32.mxu0 %v7911_v9  ;;  %v2481_v47 = vsel %vm2468_vm13, %v2457_v25, %v2459_v63  ;;  %v2394_v0 = vsel %vm969_vm8, %v2372_v48, %v9566_v31 }
 0x45a   : > { %v7287_v56 = vpack.c.bf16 %v2481_v47, %v2393_v6 }
 0x45c   : > { %v2461_v61 = vpop.permute.xlu1 %2460  ;;  %v2547_v22 = vpop.permute.xlu0 %2546 }
 0x45d   : > { %v2482_v52 = vsel %vm2468_vm13, %v2459_v63, %v2461_v61  ;;  %v2566_v14 = vsel %vm1181_vm9, %v9543_v13, %v2547_v22 }
 0x45e   : > { %v7285_v5 = vpack.c.bf16 %v2482_v52, %v2394_v0 }
 0x460   : > { %v9577_v43 = vpop.permute.xlu1 %2548  ;;  %v2631_v35 = vpop.permute.xlu0 %2630  ;;  %7286 = vmatprep.subr.bf16.mxu1 %v7285_v5 }
 0x461   : > { %7288 = vmatpush1.bf16.msra.mxu1 %v7287_v56  ;;  %v2651_v44 = vsel %vm2638_vm14, %v2629_v45, %v2631_v35  ;;  %v2567_v59 = vsel %vm1181_vm9, %v2547_v22, %v9577_v43 }
 0x462   : > { %v7291_v53 = vpack.c.bf16 %v2651_v44, %v2566_v14 }
 0x464   : > { %v9580_v33 = vpop.permute.xlu1 %2632  ;;  %v2716_v58 = vpop.permute.xlu0 %2715 }
 0x465   : > { %v2652_v19 = vsel %vm2638_vm14, %v2631_v35, %v9580_v33  ;;  %v2735_v3 = vsel %vm305_vm0, %v2714_v54, %v2716_v58 }
 0x466   : > { %v7289_v10 = vpack.c.bf16 %v2652_v19, %v2567_v59 }
 0x468   : > { %v9588_v18 = vpop.permute.xlu1 %2717  ;;  %v2116_v2 = vpop.permute.xlu0 %2115  ;;  %7290 = vmatprep.subr.bf16.mxu1 %v7289_v10 }
 0x469   : > { %v2736_v25 = vsel %vm305_vm0, %v2716_v58, %v9588_v18  ;;  %7292 = vmatpush1.bf16.msra.mxu1 %v7291_v53  ;;  %v2133_v12 = vsel %vm447_vm2, %v2114_v40, %v2116_v2 }
 0x46a   : > { %3380 = vmatprep.subr.mxu1 %v2736_v25  ;;  %v7295_v38 = vpack.c.bf16 %v2133_v12, %v2789_v36 }
 0x46c   : > { %v2118_v20 = vpop.permute.xlu1 %2117  ;;  %v2200_v21 = vpop.permute.xlu0 %2199 }
 0x46d   : > { %v2134_v28 = vsel %vm447_vm2, %v2116_v2, %v2118_v20  ;;  %2168 = vst.msk [vmem:[#allocation2 + $0x108] sm:$0xff] %vm305_vm0, %v2118_v20  ;;  %3381 = vmatpush1.msra.mxu1 %v2735_v3  ;;  %v2218_v46 = vsel %vm2203_vm12, %v9553_v30, %v2200_v21 }
 0x46e   : > { %6619 = vmatmul.mubr.msk.f32.vlgmr.msra.gmra.mrb[14].mxu1 %vm1181_vm9, %v9237_v16  ;;  %7309 = vmatprep.subr.bf16.mxu1 %v7914_v11  ;;  %v7293_v13 = vpack.c.bf16 %v2134_v28, %v2790_v57 }
 0x46f   : > { %6996 = vmatprep.mubr.msk.f32.mxu1 %vm7915_vm11, %v7911_v9 }
 0x470   : > { %v2202_v45 = vpop.permute.xlu1 %2201  ;;  %v2289_v17 = vpop.permute.xlu0 %2288  ;;  %7294 = vmatprep.subr.bf16.mxu0 %v7293_v13 }
 0x471   : > { %2253 = vst.msk [vmem:[#allocation2 + $0x190] sm:$0xff] %vm305_vm0, %v2202_v45  ;;  %7296 = vmatpush1.bf16.msra.mxu0 %v7295_v38  ;;  %v2308_v1 = vsel %vm793_vm6, %v9555_v50, %v2289_v17  ;;  %v2219_v40 = vsel %vm2203_vm12, %v2200_v21, %v2202_v45 }
 0x472   : > { %v7299_v37 = vpack.c.bf16 %v2308_v1, %v2218_v46 }
 0x474   : > { %v2291_v4 = vpop.permute.xlu1 %2290  ;;  %v2376_v15 = vpop.permute.xlu0 %2375  ;;  %v2808_v42 = vld [vmem:[#allocation2 + $0x108] sm:$0xff] }
 0x475   : > { %v2309_v7 = vsel %vm793_vm6, %v2289_v17, %v2291_v4  ;;  %v7310_v23 = vpack.c.bf16 %v2808_v42, %v2791_v39  ;;  %v2395_v30 = vsel %vm969_vm8, %v9566_v31, %v2376_v15 }
 0x476   : > { %v7297_v34 = vpack.c.bf16 %v2309_v7, %v2219_v40 }
 0x477   : > { %7311 = vmatpush3.bf16.msra.mxu1 %v7310_v23 }
 0x478   : > { %v2378_v26 = vpop.permute.xlu1 %2377  ;;  %v2463_v24 = vpop.permute.xlu0 %2462  ;;  %7298 = vmatprep.subr.bf16.mxu0 %v7297_v34  ;;  %7312 = vmatprep.subr.bf16.mxu1 %v7914_v11  ;;  %v2825_v59 = vld [vmem:[#allocation2 + $0x190] sm:$0xff] }
 0x479   : > { %7300 = vmatpush1.bf16.msra.mxu0 %v7299_v37  ;;  %v2483_v27 = vsel %vm2468_vm13, %v2461_v61, %v2463_v24  ;;  %v2396_v8 = vsel %vm969_vm8, %v2376_v15, %v2378_v26 }
 0x47a   : > { %v7303_v32 = vpack.c.bf16 %v2483_v27, %v2395_v30 }
 0x47c   : > { %v2465_v50 = vpop.permute.xlu1 %2464  ;;  %v2551_v41 = vpop.permute.xlu0 %2550 }
 0x47d   : > { %v2484_v51 = vsel %vm2468_vm13, %v2463_v24, %v2465_v50  ;;  %v2568_v47 = vsel %vm1181_vm9, %v9577_v43, %v2551_v41 }
 0x47e   : > { %v7301_v29 = vpack.c.bf16 %v2484_v51, %v2396_v8 }
 0x480   : > { %v2553_v55 = vpop.permute.xlu1 %2552  ;;  %v2635_v49 = vpop.permute.xlu0 %2634  ;;  %7302 = vmatprep.subr.bf16.mxu0 %v7301_v29 }
 0x481   : > { %2603 = vst.msk [vmem:[#allocation2 + $0x3b0] sm:$0xff] %vm305_vm0, %v2553_v55  ;;  %7304 = vmatpush1.bf16.msra.mxu0 %v7303_v32  ;;  %v2653_v54 = vsel %vm2638_vm14, %v9580_v33, %v2635_v49  ;;  %v2569_v62 = vsel %vm1181_vm9, %v2551_v41, %v2553_v55 }
 0x482   : > { %v7307_v22 = vpack.c.bf16 %v2653_v54, %v2568_v47 }
 0x484   : > { %v2637_v48 = vpop.permute.xlu1 %2636  ;;  %v2293_v60 = vpop.permute.xlu0 %2292 }
 0x485   : > { %v2654_v63 = vsel %vm2638_vm14, %v2635_v49, %v2637_v48  ;;  %2688 = vst.msk [vmem:[#allocation2 + $0x438] sm:$0xff] %vm305_vm0, %v2637_v48  ;;  %v2310_v31 = vsel %vm793_vm6, %v2291_v4, %v2293_v60 }
 0x486   : > { %2344 = vst.msk [vmem:[#allocation2 + $0x218] sm:$0xff] %vm305_vm0, %v2310_v31  ;;  %v7305_v61 = vpack.c.bf16 %v2654_v63, %v2569_v62 }
 0x488   : > { %v2720_v0 = vpop.permute.xlu1 %2719  ;;  %v2722_v52 = vpop.permute.xlu0 %2721  ;;  %7306 = vmatprep.subr.bf16.mxu0 %v7305_v61  ;;  %v2893_v25 = vld [vmem:[#allocation2 + $0x3b0] sm:$0xff] }
 0x489   : > { %v2738_v6 = vsel %vm305_vm0, %v2720_v0, %v2722_v52  ;;  %2772 = vst.msk [vmem:[#allocation2 + $0x4c0] sm:$0xff] %vm305_vm0, %v2722_v52  ;;  %7308 = vmatpush1.bf16.msra.mxu0 %v7307_v22  ;;  %v3004_v5 = vpop.f32.mrb[8].mxu1  ;;  %v2737_v35 = vsel %vm305_vm0, %v9588_v18, %v2720_v0 }
 0x48a   : > { %3451 = vmatprep.subr.mxu0 %v2738_v6  ;;  %v3006_v56 = vpop.f32.mrb[9].mxu1 }
 0x48c   : > { %v2380_v44 = vpop.permute.xlu1 %2379  ;;  %v2467_v43 = vpop.permute.xlu0 %2466  ;;  %v2910_v2 = vld [vmem:[#allocation2 + $0x438] sm:$0xff] }
 0x48d   : > { %v2397_v33 = vsel %vm969_vm8, %v2378_v26, %v2380_v44  ;;  %v2485_v58 = vsel %vm2468_vm13, %v2465_v50, %v2467_v43  ;;  %v2842_v19 = vld [vmem:[#allocation2 + $0x218] sm:$0xff]  ;;  %3452 = vmatpush1.msra.mxu0 %v2737_v35  ;;  %v7319_v3 = vpack.c.bf16 %v2910_v2, %v2893_v25 }
 0x48e   : > { %2431 = vst.msk [vmem:[#allocation2 + $0x2a0] sm:$0xff] %vm305_vm0, %v2397_v33  ;;  %2519 = vst.msk [vmem:[#allocation2 + $0x328] sm:$0xff] %vm305_vm0, %v2485_v58  ;;  %v7313_v14 = vpack.c.bf16 %v2842_v19, %v2825_v59  ;;  %6620 = vmatmul.mubr.msk.f32.vlgmr.msra.gmra.mrb[16].mxu0 %vm1181_vm9, %v9237_v16 }
 0x48f   : > { %4775 = vmatprep.mubr.f32.mxu0 %v7911_v9 }
 0x490   : > { %7314 = vmatpush3.bf16.msra.mxu1 %v7313_v14  ;;  %v2927_v21 = vld [vmem:[#allocation2 + $0x4c0] sm:$0xff] }
 0x491   : > { %7315 = vmatprep.subr.bf16.mxu1 %v7914_v11 }
 0x495   : > { %v2859_v10 = vld [vmem:[#allocation2 + $0x2a0] sm:$0xff]  ;;  %v2876_v53 = vld [vmem:[#allocation2 + $0x328] sm:$0xff] }
 0x496   : > { %v7316_v18 = vpack.c.bf16 %v2876_v53, %v2859_v10 }
 0x498   : > { %7317 = vmatpush3.bf16.msra.mxu1 %v7316_v18 }
 0x499   : > { %7318 = vmatprep.subr.bf16.mxu1 %v7914_v11 }
 0x49c   : > { %7320 = vmatpush3.bf16.msra.mxu1 %v7319_v3 }
 0x49d   : > { %v9637_v12 = vpop.permute.xlu1 %2932  ;;  %6994 = vmatprep.subr.mxu1 %v7911_v9 }
 0x49e   : > { %v3005_v20 = vadd.f32 %v3004_v5, %v9637_v12  ;;  %v9642_v28 = vadd.f32 %v3006_v56, %v9637_v12 }
 0x4a0   : > { %6995 = vmatpush3.msra.mxu1 %v2927_v21  ;;  %v9644_v57 = vmax.f32 %v3005_v20, 0.0  ;;  %v3577_v13 = vmax.f32 %v9642_v28, 0.0 }
 0x4a1   : > { %6997 = vmatmul.mubr.msk.f32.vlgmr.msra.gmra.mrb[16].mxu1 %vm1181_vm9, %v9237_v16 }
 0x4a2   : > { %3593 = vrot.lane.b32.xlu1 %v9644_v57, %s7906_s6  ;;  %3613 = vrot.lane.b32.xlu0 %v9644_v57, %s7904_s30 }
 0x4a3   : > { %4846 = vmatprep.mubr.f32.mxu1 %v7911_v9 }
 0x4a6   : > { %3615 = vrot.lane.b32.xlu0 %v3577_v13, %s7904_s30 }
 0x4b4   : > { %v3075_v36 = vpop.f32.mrb[10].mxu0 }
 0x4b5   : > { %v9658_v38 = vadd.f32 %v3075_v36, %v9637_v12  ;;  %v3077_v45 = vpop.f32.mrb[11].mxu0 }
 0x4b6   : > { %v9661_v16 = vadd.f32 %v3077_v45, %v9637_v12 }
 0x4b7   : > { %v3578_v17 = vmax.f32 %v9658_v38, 0.0 }
 0x4b8   : > { %v3579_v1 = vmax.f32 %v9661_v16, 0.0 }
 0x4b9   : > { %3617 = vrot.lane.b32.xlu1 %v3578_v17, %s7904_s30 }
 0x4ba   : > { %3619 = vrot.lane.b32.xlu0 %v3579_v1, %s7904_s30 }
 0x4cc   : > { %v3146_v4 = vpop.f32.mrb[10].mxu1 }
 0x4cd   : > { %v3147_v15 = vadd.f32 %v3146_v4, %v9637_v12  ;;  %v3148_v39 = vpop.f32.mrb[11].mxu1 }
 0x4ce   : > { %v3149_v40 = vadd.f32 %v3148_v39, %v9637_v12 }
 0x4cf   : > { %v3580_v42 = vmax.f32 %v3147_v15, 0.0 }
 0x4d0   : > { %v3581_v7 = vmax.f32 %v3149_v40, 0.0 }
 0x4d1   : > { %3621 = vrot.lane.b32.xlu1 %v3580_v42, %s7904_s30 }
 0x4d5   : > { %3623 = vrot.lane.b32.xlu1 %v3581_v7, %s7904_s30 }
 0x4f0   : > { %v3217_v23 = vpop.f32.mrb[12].mxu0 }
 0x4f1   : > { %v3218_v46 = vadd.f32 %v3217_v23, %v9637_v12  ;;  %v3219_v34 = vpop.f32.mrb[13].mxu0 }
 0x4f2   : > { %v9675_v26 = vadd.f32 %v3219_v34, %v9637_v12 }
 0x4f3   : > { %v3582_v37 = vmax.f32 %v3218_v46, 0.0 }
 0x4f4   : > { %v3583_v24 = vmax.f32 %v9675_v26, 0.0 }
 0x4f5   : > { %3625 = vrot.lane.b32.xlu0 %v3582_v37, %s7904_s30 }
 0x4f9   : > { %3627 = vrot.lane.b32.xlu0 %v3583_v24, %s7904_s30 }
 0x501   : > { %v3288_v27 = vpop.f32.mrb[12].mxu1 }
 0x502   : > { %v9683_v50 = vadd.f32 %v3288_v27, %v9637_v12  ;;  %v3290_v41 = vpop.f32.mrb[13].mxu1 }
 0x503   : > { %v9686_v8 = vadd.f32 %v3290_v41, %v9637_v12 }
 0x504   : > { %v3584_v51 = vmax.f32 %v9683_v50, 0.0 }
 0x505   : > { %v3585_v30 = vmax.f32 %v9686_v8, 0.0 }
 0x506   : > { %3629 = vrot.lane.b32.xlu1 %v3584_v51, %s7904_s30 }
 0x507   : > { %3631 = vrot.lane.b32.xlu0 %v3585_v30, %s7904_s30 }
 0x514   : > { %v3594_v22 = vpop.permute.xlu1 %3593  ;;  %v3614_v0 = vpop.permute.xlu0 %3613 }
 0x518   : > { %v3616_v6 = vpop.permute.xlu0 %3615 }
 0x519   : > { %v3647_v46 = vsel %vm447_vm2, %v3614_v0, %v3616_v6 }
 0x51a   : > { %v3680_v34 = vmax.f32 %v9644_v57, %v3647_v46 }
 0x52b   : > { %v3359_v29 = vpop.f32.mrb[14].mxu0  ;;  %v3618_v52 = vpop.permute.xlu1 %3617 }
 0x52c   : > { %v9695_v32 = vadd.f32 %v3359_v29, %v9637_v12  ;;  %v3361_v55 = vpop.f32.mrb[15].mxu0  ;;  %v3620_v35 = vpop.permute.xlu0 %3619  ;;  %v3648_v39 = vsel %vm447_vm2, %v3616_v6, %v3618_v52 }
 0x52d   : > { %v9698_v49 = vadd.f32 %v3361_v55, %v9637_v12  ;;  %v3649_v59 = vsel %vm447_vm2, %v3618_v52, %v3620_v35  ;;  %v3681_v23 = vmax.f32 %v3577_v13, %v3648_v39 }
 0x52e   : > { %v3586_v54 = vmax.f32 %v9695_v32, 0.0  ;;  %v9737_v10 = vmax.f32 %v3578_v17, %v3649_v59 }
 0x52f   : > { %v3587_v48 = vmax.f32 %v9698_v49, 0.0 }
 0x530   : > { %3633 = vrot.lane.b32.xlu1 %v3586_v54, %s7904_s30 }
 0x531   : > { %3635 = vrot.lane.b32.xlu0 %v3587_v48, %s7904_s30 }
 0x541   : > { %v3430_v60 = vpop.f32.mrb[14].mxu1 }
 0x542   : > { %v9709_v62 = vadd.f32 %v3430_v60, %v9637_v12  ;;  %v3432_v63 = vpop.f32.mrb[15].mxu1 }
 0x543   : > { %v9712_v31 = vadd.f32 %v3432_v63, %v9637_v12  ;;  %v3622_v5 = vpop.permute.xlu1 %3621 }
 0x544   : > { %v3588_v47 = vmax.f32 %v9709_v62, 0.0 }
 0x545   : > { %v3589_v61 = vmax.f32 %v9712_v31, 0.0 }
 0x546   : > { %3637 = vrot.lane.b32.xlu1 %v3588_v47, %s7904_s30 }
 0x547   : > { %3639 = vrot.lane.b32.xlu0 %v3589_v61, %s7904_s30  ;;  %v3624_v14 = vpop.permute.xlu1 %3623 }
 0x548   : > { %v3651_v18 = vsel %vm447_vm2, %v3622_v5, %v3624_v14 }
 0x549   : > { %v9742_v2 = vmax.f32 %v3580_v42, %v3651_v18 }
 0x561   : > { %v3501_v56 = vpop.f32.mrb[16].mxu0 }
 0x562   : > { %v9723_v44 = vadd.f32 %v3501_v56, %v9637_v12  ;;  %v3503_v43 = vpop.f32.mrb[17].mxu0 }
 0x563   : > { %v9726_v33 = vadd.f32 %v3503_v43, %v9637_v12 }
 0x564   : > { %v3590_v58 = vmax.f32 %v9723_v44, 0.0 }
 0x565   : > { %v3591_v19 = vmax.f32 %v9726_v33, 0.0 }
 0x566   : > { %3641 = vrot.lane.b32.xlu0 %v3590_v58, %s7904_s30 }
 0x567   : > { %3643 = vrot.lane.b32.xlu1 %v3591_v19, %s7904_s30  ;;  %v3626_v53 = vpop.permute.xlu0 %3625 }
 0x568   : > { %v3652_v25 = vsel %vm447_vm2, %v3624_v14, %v3626_v53 }
 0x569   : > { %v3685_v20 = vmax.f32 %v3581_v7, %v3652_v25 }
 0x56a   : > { %3725 = vrot.lane.b32.xlu0 %v9737_v10, %s7909_s9 }
 0x56b   : > { %v3628_v3 = vpop.permute.xlu0 %3627 }
 0x56c   : > { %v3653_v21 = vsel %vm447_vm2, %v3626_v53, %v3628_v3 }
 0x56d   : > { %v9749_v36 = vmax.f32 %v3582_v37, %v3653_v21  ;;  %v3650_v37 = vsel %vm447_vm2, %v3620_v35, %v3622_v5 }
 0x56e   : > { %3729 = vrot.lane.b32.xlu0 %v9742_v2, %s7909_s9  ;;  %v3683_v28 = vmax.f32 %v3579_v1, %v3650_v37 }
 0x572   : > { %3731 = vrot.lane.b32.xlu0 %v3685_v20, %s7909_s9 }
 0x574   : > { %v3572_v38 = vpop.f32.mrb[16].mxu1 }
 0x575   : > { %v9752_v45 = vadd.f32 %v3572_v38, %v9637_v12  ;;  %v6998_v17 = vpop.f32.mrb[17].mxu1 }
 0x576   : > { %3733 = vrot.lane.b32.xlu0 %v9749_v36, %s7909_s9 }
 0x577   : > { %v3592_v4 = vmax.f32 %v9752_v45, 0.0 }
 0x578   : > { %v3630_v15 = vpop.permute.xlu1 %3629 }
 0x579   : > { %v3595_v42 = vsel %vm307_vm10, %v3594_v22, %v3592_v4  ;;  %v3632_v40 = vpop.permute.xlu0 %3631  ;;  %v3654_v13 = vsel %vm447_vm2, %v3628_v3, %v3630_v15 }
 0x57a   : > { %3645 = vrot.lane.b32.xlu1 %v3595_v42, %s7904_s30  ;;  %v3655_v7 = vsel %vm447_vm2, %v3630_v15, %v3632_v40  ;;  %v9782_v27 = vmax.f32 %v3583_v24, %v3654_v13  ;;  %s7920_s30 = smov 120  }
 0x57b   : > { %v9763_v12 = vmax.f32 %v3584_v51, %v3655_v7 }
 0x57d   : > { %3737 = vrot.lane.b32.xlu0 %v9763_v12, %s7909_s9 }
 0x57e   : > { %3723 = vrot.lane.b32.xlu1 %v3681_v23, %s7909_s9 }
 0x582   : > { %3721 = vrot.lane.b32.xlu1 %v3680_v34, %s7909_s9 }
 0x586   : > { %3697 = vrot.lane.b32.xlu1 %v3680_v34, %s7906_s6 }
 0x58a   : > { %3699 = vrot.lane.b32.xlu1 %v3681_v23, %s7906_s6 }
 0x58e   : > { %3727 = vrot.lane.b32.xlu1 %v3683_v28, %s7909_s9 }
 0x592   : > { %3735 = vrot.lane.b32.xlu1 %v9782_v27, %s7909_s9 }
 0x5a2   : > { %v3634_v57 = vpop.permute.xlu1 %3633 }
 0x5a3   : > { %v3656_v50 = vsel %vm447_vm2, %v3632_v40, %v3634_v57  ;;  %v3636_v41 = vpop.permute.xlu0 %3635 }
 0x5a4   : > { %v9789_v51 = vmax.f32 %v3585_v30, %v3656_v50  ;;  %v3657_v16 = vsel %vm447_vm2, %v3634_v57, %v3636_v41 }
 0x5a5   : > { %v9796_v1 = vmax.f32 %v3586_v54, %v3657_v16 }
 0x5a6   : > { %3739 = vrot.lane.b32.xlu0 %v9789_v51, %s7909_s9 }
 0x5aa   : > { %3741 = vrot.lane.b32.xlu0 %v9796_v1, %s7909_s9 }
 0x5b8   : > { %v3638_v26 = vpop.permute.xlu1 %3637 }
 0x5b9   : > { %v3658_v24 = vsel %vm447_vm2, %v3636_v41, %v3638_v26  ;;  %v3640_v29 = vpop.permute.xlu0 %3639 }
 0x5ba   : > { %v9803_v8 = vmax.f32 %v3587_v48, %v3658_v24  ;;  %v3659_v30 = vsel %vm447_vm2, %v3638_v26, %v3640_v29 }
 0x5bb   : > { %v9808_v55 = vmax.f32 %v3588_v47, %v3659_v30 }
 0x5bc   : > { %3743 = vrot.lane.b32.xlu1 %v9803_v8, %s7909_s9 }
 0x5bd   : > { %3745 = vrot.lane.b32.xlu0 %v9808_v55, %s7909_s9 }
 0x5d8   : > { %v3642_v32 = vpop.permute.xlu0 %3641 }
 0x5d9   : > { %v3660_v54 = vsel %vm447_vm2, %v3640_v29, %v3642_v32  ;;  %v3644_v60 = vpop.permute.xlu1 %3643 }
 0x5da   : > { %v9817_v49 = vmax.f32 %v3589_v61, %v3660_v54  ;;  %v3661_v48 = vsel %vm447_vm2, %v3642_v32, %v3644_v60 }
 0x5db   : > { %v9824_v63 = vmax.f32 %v3590_v58, %v3661_v48 }
 0x5dc   : > { %3747 = vrot.lane.b32.xlu1 %v9817_v49, %s7909_s9  ;;  %v3726_v62 = vpop.permute.xlu0 %3725 }
 0x5e0   : > { %3749 = vrot.lane.b32.xlu1 %v9824_v63, %s7909_s9  ;;  %v3730_v47 = vpop.permute.xlu0 %3729 }
 0x5e4   : > { %v3732_v22 = vpop.permute.xlu0 %3731 }
 0x5e5   : > { %v3761_v0 = vsel %vm793_vm6, %v3730_v47, %v3732_v22 }
 0x5e6   : > { %v9830_v31 = vmax.f32 %v9742_v2, %v3761_v0 }
 0x5e8   : > { %v3734_v61 = vpop.permute.xlu0 %3733 }
 0x5e9   : > { %v3762_v52 = vsel %vm793_vm6, %v3732_v22, %v3734_v61 }
 0x5ea   : > { %v9833_v6 = vmax.f32 %v3685_v20, %v3762_v52 }
 0x5ec   : > { %v3646_v5 = vpop.permute.xlu1 %3645 }
 0x5ed   : > { %v3662_v56 = vsel %vm447_vm2, %v3644_v60, %v3646_v5  ;;  %v9850_v18 = vmax.f32 %v3592_v4, %v3646_v5  ;;  %vm4318_vm2 = vcmask 130048  }
 0x5ee   : > { %v9838_v35 = vmax.f32 %v3591_v19, %v3662_v56 }
 0x5ef   : > { %v3738_v17 = vpop.permute.xlu0 %3737 }
 0x5f0   : > { %v3724_v44 = vpop.permute.xlu1 %3723  ;;  %3751 = vrot.lane.b32.xlu0 %v9838_v35, %s7909_s9 }
 0x5f1   : > { %v3758_v43 = vsel %vm793_vm6, %v3724_v44, %v3726_v62 }
 0x5f2   : > { %v9843_v58 = vmax.f32 %v3681_v23, %v3758_v43 }
 0x5f4   : > { %v3722_v59 = vpop.permute.xlu1 %3721 }
 0x5f5   : > { %v3757_v14 = vsel %vm793_vm6, %v3722_v59, %v3724_v44 }
 0x5f6   : > { %v9846_v53 = vmax.f32 %v3680_v34, %v3757_v14 }
 0x5f8   : > { %v3698_v33 = vpop.permute.xlu1 %3697 }
 0x5f9   : > { %v3701_v19 = vsel %vm307_vm10, %v3698_v33, %v9850_v18 }
 0x5fa   : > { %3753 = vrot.lane.b32.xlu0 %v3701_v19, %s7909_s9 }
 0x5fc   : > { %v3700_v2 = vpop.permute.xlu1 %3699 }
 0x5fd   : > { %v3702_v25 = vsel %vm307_vm10, %v3700_v2, %v3698_v33 }
 0x5fe   : > { %3845 = vrot.lane.b32.xlu0 %v9846_v53, %s7916_s26  ;;  %3755 = vrot.lane.b32.xlu1 %v3702_v25, %s7909_s9  ;;  %s7924_s9 = smov 8  }
 0x600   : > { %v3728_v3 = vpop.permute.xlu1 %3727 }
 0x601   : > { %v3759_v20 = vsel %vm793_vm6, %v3726_v62, %v3728_v3  ;;  %v3760_v21 = vsel %vm793_vm6, %v3728_v3, %v3730_v47 }
 0x602   : > { %v9862_v38 = vmax.f32 %v9737_v10, %v3759_v20  ;;  %v9864_v45 = vmax.f32 %v3683_v28, %v3760_v21  ;;  %3825 = vrot.lane.b32.xlu0 %v9846_v53, %s7906_s6  ;;  %3929 = vrot.lane.b32.xlu1 %v9846_v53, %s7920_s30 }
 0x604   : > { %v3736_v4 = vpop.permute.xlu1 %3735 }
 0x605   : > { %v3763_v15 = vsel %vm793_vm6, %v3734_v61, %v3736_v4  ;;  %v3764_v39 = vsel %vm793_vm6, %v3736_v4, %v3738_v17 }
 0x606   : > { %v9873_v42 = vmax.f32 %v9749_v36, %v3763_v15  ;;  %v9876_v10 = vmax.f32 %v9782_v27, %v3764_v39  ;;  %4018 = vrot.lane.b32.xlu0 %v9843_v58, %s7918_s28  ;;  %3847 = vrot.lane.b32.xlu1 %v9843_v58, %s7916_s26 }
 0x60a   : > { %4102 = vrot.lane.b32.xlu0 %v9843_v58, %s7906_s6  ;;  %3931 = vrot.lane.b32.xlu1 %v9843_v58, %s7920_s30 }
 0x60e   : > { %3849 = vrot.lane.b32.xlu0 %v9862_v38, %s7916_s26  ;;  %4190 = vrot.lane.b32.xlu1 %v9843_v58, %s7921_s5 }
 0x612   : > { %3933 = vrot.lane.b32.xlu0 %v9862_v38, %s7920_s30  ;;  %4014 = vrot.lane.b32.xlu1 %v9843_v58, %s7906_s6 }
 0x616   : > { %4104 = vrot.lane.b32.xlu0 %v9862_v38, %s7906_s6  ;;  %4020 = vrot.lane.b32.xlu1 %v9862_v38, %s7918_s28 }
 0x618   : > { %v3740_v36 = vpop.permute.xlu0 %3739 }
 0x619   : > { %v3765_v40 = vsel %vm793_vm6, %v3738_v17, %v3740_v36 }
 0x61a   : > { %4192 = vrot.lane.b32.xlu0 %v9862_v38, %s7921_s5  ;;  %4370 = vrot.lane.b32.xlu1 %v9862_v38, %s7922_s7  ;;  %v9904_v7 = vmax.f32 %v9763_v12, %v3765_v40 }
 0x61c   : > { %3816 = vst [vmem:[#allocation2 + $0x40] sm:$0xff] %v9904_v7  ;;  %v3742_v23 = vpop.permute.xlu0 %3741 }
 0x61d   : > { %v3766_v46 = vsel %vm793_vm6, %v3740_v36, %v3742_v23 }
 0x61e   : > { %4282 = vrot.lane.b32.xlu0 %v9862_v38, %s7923_s8  ;;  %4458 = vrot.lane.b32.xlu1 %v9862_v38, %s7924_s9  ;;  %v9913_v34 = vmax.f32 %v9789_v51, %v3766_v46 }
 0x620   : > { %3817 = vst [vmem:[#allocation2 + $0x48] sm:$0xff] %v9913_v34 }
 0x622   : > { %4186 = vrot.lane.b32.xlu0 %v9862_v38, %s7906_s6  ;;  %4106 = vrot.lane.b32.xlu1 %v9864_v45, %s7906_s6 }
 0x626   : > { %4194 = vrot.lane.b32.xlu1 %v9864_v45, %s7921_s5  ;;  %4022 = vrot.lane.b32.xlu0 %v9864_v45, %s7918_s28 }
 0x62a   : > { %4284 = vrot.lane.b32.xlu0 %v9864_v45, %s7923_s8  ;;  %4286 = vrot.lane.b32.xlu1 %v9830_v31, %s7923_s8 }
 0x62e   : > { %4372 = vrot.lane.b32.xlu0 %v9864_v45, %s7922_s7  ;;  %4374 = vrot.lane.b32.xlu1 %v9830_v31, %s7922_s7  ;;  %v3744_v12 = vpop.permute.xlu1 %3743 }
 0x62f   : > { %v3767_v37 = vsel %vm793_vm6, %v3742_v23, %v3744_v12  ;;  %v3746_v28 = vpop.permute.xlu0 %3745 }
 0x630   : > { %v9934_v13 = vmax.f32 %v9796_v1, %v3767_v37  ;;  %v3768_v27 = vsel %vm793_vm6, %v3744_v12, %v3746_v28 }
 0x631   : > { %v9938_v57 = vmax.f32 %v9803_v8, %v3768_v27 }
 0x632   : > { %3851 = vrot.lane.b32.xlu0 %v9864_v45, %s7916_s26  ;;  %3853 = vrot.lane.b32.xlu1 %v9830_v31, %s7916_s26  ;;  %3818 = vst [vmem:[#allocation2 + $0x50] sm:$0xff] %v9934_v13 }
 0x633   : > { %3819 = vst [vmem:[#allocation2 + $0x58] sm:$0xff] %v9938_v57 }
 0x636   : > { %3937 = vrot.lane.b32.xlu0 %v9830_v31, %s7920_s30  ;;  %3935 = vrot.lane.b32.xlu1 %v9864_v45, %s7920_s30 }
 0x63a   : > { %4462 = vrot.lane.b32.xlu0 %v9830_v31, %s7924_s9  ;;  %4024 = vrot.lane.b32.xlu1 %v9830_v31, %s7918_s28 }
 0x63e   : > { %4108 = vrot.lane.b32.xlu0 %v9830_v31, %s7906_s6  ;;  %4460 = vrot.lane.b32.xlu1 %v9864_v45, %s7924_s9 }
 0x642   : > { %4196 = vrot.lane.b32.xlu0 %v9830_v31, %s7921_s5  ;;  %4278 = vrot.lane.b32.xlu1 %v9864_v45, %s7906_s6 }
 0x646   : > { %3855 = vrot.lane.b32.xlu1 %v9833_v6, %s7916_s26  ;;  %4026 = vrot.lane.b32.xlu0 %v9833_v6, %s7918_s28 }
 0x64a   : > { %4110 = vrot.lane.b32.xlu1 %v9833_v6, %s7906_s6  ;;  %3939 = vrot.lane.b32.xlu0 %v9833_v6, %s7920_s30 }
 0x64e   : > { %4198 = vrot.lane.b32.xlu1 %v9833_v6, %s7921_s5  ;;  %3857 = vrot.lane.b32.xlu0 %v9873_v42, %s7916_s26  ;;  %v3748_v50 = vpop.permute.xlu1 %3747 }
 0x64f   : > { %v3769_v41 = vsel %vm793_vm6, %v3746_v28, %v3748_v50 }
 0x650   : > { %v9976_v51 = vmax.f32 %v9808_v55, %v3769_v41 }
 0x652   : > { %4288 = vrot.lane.b32.xlu1 %v9833_v6, %s7923_s8  ;;  %4028 = vrot.lane.b32.xlu0 %v9873_v42, %s7918_s28  ;;  %3820 = vst [vmem:[#allocation2 + $0x60] sm:$0xff] %v9976_v51  ;;  %v3750_v16 = vpop.permute.xlu1 %3749 }
 0x653   : > { %v3770_v1 = vsel %vm793_vm6, %v3748_v50, %v3750_v16 }
 0x654   : > { %v9985_v26 = vmax.f32 %v9817_v49, %v3770_v1 }
 0x656   : > { %4376 = vrot.lane.b32.xlu1 %v9833_v6, %s7922_s7  ;;  %4290 = vrot.lane.b32.xlu0 %v9873_v42, %s7923_s8  ;;  %3821 = vst [vmem:[#allocation2 + $0x68] sm:$0xff] %v9985_v26 }
 0x65a   : > { %4464 = vrot.lane.b32.xlu1 %v9833_v6, %s7924_s9  ;;  %4378 = vrot.lane.b32.xlu0 %v9873_v42, %s7922_s7 }
 0x65e   : > { %3941 = vrot.lane.b32.xlu1 %v9873_v42, %s7920_s30  ;;  %4466 = vrot.lane.b32.xlu0 %v9873_v42, %s7924_s9 }
 0x662   : > { %4112 = vrot.lane.b32.xlu1 %v9873_v42, %s7906_s6  ;;  %4114 = vrot.lane.b32.xlu0 %v9876_v10, %s7906_s6  ;;  %v3752_v24 = vpop.permute.xlu0 %3751 }
 0x663   : > { %v3771_v29 = vsel %vm793_vm6, %v3750_v16, %v3752_v24 }
 0x664   : > { %v10006_v8 = vmax.f32 %v9824_v63, %v3771_v29 }
 0x666   : > { %3822 = vst [vmem:[#allocation2 + $0x70] sm:$0xff] %v10006_v8  ;;  %4200 = vrot.lane.b32.xlu1 %v9873_v42, %s7921_s5  ;;  %4202 = vrot.lane.b32.xlu0 %v9876_v10, %s7921_s5 }
 0x66a   : > { %4030 = vrot.lane.b32.xlu1 %v9876_v10, %s7918_s28  ;;  %4294 = vrot.lane.b32.xlu0 %v9904_v7, %s7923_s8 }
 0x66c   : > { %v3754_v30 = vpop.permute.xlu0 %3753 }
 0x66d   : > { %v3772_v55 = vsel %vm793_vm6, %v3752_v24, %v3754_v30 }
 0x66e   : > { %v10019_v32 = vmax.f32 %v9838_v35, %v3772_v55  ;;  %4292 = vrot.lane.b32.xlu1 %v9876_v10, %s7923_s8  ;;  %4382 = vrot.lane.b32.xlu0 %v9904_v7, %s7922_s7 }
 0x670   : > { %3823 = vst [vmem:[#allocation2 + $0x78] sm:$0xff] %v10019_v32  ;;  %v3756_v54 = vpop.permute.xlu1 %3755  ;;  %v3846_v60 = vpop.permute.xlu0 %3845 }
 0x671   : > { %v3773_v49 = vsel %vm793_vm6, %v3754_v30, %v3756_v54 }
 0x672   : > { %v10028_v48 = vmax.f32 %v9850_v18, %v3773_v49  ;;  %4380 = vrot.lane.b32.xlu1 %v9876_v10, %s7922_s7  ;;  %3861 = vrot.lane.b32.xlu0 %v9904_v7, %s7916_s26 }
 0x674   : > { %3824 = vst.msk [vmem:[#allocation2 + $0x80] sm:$0xff] %vm305_vm0, %v10028_v48  ;;  %v3930_v62 = vpop.permute.xlu1 %3929  ;;  %v10036_v63 = vpop.permute.xlu0 %3825 }
 0x676   : > { %3859 = vrot.lane.b32.xlu1 %v9876_v10, %s7916_s26  ;;  %3945 = vrot.lane.b32.xlu0 %v9904_v7, %s7920_s30 }
 0x678   : > { %v3848_v47 = vpop.permute.xlu1 %3847  ;;  %v4019_v22 = vpop.permute.xlu0 %4018 }
 0x679   : > { %v3879_v0 = vsel %vm2203_vm12, %v3846_v60, %v3848_v47 }
 0x67a   : > { %3943 = vrot.lane.b32.xlu1 %v9876_v10, %s7920_s30  ;;  %4470 = vrot.lane.b32.xlu0 %v9904_v7, %s7924_s9  ;;  %v7323_v59 = vpack.c.bf16 %v3879_v0, %v9846_v53 }
 0x67c   : > { %v3932_v61 = vpop.permute.xlu1 %3931  ;;  %v4103_v52 = vpop.permute.xlu0 %4102 }
 0x67d   : > { %v3964_v5 = vsel %vm3963_vm15, %v3930_v62, %v3932_v61 }
 0x67e   : > { %4468 = vrot.lane.b32.xlu1 %v9876_v10, %s7924_s9  ;;  %4034 = vrot.lane.b32.xlu0 %v9913_v34, %s7918_s28 }
 0x680   : > { %v4191_v56 = vpop.permute.xlu1 %4190  ;;  %v10052_v35 = vpop.permute.xlu0 %3849 }
 0x681   : > { %v3880_v44 = vsel %vm2203_vm12, %v3848_v47, %v10052_v35 }
 0x682   : > { %4032 = vrot.lane.b32.xlu1 %v9904_v7, %s7918_s28  ;;  %4118 = vrot.lane.b32.xlu0 %v9913_v34, %s7906_s6  ;;  %v7321_v43 = vpack.c.bf16 %v3880_v44, %v9843_v58 }
 0x684   : > { %v10062_v14 = vpop.permute.xlu1 %4014  ;;  %v10064_v18 = vpop.permute.xlu0 %3933  ;;  %7322 = vmatprep.subr.bf16.mxu0 %v7321_v43 }
 0x685   : > { %v3965_v33 = vsel %vm3963_vm15, %v3932_v61, %v10064_v18  ;;  %7324 = vmatpush1.bf16.msra.mxu0 %v7323_v59 }
 0x686   : > { %4116 = vrot.lane.b32.xlu1 %v9904_v7, %s7906_s6  ;;  %4206 = vrot.lane.b32.xlu0 %v9913_v34, %s7921_s5 }
 0x688   : > { %v4021_v19 = vpop.permute.xlu1 %4020  ;;  %v4105_v2 = vpop.permute.xlu0 %4104 }
 0x689   : > { %v4052_v58 = vsel %vm1181_vm9, %v4019_v22, %v4021_v19  ;;  %v4136_v53 = vsel %vm305_vm0, %v4103_v52, %v4105_v2 }
 0x68a   : > { %4204 = vrot.lane.b32.xlu1 %v9904_v7, %s7921_s5  ;;  %4296 = vrot.lane.b32.xlu0 %v9913_v34, %s7923_s8  ;;  %v7327_v12 = vpack.c.bf16 %v4052_v58, %v3964_v5 }
 0x68c   : > { %v4371_v25 = vpop.permute.xlu1 %4370  ;;  %v4193_v3 = vpop.permute.xlu0 %4192 }
 0x68d   : > { %v4227_v20 = vsel %vm4226_vm1, %v4191_v56, %v4193_v3 }
 0x68e   : > { %4298 = vrot.lane.b32.xlu1 %v9934_v13, %s7923_s8  ;;  %4384 = vrot.lane.b32.xlu0 %v9913_v34, %s7922_s7  ;;  %v7331_v16 = vpack.c.bf16 %v4227_v20, %v4136_v53 }
 0x690   : > { %v10083_v21 = vpop.permute.xlu1 %4458  ;;  %v4283_v17 = vpop.permute.xlu0 %4282 }
 0x692   : > { %4386 = vrot.lane.b32.xlu1 %v9934_v13, %s7922_s7  ;;  %4474 = vrot.lane.b32.xlu0 %v9934_v13, %s7924_s9 }
 0x694   : > { %v10089_v4 = vpop.permute.xlu1 %4106  ;;  %v10091_v15 = vpop.permute.xlu0 %4186 }
 0x695   : > { %v4137_v39 = vsel %vm305_vm0, %v4105_v2, %v10089_v4 }
 0x696   : > { %4472 = vrot.lane.b32.xlu1 %v9913_v34, %s7924_s9  ;;  %3865 = vrot.lane.b32.xlu0 %v9934_v13, %s7916_s26 }
 0x698   : > { %v10099_v36 = vpop.permute.xlu1 %4194  ;;  %v4023_v40 = vpop.permute.xlu0 %4022 }
 0x699   : > { %v4228_v7 = vsel %vm4226_vm1, %v4193_v3, %v10099_v36  ;;  %v4053_v23 = vsel %vm1181_vm9, %v4021_v19, %v4023_v40 }
 0x69a   : > { %3863 = vrot.lane.b32.xlu1 %v9913_v34, %s7916_s26  ;;  %3949 = vrot.lane.b32.xlu0 %v9934_v13, %s7920_s30  ;;  %v7325_v46 = vpack.c.bf16 %v4053_v23, %v3965_v33  ;;  %v7329_v41 = vpack.c.bf16 %v4228_v7, %v4137_v39 }
 0x69c   : > { %v10108_v37 = vpop.permute.xlu1 %4286  ;;  %v4285_v28 = vpop.permute.xlu0 %4284  ;;  %7326 = vmatprep.subr.bf16.mxu0 %v7325_v46 }
 0x69d   : > { %v4319_v27 = vsel %vm4318_vm2, %v4283_v17, %v4285_v28  ;;  %v4320_v50 = vsel %vm4318_vm2, %v4285_v28, %v10108_v37  ;;  %7328 = vmatpush1.bf16.msra.mxu0 %v7327_v12 }
 0x69e   : > { %3947 = vrot.lane.b32.xlu1 %v9913_v34, %s7920_s30  ;;  %4038 = vrot.lane.b32.xlu0 %v9938_v57, %s7918_s28 }
 0x69f   : > { %7330 = vmatprep.subr.bf16.mxu0 %v7329_v41 }
 0x6a0   : > { %v10117_v1 = vpop.permute.xlu1 %4374  ;;  %v4373_v24 = vpop.permute.xlu0 %4372 }
 0x6a1   : > { %v4407_v29 = vsel %vm4406_vm3, %v4371_v25, %v4373_v24  ;;  %v4408_v30 = vsel %vm4406_vm3, %v4373_v24, %v10117_v1  ;;  %7332 = vmatpush1.bf16.msra.mxu0 %v7331_v16 }
 0x6a2   : > { %4036 = vrot.lane.b32.xlu1 %v9934_v13, %s7918_s28  ;;  %4122 = vrot.lane.b32.xlu0 %v9938_v57, %s7906_s6  ;;  %v7333_v34 = vpack.c.bf16 %v4408_v30, %v4320_v50  ;;  %v7335_v55 = vpack.c.bf16 %v4407_v29, %v4319_v27 }
 0x6a4   : > { %v3854_v54 = vpop.permute.xlu1 %3853  ;;  %v3852_v60 = vpop.permute.xlu0 %3851  ;;  %7334 = vmatprep.subr.bf16.mxu0 %v7333_v34 }
 0x6a5   : > { %v3881_v49 = vsel %vm2203_vm12, %v10052_v35, %v3852_v60  ;;  %v3882_v62 = vsel %vm2203_vm12, %v3852_v60, %v3854_v54  ;;  %7336 = vmatpush1.bf16.msra.mxu0 %v7335_v55 }
 0x6a6   : > { %4120 = vrot.lane.b32.xlu1 %v9934_v13, %s7906_s6  ;;  %4210 = vrot.lane.b32.xlu0 %v9938_v57, %s7921_s5  ;;  %v7337_v47 = vpack.c.bf16 %v3882_v62, %v9864_v45  ;;  %v7339_v22 = vpack.c.bf16 %v3881_v49, %v9862_v38 }
 0x6a8   : > { %v3936_v0 = vpop.permute.xlu1 %3935  ;;  %v3938_v61 = vpop.permute.xlu0 %3937  ;;  %7338 = vmatprep.subr.bf16.mxu1 %v7337_v47 }
 0x6a9   : > { %v3966_v52 = vsel %vm3963_vm15, %v10064_v18, %v3936_v0  ;;  %v3967_v5 = vsel %vm3963_vm15, %v3936_v0, %v3938_v61  ;;  %7340 = vmatpush1.bf16.msra.mxu1 %v7339_v22  ;;  %v10160_v18 = vld [vmem:[%s8286_s22 + $0x10] sm:$0xff] }
 0x6aa   : > { %4208 = vrot.lane.b32.xlu1 %v9934_v13, %s7921_s5  ;;  %4476 = vrot.lane.b32.xlu0 %v9938_v57, %s7924_s9 }
 0x6ac   : > { %v4025_v56 = vpop.permute.xlu1 %4024  ;;  %v10142_v45 = vpop.permute.xlu0 %4462 }
 0x6ad   : > { %v4054_v38 = vsel %vm1181_vm9, %v4023_v40, %v4025_v56 }
 0x6ae   : > { %4300 = vrot.lane.b32.xlu1 %v9938_v57, %s7923_s8  ;;  %4302 = vrot.lane.b32.xlu0 %v9976_v51, %s7923_s8 }
 0x6b0   : > { %v4461_v35 = vpop.permute.xlu1 %4460  ;;  %v4109_v44 = vpop.permute.xlu0 %4108 }
 0x6b1   : > { %v4495_v13 = vsel %vm4494_vm4, %v10083_v21, %v4461_v35  ;;  %v4496_v43 = vsel %vm4494_vm4, %v4461_v35, %v10142_v45  ;;  %v4138_v59 = vsel %vm305_vm0, %v10089_v4, %v4109_v44  ;;  %v7343_v21 = vpack.c.bf16 %v4054_v38, %v3966_v52 }
 0x6b2   : > { %4388 = vrot.lane.b32.xlu1 %v9938_v57, %s7922_s7  ;;  %4390 = vrot.lane.b32.xlu0 %v9976_v51, %s7922_s7 }
 0x6b3   : > { %4727 = vmatprep.subr.mxu0 %v4496_v43 }
 0x6b4   : > { %v10162_v33 = vpop.permute.xlu1 %4278  ;;  %v4197_v19 = vpop.permute.xlu0 %4196  ;;  %4728 = vmatpush1.msra.mxu0 %v4495_v13 }
 0x6b5   : > { %v4229_v2 = vsel %vm4226_vm1, %v10099_v36, %v4197_v19  ;;  %6624 = vmatmul.mubr.msk.f32.vlgmr.msra.gmra.mrb[18].mxu0 %vm1181_vm9, %v10160_v18 }
 0x6b6   : > { %3867 = vrot.lane.b32.xlu1 %v9938_v57, %s7916_s26  ;;  %3869 = vrot.lane.b32.xlu0 %v9976_v51, %s7916_s26  ;;  %v7347_v28 = vpack.c.bf16 %v4229_v2, %v4138_v59 }
 0x6b7   : > { %4917 = vmatprep.mubr.f32.mxu0 %v7911_v9 }
 0x6b8   : > { %v3856_v58 = vpop.permute.xlu1 %3855  ;;  %v4027_v53 = vpop.permute.xlu0 %4026 }
 0x6b9   : > { %v3883_v25 = vsel %vm2203_vm12, %v3854_v54, %v3856_v58  ;;  %v4055_v3 = vsel %vm1181_vm9, %v4025_v56, %v4027_v53 }
 0x6ba   : > { %3951 = vrot.lane.b32.xlu1 %v9938_v57, %s7920_s30  ;;  %3953 = vrot.lane.b32.xlu0 %v9976_v51, %s7920_s30  ;;  %v7341_v20 = vpack.c.bf16 %v4055_v3, %v3967_v5  ;;  %v7355_v27 = vpack.c.bf16 %v3883_v25, %v9830_v31 }
 0x6bc   : > { %v4111_v17 = vpop.permute.xlu1 %4110  ;;  %v3940_v4 = vpop.permute.xlu0 %3939  ;;  %7342 = vmatprep.subr.bf16.mxu1 %v7341_v20 }
 0x6bd   : > { %v4139_v39 = vsel %vm305_vm0, %v4109_v44, %v4111_v17  ;;  %v10181_v36 = vsel %vm3963_vm15, %v3938_v61, %v3940_v4  ;;  %7344 = vmatpush1.bf16.msra.mxu1 %v7343_v21 }
 0x6be   : > { %4040 = vrot.lane.b32.xlu1 %v9976_v51, %s7918_s28  ;;  %4124 = vrot.lane.b32.xlu0 %v9976_v51, %s7906_s6 }
 0x6c0   : > { %v4199_v57 = vpop.permute.xlu1 %4198  ;;  %v10187_v40 = vpop.permute.xlu0 %3857 }
 0x6c1   : > { %v4230_v7 = vsel %vm4226_vm1, %v4197_v19, %v4199_v57  ;;  %v3884_v23 = vsel %vm2203_vm12, %v3856_v58, %v10187_v40 }
 0x6c2   : > { %4478 = vrot.lane.b32.xlu1 %v9976_v51, %s7924_s9  ;;  %4212 = vrot.lane.b32.xlu0 %v9976_v51, %s7921_s5  ;;  %v7345_v46 = vpack.c.bf16 %v4230_v7, %v4139_v39  ;;  %v7353_v12 = vpack.c.bf16 %v3884_v23, %v9833_v6 }
 0x6c4   : > { %v4289_v50 = vpop.permute.xlu1 %4288  ;;  %v4029_v41 = vpop.permute.xlu0 %4028  ;;  %7346 = vmatprep.subr.bf16.mxu1 %v7345_v46  ;;  %7354 = vmatprep.subr.bf16.mxu0 %v7353_v12 }
 0x6c5   : > { %v4321_v16 = vsel %vm4318_vm2, %v10108_v37, %v4289_v50  ;;  %v4056_v24 = vsel %vm1181_vm9, %v4027_v53, %v4029_v41  ;;  %7348 = vmatpush1.bf16.msra.mxu1 %v7347_v28  ;;  %7356 = vmatpush1.bf16.msra.mxu0 %v7355_v27 }
 0x6c6   : > { %4126 = vrot.lane.b32.xlu1 %v9985_v26, %s7906_s6  ;;  %4042 = vrot.lane.b32.xlu0 %v9985_v26, %s7918_s28  ;;  %v7359_v59 = vpack.c.bf16 %v4056_v24, %v10181_v36 }
 0x6c8   : > { %v4377_v6 = vpop.permute.xlu1 %4376  ;;  %v4291_v51 = vpop.permute.xlu0 %4290 }
 0x6c9   : > { %v4409_v31 = vsel %vm4406_vm3, %v10117_v1, %v4377_v6  ;;  %v4322_v29 = vsel %vm4318_vm2, %v4289_v50, %v4291_v51 }
 0x6ca   : > { %4214 = vrot.lane.b32.xlu1 %v9985_v26, %s7921_s5  ;;  %4304 = vrot.lane.b32.xlu0 %v9985_v26, %s7923_s8  ;;  %v7351_v54 = vpack.c.bf16 %v4409_v31, %v4321_v16 }
 0x6cc   : > { %v4465_v37 = vpop.permute.xlu1 %4464  ;;  %v4379_v30 = vpop.permute.xlu0 %4378 }
 0x6cd   : > { %v4497_v34 = vsel %vm4494_vm4, %v10142_v45, %v4465_v37  ;;  %v4410_v55 = vsel %vm4406_vm3, %v4377_v6, %v4379_v30 }
 0x6ce   : > { %4306 = vrot.lane.b32.xlu1 %v10006_v8, %s7923_s8  ;;  %4392 = vrot.lane.b32.xlu0 %v9985_v26, %s7922_s7  ;;  %v7349_v1 = vpack.c.bf16 %v4410_v55, %v4322_v29  ;;  %v3827_v55 = vsel %vm307_vm10, %v10036_v63, %v10028_v48 }
 0x6d0   : > { %v10219_v60 = vpop.permute.xlu1 %3941  ;;  %v10221_v49 = vpop.permute.xlu0 %4466  ;;  %7350 = vmatprep.subr.bf16.mxu1 %v7349_v1 }
 0x6d1   : > { %v3969_v62 = vsel %vm3963_vm15, %v3940_v4, %v10219_v60  ;;  %v4498_v47 = vsel %vm4494_vm4, %v4465_v37, %v10221_v49  ;;  %7352 = vmatpush1.bf16.msra.mxu1 %v7351_v54 }
 0x6d2   : > { %4394 = vrot.lane.b32.xlu1 %v10006_v8, %s7922_s7  ;;  %4480 = vrot.lane.b32.xlu0 %v9985_v26, %s7924_s9 }
 0x6d3   : > { %4798 = vmatprep.subr.mxu1 %v4498_v47 }
 0x6d4   : > { %v4113_v22 = vpop.permute.xlu1 %4112  ;;  %v10231_v0 = vpop.permute.xlu0 %4114 }
 0x6d5   : > { %v4140_v61 = vsel %vm305_vm0, %v4111_v17, %v4113_v22  ;;  %v4141_v52 = vsel %vm305_vm0, %v4113_v22, %v10231_v0  ;;  %4799 = vmatpush1.msra.mxu1 %v4497_v34 }
 0x6d6   : > { %4482 = vrot.lane.b32.xlu1 %v10006_v8, %s7924_s9  ;;  %3871 = vrot.lane.b32.xlu0 %v9985_v26, %s7916_s26 }
 0x6d7   : > { %6625 = vmatmul.mubr.msk.f32.vlgmr.msra.gmra.mrb[18].mxu1 %vm1181_vm9, %v10160_v18 }
 0x6d8   : > { %v4201_v5 = vpop.permute.xlu1 %4200  ;;  %v10242_v56 = vpop.permute.xlu0 %4202  ;;  %4988 = vmatprep.mubr.f32.mxu1 %v7911_v9 }
 0x6d9   : > { %v4231_v45 = vsel %vm4226_vm1, %v4199_v57, %v4201_v5  ;;  %v4232_v38 = vsel %vm4226_vm1, %v4201_v5, %v10242_v56 }
 0x6da   : > { %3873 = vrot.lane.b32.xlu1 %v10006_v8, %s7916_s26  ;;  %3955 = vrot.lane.b32.xlu0 %v9985_v26, %s7920_s30  ;;  %v7361_v53 = vpack.c.bf16 %v4232_v38, %v4141_v52  ;;  %v7363_v25 = vpack.c.bf16 %v4231_v45, %v4140_v61 }
 0x6dc   : > { %v4031_v35 = vpop.permute.xlu1 %4030  ;;  %v10252_v44 = vpop.permute.xlu0 %4294 }
 0x6dd   : > { %v4057_v13 = vsel %vm1181_vm9, %v4029_v41, %v4031_v35 }
 0x6de   : > { %3957 = vrot.lane.b32.xlu1 %v10006_v8, %s7920_s30  ;;  %4044 = vrot.lane.b32.xlu0 %v10006_v8, %s7918_s28  ;;  %v7357_v43 = vpack.c.bf16 %v4057_v13, %v3969_v62 }
 0x6e0   : > { %v4293_v19 = vpop.permute.xlu1 %4292  ;;  %v10260_v2 = vpop.permute.xlu0 %4382  ;;  %7358 = vmatprep.subr.bf16.mxu0 %v7357_v43 }
 0x6e1   : > { %v4323_v26 = vsel %vm4318_vm2, %v4291_v51, %v4293_v19  ;;  %v4324_v58 = vsel %vm4318_vm2, %v4293_v19, %v10252_v44  ;;  %7360 = vmatpush1.bf16.msra.mxu0 %v7359_v59 }
 0x6e2   : > { %4046 = vrot.lane.b32.xlu1 %v10019_v32, %s7918_s28  ;;  %4128 = vrot.lane.b32.xlu0 %v10006_v8, %s7906_s6 }
 0x6e3   : > { %7362 = vmatprep.subr.bf16.mxu0 %v7361_v53  ;;  %v4188_v53 = vsel %vm307_vm10, %v10091_v15, %v10062_v14 }
 0x6e4   : > { %v4381_v3 = vpop.permute.xlu1 %4380  ;;  %v10269_v20 = vpop.permute.xlu0 %3861 }
 0x6e5   : > { %v4411_v21 = vsel %vm4406_vm3, %v4379_v30, %v4381_v3  ;;  %v4412_v17 = vsel %vm4406_vm3, %v4381_v3, %v10260_v2  ;;  %7364 = vmatpush1.bf16.msra.mxu0 %v7363_v25  ;;  %v4557_v25 = vld [vmem:[#allocation2 + $0x48] sm:$0xff]  ;;  %v4556_v3 = vld [vmem:[#allocation2 + $0x40] sm:$0xff] }
 0x6e6   : > { %4130 = vrot.lane.b32.xlu1 %v10019_v32, %s7906_s6  ;;  %4216 = vrot.lane.b32.xlu0 %v10006_v8, %s7921_s5  ;;  %v7365_v4 = vpack.c.bf16 %v4412_v17, %v4324_v58  ;;  %v7367_v39 = vpack.c.bf16 %v4411_v21, %v4323_v26 }
 0x6e8   : > { %v3860_v36 = vpop.permute.xlu1 %3859  ;;  %v10278_v57 = vpop.permute.xlu0 %3945  ;;  %7366 = vmatprep.subr.bf16.mxu0 %v7365_v4 }
 0x6e9   : > { %v3885_v7 = vsel %vm2203_vm12, %v10187_v40, %v3860_v36  ;;  %v3886_v23 = vsel %vm2203_vm12, %v3860_v36, %v10269_v20  ;;  %7368 = vmatpush1.bf16.msra.mxu0 %v7367_v39  ;;  %v10295_v40 = vsel %vm307_vm10, %v10062_v14, %v10036_v63 }
 0x6ea   : > { %4218 = vrot.lane.b32.xlu1 %v10019_v32, %s7921_s5  ;;  %4308 = vrot.lane.b32.xlu0 %v10019_v32, %s7923_s8  ;;  %v7369_v8 = vpack.c.bf16 %v3886_v23, %v9876_v10  ;;  %v7371_v46 = vpack.c.bf16 %v3885_v7, %v9873_v42 }
 0x6ec   : > { %v3944_v12 = vpop.permute.xlu1 %3943  ;;  %v10290_v28 = vpop.permute.xlu0 %4470  ;;  %7370 = vmatprep.subr.bf16.mxu1 %v7369_v8 }
 0x6ed   : > { %v3970_v27 = vsel %vm3963_vm15, %v10219_v60, %v3944_v12  ;;  %v3971_v50 = vsel %vm3963_vm15, %v3944_v12, %v10278_v57  ;;  %7372 = vmatpush1.bf16.msra.mxu1 %v7371_v46 }
 0x6ee   : > { %4050 = vrot.lane.b32.xlu1 %v10295_v40, %s7918_s28  ;;  %4396 = vrot.lane.b32.xlu0 %v10019_v32, %s7922_s7 }
 0x6f0   : > { %v4469_v42 = vpop.permute.xlu1 %4468  ;;  %v10305_v10 = vpop.permute.xlu0 %4034 }
 0x6f1   : > { %v4499_v41 = vsel %vm4494_vm4, %v10221_v49, %v4469_v42  ;;  %v4500_v16 = vsel %vm4494_vm4, %v4469_v42, %v10290_v28  ;;  %v6623_v42 = vld [vmem:[%s8531_s25 + $0x10] sm:$0xff] }
 0x6f2   : > { %4134 = vrot.lane.b32.xlu1 %v10295_v40, %s7906_s6  ;;  %3875 = vrot.lane.b32.xlu0 %v10019_v32, %s7916_s26 }
 0x6f3   : > { %4869 = vmatprep.subr.mxu0 %v4500_v16 }
 0x6f4   : > { %v4033_v24 = vpop.permute.xlu1 %4032  ;;  %v10315_v6 = vpop.permute.xlu0 %4118  ;;  %4870 = vmatpush1.msra.mxu0 %v4499_v41 }
 0x6f5   : > { %v4058_v51 = vsel %vm1181_vm9, %v4031_v35, %v4033_v24  ;;  %v4059_v31 = vsel %vm1181_vm9, %v4033_v24, %v10305_v10  ;;  %6626 = vmatmul.mubr.msk.f32.vlgmr.msra.gmra.mrb[20].mxu0 %vm1181_vm9, %v10160_v18 }
 0x6f6   : > { %4222 = vrot.lane.b32.xlu1 %v10295_v40, %s7921_s5  ;;  %3959 = vrot.lane.b32.xlu0 %v10019_v32, %s7920_s30  ;;  %v7373_v29 = vpack.c.bf16 %v4059_v31, %v3971_v50  ;;  %v7375_v37 = vpack.c.bf16 %v4058_v51, %v3970_v27 }
 0x6f7   : > { %5059 = vmatprep.mubr.f32.mxu0 %v7911_v9 }
 0x6f8   : > { %v4117_v30 = vpop.permute.xlu1 %4116  ;;  %v10327_v34 = vpop.permute.xlu0 %4206  ;;  %7374 = vmatprep.subr.bf16.mxu1 %v7373_v29 }
 0x6f9   : > { %v4142_v1 = vsel %vm305_vm0, %v10231_v0, %v4117_v30  ;;  %v4143_v54 = vsel %vm305_vm0, %v4117_v30, %v10315_v6  ;;  %7376 = vmatpush1.bf16.msra.mxu1 %v7375_v37 }
 0x6fa   : > { %4310 = vrot.lane.b32.xlu1 %v3827_v55, %s7923_s8  ;;  %4484 = vrot.lane.b32.xlu0 %v10019_v32, %s7924_s9 }
 0x6fc   : > { %v4205_v60 = vpop.permute.xlu1 %4204  ;;  %v4297_v49 = vpop.permute.xlu0 %4296 }
 0x6fd   : > { %v4233_v62 = vsel %vm4226_vm1, %v10242_v56, %v4205_v60  ;;  %v4234_v48 = vsel %vm4226_vm1, %v4205_v60, %v10327_v34  ;;  %v4325_v63 = vsel %vm4318_vm2, %v10252_v44, %v4297_v49 }
 0x6fe   : > { %4398 = vrot.lane.b32.xlu1 %v3827_v55, %s7922_s7  ;;  %4312 = vrot.lane.b32.xlu0 %v10295_v40, %s7923_s8  ;;  %v7377_v47 = vpack.c.bf16 %v4234_v48, %v4143_v54  ;;  %v7379_v22 = vpack.c.bf16 %v4233_v62, %v4142_v1 }
 0x700   : > { %v10348_v0 = vpop.permute.xlu1 %4298  ;;  %v4385_v32 = vpop.permute.xlu0 %4384  ;;  %7378 = vmatprep.subr.bf16.mxu1 %v7377_v47  ;;  %v4559_v47 = vld [vmem:[#allocation2 + $0x58] sm:$0xff] }
 0x701   : > { %v4326_v61 = vsel %vm4318_vm2, %v4297_v49, %v10348_v0  ;;  %v4413_v52 = vsel %vm4406_vm3, %v10260_v2, %v4385_v32  ;;  %7380 = vmatpush1.bf16.msra.mxu1 %v7379_v22  ;;  %v4558_v22 = vld [vmem:[#allocation2 + $0x50] sm:$0xff] }
 0x702   : > { %3877 = vrot.lane.b32.xlu1 %v3827_v55, %s7916_s26  ;;  %4048 = vrot.lane.b32.xlu0 %v3827_v55, %s7918_s28  ;;  %v7383_v35 = vpack.c.bf16 %v4413_v52, %v4325_v63 }
 0x704   : > { %v10356_v5 = vpop.permute.xlu1 %4386  ;;  %v4475_v56 = vpop.permute.xlu0 %4474 }
 0x705   : > { %v4414_v45 = vsel %vm4406_vm3, %v4385_v32, %v10356_v5 }
 0x706   : > { %3961 = vrot.lane.b32.xlu1 %v3827_v55, %s7920_s30  ;;  %4132 = vrot.lane.b32.xlu0 %v3827_v55, %s7906_s6  ;;  %v7381_v38 = vpack.c.bf16 %v4414_v45, %v4326_v61 }
 0x708   : > { %v4473_v44 = vpop.permute.xlu1 %4472  ;;  %v10362_v13 = vpop.permute.xlu0 %3865  ;;  %7382 = vmatprep.subr.bf16.mxu1 %v7381_v38 }
 0x709   : > { %v4501_v43 = vsel %vm4494_vm4, %v10290_v28, %v4473_v44  ;;  %v4502_v59 = vsel %vm4494_vm4, %v4473_v44, %v4475_v56  ;;  %7384 = vmatpush1.bf16.msra.mxu1 %v7383_v35 }
 0x70a   : > { %4486 = vrot.lane.b32.xlu1 %v3827_v55, %s7924_s9  ;;  %4220 = vrot.lane.b32.xlu0 %v3827_v55, %s7921_s5 }
 0x70b   : > { %4940 = vmatprep.subr.mxu1 %v4502_v59 }
 0x70c   : > { %v3864_v19 = vpop.permute.xlu1 %3863  ;;  %v10369_v2 = vpop.permute.xlu0 %3949 }
 0x70d   : > { %v3887_v26 = vsel %vm2203_vm12, %v10269_v20, %v3864_v19  ;;  %v3888_v58 = vsel %vm2203_vm12, %v3864_v19, %v10362_v13  ;;  %4941 = vmatpush1.msra.mxu1 %v4501_v43 }
 0x70e   : > { %4314 = vrot.lane.b32.xlu1 %v4188_v53, %s7923_s8  ;;  %4400 = vrot.lane.b32.xlu0 %v10295_v40, %s7922_s7  ;;  %v7385_v21 = vpack.c.bf16 %v3888_v58, %v4557_v25  ;;  %v7387_v17 = vpack.c.bf16 %v3887_v26, %v4556_v3 }
 0x70f   : > { %6627 = vmatmul.mubr.msk.f32.vlgmr.msra.gmra.mrb[20].mxu1 %vm1181_vm9, %v10160_v18 }
 0x710   : > { %v3948_v20 = vpop.permute.xlu1 %3947  ;;  %v10383_v4 = vpop.permute.xlu0 %4038  ;;  %7386 = vmatprep.subr.bf16.mxu0 %v7385_v21  ;;  %5130 = vmatprep.mubr.f32.mxu1 %v7911_v9 }
 0x711   : > { %v3972_v14 = vsel %vm3963_vm15, %v10278_v57, %v3948_v20  ;;  %v3973_v39 = vsel %vm3963_vm15, %v3948_v20, %v10369_v2  ;;  %7388 = vmatpush1.bf16.msra.mxu0 %v7387_v17 }
 0x712   : > { %4402 = vrot.lane.b32.xlu1 %v4188_v53, %s7922_s7  ;;  %4488 = vrot.lane.b32.xlu0 %v10295_v40, %s7924_s9  ;;  %v4280_v40 = vsel %vm307_vm10, %v10162_v33, %v10091_v15 }
 0x714   : > { %v4037_v36 = vpop.permute.xlu1 %4036  ;;  %v4123_v7 = vpop.permute.xlu0 %4122 }
 0x715   : > { %v4060_v23 = vsel %vm1181_vm9, %v10305_v10, %v4037_v36  ;;  %v4061_v8 = vsel %vm1181_vm9, %v4037_v36, %v10383_v4 }
 0x716   : > { %4490 = vrot.lane.b32.xlu1 %v4188_v53, %s7924_s9  ;;  %4224 = vrot.lane.b32.xlu0 %v4188_v53, %s7921_s5  ;;  %v7389_v57 = vpack.c.bf16 %v4061_v8, %v3973_v39  ;;  %v7391_v46 = vpack.c.bf16 %v4060_v23, %v3972_v14  ;;  %s7732_s5 = smul.u32 6, %s11672_s16 }
 0x718   : > { %v4121_v12 = vpop.permute.xlu1 %4120  ;;  %v4211_v28 = vpop.permute.xlu0 %4210  ;;  %7390 = vmatprep.subr.bf16.mxu0 %v7389_v57 }
 0x719   : > { %v4144_v27 = vsel %vm305_vm0, %v10315_v6, %v4121_v12  ;;  %v4145_v50 = vsel %vm305_vm0, %v4121_v12, %v4123_v7  ;;  %7392 = vmatpush1.bf16.msra.mxu0 %v7391_v46 }
 0x71a   : > { %4316 = vrot.lane.b32.xlu1 %v4280_v40, %s7923_s8  ;;  %4404 = vrot.lane.b32.xlu0 %v4280_v40, %s7922_s7 }
 0x71c   : > { %v4209_v10 = vpop.permute.xlu1 %4208  ;;  %v4477_v41 = vpop.permute.xlu0 %4476 }
 0x71d   : > { %v4235_v16 = vsel %vm4226_vm1, %v10327_v34, %v4209_v10  ;;  %v4236_v24 = vsel %vm4226_vm1, %v4209_v10, %v4211_v28  ;;  %v4503_v15 = vsel %vm4494_vm4, %v4475_v56, %v4477_v41 }
 0x71e   : > { %4492 = vrot.lane.b32.xlu1 %v4280_v40, %s7924_s9  ;;  %v7393_v33 = vpack.c.bf16 %v4236_v24, %v4145_v50  ;;  %v7395_v6 = vpack.c.bf16 %v4235_v16, %v4144_v27  ;;  %4705 = vperm.xlu0 %7796, %v6623_v42  }
 0x720   : > { %v4301_v51 = vpop.permute.xlu1 %4300  ;;  %v4303_v31 = vpop.permute.xlu0 %4302  ;;  %7394 = vmatprep.subr.bf16.mxu0 %v7393_v33 }
 0x721   : > { %v4327_v29 = vsel %vm4318_vm2, %v10348_v0, %v4301_v51  ;;  %v4328_v37 = vsel %vm4318_vm2, %v4301_v51, %v4303_v31  ;;  %7396 = vmatpush1.bf16.msra.mxu0 %v7395_v6  ;;  %v4561_v6 = vld [vmem:[#allocation2 + $0x68] sm:$0xff] }
 0x724   : > { %v4389_v30 = vpop.permute.xlu1 %4388  ;;  %v4391_v34 = vpop.permute.xlu0 %4390 }
 0x725   : > { %v4415_v55 = vsel %vm4406_vm3, %v10356_v5, %v4389_v30  ;;  %v4416_v1 = vsel %vm4406_vm3, %v4389_v30, %v4391_v34 }
 0x726   : > { %v7397_v54 = vpack.c.bf16 %v4416_v1, %v4328_v37  ;;  %v7399_v60 = vpack.c.bf16 %v4415_v55, %v4327_v29 }
 0x728   : > { %v3868_v49 = vpop.permute.xlu1 %3867  ;;  %v3870_v62 = vpop.permute.xlu0 %3869  ;;  %7398 = vmatprep.subr.bf16.mxu0 %v7397_v54 }
 0x729   : > { %v3889_v48 = vsel %vm2203_vm12, %v10362_v13, %v3868_v49  ;;  %v3890_v63 = vsel %vm2203_vm12, %v3868_v49, %v3870_v62  ;;  %7400 = vmatpush1.bf16.msra.mxu0 %v7399_v60 }
 0x72a   : > { %v7401_v0 = vpack.c.bf16 %v3890_v63, %v4559_v47  ;;  %v7403_v32 = vpack.c.bf16 %v3889_v48, %v4558_v22 }
 0x72c   : > { %v3952_v61 = vpop.permute.xlu1 %3951  ;;  %v3954_v52 = vpop.permute.xlu0 %3953  ;;  %7402 = vmatprep.subr.bf16.mxu1 %v7401_v0 }
 0x72d   : > { %v3974_v5 = vsel %vm3963_vm15, %v10369_v2, %v3952_v61  ;;  %v3975_v56 = vsel %vm3963_vm15, %v3952_v61, %v3954_v52  ;;  %7404 = vmatpush1.bf16.msra.mxu1 %v7403_v32 }
 0x730   : > { %v4041_v45 = vpop.permute.xlu1 %4040  ;;  %v4125_v38 = vpop.permute.xlu0 %4124 }
 0x731   : > { %v4062_v35 = vsel %vm1181_vm9, %v10383_v4, %v4041_v45  ;;  %v4146_v44 = vsel %vm305_vm0, %v4123_v7, %v4125_v38 }
 0x732   : > { %v7407_v3 = vpack.c.bf16 %v4062_v35, %v3974_v5 }
 0x734   : > { %v4479_v13 = vpop.permute.xlu1 %4478  ;;  %v4213_v43 = vpop.permute.xlu0 %4212 }
 0x735   : > { %v4504_v59 = vsel %vm4494_vm4, %v4477_v41, %v4479_v13  ;;  %v4237_v19 = vsel %vm4226_vm1, %v4211_v28, %v4213_v43 }
 0x736   : > { %5011 = vmatprep.subr.mxu0 %v4504_v59  ;;  %v7411_v39 = vpack.c.bf16 %v4237_v19, %v4146_v44 }
 0x737   : > { %5012 = vmatpush1.msra.mxu0 %v4503_v15 }
 0x738   : > { %v4127_v26 = vpop.permute.xlu1 %4126  ;;  %v4043_v2 = vpop.permute.xlu0 %4042  ;;  %6628 = vmatmul.mubr.msk.f32.vlgmr.msra.gmra.mrb[22].mxu0 %vm1181_vm9, %v10160_v18 }
 0x739   : > { %v4147_v58 = vsel %vm305_vm0, %v4125_v38, %v4127_v26  ;;  %v4063_v53 = vsel %vm1181_vm9, %v4041_v45, %v4043_v2  ;;  %5201 = vmatprep.mubr.f32.mxu0 %v7911_v9 }
 0x73a   : > { %v7405_v25 = vpack.c.bf16 %v4063_v53, %v3975_v56 }
 0x73c   : > { %v4215_v21 = vpop.permute.xlu1 %4214  ;;  %v4305_v17 = vpop.permute.xlu0 %4304  ;;  %7406 = vmatprep.subr.bf16.mxu1 %v7405_v25 }
 0x73d   : > { %v4238_v20 = vsel %vm4226_vm1, %v4213_v43, %v4215_v21  ;;  %v4329_v4 = vsel %vm4318_vm2, %v4303_v31, %v4305_v17  ;;  %7408 = vmatpush1.bf16.msra.mxu1 %v7407_v3  ;;  %v4560_v31 = vld [vmem:[#allocation2 + $0x60] sm:$0xff] }
 0x73e   : > { %v7409_v14 = vpack.c.bf16 %v4238_v20, %v4147_v58 }
 0x740   : > { %v4307_v36 = vpop.permute.xlu1 %4306  ;;  %v4393_v7 = vpop.permute.xlu0 %4392  ;;  %7410 = vmatprep.subr.bf16.mxu1 %v7409_v14 }
 0x741   : > { %v4330_v23 = vsel %vm4318_vm2, %v4305_v17, %v4307_v36  ;;  %v4417_v8 = vsel %vm4406_vm3, %v4391_v34, %v4393_v7  ;;  %7412 = vmatpush1.bf16.msra.mxu1 %v7411_v39 }
 0x742   : > { %v7415_v27 = vpack.c.bf16 %v4417_v8, %v4329_v4 }
 0x744   : > { %v4395_v57 = vpop.permute.xlu1 %4394  ;;  %v4481_v46 = vpop.permute.xlu0 %4480 }
 0x745   : > { %v4418_v12 = vsel %vm4406_vm3, %v4393_v7, %v4395_v57  ;;  %v4505_v28 = vsel %vm4494_vm4, %v4479_v13, %v4481_v46 }
 0x746   : > { %v7413_v40 = vpack.c.bf16 %v4418_v12, %v4330_v23 }
 0x748   : > { %v4483_v50 = vpop.permute.xlu1 %4482  ;;  %v3872_v42 = vpop.permute.xlu0 %3871  ;;  %7414 = vmatprep.subr.bf16.mxu1 %v7413_v40 }
 0x749   : > { %v4506_v10 = vsel %vm4494_vm4, %v4481_v46, %v4483_v50  ;;  %v3891_v41 = vsel %vm2203_vm12, %v3870_v62, %v3872_v42  ;;  %7416 = vmatpush1.bf16.msra.mxu1 %v7415_v27  ;;  %v4563_v46 = vld [vmem:[#allocation2 + $0x78] sm:$0xff] }
 0x74a   : > { %5082 = vmatprep.subr.mxu1 %v4506_v10  ;;  %v7419_v29 = vpack.c.bf16 %v3891_v41, %v4560_v31 }
 0x74c   : > { %v3874_v16 = vpop.permute.xlu1 %3873  ;;  %v3956_v24 = vpop.permute.xlu0 %3955 }
 0x74d   : > { %v3892_v15 = vsel %vm2203_vm12, %v3872_v42, %v3874_v16  ;;  %v3976_v33 = vsel %vm3963_vm15, %v3954_v52, %v3956_v24  ;;  %5083 = vmatpush1.msra.mxu1 %v4505_v28  ;;  %v4562_v28 = vld [vmem:[#allocation2 + $0x70] sm:$0xff] }
 0x74e   : > { %6629 = vmatmul.mubr.msk.f32.vlgmr.msra.gmra.mrb[22].mxu1 %vm1181_vm9, %v10160_v18  ;;  %v7417_v51 = vpack.c.bf16 %v3892_v15, %v4561_v6 }
 0x74f   : > { %5272 = vmatprep.mubr.f32.mxu1 %v7911_v9 }
 0x750   : > { %v3958_v37 = vpop.permute.xlu1 %3957  ;;  %v4045_v30 = vpop.permute.xlu0 %4044  ;;  %7418 = vmatprep.subr.bf16.mxu0 %v7417_v51 }
 0x751   : > { %v3977_v34 = vsel %vm3963_vm15, %v3956_v24, %v3958_v37  ;;  %v4064_v55 = vsel %vm1181_vm9, %v4043_v2, %v4045_v30  ;;  %7420 = vmatpush1.bf16.msra.mxu0 %v7419_v29 }
 0x752   : > { %v7423_v48 = vpack.c.bf16 %v4064_v55, %v3976_v33 }
 0x754   : > { %v4047_v1 = vpop.permute.xlu1 %4046  ;;  %v4129_v54 = vpop.permute.xlu0 %4128 }
 0x755   : > { %v4065_v60 = vsel %vm1181_vm9, %v4045_v30, %v4047_v1  ;;  %v4148_v49 = vsel %vm305_vm0, %v4127_v26, %v4129_v54 }
 0x756   : > { %v7421_v62 = vpack.c.bf16 %v4065_v60, %v3977_v34  ;;  %v4564_v34 = vld [vmem:[#allocation2 + $0x80] sm:$0xff] }
 0x758   : > { %v4131_v63 = vpop.permute.xlu1 %4130  ;;  %v4217_v47 = vpop.permute.xlu0 %4216  ;;  %7422 = vmatprep.subr.bf16.mxu0 %v7421_v62 }
 0x759   : > { %v4149_v22 = vsel %vm305_vm0, %v4129_v54, %v4131_v63  ;;  %v4239_v0 = vsel %vm4226_vm1, %v4215_v21, %v4217_v47  ;;  %7424 = vmatpush1.bf16.msra.mxu0 %v7423_v48 }
 0x75a   : > { %v7427_v45 = vpack.c.bf16 %v4239_v0, %v4148_v49 }
 0x75c   : > { %v4219_v32 = vpop.permute.xlu1 %4218  ;;  %v4309_v61 = vpop.permute.xlu0 %4308 }
 0x75d   : > { %v4240_v52 = vsel %vm4226_vm1, %v4217_v47, %v4219_v32  ;;  %v4331_v5 = vsel %vm4318_vm2, %v4307_v36, %v4309_v61 }
 0x75e   : > { %v7425_v56 = vpack.c.bf16 %v4240_v52, %v4149_v22 }
 0x760   : > { %v4051_v38 = vpop.permute.xlu1 %4050  ;;  %v4397_v35 = vpop.permute.xlu0 %4396  ;;  %7426 = vmatprep.subr.bf16.mxu0 %v7425_v56 }
 0x761   : > { %4101 = vst.msk [vmem:[#allocation2 + $0x218] sm:$0xff] %vm305_vm0, %v4051_v38  ;;  %v4419_v44 = vsel %vm4406_vm3, %v4395_v57, %v4397_v35  ;;  %7428 = vmatpush1.bf16.msra.mxu0 %v7427_v45 }
 0x762   : > { %v7431_v39 = vpack.c.bf16 %v4419_v44, %v4331_v5 }
 0x764   : > { %v4135_v13 = vpop.permute.xlu1 %4134  ;;  %v3876_v43 = vpop.permute.xlu0 %3875 }
 0x765   : > { %4185 = vst.msk [vmem:[#allocation2 + $0x2a0] sm:$0xff] %vm305_vm0, %v4135_v13  ;;  %v3893_v59 = vsel %vm2203_vm12, %v3874_v16, %v3876_v43 }
 0x766   : > { %v7435_v40 = vpack.c.bf16 %v3893_v59, %v4562_v28 }
 0x768   : > { %v10460_v19 = vpop.permute.xlu1 %4222  ;;  %v3960_v26 = vpop.permute.xlu0 %3959  ;;  %v4615_v48 = vld [vmem:[#allocation2 + $0x218] sm:$0xff] }
 0x769   : > { %v3978_v2 = vsel %vm3963_vm15, %v3958_v37, %v3960_v26 }
 0x76c   : > { %v4311_v58 = vpop.permute.xlu1 %4310  ;;  %v4485_v53 = vpop.permute.xlu0 %4484 }
 0x76d   : > { %v4332_v25 = vsel %vm4318_vm2, %v4309_v61, %v4311_v58  ;;  %v4507_v3 = vsel %vm4494_vm4, %v4483_v50, %v4485_v53 }
 0x770   : > { %v4399_v21 = vpop.permute.xlu1 %4398  ;;  %v4313_v17 = vpop.permute.xlu0 %4312 }
 0x771   : > { %v4420_v20 = vsel %vm4406_vm3, %v4397_v35, %v4399_v21  ;;  %v10467_v4 = vsel %vm4318_vm2, %v4311_v58, %v4313_v17  ;;  %v4632_v58 = vld [vmem:[#allocation2 + $0x2a0] sm:$0xff] }
 0x772   : > { %v7429_v14 = vpack.c.bf16 %v4420_v20, %v4332_v25 }
 0x774   : > { %v3878_v36 = vpop.permute.xlu1 %3877  ;;  %v4049_v7 = vpop.permute.xlu0 %4048  ;;  %7430 = vmatprep.subr.bf16.mxu0 %v7429_v14 }
 0x775   : > { %v3894_v23 = vsel %vm2203_vm12, %v3876_v43, %v3878_v36  ;;  %3928 = vst.msk [vmem:[#allocation2 + $0x108] sm:$0xff] %vm305_vm0, %v3878_v36  ;;  %v4066_v8 = vsel %vm1181_vm9, %v4047_v1, %v4049_v7  ;;  %v4067_v57 = vsel %vm1181_vm9, %v4049_v7, %v4051_v38  ;;  %7432 = vmatpush1.bf16.msra.mxu0 %v7431_v39 }
 0x776   : > { %v7433_v12 = vpack.c.bf16 %v3894_v23, %v4563_v46  ;;  %v7439_v24 = vpack.c.bf16 %v4066_v8, %v3978_v2 }
 0x778   : > { %v3962_v27 = vpop.permute.xlu1 %3961  ;;  %v4133_v50 = vpop.permute.xlu0 %4132  ;;  %7434 = vmatprep.subr.bf16.mxu1 %v7433_v12 }
 0x779   : > { %v3979_v42 = vsel %vm3963_vm15, %v3960_v26, %v3962_v27  ;;  %4013 = vst.msk [vmem:[#allocation2 + $0x190] sm:$0xff] %vm305_vm0, %v3962_v27  ;;  %v4150_v10 = vsel %vm305_vm0, %v4131_v63, %v4133_v50  ;;  %v4151_v41 = vsel %vm305_vm0, %v4133_v50, %v4135_v13  ;;  %7436 = vmatpush1.bf16.msra.mxu1 %v7435_v40  ;;  %v7862_v26 = vld [vmem:[%s8286_s22 + $0x10] sm:$0xff] }
 0x77a   : > { %v7437_v16 = vpack.c.bf16 %v4067_v57, %v3979_v42 }
 0x77c   : > { %v4487_v15 = vpop.permute.xlu1 %4486  ;;  %v4221_v33 = vpop.permute.xlu0 %4220  ;;  %7438 = vmatprep.subr.bf16.mxu1 %v7437_v16  ;;  %v4581_v29 = vld [vmem:[#allocation2 + $0x108] sm:$0xff] }
 0x77d   : > { %v4508_v6 = vsel %vm4494_vm4, %v4485_v53, %v4487_v15  ;;  %v4241_v51 = vsel %vm4226_vm1, %v4219_v32, %v4221_v33  ;;  %v4242_v31 = vsel %vm4226_vm1, %v4221_v33, %v10460_v19  ;;  %7440 = vmatpush1.bf16.msra.mxu1 %v7439_v24  ;;  %v7450_v54 = vpack.c.bf16 %v4581_v29, %v4564_v34 }
 0x77e   : > { %5153 = vmatprep.subr.mxu0 %v4508_v6  ;;  %v7441_v37 = vpack.c.bf16 %v4242_v31, %v4151_v41  ;;  %v7443_v30 = vpack.c.bf16 %v4241_v51, %v4150_v10 }
 0x77f   : > { %5154 = vmatpush1.msra.mxu0 %v4507_v3 }
 0x780   : > { %v4315_v55 = vpop.permute.xlu1 %4314  ;;  %v4401_v1 = vpop.permute.xlu0 %4400  ;;  %6630 = vmatmul.mubr.msk.f32.vlgmr.msra.gmra.mrb[24].mxu0 %vm1181_vm9, %v10160_v18  ;;  %7442 = vmatprep.subr.bf16.mxu1 %v7441_v37  ;;  %v4598_v62 = vld [vmem:[#allocation2 + $0x190] sm:$0xff] }
 0x781   : > { %v4334_v60 = vsel %vm4318_vm2, %v4313_v17, %v4315_v55  ;;  %v4421_v49 = vsel %vm4406_vm3, %v4399_v21, %v4401_v1  ;;  %7449 = vmatprep.subr.bf16.mxu0 %v7914_v11  ;;  %7444 = vmatpush1.bf16.msra.mxu1 %v7443_v30  ;;  %v7453_v18 = vpack.c.bf16 %v4615_v48, %v4598_v62 }
 0x782   : > { %7451 = vmatpush3.bf16.msra.mxu0 %v7450_v54  ;;  %7017 = vmatprep.mubr.msk.f32.mxu0 %vm7915_vm11, %v7911_v9  ;;  %v7447_v61 = vpack.c.bf16 %v4421_v49, %v10467_v4  ;;  %v5593_v54 = vld [vmem:[%s11659_s3 + $0x80] sm:$0xff] }
 0x783   : > { %7452 = vmatprep.subr.bf16.mxu0 %v7914_v11  ;;  %v5577_v49 = vld [vmem:[%s11659_s3] sm:$0xff] }
 0x784   : > { %v4403_v63 = vpop.permute.xlu1 %4402  ;;  %v4489_v47 = vpop.permute.xlu0 %4488 }
 0x785   : > { %v4422_v22 = vsel %vm4406_vm3, %v4401_v1, %v4403_v63  ;;  %v4509_v0 = vsel %vm4494_vm4, %v4487_v15, %v4489_v47 }
 0x786   : > { %7454 = vmatpush3.bf16.msra.mxu0 %v7453_v18  ;;  %v7445_v32 = vpack.c.bf16 %v4422_v22, %v4334_v60  ;;  %v5594_v60 = vld [vmem:[%s11659_s3 + $0x88] sm:$0xff] }
 0x787   : > { %7455 = vmatprep.subr.bf16.mxu0 %v7914_v11  ;;  %v7461_v48 = vpack.c.bf16 %v5594_v60, %v5593_v54  ;;  %v5605_v54 = vld [vmem:[%s11659_s3 + $0xe0] sm:$0xff]  ;;  %v5606_v60 = vld [vmem:[%s11659_s3 + $0xe8] sm:$0xff] }
 0x788   : > { %v4491_v52 = vpop.permute.xlu1 %4490  ;;  %v4225_v5 = vpop.permute.xlu0 %4224  ;;  %7446 = vmatprep.subr.bf16.mxu1 %v7445_v32 }
 0x789   : > { %v4510_v56 = vsel %vm4494_vm4, %v4489_v47, %v4491_v52  ;;  %v4243_v45 = vsel %vm4226_vm1, %v10460_v19, %v4225_v5  ;;  %7448 = vmatpush1.bf16.msra.mxu1 %v7447_v61  ;;  %v4777_v38 = vpop.f32.mrb[18].mxu0  ;;  %v5595_v5 = vld [vmem:[%s11659_s3 + $0x90] sm:$0xff] }
 0x78a   : > { %4277 = vst.msk [vmem:[#allocation2 + $0x328] sm:$0xff] %vm305_vm0, %v4243_v45  ;;  %5224 = vmatprep.subr.mxu1 %v4510_v56  ;;  %v4779_v35 = vpop.f32.mrb[19].mxu0  ;;  %v5596_v56 = vld [vmem:[%s11659_s3 + $0x98] sm:$0xff]  ;;  %v5579_v45 = vld [vmem:[%s11659_s3 + $0x10] sm:$0xff] }
 0x78c   : > { %v4317_v44 = vpop.permute.xlu1 %4316  ;;  %v4405_v13 = vpop.permute.xlu0 %4404 }
 0x78d   : > { %v4335_v43 = vsel %vm4318_vm2, %v4315_v55, %v4317_v44  ;;  %v4423_v59 = vsel %vm4406_vm3, %v4403_v63, %v4405_v13  ;;  %5225 = vmatpush1.msra.mxu1 %v4509_v0  ;;  %v5578_v63 = vld [vmem:[%s11659_s3 + $0x8] sm:$0xff]  ;;  %v5580_v44 = vld [vmem:[%s11659_s3 + $0x18] sm:$0xff] }
 0x78e   : > { %4369 = vst.msk [vmem:[#allocation2 + $0x3b0] sm:$0xff] %vm305_vm0, %v4335_v43  ;;  %4457 = vst.msk [vmem:[#allocation2 + $0x438] sm:$0xff] %vm305_vm0, %v4423_v59  ;;  %6631 = vmatmul.mubr.msk.f32.vlgmr.msra.gmra.mrb[24].mxu1 %vm1181_vm9, %v7862_v26  ;;  %v7463_v18 = vpack.c.bf16 %v5578_v63, %v5577_v49  ;;  %7462 = vmatprep.subr.bf16.mxu1 %v7461_v48  ;;  %v7467_v59 = vpack.c.bf16 %v5580_v44, %v5579_v45  ;;  %v5589_v63 = vld [vmem:[%s11659_s3 + $0x60] sm:$0xff] }
 0x78f   : > { %v7485_v48 = vpack.c.bf16 %v5606_v60, %v5605_v54  ;;  %v5609_v45 = vld [vmem:[%s11659_s3 + $0x100] sm:$0xff]  ;;  %v5615_v60 = vld [vmem:[%s11659_s3 + $0x130] sm:$0xff] }
 0x790   : > { %v4493_v19 = vpop.permute.xlu1 %4492  ;;  %7464 = vmatpush3.bf16.msra.mxu1 %v7463_v18  ;;  %v5590_v18 = vld [vmem:[%s11659_s3 + $0x68] sm:$0xff] }
 0x791   : > { %v4511_v2 = vsel %vm4494_vm4, %v4491_v52, %v4493_v19  ;;  %v4649_v53 = vld [vmem:[#allocation2 + $0x328] sm:$0xff]  ;;  %v5597_v19 = vld [vmem:[%s11659_s3 + $0xa0] sm:$0xff] }
 0x792   : > { %4545 = vst.msk [vmem:[#allocation2 + $0x4c0] sm:$0xff] %vm305_vm0, %v4511_v2  ;;  %v7456_v25 = vpack.c.bf16 %v4649_v53, %v4632_v58  ;;  %v5598_v2 = vld [vmem:[%s11659_s3 + $0xa8] sm:$0xff]  ;;  %v5581_v58 = vld [vmem:[%s11659_s3 + $0x20] sm:$0xff] }
 0x793   : > { %v7469_v53 = vpack.c.bf16 %v5598_v2, %v5597_v19  ;;  %v5591_v2 = vld [vmem:[%s11659_s3 + $0x70] sm:$0xff] }
 0x794   : > { %7457 = vmatpush3.bf16.msra.mxu0 %v7456_v25  ;;  %v5582_v25 = vld [vmem:[%s11659_s3 + $0x28] sm:$0xff] }
 0x795   : > { %7458 = vmatprep.subr.bf16.mxu0 %v7914_v11  ;;  %v4666_v3 = vld [vmem:[#allocation2 + $0x3b0] sm:$0xff]  ;;  %v4683_v21 = vld [vmem:[#allocation2 + $0x438] sm:$0xff] }
 0x796   : > { %v7459_v17 = vpack.c.bf16 %v4683_v21, %v4666_v3  ;;  %v5599_v3 = vld [vmem:[%s11659_s3 + $0xb0] sm:$0xff]  ;;  %v5600_v21 = vld [vmem:[%s11659_s3 + $0xb8] sm:$0xff] }
 0x798   : > { %7460 = vmatpush3.bf16.msra.mxu0 %v7459_v17  ;;  %v7471_v17 = vpack.c.bf16 %v5582_v25, %v5581_v58  ;;  %v5592_v58 = vld [vmem:[%s11659_s3 + $0x78] sm:$0xff]  ;;  %v5627_v25 = vld [vmem:[%s11659_s3 + $0x190] sm:$0xff] }
 0x799   : > { %7015 = vmatprep.subr.mxu0 %v7911_v9  ;;  %v4700_v20 = vld [vmem:[#allocation2 + $0x4c0] sm:$0xff] }
 0x79c   : > { %7016 = vmatpush3.msra.mxu0 %v4700_v20  ;;  %v7473_v20 = vpack.c.bf16 %v5600_v21, %v5599_v3  ;;  %v5628_v3 = vld [vmem:[%s11659_s3 + $0x198] sm:$0xff] }
 0x79d   : > { %7018 = vmatmul.mubr.msk.f32.vlgmr.msra.gmra.mrb[26].mxu0 %vm1181_vm9, %v7862_v26  ;;  %v10508_v4 = vpop.permute.xlu0 %4705  ;;  %v7497_v21 = vpack.c.bf16 %v5628_v3, %v5627_v25 }
 0x79e   : > { %v4780_v14 = vadd.f32 %v4779_v35, %v10508_v4  ;;  %v4778_v6 = vadd.f32 %v4777_v38, %v10508_v4  ;;  %v7465_v35 = vpack.c.bf16 %v5596_v56, %v5595_v5  ;;  %v5626_v5 = vld [vmem:[%s11659_s3 + $0x188] sm:$0xff] }
 0x7a0   : > { %v5350_v39 = vmax.f32 %v4780_v14, 0.0  ;;  %v10546_v51 = vmax.f32 %v4778_v6, 0.0  ;;  %7466 = vmatprep.subr.bf16.mxu1 %v7465_v35  ;;  %v5583_v14 = vld [vmem:[%s11659_s3 + $0x30] sm:$0xff]  ;;  %v5610_v35 = vld [vmem:[%s11659_s3 + $0x108] sm:$0xff] }
 0x7a1   : > { %7468 = vmatpush3.bf16.msra.mxu1 %v7467_v59  ;;  %v7495_v44 = vpack.c.bf16 %v5610_v35, %v5609_v45  ;;  %v5607_v59 = vld [vmem:[%s11659_s3 + $0xf0] sm:$0xff] }
 0x7a2   : > { %5388 = vrot.lane.b32.xlu0 %v5350_v39, %s7916_s26  ;;  %7470 = vmatprep.subr.bf16.mxu1 %v7469_v53  ;;  %v7491_v53 = vpack.c.bf16 %v5592_v58, %v5591_v2  ;;  %v5619_v35 = vld [vmem:[%s11659_s3 + $0x150] sm:$0xff]  ;;  %v5621_v2 = vld [vmem:[%s11659_s3 + $0x160] sm:$0xff] }
 0x7a5   : > { %7472 = vmatpush3.bf16.msra.mxu1 %v7471_v17  ;;  %v5611_v17 = vld [vmem:[%s11659_s3 + $0x110] sm:$0xff] }
 0x7a6   : > { %7474 = vmatprep.subr.bf16.mxu1 %v7473_v20  ;;  %v5612_v20 = vld [vmem:[%s11659_s3 + $0x118] sm:$0xff] }
 0x7aa   : > { %v4848_v36 = vpop.f32.mrb[18].mxu1 }
 0x7ab   : > { %v10513_v7 = vadd.f32 %v4848_v36, %v10508_v4  ;;  %v4850_v23 = vpop.f32.mrb[19].mxu1  ;;  %v5601_v36 = vld [vmem:[%s11659_s3 + $0xc0] sm:$0xff] }
 0x7ac   : > { %v10520_v57 = vadd.f32 %v4850_v23, %v10508_v4  ;;  %v5602_v23 = vld [vmem:[%s11659_s3 + $0xc8] sm:$0xff] }
 0x7ad   : > { %v5351_v8 = vmax.f32 %v10513_v7, 0.0  ;;  %v5617_v7 = vld [vmem:[%s11659_s3 + $0x140] sm:$0xff] }
 0x7ae   : > { %v5352_v12 = vmax.f32 %v10520_v57, 0.0 }
 0x7af   : > { %5390 = vrot.lane.b32.xlu1 %v5351_v8, %s7916_s26 }
 0x7c8   : > { %v4919_v46 = vpop.f32.mrb[20].mxu0 }
 0x7c9   : > { %v10524_v28 = vadd.f32 %v4919_v46, %v10508_v4  ;;  %v4921_v40 = vpop.f32.mrb[21].mxu0 }
 0x7ca   : > { %v10533_v42 = vadd.f32 %v4921_v40, %v10508_v4  ;;  %v7477_v40 = vpack.c.bf16 %v5602_v23, %v5601_v36 }
 0x7cb   : > { %v5353_v27 = vmax.f32 %v10524_v28, 0.0  ;;  %v5657_v28 = vld [vmem:[%s11659_s3 + $0x280] sm:$0xff] }
 0x7cc   : > { %v5354_v41 = vmax.f32 %v10533_v42, 0.0 }
 0x7cd   : > { %v7797_v50 = vpack.i.bf16 %v5353_v27, %v5352_v12 }
 0x7cf   : > { %7798 = vrot.lane.b32.xlu1 %v7797_v50, %s7916_s26  ;;  %v5585_v50 = vld [vmem:[%s11659_s3 + $0x40] sm:$0xff] }
 0x7e2   : > { %v4990_v10 = vpop.f32.mrb[20].mxu1 }
 0x7e3   : > { %v10537_v16 = vadd.f32 %v4990_v10, %v10508_v4  ;;  %v4992_v24 = vpop.f32.mrb[21].mxu1  ;;  %v5586_v10 = vld [vmem:[%s11659_s3 + $0x48] sm:$0xff] }
 0x7e4   : > { %v10553_v31 = vadd.f32 %v4992_v24, %v10508_v4  ;;  %v5603_v24 = vld [vmem:[%s11659_s3 + $0xd0] sm:$0xff]  ;;  %v7479_v6 = vpack.c.bf16 %v5586_v10, %v5585_v50  ;;  %v5613_v50 = vld [vmem:[%s11659_s3 + $0x120] sm:$0xff] }
 0x7e5   : > { %v5355_v15 = vmax.f32 %v10537_v16, 0.0 }
 0x7e6   : > { %v5356_v34 = vmax.f32 %v10553_v31, 0.0 }
 0x7e7   : > { %v7802_v33 = vpack.i.bf16 %v5355_v15, %v5354_v41 }
 0x7e9   : > { %7803 = vrot.lane.b32.xlu1 %v7802_v33, %s7916_s26  ;;  %v5604_v33 = vld [vmem:[%s11659_s3 + $0xd8] sm:$0xff] }
 0x7ed   : > { %5366 = vrot.lane.b32.xlu1 %v10546_v51, %s7906_s6 }
 0x7f1   : > { %5386 = vrot.lane.b32.xlu1 %v10546_v51, %s7916_s26 }
 0x80b   : > { %v5061_v29 = vpop.f32.mrb[22].mxu0 }
 0x80c   : > { %v10556_v37 = vadd.f32 %v5061_v29, %v10508_v4  ;;  %v5063_v30 = vpop.f32.mrb[23].mxu0  ;;  %v7481_v29 = vpack.c.bf16 %v5604_v33, %v5603_v24  ;;  %v5614_v24 = vld [vmem:[%s11659_s3 + $0x128] sm:$0xff]  ;;  %v5631_v33 = vld [vmem:[%s11659_s3 + $0x1b0] sm:$0xff] }
 0x80d   : > { %v10580_v47 = vadd.f32 %v5063_v30, %v10508_v4  ;;  %v5587_v30 = vld [vmem:[%s11659_s3 + $0x50] sm:$0xff] }
 0x80e   : > { %v5357_v55 = vmax.f32 %v10556_v37, 0.0 }
 0x80f   : > { %v5358_v13 = vmax.f32 %v10580_v47, 0.0  ;;  %v5642_v47 = vld [vmem:[%s11659_s3 + $0x208] sm:$0xff] }
 0x810   : > { %v7807_v1 = vpack.i.bf16 %v5357_v55, %v5356_v34 }
 0x812   : > { %7808 = vrot.lane.b32.xlu0 %v7807_v1, %s7916_s26  ;;  %v5588_v1 = vld [vmem:[%s11659_s3 + $0x58] sm:$0xff] }
 0x813   : > { %v7483_v49 = vpack.c.bf16 %v5588_v1, %v5587_v30  ;;  %v7503_v1 = vpack.c.bf16 %v5614_v24, %v5613_v50  ;;  %v5623_v50 = vld [vmem:[%s11659_s3 + $0x170] sm:$0xff] }
 0x814   : > { %v10574_v62 = vpop.permute.xlu0 %5388 }
 0x821   : > { %v10582_v22 = vpop.permute.xlu1 %5390  ;;  %v5132_v0 = vpop.f32.mrb[22].mxu1 }
 0x822   : > { %v5421_v32 = vsel %vm2203_vm12, %v10574_v62, %v10582_v22  ;;  %v10588_v61 = vadd.f32 %v5132_v0, %v10508_v4  ;;  %v10590_v52 = vpop.f32.mrb[23].mxu1  ;;  %v7487_v0 = vpack.c.bf16 %v5590_v18, %v5589_v63  ;;  %v5634_v18 = vld [vmem:[%s11659_s3 + $0x1c8] sm:$0xff] }
 0x823   : > { %v10601_v38 = vmax.f32 %v5350_v39, %v5421_v32  ;;  %v5584_v39 = vld [vmem:[%s11659_s3 + $0x38] sm:$0xff]  ;;  %v5625_v32 = vld [vmem:[%s11659_s3 + $0x180] sm:$0xff]  ;;  %v10793_v25 = vadd.f32 %v10590_v52, %v10508_v4 }
 0x824   : > { %v5359_v43 = vmax.f32 %v10588_v61, 0.0  ;;  %v7475_v46 = vpack.c.bf16 %v5584_v39, %v5583_v14  ;;  %v7493_v56 = vpack.c.bf16 %v5626_v5, %v5625_v32  ;;  %v7499_v14 = vpack.c.bf16 %v5612_v20, %v5611_v17  ;;  %v5640_v52 = vld [vmem:[%s11659_s3 + $0x1f8] sm:$0xff]  ;;  %v5669_v61 = vld [vmem:[%s11659_s3 + $0x2e0] sm:$0xff] }
 0x825   : > { %5493 = vrot.lane.b32.xlu1 %v10601_v38, %s7918_s28 }
 0x826   : > { %v7812_v26 = vpack.i.bf16 %v5359_v43, %v5358_v13  ;;  %7476 = vmatpush3.bf16.msra.mxu1 %v7475_v46  ;;  %7494 = vmatprep.subr.bf16.mxu0 %v7493_v56  ;;  %v5629_v46 = vld [vmem:[%s11659_s3 + $0x1a0] sm:$0xff]  ;;  %v5636_v56 = vld [vmem:[%s11659_s3 + $0x1d8] sm:$0xff] }
 0x827   : > { %7478 = vmatprep.subr.bf16.mxu1 %v7477_v40  ;;  %7496 = vmatpush3.bf16.msra.mxu0 %v7495_v44  ;;  %v5630_v40 = vld [vmem:[%s11659_s3 + $0x1a8] sm:$0xff]  ;;  %v5620_v44 = vld [vmem:[%s11659_s3 + $0x158] sm:$0xff] }
 0x828   : > { %7813 = vrot.lane.b32.xlu0 %v7812_v26, %s7916_s26  ;;  %v5608_v26 = vld [vmem:[%s11659_s3 + $0xf8] sm:$0xff]  ;;  %7498 = vmatprep.subr.bf16.mxu0 %v7497_v21  ;;  %v7501_v10 = vpack.c.bf16 %v5630_v40, %v5629_v46  ;;  %v5639_v46 = vld [vmem:[%s11659_s3 + $0x1f0] sm:$0xff] }
 0x829   : > { %v7489_v19 = vpack.c.bf16 %v5608_v26, %v5607_v59  ;;  %v7515_v59 = vpack.c.bf16 %v5620_v44, %v5619_v35  ;;  %v5637_v26 = vld [vmem:[%s11659_s3 + $0x1e0] sm:$0xff]  ;;  %v7521_v40 = vpack.c.bf16 %v5640_v52, %v5639_v46 }
 0x82a   : > { %7480 = vmatpush3.bf16.msra.mxu1 %v7479_v6  ;;  %v5632_v6 = vld [vmem:[%s11659_s3 + $0x1b8] sm:$0xff] }
 0x82b   : > { %7482 = vmatprep.subr.bf16.mxu1 %v7481_v29  ;;  %7500 = vmatpush3.bf16.msra.mxu0 %v7499_v14  ;;  %v7505_v54 = vpack.c.bf16 %v5632_v6, %v5631_v33  ;;  %v5360_v14 = vmax.f32 %v10793_v25, 0.0 }
 0x82c   : > { %7502 = vmatprep.subr.bf16.mxu0 %v7501_v10  ;;  %v5624_v10 = vld [vmem:[%s11659_s3 + $0x178] sm:$0xff] }
 0x82d   : > { %v7523_v33 = vpack.c.bf16 %v5624_v10, %v5623_v50 }
 0x82e   : > { %7484 = vmatpush3.bf16.msra.mxu1 %v7483_v49  ;;  %v5616_v49 = vld [vmem:[%s11659_s3 + $0x138] sm:$0xff] }
 0x82f   : > { %7486 = vmatprep.subr.bf16.mxu1 %v7485_v48  ;;  %v5633_v48 = vld [vmem:[%s11659_s3 + $0x1c0] sm:$0xff]  ;;  %7504 = vmatpush3.bf16.msra.mxu0 %v7503_v1 }
 0x830   : > { %7506 = vmatprep.subr.bf16.mxu0 %v7505_v54  ;;  %v7509_v5 = vpack.c.bf16 %v5634_v18, %v5633_v48 }
 0x832   : > { %7488 = vmatpush3.bf16.msra.mxu1 %v7487_v0  ;;  %v7507_v0 = vpack.c.bf16 %v5616_v49, %v5615_v60 }
 0x833   : > { %7490 = vmatprep.subr.bf16.mxu1 %v7489_v19  ;;  %v5638_v19 = vld [vmem:[%s11659_s3 + $0x1e8] sm:$0xff] }
 0x834   : > { %7508 = vmatpush3.bf16.msra.mxu0 %v7507_v0  ;;  %v7517_v58 = vpack.c.bf16 %v5638_v19, %v5637_v26 }
 0x835   : > { %7510 = vmatprep.subr.bf16.mxu0 %v7509_v5 }
 0x836   : > { %7492 = vmatpush3.bf16.msra.mxu1 %v7491_v53  ;;  %v5622_v53 = vld [vmem:[%s11659_s3 + $0x168] sm:$0xff] }
 0x837   : > { %v7519_v3 = vpack.c.bf16 %v5622_v53, %v5621_v2 }
 0x841   : > { %v10711_v39 = vpop.permute.xlu1 %7798 }
 0x842   : > { %v7801_v36 = vunpack.i.h.bf16 %v10711_v39  ;;  %v7800_v23 = vunpack.i.l.bf16 %v10711_v39 }
 0x844   : > { %v5422_v29 = vsel %vm2203_vm12, %v10582_v22, %v7800_v23  ;;  %v5423_v30 = vsel %vm2203_vm12, %v7800_v23, %v7801_v36 }
 0x845   : > { %v10749_v22 = vmax.f32 %v5351_v8, %v5422_v29  ;;  %v10753_v63 = vmax.f32 %v5352_v12, %v5423_v30  ;;  %v5618_v8 = vld [vmem:[%s11659_s3 + $0x148] sm:$0xff]  ;;  %v5635_v12 = vld [vmem:[%s11659_s3 + $0x1d0] sm:$0xff] }
 0x846   : > { %v7511_v57 = vpack.c.bf16 %v5618_v8, %v5617_v7  ;;  %v7513_v45 = vpack.c.bf16 %v5636_v56, %v5635_v12  ;;  %v5690_v12 = vld [vmem:[%s11659_s3 + $0x388] sm:$0xff] }
 0x847   : > { %v7817_v32 = vpack.i.bf16 %v10753_v63, %v10749_v22 }
 0x848   : > { %7512 = vmatpush3.bf16.msra.mxu0 %v7511_v57  ;;  %v5689_v57 = vld [vmem:[%s11659_s3 + $0x380] sm:$0xff] }
 0x849   : > { %7818 = vrot.lane.b32.xlu0 %v7817_v32, %s7918_s28  ;;  %7514 = vmatprep.subr.bf16.mxu0 %v7513_v45  ;;  %v7557_v56 = vpack.c.bf16 %v5690_v12, %v5689_v57  ;;  %v5662_v57 = vld [vmem:[%s11659_s3 + $0x2a8] sm:$0xff] }
 0x84c   : > { %7516 = vmatpush3.bf16.msra.mxu0 %v7515_v59 }
 0x84d   : > { %7518 = vmatprep.subr.bf16.mxu0 %v7517_v58 }
 0x850   : > { %7520 = vmatpush3.bf16.msra.mxu0 %v7519_v3 }
 0x851   : > { %7522 = vmatprep.subr.bf16.mxu0 %v7521_v40 }
 0x853   : > { %v5203_v21 = vpop.f32.mrb[24].mxu0 }
 0x854   : > { %v10796_v17 = vadd.f32 %v5203_v21, %v10508_v4  ;;  %v5205_v20 = vpop.f32.mrb[25].mxu0  ;;  %7524 = vmatpush3.bf16.msra.mxu0 %v7523_v33 }
 0x855   : > { %v10830_v48 = vadd.f32 %v5205_v20, %v10508_v4  ;;  %7558 = vmatprep.subr.bf16.mxu0 %v7557_v56  ;;  %v5645_v56 = vld [vmem:[%s11659_s3 + $0x220] sm:$0xff] }
 0x856   : > { %v5361_v23 = vmax.f32 %v10796_v17, 0.0  ;;  %v5695_v17 = vld [vmem:[%s11659_s3 + $0x3b0] sm:$0xff] }
 0x858   : > { %v7822_v24 = vpack.i.bf16 %v5361_v23, %v5360_v14 }
 0x85a   : > { %7823 = vrot.lane.b32.xlu0 %v7822_v24, %s7916_s26 }
 0x85b   : > { %v7804_v6 = vpop.permute.xlu1 %7803 }
 0x85c   : > { %v7806_v29 = vunpack.i.h.bf16 %v7804_v6  ;;  %v7805_v30 = vunpack.i.l.bf16 %v7804_v6 }
 0x85e   : > { %v5424_v1 = vsel %vm2203_vm12, %v7801_v36, %v7805_v30  ;;  %v5425_v54 = vsel %vm2203_vm12, %v7805_v30, %v7806_v29  ;;  %v5660_v30 = vld [vmem:[%s11659_s3 + $0x298] sm:$0xff] }
 0x85f   : > { %v10823_v60 = vmax.f32 %v5353_v27, %v5424_v1  ;;  %v10827_v49 = vmax.f32 %v5354_v41, %v5425_v54  ;;  %v5658_v27 = vld [vmem:[%s11659_s3 + $0x288] sm:$0xff]  ;;  %v5362_v41 = vmax.f32 %v10830_v48, 0.0  ;;  %v5367_v19 = vpop.permute.xlu1 %5366 }
 0x860   : > { %v7525_v42 = vpack.c.bf16 %v5658_v27, %v5657_v28  ;;  %v5643_v27 = vld [vmem:[%s11659_s3 + $0x210] sm:$0xff] }
 0x861   : > { %v5274_v18 = vpop.f32.mrb[24].mxu1  ;;  %v7827_v0 = vpack.i.bf16 %v10827_v49, %v10823_v60 }
 0x862   : > { %v10835_v39 = vadd.f32 %v5274_v18, %v10508_v4  ;;  %v5276_v36 = vpop.f32.mrb[25].mxu1  ;;  %7526 = vmatprep.subr.bf16.mxu1 %v7525_v42  ;;  %v5644_v42 = vld [vmem:[%s11659_s3 + $0x218] sm:$0xff] }
 0x863   : > { %7828 = vrot.lane.b32.xlu1 %v7827_v0, %s7918_s28  ;;  %v10851_v7 = vadd.f32 %v5276_v36, %v10508_v4  ;;  %v5387_v52 = vpop.permute.xlu1 %5386 }
 0x864   : > { %v5363_v32 = vmax.f32 %v10835_v39, 0.0 }
 0x865   : > { %v5364_v8 = vmax.f32 %v10851_v7, 0.0 }
 0x866   : > { %v7832_v5 = vpack.i.bf16 %v5363_v32, %v5362_v41 }
 0x868   : > { %7833 = vrot.lane.b32.xlu0 %v7832_v5, %s7916_s26  ;;  %v5661_v5 = vld [vmem:[%s11659_s3 + $0x2a0] sm:$0xff] }
 0x869   : > { %v7533_v12 = vpack.c.bf16 %v5662_v57, %v5661_v5  ;;  %v5673_v57 = vld [vmem:[%s11659_s3 + $0x300] sm:$0xff] }
 0x86c   : > { %5416 = vrot.lane.b32.xlu0 %v5364_v8, %s7916_s26 }
 0x870   : > { %v5345_v45 = vpop.f32.mrb[26].mxu0 }
 0x871   : > { %v7019_v35 = vpop.f32.mrb[27].mxu0  ;;  %v10865_v2 = vadd.f32 %v5345_v45, %v10508_v4  ;;  %v5420_v4 = vsel %vm2203_vm12, %v5387_v52, %v10574_v62  ;;  %v5646_v45 = vld [vmem:[%s11659_s3 + $0x228] sm:$0xff] }
 0x872   : > { %v5663_v35 = vld [vmem:[%s11659_s3 + $0x2b0] sm:$0xff] }
 0x873   : > { %v5365_v46 = vmax.f32 %v10865_v2, 0.0  ;;  %v5710_v2 = vld [vmem:[%s11659_s3 + $0x428] sm:$0xff] }
 0x875   : > { %v5368_v16 = vsel %vm307_vm10, %v5367_v19, %v5365_v46  ;;  %v5647_v19 = vld [vmem:[%s11659_s3 + $0x230] sm:$0xff] }
 0x884   : > { %v7809_v44 = vpop.permute.xlu0 %7808 }
 0x885   : > { %v7811_v59 = vunpack.i.h.bf16 %v7809_v44  ;;  %v7810_v26 = vunpack.i.l.bf16 %v7809_v44  ;;  %v5664_v44 = vld [vmem:[%s11659_s3 + $0x2b8] sm:$0xff] }
 0x887   : > { %v5426_v58 = vsel %vm2203_vm12, %v7806_v29, %v7810_v26  ;;  %v5427_v53 = vsel %vm2203_vm12, %v7810_v26, %v7811_v59  ;;  %v5659_v29 = vld [vmem:[%s11659_s3 + $0x290] sm:$0xff]  ;;  %v7537_v26 = vpack.c.bf16 %v5664_v44, %v5663_v35 }
 0x888   : > { %v10871_v3 = vmax.f32 %v5355_v15, %v5426_v58  ;;  %v10875_v21 = vmax.f32 %v5356_v34, %v5427_v53  ;;  %v5453_v15 = vmax.f32 %v10546_v51, %v5420_v4  ;;  %v7529_v28 = vpack.c.bf16 %v5660_v30, %v5659_v29  ;;  %v5648_v58 = vld [vmem:[%s11659_s3 + $0x238] sm:$0xff]  ;;  %v5665_v53 = vld [vmem:[%s11659_s3 + $0x2c0] sm:$0xff] }
 0x889   : > { %v7539_v52 = vpack.c.bf16 %v5648_v58, %v5647_v19  ;;  %v5656_v19 = vld [vmem:[%s11659_s3 + $0x278] sm:$0xff] }
 0x88a   : > { %v7837_v20 = vpack.i.bf16 %v10875_v21, %v10871_v3 }
 0x88c   : > { %7838 = vrot.lane.b32.xlu1 %v7837_v20, %s7918_s28  ;;  %v5666_v20 = vld [vmem:[%s11659_s3 + $0x2c8] sm:$0xff] }
 0x890   : > { %5418 = vrot.lane.b32.xlu1 %v5368_v16, %s7916_s26  ;;  %v7541_v16 = vpack.c.bf16 %v5666_v20, %v5665_v53  ;;  %v5722_v20 = vld [vmem:[%s11659_s3 + $0x488] sm:$0xff] }
 0x894   : > { %5470 = vrot.lane.b32.xlu1 %v5453_v15, %s7906_s6 }
 0x89a   : > { %v7814_v31 = vpop.permute.xlu0 %7813 }
 0x89b   : > { %v7816_v34 = vunpack.i.h.bf16 %v7814_v31  ;;  %v7815_v40 = vunpack.i.l.bf16 %v7814_v31  ;;  %v5650_v31 = vld [vmem:[%s11659_s3 + $0x248] sm:$0xff] }
 0x89d   : > { %v5428_v50 = vsel %vm2203_vm12, %v7811_v59, %v7815_v40  ;;  %v5429_v10 = vsel %vm2203_vm12, %v7815_v40, %v7816_v34  ;;  %v7535_v59 = vpack.c.bf16 %v5646_v45, %v5645_v56  ;;  %v5691_v56 = vld [vmem:[%s11659_s3 + $0x390] sm:$0xff]  ;;  %v5692_v45 = vld [vmem:[%s11659_s3 + $0x398] sm:$0xff] }
 0x89e   : > { %v10893_v62 = vmax.f32 %v5357_v55, %v5428_v50  ;;  %v10897_v24 = vmax.f32 %v5358_v13, %v5429_v10  ;;  %v5641_v55 = vld [vmem:[%s11659_s3 + $0x200] sm:$0xff]  ;;  %v5494_v13 = vpop.permute.xlu1 %5493  ;;  %v5667_v10 = vld [vmem:[%s11659_s3 + $0x2d0] sm:$0xff] }
 0x89f   : > { %v7527_v36 = vpack.c.bf16 %v5642_v47, %v5641_v55 }
 0x8a0   : > { %v7842_v51 = vpack.i.bf16 %v10897_v24, %v10893_v62 }
 0x8a2   : > { %7843 = vrot.lane.b32.xlu0 %v7842_v51, %s7918_s28  ;;  %v5668_v51 = vld [vmem:[%s11659_s3 + $0x2d8] sm:$0xff] }
 0x8a3   : > { %v7545_v30 = vpack.c.bf16 %v5668_v51, %v5667_v10  ;;  %v5694_v10 = vld [vmem:[%s11659_s3 + $0x3a8] sm:$0xff] }
 0x8a6   : > { %5472 = vrot.lane.b32.xlu0 %v10601_v38, %s7906_s6  ;;  %s269_s6 = sadd.s32 %s7732_s5, %s11674_s15 }
 0x8a7   : > { %s6601_s7 = sshll.u32 %s269_s6, 3 }
 0x8a8   : > { %s271_s10 = scalar_lea.vmem %s11660_s4, %s6601_s7 }
 0x8bb   : > { %v10904_v33 = vpop.permute.xlu0 %7818 }
 0x8bc   : > { %v7821_v6 = vunpack.i.h.bf16 %v10904_v33  ;;  %v7820_v37 = vunpack.i.l.bf16 %v10904_v33 }
 0x8be   : > { %v5527_v1 = vsel %vm1181_vm9, %v5494_v13, %v7820_v37  ;;  %v5528_v54 = vsel %vm1181_vm9, %v7820_v37, %v7821_v6 }
 0x8bf   : > { %v5560_v18 = vmax.f32 %v5453_v15, %v5527_v1  ;;  %v5561_v0 = vmax.f32 %v10601_v38, %v5528_v54  ;;  %v7531_v38 = vpack.c.bf16 %v5644_v42, %v5643_v27  ;;  %v5649_v15 = vld [vmem:[%s11659_s3 + $0x240] sm:$0xff]  ;;  %v5651_v1 = vld [vmem:[%s11659_s3 + $0x250] sm:$0xff]  ;;  %v5672_v27 = vld [vmem:[%s11659_s3 + $0x2f8] sm:$0xff] }
 0x8c0   : > { %v7543_v47 = vpack.c.bf16 %v5650_v31, %v5649_v15 }
 0x8c1   : > { %5913 = vmatprep.mubr.f32.mxu1 %v5561_v0  ;;  %v5654_v0 = vld [vmem:[%s11659_s3 + $0x268] sm:$0xff] }
 0x8c2   : > { %5914 = vmatmul.mubr.f32.vlgmr.msra.gmra.mrb[26].mxu1 %v5560_v18  ;;  %v5653_v18 = vld [vmem:[%s11659_s3 + $0x260] sm:$0xff] }
 0x8c3   : > { %7528 = vmatpush3.bf16.msra.mxu1 %v7527_v36 }
 0x8c4   : > { %7530 = vmatprep.subr.bf16.mxu1 %v7529_v28  ;;  %v5671_v28 = vld [vmem:[%s11659_s3 + $0x2f0] sm:$0xff] }
 0x8c7   : > { %7532 = vmatpush3.bf16.msra.mxu1 %v7531_v38  ;;  %v5674_v38 = vld [vmem:[%s11659_s3 + $0x308] sm:$0xff] }
 0x8c8   : > { %7534 = vmatprep.subr.bf16.mxu1 %v7533_v12  ;;  %v7551_v12 = vpack.c.bf16 %v5654_v0, %v5653_v18  ;;  %v7559_v53 = vpack.c.bf16 %v5674_v38, %v5673_v57  ;;  %v5698_v18 = vld [vmem:[%s11659_s3 + $0x3c8] sm:$0xff]  ;;  %v5699_v57 = vld [vmem:[%s11659_s3 + $0x3d0] sm:$0xff]  ;;  %v5700_v38 = vld [vmem:[%s11659_s3 + $0x3d8] sm:$0xff] }
 0x8cb   : > { %7536 = vmatpush3.bf16.msra.mxu1 %v7535_v59  ;;  %v7553_v59 = vpack.c.bf16 %v5672_v27, %v5671_v28  ;;  %v5681_v27 = vld [vmem:[%s11659_s3 + $0x340] sm:$0xff] }
 0x8cc   : > { %v10961_v4 = vpop.permute.xlu0 %7823  ;;  %7538 = vmatprep.subr.bf16.mxu1 %v7537_v26  ;;  %v5655_v26 = vld [vmem:[%s11659_s3 + $0x270] sm:$0xff] }
 0x8cd   : > { %v7826_v40 = vunpack.i.h.bf16 %v10961_v4  ;;  %v7825_v50 = vunpack.i.l.bf16 %v10961_v4  ;;  %v7561_v4 = vpack.c.bf16 %v5692_v45, %v5691_v56  ;;  %v7555_v31 = vpack.c.bf16 %v5656_v19, %v5655_v26  ;;  %v5683_v45 = vld [vmem:[%s11659_s3 + $0x350] sm:$0xff] }
 0x8ce   : > { %v7577_v56 = vpack.c.bf16 %v5700_v38, %v5699_v57  ;;  %v5728_v57 = vld [vmem:[%s11659_s3 + $0x4b8] sm:$0xff] }
 0x8cf   : > { %v5430_v37 = vsel %vm2203_vm12, %v7816_v34, %v7825_v50  ;;  %v5431_v55 = vsel %vm2203_vm12, %v7825_v50, %v7826_v40  ;;  %7540 = vmatpush3.bf16.msra.mxu1 %v7539_v52  ;;  %v5652_v34 = vld [vmem:[%s11659_s3 + $0x258] sm:$0xff]  ;;  %v5693_v50 = vld [vmem:[%s11659_s3 + $0x3a0] sm:$0xff] }
 0x8d0   : > { %v10981_v13 = vmax.f32 %v5359_v43, %v5430_v37  ;;  %v10985_v29 = vmax.f32 %v5360_v14, %v5431_v55  ;;  %7542 = vmatprep.subr.bf16.mxu1 %v7541_v16  ;;  %v5670_v43 = vld [vmem:[%s11659_s3 + $0x2e8] sm:$0xff]  ;;  %v7547_v14 = vpack.c.bf16 %v5652_v34, %v5651_v1  ;;  %v5675_v16 = vld [vmem:[%s11659_s3 + $0x310] sm:$0xff]  ;;  %v7565_v34 = vpack.c.bf16 %v5694_v10, %v5693_v50 }
 0x8d1   : > { %v7549_v54 = vpack.c.bf16 %v5670_v43, %v5669_v61  ;;  %v5678_v61 = vld [vmem:[%s11659_s3 + $0x328] sm:$0xff] }
 0x8d2   : > { %v7847_v25 = vpack.i.bf16 %v10985_v29, %v10981_v13 }
 0x8d3   : > { %7544 = vmatpush3.bf16.msra.mxu1 %v7543_v47 }
 0x8d4   : > { %7848 = vrot.lane.b32.xlu1 %v7847_v25, %s7918_s28  ;;  %7546 = vmatprep.subr.bf16.mxu1 %v7545_v30  ;;  %v5679_v25 = vld [vmem:[%s11659_s3 + $0x330] sm:$0xff] }
 0x8d5   : > { %v11008_v36 = vpop.permute.xlu1 %7828 }
 0x8d6   : > { %v7831_v42 = vunpack.i.h.bf16 %v11008_v36  ;;  %v7830_v5 = vunpack.i.l.bf16 %v11008_v36  ;;  %v5708_v36 = vld [vmem:[%s11659_s3 + $0x418] sm:$0xff] }
 0x8d7   : > { %7548 = vmatpush3.bf16.msra.mxu1 %v7547_v14  ;;  %v5680_v14 = vld [vmem:[%s11659_s3 + $0x338] sm:$0xff] }
 0x8d8   : > { %v5529_v35 = vsel %vm1181_vm9, %v7821_v6, %v7830_v5  ;;  %v5530_v44 = vsel %vm1181_vm9, %v7830_v5, %v7831_v42  ;;  %7550 = vmatprep.subr.bf16.mxu1 %v7549_v54  ;;  %v5721_v6 = vld [vmem:[%s11659_s3 + $0x480] sm:$0xff]  ;;  %v7571_v0 = vpack.c.bf16 %v5680_v14, %v5679_v25  ;;  %v5682_v5 = vld [vmem:[%s11659_s3 + $0x348] sm:$0xff] }
 0x8d9   : > { %v5562_v58 = vmax.f32 %v10749_v22, %v5529_v35  ;;  %v5563_v33 = vmax.f32 %v10753_v63, %v5530_v44  ;;  %v5676_v22 = vld [vmem:[%s11659_s3 + $0x318] sm:$0xff]  ;;  %v7589_v51 = vpack.c.bf16 %v5722_v20, %v5721_v6  ;;  %v5697_v54 = vld [vmem:[%s11659_s3 + $0x3c0] sm:$0xff] }
 0x8da   : > { %v11050_v52 = vpop.permute.xlu0 %7833  ;;  %v7563_v47 = vpack.c.bf16 %v5676_v22, %v5675_v16  ;;  %v7573_v28 = vpack.c.bf16 %v5698_v18, %v5697_v54  ;;  %v5684_v35 = vld [vmem:[%s11659_s3 + $0x358] sm:$0xff]  ;;  %v5701_v44 = vld [vmem:[%s11659_s3 + $0x3e0] sm:$0xff]  ;;  %v5687_v16 = vld [vmem:[%s11659_s3 + $0x370] sm:$0xff] }
 0x8db   : > { %v7836_v63 = vunpack.i.h.bf16 %v11050_v52  ;;  %v7835_v15 = vunpack.i.l.bf16 %v11050_v52  ;;  %5983 = vmatprep.mubr.f32.mxu0 %v5563_v33  ;;  %7552 = vmatpush3.bf16.msra.mxu1 %v7551_v12  ;;  %v7575_v12 = vpack.c.bf16 %v5682_v5, %v5681_v27  ;;  %v7579_v26 = vpack.c.bf16 %v5684_v35, %v5683_v45  ;;  %v5686_v33 = vld [vmem:[%s11659_s3 + $0x368] sm:$0xff]  ;;  %v5704_v6 = vld [vmem:[%s11659_s3 + $0x3f8] sm:$0xff]  ;;  %v5707_v52 = vld [vmem:[%s11659_s3 + $0x410] sm:$0xff] }
 0x8dc   : > { %5984 = vmatmul.mubr.f32.vlgmr.msra.gmra.mrb[28].mxu0 %v5562_v58  ;;  %7554 = vmatprep.subr.bf16.mxu1 %v7553_v59  ;;  %v5702_v59 = vld [vmem:[%s11659_s3 + $0x3e8] sm:$0xff]  ;;  %v5685_v58 = vld [vmem:[%s11659_s3 + $0x360] sm:$0xff]  ;;  %v5688_v22 = vld [vmem:[%s11659_s3 + $0x378] sm:$0xff]  ;;  %v7595_v7 = vpack.c.bf16 %v5708_v36, %v5707_v52 }
 0x8dd   : > { %v5432_v37 = vsel %vm2203_vm12, %v7826_v40, %v7835_v15  ;;  %v5433_v55 = vsel %vm2203_vm12, %v7835_v15, %v7836_v63  ;;  %7560 = vmatpush3.bf16.msra.mxu0 %v7559_v53  ;;  %v5677_v40 = vld [vmem:[%s11659_s3 + $0x320] sm:$0xff]  ;;  %v7581_v19 = vpack.c.bf16 %v5702_v59, %v5701_v44  ;;  %v5703_v53 = vld [vmem:[%s11659_s3 + $0x3f0] sm:$0xff]  ;;  %v7583_v20 = vpack.c.bf16 %v5686_v33, %v5685_v58  ;;  %v5712_v45 = vld [vmem:[%s11659_s3 + $0x438] sm:$0xff] }
 0x8de   : > { %v11072_v30 = vmax.f32 %v5361_v23, %v5432_v37  ;;  %v11076_v1 = vmax.f32 %v5362_v41, %v5433_v55  ;;  %7562 = vmatprep.subr.bf16.mxu0 %v7561_v4  ;;  %v5696_v23 = vld [vmem:[%s11659_s3 + $0x3b8] sm:$0xff]  ;;  %v7567_v41 = vpack.c.bf16 %v5678_v61, %v5677_v40  ;;  %v7585_v4 = vpack.c.bf16 %v5704_v6, %v5703_v53  ;;  %v5753_v15 = vld [vmem:[%s11659_s3 + $0x580] sm:$0xff]  ;;  %v5706_v40 = vld [vmem:[%s11659_s3 + $0x408] sm:$0xff] }
 0x8df   : > { %7556 = vmatpush3.bf16.msra.mxu1 %v7555_v31  ;;  %v7569_v43 = vpack.c.bf16 %v5696_v23, %v5695_v17  ;;  %v5754_v31 = vld [vmem:[%s11659_s3 + $0x588] sm:$0xff]  ;;  %v7587_v50 = vpack.c.bf16 %v5688_v22, %v5687_v16  ;;  %v5723_v61 = vld [vmem:[%s11659_s3 + $0x490] sm:$0xff]  ;;  %v5724_v17 = vld [vmem:[%s11659_s3 + $0x498] sm:$0xff] }
 0x8e0   : > { %v7852_v48 = vpack.i.bf16 %v11076_v1, %v11072_v30  ;;  %7590 = vmatprep.subr.bf16.mxu1 %v7589_v51  ;;  %v7621_v10 = vpack.c.bf16 %v5754_v31, %v5753_v15  ;;  %v5417_v51 = vpop.permute.xlu0 %5416  ;;  %v5709_v5 = vld [vmem:[%s11659_s3 + $0x420] sm:$0xff]  ;;  %v5730_v44 = vld [vmem:[%s11659_s3 + $0x4c8] sm:$0xff]  ;;  %v5731_v33 = vld [vmem:[%s11659_s3 + $0x4d0] sm:$0xff] }
 0x8e1   : > { %7564 = vmatpush3.bf16.msra.mxu0 %v7563_v47  ;;  %v5434_v23 = vsel %vm2203_vm12, %v7836_v63, %v5417_v51  ;;  %v5726_v63 = vld [vmem:[%s11659_s3 + $0x4a8] sm:$0xff]  ;;  %v7599_v38 = vpack.c.bf16 %v5710_v2, %v5709_v5  ;;  %v5729_v35 = vld [vmem:[%s11659_s3 + $0x4c0] sm:$0xff]  ;;  %v5732_v53 = vld [vmem:[%s11659_s3 + $0x4d8] sm:$0xff] }
 0x8e2   : > { %7853 = vrot.lane.b32.xlu0 %v7852_v48, %s7918_s28  ;;  %7566 = vmatprep.subr.bf16.mxu0 %v7565_v34  ;;  %v5705_v34 = vld [vmem:[%s11659_s3 + $0x400] sm:$0xff]  ;;  %v5714_v58 = vld [vmem:[%s11659_s3 + $0x448] sm:$0xff]  ;;  %v5715_v22 = vld [vmem:[%s11659_s3 + $0x450] sm:$0xff] }
 0x8e3   : > { %v7591_v54 = vpack.c.bf16 %v5706_v40, %v5705_v34  ;;  %v5737_v16 = vld [vmem:[%s11659_s3 + $0x500] sm:$0xff]  ;;  %v5716_v15 = vld [vmem:[%s11659_s3 + $0x458] sm:$0xff]  ;;  %v5755_v34 = vld [vmem:[%s11659_s3 + $0x590] sm:$0xff] }
 0x8e4   : > { %v5756_v40 = vld [vmem:[%s11659_s3 + $0x598] sm:$0xff]  ;;  %v5757_v36 = vld [vmem:[%s11659_s3 + $0x5a0] sm:$0xff]  ;;  %v5742_v2 = vld [vmem:[%s11659_s3 + $0x528] sm:$0xff] }
 0x8e5   : > { %7568 = vmatpush3.bf16.msra.mxu0 %v7567_v41  ;;  %v5736_v52 = vld [vmem:[%s11659_s3 + $0x4f8] sm:$0xff] }
 0x8e6   : > { %7570 = vmatprep.subr.bf16.mxu0 %v7569_v43 }
 0x8e9   : > { %7572 = vmatpush3.bf16.msra.mxu0 %v7571_v0  ;;  %v7593_v0 = vpack.c.bf16 %v5724_v17, %v5723_v61 }
 0x8ea   : > { %7574 = vmatprep.subr.bf16.mxu0 %v7573_v28 }
 0x8ed   : > { %7576 = vmatpush3.bf16.msra.mxu0 %v7575_v12 }
 0x8ee   : > { %7578 = vmatprep.subr.bf16.mxu0 %v7577_v56  ;;  %v5711_v56 = vld [vmem:[%s11659_s3 + $0x430] sm:$0xff] }
 0x8ef   : > { %v7603_v59 = vpack.c.bf16 %v5712_v45, %v5711_v56 }
 0x8f1   : > { %7580 = vmatpush3.bf16.msra.mxu0 %v7579_v26  ;;  %v7605_v26 = vpack.c.bf16 %v5730_v44, %v5729_v35 }
 0x8f2   : > { %7582 = vmatprep.subr.bf16.mxu0 %v7581_v19  ;;  %v5713_v19 = vld [vmem:[%s11659_s3 + $0x440] sm:$0xff] }
 0x8f3   : > { %v7607_v6 = vpack.c.bf16 %v5714_v58, %v5713_v19  ;;  %v5761_v19 = vld [vmem:[%s11659_s3 + $0x5c0] sm:$0xff]  ;;  %v5762_v58 = vld [vmem:[%s11659_s3 + $0x5c8] sm:$0xff] }
 0x8f5   : > { %7584 = vmatpush3.bf16.msra.mxu0 %v7583_v20  ;;  %v7609_v20 = vpack.c.bf16 %v5732_v53, %v5731_v33  ;;  %v7637_v53 = vpack.c.bf16 %v5762_v58, %v5761_v19  ;;  %v5793_v58 = vld [vmem:[%s11659_s3 + $0x6c0] sm:$0xff] }
 0x8f6   : > { %7586 = vmatprep.subr.bf16.mxu0 %v7585_v4 }
 0x8f9   : > { %7588 = vmatpush3.bf16.msra.mxu0 %v7587_v50 }
 0x8fa   : > { %7622 = vmatprep.subr.bf16.mxu0 %v7621_v10  ;;  %v5738_v10 = vld [vmem:[%s11659_s3 + $0x508] sm:$0xff] }
 0x8fe   : > { %v11153_v37 = vpop.permute.xlu1 %7838 }
 0x8ff   : > { %v7841_v55 = vunpack.i.h.bf16 %v11153_v37  ;;  %v7840_v47 = vunpack.i.l.bf16 %v11153_v37  ;;  %v5717_v37 = vld [vmem:[%s11659_s3 + $0x460] sm:$0xff] }
 0x901   : > { %v5531_v48 = vsel %vm1181_vm9, %v7831_v42, %v7840_v47  ;;  %v5532_v41 = vsel %vm1181_vm9, %v7840_v47, %v7841_v55  ;;  %v11189_v42 = vmax.f32 %v5363_v32, %v5434_v23  ;;  %v5734_v47 = vld [vmem:[%s11659_s3 + $0x4e8] sm:$0xff]  ;;  %v7611_v23 = vpack.c.bf16 %v5716_v15, %v5715_v22  ;;  %v5764_v22 = vld [vmem:[%s11659_s3 + $0x5d8] sm:$0xff] }
 0x902   : > { %v5564_v43 = vmax.f32 %v10823_v60, %v5531_v48  ;;  %v5419_v25 = vpop.permute.xlu1 %5418  ;;  %v5565_v14 = vmax.f32 %v10827_v49, %v5532_v41  ;;  %v5725_v49 = vld [vmem:[%s11659_s3 + $0x4a0] sm:$0xff] }
 0x903   : > { %v5435_v18 = vsel %vm2203_vm12, %v5417_v51, %v5419_v25  ;;  %v11203_v28 = vmax.f32 %v5365_v46, %v5419_v25  ;;  %v7597_v27 = vpack.c.bf16 %v5726_v63, %v5725_v49  ;;  %v5727_v46 = vld [vmem:[%s11659_s3 + $0x4b0] sm:$0xff]  ;;  %v5733_v51 = vld [vmem:[%s11659_s3 + $0x4e0] sm:$0xff]  ;;  %v7623_v25 = vpack.c.bf16 %v5738_v10, %v5737_v16  ;;  %v5758_v49 = vld [vmem:[%s11659_s3 + $0x5a8] sm:$0xff] }
 0x904   : > { %v11193_v60 = vmax.f32 %v5364_v8, %v5435_v18  ;;  %6053 = vmatprep.mubr.f32.mxu1 %v5565_v14  ;;  %v7601_v12 = vpack.c.bf16 %v5728_v57, %v5727_v46  ;;  %v5739_v14 = vld [vmem:[%s11659_s3 + $0x510] sm:$0xff]  ;;  %v7629_v5 = vpack.c.bf16 %v5758_v49, %v5757_v36  ;;  %v5785_v46 = vld [vmem:[%s11659_s3 + $0x680] sm:$0xff]  ;;  %v5786_v57 = vld [vmem:[%s11659_s3 + $0x688] sm:$0xff] }
 0x905   : > { %6054 = vmatmul.mubr.f32.vlgmr.msra.gmra.mrb[28].mxu1 %v5564_v43  ;;  %v7653_v35 = vpack.c.bf16 %v5786_v57, %v5785_v46  ;;  %v5763_v16 = vld [vmem:[%s11659_s3 + $0x5d0] sm:$0xff]  ;;  %v5769_v36 = vld [vmem:[%s11659_s3 + $0x600] sm:$0xff]  ;;  %v5770_v49 = vld [vmem:[%s11659_s3 + $0x608] sm:$0xff] }
 0x906   : > { %v7857_v39 = vpack.i.bf16 %v11193_v60, %v11189_v42  ;;  %v5471_v32 = vpop.permute.xlu1 %5470  ;;  %7592 = vmatpush3.bf16.msra.mxu1 %v7591_v54  ;;  %v7613_v54 = vpack.c.bf16 %v5734_v47, %v5733_v51  ;;  %v5747_v10 = vld [vmem:[%s11659_s3 + $0x550] sm:$0xff]  ;;  %v5748_v51 = vld [vmem:[%s11659_s3 + $0x558] sm:$0xff]  ;;  %v5765_v47 = vld [vmem:[%s11659_s3 + $0x5e0] sm:$0xff] }
 0x907   : > { %v5474_v8 = vsel %vm307_vm10, %v5471_v32, %v11203_v28  ;;  %7594 = vmatprep.subr.bf16.mxu1 %v7593_v0  ;;  %v5735_v0 = vld [vmem:[%s11659_s3 + $0x4f0] sm:$0xff]  ;;  %v5772_v57 = vld [vmem:[%s11659_s3 + $0x618] sm:$0xff] }
 0x908   : > { %7858 = vrot.lane.b32.xlu1 %v7857_v39, %s7918_s28  ;;  %5523 = vrot.lane.b32.xlu0 %v5474_v8, %s7918_s28  ;;  %v5719_v8 = vld [vmem:[%s11659_s3 + $0x470] sm:$0xff] }
 0x909   : > { %v5771_v46 = vld [vmem:[%s11659_s3 + $0x610] sm:$0xff] }
 0x90a   : > { %7596 = vmatpush3.bf16.msra.mxu1 %v7595_v7  ;;  %v7617_v7 = vpack.c.bf16 %v5736_v52, %v5735_v0 }
 0x90b   : > { %7598 = vmatprep.subr.bf16.mxu1 %v7597_v27  ;;  %v5720_v27 = vld [vmem:[%s11659_s3 + $0x478] sm:$0xff] }
 0x90c   : > { %v7619_v56 = vpack.c.bf16 %v5720_v27, %v5719_v8 }
 0x90e   : > { %7600 = vmatpush3.bf16.msra.mxu1 %v7599_v38  ;;  %v5759_v38 = vld [vmem:[%s11659_s3 + $0x5b0] sm:$0xff] }
 0x90f   : > { %7602 = vmatprep.subr.bf16.mxu1 %v7601_v12  ;;  %v5760_v12 = vld [vmem:[%s11659_s3 + $0x5b8] sm:$0xff] }
 0x910   : > { %v7633_v44 = vpack.c.bf16 %v5760_v12, %v5759_v38  ;;  %v5773_v38 = vld [vmem:[%s11659_s3 + $0x620] sm:$0xff]  ;;  %v5774_v12 = vld [vmem:[%s11659_s3 + $0x628] sm:$0xff] }
 0x912   : > { %7604 = vmatpush3.bf16.msra.mxu1 %v7603_v59  ;;  %v5743_v59 = vld [vmem:[%s11659_s3 + $0x530] sm:$0xff] }
 0x913   : > { %7606 = vmatprep.subr.bf16.mxu1 %v7605_v26  ;;  %v5744_v26 = vld [vmem:[%s11659_s3 + $0x538] sm:$0xff] }
 0x914   : > { %v11247_v4 = vpop.permute.xlu0 %7843  ;;  %v7635_v33 = vpack.c.bf16 %v5744_v26, %v5743_v59  ;;  %v5775_v59 = vld [vmem:[%s11659_s3 + $0x630] sm:$0xff]  ;;  %v5776_v26 = vld [vmem:[%s11659_s3 + $0x638] sm:$0xff] }
 0x915   : > { %v7846_v31 = vunpack.i.h.bf16 %v11247_v4  ;;  %v7845_v50 = vunpack.i.l.bf16 %v11247_v4  ;;  %v5789_v4 = vld [vmem:[%s11659_s3 + $0x6a0] sm:$0xff] }
 0x916   : > { %7608 = vmatpush3.bf16.msra.mxu1 %v7607_v6  ;;  %v5745_v6 = vld [vmem:[%s11659_s3 + $0x540] sm:$0xff] }
 0x917   : > { %v5533_v61 = vsel %vm1181_vm9, %v7841_v55, %v7845_v50  ;;  %v5534_v17 = vsel %vm1181_vm9, %v7845_v50, %v7846_v31  ;;  %7610 = vmatprep.subr.bf16.mxu1 %v7609_v20  ;;  %v5718_v55 = vld [vmem:[%s11659_s3 + $0x468] sm:$0xff]  ;;  %v7641_v50 = vpack.c.bf16 %v5764_v22, %v5763_v16  ;;  %v7667_v22 = vpack.c.bf16 %v5776_v26, %v5775_v59  ;;  %v5809_v59 = vld [vmem:[%s11659_s3 + $0x740] sm:$0xff] }
 0x918   : > { %v5566_v48 = vmax.f32 %v10871_v3, %v5533_v61  ;;  %v5473_v41 = vpop.permute.xlu0 %5472  ;;  %v5567_v43 = vmax.f32 %v10875_v21, %v5534_v17  ;;  %v7625_v3 = vpack.c.bf16 %v5756_v40, %v5755_v34  ;;  %v5740_v21 = vld [vmem:[%s11659_s3 + $0x518] sm:$0xff]  ;;  %v7615_v63 = vpack.c.bf16 %v5718_v55, %v5717_v37  ;;  %v5746_v20 = vld [vmem:[%s11659_s3 + $0x548] sm:$0xff]  ;;  %v5749_v17 = vld [vmem:[%s11659_s3 + $0x560] sm:$0xff] }
 0x919   : > { %v5475_v18 = vsel %vm307_vm10, %v5473_v41, %v5471_v32  ;;  %v7627_v39 = vpack.c.bf16 %v5740_v21, %v5739_v14  ;;  %v5741_v32 = vld [vmem:[%s11659_s3 + $0x520] sm:$0xff]  ;;  %v7639_v15 = vpack.c.bf16 %v5746_v20, %v5745_v6  ;;  %v5766_v34 = vld [vmem:[%s11659_s3 + $0x5e8] sm:$0xff]  ;;  %v7643_v40 = vpack.c.bf16 %v5748_v51, %v5747_v10  ;;  %v5768_v41 = vld [vmem:[%s11659_s3 + $0x5f8] sm:$0xff] }
 0x91a   : > { %5525 = vrot.lane.b32.xlu1 %v5475_v18, %s7918_s28  ;;  %6123 = vmatprep.mubr.f32.mxu0 %v5567_v43  ;;  %v7631_v45 = vpack.c.bf16 %v5742_v2, %v5741_v32  ;;  %v7645_v61 = vpack.c.bf16 %v5766_v34, %v5765_v47  ;;  %v5751_v14 = vld [vmem:[%s11659_s3 + $0x570] sm:$0xff]  ;;  %v5817_v37 = vld [vmem:[%s11659_s3 + $0x780] sm:$0xff]  ;;  %v5818_v55 = vld [vmem:[%s11659_s3 + $0x788] sm:$0xff] }
 0x91b   : > { %6124 = vmatmul.mubr.f32.vlgmr.msra.gmra.mrb[30].mxu0 %v5566_v48  ;;  %7612 = vmatpush3.bf16.msra.mxu1 %v7611_v23  ;;  %v5750_v23 = vld [vmem:[%s11659_s3 + $0x568] sm:$0xff]  ;;  %v5767_v48 = vld [vmem:[%s11659_s3 + $0x5f0] sm:$0xff]  ;;  %v5801_v20 = vld [vmem:[%s11659_s3 + $0x700] sm:$0xff] }
 0x91c   : > { %7624 = vmatpush3.bf16.msra.mxu0 %v7623_v25  ;;  %7614 = vmatprep.subr.bf16.mxu1 %v7613_v54  ;;  %v7647_v43 = vpack.c.bf16 %v5750_v23, %v5749_v17  ;;  %v7649_v25 = vpack.c.bf16 %v5768_v41, %v5767_v48  ;;  %v5752_v54 = vld [vmem:[%s11659_s3 + $0x578] sm:$0xff]  ;;  %v5802_v16 = vld [vmem:[%s11659_s3 + $0x708] sm:$0xff]  ;;  %v5777_v34 = vld [vmem:[%s11659_s3 + $0x640] sm:$0xff] }
 0x91d   : > { %7626 = vmatprep.subr.bf16.mxu0 %v7625_v3  ;;  %v7651_v18 = vpack.c.bf16 %v5752_v54, %v5751_v14  ;;  %v7685_v3 = vpack.c.bf16 %v5818_v55, %v5817_v37  ;;  %v7687_v23 = vpack.c.bf16 %v5802_v16, %v5801_v20  ;;  %v5795_v48 = vld [vmem:[%s11659_s3 + $0x6d0] sm:$0xff]  ;;  %v5796_v41 = vld [vmem:[%s11659_s3 + $0x6d8] sm:$0xff]  ;;  %v5821_v14 = vld [vmem:[%s11659_s3 + $0x7a0] sm:$0xff] }
 0x91e   : > { %v5822_v54 = vld [vmem:[%s11659_s3 + $0x7a8] sm:$0xff]  ;;  %v7673_v37 = vpack.c.bf16 %v5796_v41, %v5795_v48  ;;  %v5779_v55 = vld [vmem:[%s11659_s3 + $0x650] sm:$0xff] }
 0x91f   : > { %7616 = vmatpush3.bf16.msra.mxu1 %v7615_v63  ;;  %v5787_v63 = vld [vmem:[%s11659_s3 + $0x690] sm:$0xff]  ;;  %v5810_v26 = vld [vmem:[%s11659_s3 + $0x748] sm:$0xff] }
 0x920   : > { %7628 = vmatpush3.bf16.msra.mxu0 %v7627_v39  ;;  %7618 = vmatprep.subr.bf16.mxu1 %v7617_v7  ;;  %v5788_v39 = vld [vmem:[%s11659_s3 + $0x698] sm:$0xff]  ;;  %v7703_v20 = vpack.c.bf16 %v5810_v26, %v5809_v59  ;;  %v5815_v41 = vld [vmem:[%s11659_s3 + $0x770] sm:$0xff] }
 0x921   : > { %7630 = vmatprep.subr.bf16.mxu0 %v7629_v5  ;;  %v7655_v5 = vpack.c.bf16 %v5770_v49, %v5769_v36  ;;  %v7657_v2 = vpack.c.bf16 %v5788_v39, %v5787_v63  ;;  %v5805_v36 = vld [vmem:[%s11659_s3 + $0x720] sm:$0xff]  ;;  %v5806_v49 = vld [vmem:[%s11659_s3 + $0x728] sm:$0xff]  ;;  %v5823_v39 = vld [vmem:[%s11659_s3 + $0x7b0] sm:$0xff] }
 0x923   : > { %7620 = vmatpush3.bf16.msra.mxu1 %v7619_v56  ;;  %v5791_v56 = vld [vmem:[%s11659_s3 + $0x6b0] sm:$0xff] }
 0x924   : > { %7632 = vmatpush3.bf16.msra.mxu0 %v7631_v45  ;;  %7654 = vmatprep.subr.bf16.mxu1 %v7653_v35  ;;  %v5792_v45 = vld [vmem:[%s11659_s3 + $0x6b8] sm:$0xff]  ;;  %v7663_v35 = vpack.c.bf16 %v5774_v12, %v5773_v38  ;;  %v5826_v38 = vld [vmem:[%s11659_s3 + $0x7c8] sm:$0xff] }
 0x925   : > { %7634 = vmatprep.subr.bf16.mxu0 %v7633_v44  ;;  %v7665_v44 = vpack.c.bf16 %v5792_v45, %v5791_v56  ;;  %v5783_v56 = vld [vmem:[%s11659_s3 + $0x670] sm:$0xff]  ;;  %v5784_v45 = vld [vmem:[%s11659_s3 + $0x678] sm:$0xff] }
 0x928   : > { %7636 = vmatpush3.bf16.msra.mxu0 %v7635_v33  ;;  %v5794_v33 = vld [vmem:[%s11659_s3 + $0x6c8] sm:$0xff] }
 0x929   : > { %7638 = vmatprep.subr.bf16.mxu0 %v7637_v53  ;;  %v7669_v47 = vpack.c.bf16 %v5794_v33, %v5793_v58  ;;  %v7683_v58 = vpack.c.bf16 %v5784_v45, %v5783_v56  ;;  %v5827_v33 = vld [vmem:[%s11659_s3 + $0x7d0] sm:$0xff] }
 0x92c   : > { %7640 = vmatpush3.bf16.msra.mxu0 %v7639_v15  ;;  %v5819_v15 = vld [vmem:[%s11659_s3 + $0x790] sm:$0xff] }
 0x92d   : > { %7642 = vmatprep.subr.bf16.mxu0 %v7641_v50  ;;  %v5820_v50 = vld [vmem:[%s11659_s3 + $0x798] sm:$0xff] }
 0x930   : > { %7644 = vmatpush3.bf16.msra.mxu0 %v7643_v40  ;;  %v5778_v40 = vld [vmem:[%s11659_s3 + $0x648] sm:$0xff] }
 0x931   : > { %7646 = vmatprep.subr.bf16.mxu0 %v7645_v61 }
 0x934   : > { %7648 = vmatpush3.bf16.msra.mxu0 %v7647_v43  ;;  %v7689_v43 = vpack.c.bf16 %v5820_v50, %v5819_v15  ;;  %v5812_v15 = vld [vmem:[%s11659_s3 + $0x758] sm:$0xff]  ;;  %v5829_v50 = vld [vmem:[%s11659_s3 + $0x7e0] sm:$0xff] }
 0x935   : > { %7650 = vmatprep.subr.bf16.mxu0 %v7649_v25  ;;  %v5803_v25 = vld [vmem:[%s11659_s3 + $0x710] sm:$0xff] }
 0x938   : > { %7652 = vmatpush3.bf16.msra.mxu0 %v7651_v18  ;;  %v5780_v18 = vld [vmem:[%s11659_s3 + $0x658] sm:$0xff] }
 0x939   : > { %7686 = vmatprep.subr.bf16.mxu0 %v7685_v3  ;;  %v7675_v63 = vpack.c.bf16 %v5780_v18, %v5779_v55 }
 0x946   : > { %v7849_v21 = vpop.permute.xlu1 %7848 }
 0x947   : > { %v7851_v0 = vunpack.i.h.bf16 %v7849_v21  ;;  %v7850_v52 = vunpack.i.l.bf16 %v7849_v21  ;;  %v5797_v21 = vld [vmem:[%s11659_s3 + $0x6e0] sm:$0xff] }
 0x949   : > { %v5535_v32 = vsel %vm1181_vm9, %v7846_v31, %v7850_v52  ;;  %v5536_v7 = vsel %vm1181_vm9, %v7850_v52, %v7851_v0  ;;  %v7693_v52 = vpack.c.bf16 %v5822_v54, %v5821_v14  ;;  %v5833_v54 = vld [vmem:[%s11659_s3 + $0x800] sm:$0xff] }
 0x94a   : > { %v5568_v8 = vmax.f32 %v10893_v62, %v5535_v32  ;;  %v5569_v27 = vmax.f32 %v10897_v24, %v5536_v7  ;;  %v5790_v62 = vld [vmem:[%s11659_s3 + $0x6a8] sm:$0xff]  ;;  %v7659_v24 = vpack.c.bf16 %v5772_v57, %v5771_v46  ;;  %v5824_v32 = vld [vmem:[%s11659_s3 + $0x7b8] sm:$0xff] }
 0x94b   : > { %v7661_v31 = vpack.c.bf16 %v5790_v62, %v5789_v4  ;;  %v5800_v46 = vld [vmem:[%s11659_s3 + $0x6f8] sm:$0xff]  ;;  %v7697_v57 = vpack.c.bf16 %v5824_v32, %v5823_v39  ;;  %v5807_v4 = vld [vmem:[%s11659_s3 + $0x730] sm:$0xff] }
 0x94c   : > { %6193 = vmatprep.mubr.f32.mxu1 %v5569_v27  ;;  %v5782_v27 = vld [vmem:[%s11659_s3 + $0x668] sm:$0xff]  ;;  %v5808_v62 = vld [vmem:[%s11659_s3 + $0x738] sm:$0xff] }
 0x94d   : > { %6194 = vmatmul.mubr.f32.vlgmr.msra.gmra.mrb[30].mxu1 %v5568_v8  ;;  %v5781_v8 = vld [vmem:[%s11659_s3 + $0x660] sm:$0xff] }
 0x94e   : > { %7656 = vmatpush3.bf16.msra.mxu1 %v7655_v5  ;;  %v7695_v5 = vpack.c.bf16 %v5806_v49, %v5805_v36  ;;  %v5836_v36 = vld [vmem:[%s11659_s3 + $0x818] sm:$0xff]  ;;  %v5839_v49 = vld [vmem:[%s11659_s3 + $0x830] sm:$0xff] }
 0x94f   : > { %7658 = vmatprep.subr.bf16.mxu1 %v7657_v2  ;;  %v5799_v2 = vld [vmem:[%s11659_s3 + $0x6f0] sm:$0xff] }
 0x950   : > { %v7681_v12 = vpack.c.bf16 %v5800_v46, %v5799_v2  ;;  %v5841_v46 = vld [vmem:[%s11659_s3 + $0x840] sm:$0xf] }
 0x952   : > { %7660 = vmatpush3.bf16.msra.mxu1 %v7659_v24  ;;  %v7679_v24 = vpack.c.bf16 %v5782_v27, %v5781_v8 }
 0x953   : > { %7662 = vmatprep.subr.bf16.mxu1 %v7661_v31  ;;  %v5825_v31 = vld [vmem:[%s11659_s3 + $0x7c0] sm:$0xff] }
 0x954   : > { %v11441_v19 = vpop.permute.xlu0 %7853 }
 0x955   : > { %v7856_v53 = vunpack.i.h.bf16 %v11441_v19  ;;  %v7855_v6 = vunpack.i.l.bf16 %v11441_v19 }
 0x956   : > { %7664 = vmatpush3.bf16.msra.mxu1 %v7663_v35  ;;  %v7699_v35 = vpack.c.bf16 %v5808_v62, %v5807_v4 }
 0x957   : > { %v5537_v10 = vsel %vm1181_vm9, %v7851_v0, %v7855_v6  ;;  %v5538_v51 = vsel %vm1181_vm9, %v7855_v6, %v7856_v53  ;;  %7666 = vmatprep.subr.bf16.mxu1 %v7665_v44  ;;  %v5798_v0 = vld [vmem:[%s11659_s3 + $0x6e8] sm:$0xff]  ;;  %v7701_v44 = vpack.c.bf16 %v5826_v38, %v5825_v31  ;;  %v5828_v6 = vld [vmem:[%s11659_s3 + $0x7d8] sm:$0xff] }
 0x958   : > { %v5570_v61 = vmax.f32 %v10981_v13, %v5537_v10  ;;  %v5571_v17 = vmax.f32 %v10985_v29, %v5538_v51  ;;  %v5804_v13 = vld [vmem:[%s11659_s3 + $0x718] sm:$0xff]  ;;  %v7671_v29 = vpack.c.bf16 %v5778_v40, %v5777_v34  ;;  %v7677_v7 = vpack.c.bf16 %v5798_v0, %v5797_v21  ;;  %v5830_v10 = vld [vmem:[%s11659_s3 + $0x7e8] sm:$0xff]  ;;  %v5813_v34 = vld [vmem:[%s11659_s3 + $0x760] sm:$0xff] }
 0x959   : > { %v7691_v3 = vpack.c.bf16 %v5804_v13, %v5803_v25  ;;  %v7705_v16 = vpack.c.bf16 %v5828_v6, %v5827_v33  ;;  %v5814_v40 = vld [vmem:[%s11659_s3 + $0x768] sm:$0xff] }
 0x95a   : > { %6263 = vmatprep.mubr.f32.mxu0 %v5571_v17  ;;  %7668 = vmatpush3.bf16.msra.mxu1 %v7667_v22  ;;  %v5811_v22 = vld [vmem:[%s11659_s3 + $0x750] sm:$0xff]  ;;  %v5832_v17 = vld [vmem:[%s11659_s3 + $0x7f8] sm:$0xff] }
 0x95b   : > { %6264 = vmatmul.mubr.f32.vlgmr.msra.gmra.mrb[32].mxu0 %v5570_v61  ;;  %7670 = vmatprep.subr.bf16.mxu1 %v7669_v47  ;;  %v7707_v51 = vpack.c.bf16 %v5812_v15, %v5811_v22  ;;  %v7709_v47 = vpack.c.bf16 %v5830_v10, %v5829_v50  ;;  %v5831_v61 = vld [vmem:[%s11659_s3 + $0x7f0] sm:$0xff] }
 0x95c   : > { %7688 = vmatpush3.bf16.msra.mxu0 %v7687_v23  ;;  %v7711_v23 = vpack.c.bf16 %v5814_v40, %v5813_v34  ;;  %v7713_v48 = vpack.c.bf16 %v5832_v17, %v5831_v61 }
 0x95d   : > { %7690 = vmatprep.subr.bf16.mxu0 %v7689_v43  ;;  %v5816_v43 = vld [vmem:[%s11659_s3 + $0x778] sm:$0xff] }
 0x95e   : > { %7672 = vmatpush3.bf16.msra.mxu1 %v7671_v29  ;;  %v7715_v25 = vpack.c.bf16 %v5816_v43, %v5815_v41 }
 0x95f   : > { %7674 = vmatprep.subr.bf16.mxu1 %v7673_v37  ;;  %v5834_v37 = vld [vmem:[%s11659_s3 + $0x808] sm:$0xff] }
 0x960   : > { %7692 = vmatpush3.bf16.msra.mxu0 %v7691_v3  ;;  %v7718_v0 = vpack.c.bf16 %v5834_v37, %v5833_v54 }
 0x961   : > { %7694 = vmatprep.subr.bf16.mxu0 %v7693_v52  ;;  %v5835_v52 = vld [vmem:[%s11659_s3 + $0x810] sm:$0xff] }
 0x962   : > { %7676 = vmatpush3.bf16.msra.mxu1 %v7675_v63  ;;  %v7721_v19 = vpack.c.bf16 %v5836_v36, %v5835_v52  ;;  %v5840_v63 = vld [vmem:[%s11659_s3 + $0x838] sm:$0xff] }
 0x963   : > { %7678 = vmatprep.subr.bf16.mxu1 %v7677_v7  ;;  %v7727_v39 = vpack.c.bf16 %v5840_v63, %v5839_v49 }
 0x964   : > { %7696 = vmatpush3.bf16.msra.mxu0 %v7695_v5 }
 0x965   : > { %7698 = vmatprep.subr.bf16.mxu0 %v7697_v57 }
 0x966   : > { %7680 = vmatpush3.bf16.msra.mxu1 %v7679_v24 }
 0x967   : > { %7682 = vmatprep.subr.bf16.mxu1 %v7681_v12 }
 0x968   : > { %7700 = vmatpush3.bf16.msra.mxu0 %v7699_v35 }
 0x969   : > { %7702 = vmatprep.subr.bf16.mxu0 %v7701_v44 }
 0x96a   : > { %7684 = vmatpush3.bf16.msra.mxu1 %v7683_v58 }
 0x96b   : > { %7717 = vmatprep.subr.bf16.mxu1 %v7914_v11 }
 0x96c   : > { %7704 = vmatpush3.bf16.msra.mxu0 %v7703_v20 }
 0x96d   : > { %7706 = vmatprep.subr.bf16.mxu0 %v7705_v16 }
 0x970   : > { %7708 = vmatpush3.bf16.msra.mxu0 %v7707_v51 }
 0x971   : > { %7710 = vmatprep.subr.bf16.mxu0 %v7709_v47 }
 0x974   : > { %7712 = vmatpush3.bf16.msra.mxu0 %v7711_v23 }
 0x975   : > { %7714 = vmatprep.subr.bf16.mxu0 %v7713_v48 }
 0x978   : > { %7716 = vmatpush3.bf16.msra.mxu0 %v7715_v25 }
 0x97a   : > { %v7859_v13 = vpop.permute.xlu1 %7858  ;;  %v5524_v32 = vpop.permute.xlu0 %5523 }
 0x97b   : > { %v7861_v29 = vunpack.i.h.bf16 %v7859_v13  ;;  %v7860_v14 = vunpack.i.l.bf16 %v7859_v13 }
 0x97d   : > { %v5539_v55 = vsel %vm1181_vm9, %v7856_v53, %v7860_v14  ;;  %v5540_v18 = vsel %vm1181_vm9, %v7860_v14, %v7861_v29  ;;  %v5541_v7 = vsel %vm1181_vm9, %v7861_v29, %v5524_v32 }
 0x97e   : > { %v5572_v3 = vmax.f32 %v11072_v30, %v5539_v55  ;;  %v5573_v21 = vmax.f32 %v11076_v1, %v5540_v18  ;;  %v5837_v30 = vld [vmem:[%s11659_s3 + $0x820] sm:$0xff]  ;;  %v5838_v1 = vld [vmem:[%s11659_s3 + $0x828] sm:$0xff]  ;;  %v5574_v2 = vmax.f32 %v11189_v42, %v5541_v7 }
 0x97f   : > { %v7724_v53 = vpack.c.bf16 %v5838_v1, %v5837_v30 }
 0x980   : > { %6333 = vmatprep.mubr.f32.mxu1 %v5573_v21 }
 0x981   : > { %6334 = vmatmul.mubr.f32.vlgmr.msra.gmra.mrb[32].mxu1 %v5572_v3 }
 0x982   : > { %7719 = vmatpush3.bf16.msra.mxu1 %v7718_v0  ;;  %7038 = vmatprep.mubr.msk.f32.mxu1 %vm7915_vm11, %v7911_v9 }
 0x983   : > { %7720 = vmatprep.subr.bf16.mxu1 %v7914_v11 }
 0x986   : > { %7722 = vmatpush3.bf16.msra.mxu1 %v7721_v19 }
 0x987   : > { %7723 = vmatprep.subr.bf16.mxu1 %v7914_v11 }
 0x98a   : > { %7725 = vmatpush3.bf16.msra.mxu1 %v7724_v53 }
 0x98b   : > { %7726 = vmatprep.subr.bf16.mxu1 %v7914_v11 }
 0x98c   : > { %v5526_v8 = vpop.permute.xlu1 %5525 }
 0x98d   : > { %v5542_v27 = vsel %vm1181_vm9, %v5524_v32, %v5526_v8  ;;  %v5576_v11 = vmax.f32 %v11203_v28, %v5526_v8 }
 0x98e   : > { %v5575_v5 = vmax.f32 %v11193_v60, %v5542_v27  ;;  %7728 = vmatpush3.bf16.msra.mxu1 %v7727_v39 }
 0x98f   : > { %7036 = vmatprep.subr.mxu1 %v7911_v9 }
 0x990   : > { %6403 = vmatprep.mubr.f32.mxu0 %v5575_v5 }
 0x991   : > { %6404 = vmatmul.mubr.f32.vlgmr.msra.gmra.mrb[34].mxu0 %v5574_v2 }
 0x992   : > { %7037 = vmatpush3.msk.msra.mxu1 %vm5845_vm5, %v5841_v46 }
 0x993   : > { %7039 = vmatmul.mubr.msk.f32.vlgmr.msra.gmra.mrb[34].mxu1 %vm305_vm0, %v5576_v11 }
 0x995   : > { %v6699_v57 = vpop.f32.mrb[26].mxu1 }
 0x996   : > { %v6700_v4 = vpop.f32.mrb[27].mxu1 }
 0x997   : > { %v6701_v60 = vadd.f32 %v6700_v4, %v6699_v57 }
 0x9af   : > { %v6734_v62 = vpop.f32.mrb[28].mxu0 }
 0x9b0   : > { %v6735_v24 = vpop.f32.mrb[29].mxu0 }
 0x9b1   : > { %v6736_v42 = vadd.f32 %v6735_v24, %v6734_v62 }
 0x9b3   : > { %v5986_v31 = vadd.f32 %v6736_v42, %v6701_v60 }
 0x9d8   : > { %v6769_v9 = vpop.f32.mrb[28].mxu1 }
 0x9d9   : > { %v6770_v38 = vpop.f32.mrb[29].mxu1 }
 0x9da   : > { %v6771_v12 = vadd.f32 %v6770_v38, %v6769_v9 }
 0x9dc   : > { %v6056_v56 = vadd.f32 %v6771_v12, %v5986_v31 }
 0x9ee   : > { %v6804_v45 = vpop.f32.mrb[30].mxu0 }
 0x9ef   : > { %v6805_v35 = vpop.f32.mrb[31].mxu0 }
 0x9f0   : > { %v6806_v28 = vadd.f32 %v6805_v35, %v6804_v45 }
 0x9f2   : > { %v6126_v44 = vadd.f32 %v6806_v28, %v6056_v56 }
 0xa20   : > { %v6839_v59 = vpop.f32.mrb[30].mxu1 }
 0xa21   : > { %v6840_v26 = vpop.f32.mrb[31].mxu1 }
 0xa22   : > { %v6841_v58 = vadd.f32 %v6840_v26, %v6839_v59 }
 0xa24   : > { %v6196_v33 = vadd.f32 %v6841_v58, %v6126_v44 }
 0xa2e   : > { %v6874_v6 = vpop.f32.mrb[32].mxu0 }
 0xa2f   : > { %v6875_v20 = vpop.f32.mrb[33].mxu0 }
 0xa30   : > { %v6876_v16 = vadd.f32 %v6875_v20, %v6874_v6 }
 0xa32   : > { %v6266_v22 = vadd.f32 %v6876_v16, %v6196_v33 }
 0xa54   : > { %v6909_v15 = vpop.f32.mrb[32].mxu1 }
 0xa55   : > { %v6910_v50 = vpop.f32.mrb[33].mxu1 }
 0xa56   : > { %v6911_v10 = vadd.f32 %v6910_v50, %v6909_v15 }
 0xa58   : > { %v6336_v51 = vadd.f32 %v6911_v10, %v6266_v22 }
 0xa64   : > { %v6944_v47 = vpop.f32.mrb[34].mxu0 }
 0xa65   : > { %v6945_v34 = vpop.f32.mrb[35].mxu0 }
 0xa66   : > { %v6946_v40 = vadd.f32 %v6945_v34, %v6944_v47  ;;  %v6475_v61 = vpop.f32.mrb[34].mxu1 }
 0xa67   : > { %v7040_v17 = vpop.f32.mrb[35].mxu1 }
 0xa68   : > { %v6406_v23 = vadd.f32 %v6946_v40, %v6336_v51 }
 0xa6a   : > { %v6476_v48 = vadd.f32 %v6475_v61, %v6406_v23 }
 0xa6c   : > { %6479 = vst.msk [vmem:[%s271_s10] sm:$0xff] %vm4318_vm2, %v6476_v48 }
 0xa6d PF: > { %s14_s19 = sadd.s32 1, %s7901_s19   ;;  %s11661_s15 = smov %s7893_s17 }
 0xa6e   : > { %p11_p7 = scmp.ge.s32.totalorder %s14_s19, 20   ;;  %s11662_s16 = smov %s7897_s18 }
 0xa6f   : > { %s11663_s17 = smov %s11666_s20  ;;  %s11664_s18 = smov %s11670_s21 }
 0xa70   :  { %13 = sbr.rel (!%p11_p7) target bundleno = 3 (0x3), region = 76 }

</bundles_post_ra>
